<compile_context>
chip_gen: v5e
topology: v5e:2x2
jax: 0.10.0
libtpu: 0.0.40
codegen_flags: <defaults>
</compile_context>

<pallas_src>
import jax
import jax.numpy as jnp
from jax.experimental import pallas as pl
from jax.experimental.pallas import tpu as pltpu

# ---- scaled-down hyperparameters (module uses 384/128/8/8; small & consistent) ----
N_EMBD = 128          # n_embd
BLOCK_SIZE = 16       # block_size (max context)
N_HEAD = 4            # n_head
N_LAYER = 2           # n_layer
HEAD_SIZE = N_EMBD // N_HEAD
VOCAB_SIZE = 128      # len(chars) is 0 in the snippet; pick a small synthetic vocab
LN_EPS = 1e-5
BATCH = 8             # BT = BATCH * BLOCK_SIZE = 128 -> full MXU M tile on v5e


def _layernorm(x, gamma, beta):
    # x: (R, C); gamma/beta: (1, C). Biased variance, like nn.LayerNorm. f32 math.
    mean = jnp.mean(x, axis=-1, keepdims=True)
    var = jnp.mean(jnp.square(x - mean), axis=-1, keepdims=True)
    inv = jax.lax.rsqrt(var + LN_EPS)
    return (x - mean) * inv * gamma + beta


# --------------------------- fused full-forward kernel ---------------------------
def gpt_fused_kernel(x_ref, mask_ref,
                     w_in_ref, w2_ref, vec_ref, b1_ref,
                     lnfg_ref, lnfb_ref, wlm_ref, blm_ref,
                     out_ref, x_vmem):
    l = pl.program_id(0)                      # layer index (sequential grid axis)
    T = mask_ref.shape[0]
    BT, C = x_vmem.shape
    B = BT // T
    D = HEAD_SIZE

    # Load the embedding-sum activation once; afterwards x lives in VMEM scratch.
    @pl.when(l == 0)
    def _():
        x_vmem[...] = x_ref[...]

    x = x_vmem[...]                           # (BT, C) f32, lane-dense slab
    mask = mask_ref[...]                      # (T, T) additive causal mask (0 / -1e30)

    # Packed per-layer small vectors (one DMA): rows = bproj, ln1g, ln1b, b2, ln2g, ln2b
    vec = vec_ref[0]                          # (6, C) f32
    bproj, ln1g, ln1b = vec[0:1], vec[1:2], vec[2:3]
    b2, ln2g, ln2b = vec[3:4], vec[4:5], vec[5:6]
    b1 = b1_ref[0]                            # (1, 4C) f32

    xb = x.astype(jnp.bfloat16)

    # Fused QKV projection (one bf16 MXU matmul). The 1/sqrt(head_size) score
    # scale is already folded into the Q columns at pack time.
    qkv = jnp.dot(xb, w_in_ref[0, :, :3 * C],
                  preferred_element_type=jnp.float32)          # (BT, 3C) f32
    qkv_b = qkv.astype(jnp.bfloat16)

    # Per-head attention with the output projection fused into the loop:
    #   concat_h(o_h) @ Wproj == sum_h o_h @ Wproj[h*D:(h+1)*D, :]
    # -> no (BT, C) attention slab, no masked 32-lane column stores.
    sa = jnp.zeros((BT, C), jnp.float32)
    for h in range(N_HEAD):                   # static unrolled head loop
        lo = h * D
        qh = qkv_b[:, lo:lo + D].reshape(B, T, D)
        kh = qkv_b[:, C + lo:C + lo + D].reshape(B, T, D)
        vh = qkv_b[:, 2 * C + lo:2 * C + lo + D].reshape(B, T, D)

        s = jnp.einsum("bqd,bkd->bqk", qh, kh,
                       preferred_element_type=jnp.float32)     # (B, T, T) f32
        s = s + mask[None, :, :]
        s = s - s.max(axis=-1, keepdims=True)
        p = jnp.exp(s)
        # Exact division keeps the strict reference check tight.
        # TODO(synk): use pl.reciprocal(denom, approx=True) (EUP slot) when the
        #             accuracy budget allows.
        p = p / p.sum(axis=-1, keepdims=True)
        # dropout(p) -> identity (eval)
        oh = jnp.einsum("bqk,bkd->bqd", p.astype(jnp.bfloat16), vh,
                        preferred_element_type=jnp.float32)    # (B, T, D) f32
        sa = sa + jnp.dot(oh.reshape(BT, D).astype(jnp.bfloat16),
                          w_in_ref[0, lo:lo + D, 3 * C:4 * C],
                          preferred_element_type=jnp.float32)
    sa = sa + bproj
    # dropout(sa) -> identity (eval)

    x1 = _layernorm(x + sa, ln1g, ln1b)

    hid = jnp.maximum(
        jnp.dot(x1.astype(jnp.bfloat16), w_in_ref[0, :, 4 * C:],
                preferred_element_type=jnp.float32) + b1, 0.0)
    ff = jnp.dot(hid.astype(jnp.bfloat16), w2_ref[0],
                 preferred_element_type=jnp.float32) + b2
    # dropout(ff) -> identity (eval)

    x2 = _layernorm(x1 + ff, ln2g, ln2b)
    x_vmem[...] = x2                          # carry to next layer iteration

    # Final ln_f + lm_head on the last layer iteration; output stays VMEM-resident
    # across the grid and is written back to HBM once.
    @pl.when(l == pl.num_programs(0) - 1)
    def _():
        xf = _layernorm(x2, lnfg_ref[...], lnfb_ref[...])
        out_ref[...] = (jnp.dot(xf.astype(jnp.bfloat16), wlm_ref[...],
                                preferred_element_type=jnp.float32)
                        + blm_ref[...]).astype(out_ref.dtype)


# --------------------------- wrapper ---------------------------
def gpt_forward(packed, index):
    """index: (B, T) int32 token ids. Returns logits (B, T, VOCAB_SIZE)."""
    B, T = index.shape
    C, V, L = N_EMBD, VOCAB_SIZE, N_LAYER
    BT = B * T

    # embedding gathers: plain JAX glue
    tok = packed["tok_emb"][index]                          # (B, T, C)
    pos = packed["pos_emb"][:T]                             # (T, C)
    x = (tok + pos[None]).astype(jnp.float32).reshape(BT, C)

    # additive causal mask built once (0 where allowed, -1e30 where masked)
    row = jax.lax.broadcasted_iota(jnp.int32, (T, T), 0)
    col = jax.lax.broadcasted_iota(jnp.int32, (T, T), 1)
    mask = jnp.where(col <= row, 0.0, -1e30).astype(jnp.float32)

    def per_layer(block_shape):
        return pl.BlockSpec(block_shape,
                            lambda l, _n=len(block_shape): (l,) + (0,) * (_n - 1))

    def resident(block_shape):
        return pl.BlockSpec(block_shape,
                            lambda l, _n=len(block_shape): (0,) * _n)

    logits = pl.pallas_call(
        gpt_fused_kernel,
        out_shape=jax.ShapeDtypeStruct((BT, V), jnp.float32),
        grid=(L,),
        in_specs=[
            resident((BT, C)),                  # x slab (fetched once)
            resident((T, T)),                   # causal mask (fetched once)
            per_layer((1, C, 8 * C)),           # [wqkv | wproj | w1]  bf16, one DMA
            per_layer((1, 4 * C, C)),           # ffn w2               bf16
            per_layer((1, 6, C)),               # packed small vectors f32
            per_layer((1, 1, 4 * C)),           # ffn b1               f32
            resident((1, C)),                   # ln_f gamma
            resident((1, C)),                   # ln_f beta
            resident((C, V)),                   # lm_head weight (bf16, pre-transposed)
            resident((1, V)),                   # lm_head bias
        ],
        out_specs=resident((BT, V)),
        scratch_shapes=[pltpu.VMEM((BT, C), jnp.float32)],   # resident activation
        compiler_params=pltpu.CompilerParams(
            # layer axis carries the resident activation -> must be sequential.
            dimension_semantics=("arbitrary",),
            # Explicit scoped-VMEM limit: v5e default is only 16 MiB; on v7x
            # (64 MiB/TC physical) keep per-layer bf16 streaming and ~48-56 MiB.
            vmem_limit_bytes=48 * 1024 * 1024,
        ),
    )(x, mask,
      packed["w_in"], packed["w2"], packed["vec"], packed["b1"],
      packed["ln_f_g"], packed["ln_f_b"], packed["wlm"], packed["blm"])
    return logits.reshape(B, T, V)


# --------------------------- parameter construction ---------------------------
def init_params(key):
    """Torch-semantics f32 parameters (std=0.02 normals, zero biases, unit LN)."""
    def normal(k, shape):
        return 0.02 * jax.random.normal(k, shape, dtype=jnp.float32)

    C, V, L = N_EMBD, VOCAB_SIZE, N_LAYER
    keys = iter(jax.random.split(key, 3 + 4 * L))
    params = {
        "tok_emb": normal(next(keys), (V, C)),
        "pos_emb": normal(next(keys), (BLOCK_SIZE, C)),
        "ln_f_g": jnp.ones((C,), jnp.float32),
        "ln_f_b": jnp.zeros((C,), jnp.float32),
        "wlm": normal(next(keys), (C, V)),       # pre-transposed (in, out)
        "blm": jnp.zeros((V,), jnp.float32),
        "layers": [],
    }
    for _ in range(L):
        params["layers"].append({
            # fused [q|k|v] columns; each (C, C) block is the concat of per-head
            # (C, head_size) no-bias linears, matching torch.cat over heads.
            "wqkv": normal(next(keys), (C, 3 * C)),
            "wproj": normal(next(keys), (C, C)),
            "bproj": jnp.zeros((C,), jnp.float32),
            "ln1g": jnp.ones((C,), jnp.float32),
            "ln1b": jnp.zeros((C,), jnp.float32),
            "w1": normal(next(keys), (C, 4 * C)),
            "b1": jnp.zeros((4 * C,), jnp.float32),
            "w2": normal(next(keys), (4 * C, C)),
            "b2": jnp.zeros((C,), jnp.float32),
            "ln2g": jnp.ones((C,), jnp.float32),
            "ln2b": jnp.zeros((C,), jnp.float32),
        })
    return params


def pack_params(params):
    """One-time kernel-ready packing: big weights -> bf16 stacked slabs, small
    per-layer vectors -> one (L, 6, C) tensor, attention scale folded into Wq."""
    C = N_EMBD
    scale = HEAD_SIZE ** -0.5
    w_in, w2, vec, b1 = [], [], [], []
    for lp in params["layers"]:
        wqkv = jnp.concatenate([lp["wqkv"][:, :C] * scale,   # fold score scale into Q
                                lp["wqkv"][:, C:]], axis=1)
        w_in.append(jnp.concatenate([wqkv, lp["wproj"], lp["w1"]], axis=1))  # (C, 8C)
        w2.append(lp["w2"])
        vec.append(jnp.stack([lp["bproj"], lp["ln1g"], lp["ln1b"],
                              lp["b2"], lp["ln2g"], lp["ln2b"]], axis=0))     # (6, C)
        b1.append(lp["b1"][None, :])                                          # (1, 4C)
    return {
        "tok_emb": params["tok_emb"],
        "pos_emb": params["pos_emb"],
        "w_in": jnp.stack(w_in).astype(jnp.bfloat16),   # (L, C, 8C)  bf16 streaming
        "w2": jnp.stack(w2).astype(jnp.bfloat16),       # (L, 4C, C)  bf16 streaming
        "vec": jnp.stack(vec),                          # (L, 6, C)   f32
        "b1": jnp.stack(b1),                            # (L, 1, 4C)  f32
        "ln_f_g": params["ln_f_g"][None, :],            # (1, C)
        "ln_f_b": params["ln_f_b"][None, :],
        "wlm": params["wlm"].astype(jnp.bfloat16),      # (C, V) bf16
        "blm": params["blm"][None, :],                  # (1, V)
    }


# --------------------------- pure-JAX reference (sanity check) ---------------------------
def gpt_forward_ref(packed, index):
    """Mirrors the kernel's math exactly (same packed/bf16-rounded weights, bf16
    MXU inputs, f32 accumulation, f32 LN/softmax) so the check stays tight."""
    B, T = index.shape
    C, D, L = N_EMBD, HEAD_SIZE, N_LAYER
    BT = B * T
    x = (packed["tok_emb"][index] + packed["pos_emb"][:T][None]).astype(jnp.float32)
    x = x.reshape(BT, C)
    row = jax.lax.broadcasted_iota(jnp.int32, (T, T), 0)
    col = jax.lax.broadcasted_iota(jnp.int32, (T, T), 1)
    mask = jnp.where(col <= row, 0.0, -1e30).astype(jnp.float32)

    def ln(z, g, b):
        m = z.mean(-1, keepdims=True)
        v = ((z - m) ** 2).mean(-1, keepdims=True)
        return (z - m) * jax.lax.rsqrt(v + LN_EPS) * g + b

    for l in range(L):
        w_in = packed["w_in"][l]                          # (C, 8C) bf16
        vec = packed["vec"][l]
        bproj, ln1g, ln1b = vec[0:1], vec[1:2], vec[2:3]
        b2, ln2g, ln2b = vec[3:4], vec[4:5], vec[5:6]
        b1 = packed["b1"][l]

        qkv = jnp.dot(x.astype(jnp.bfloat16), w_in[:, :3 * C],
                      preferred_element_type=jnp.float32)
        qkv_b = qkv.astype(jnp.bfloat16)
        wproj = w_in[:, 3 * C:4 * C]
        sa = jnp.zeros((BT, C), jnp.float32)
        for h in range(N_HEAD):
            lo = h * D
            qh = qkv_b[:, lo:lo + D].reshape(B, T, D)
            kh = qkv_b[:, C + lo:C + lo + D].reshape(B, T, D)
            vh = qkv_b[:, 2 * C + lo:2 * C + lo + D].reshape(B, T, D)
            s = jnp.einsum("bqd,bkd->bqk", qh, kh, preferred_element_type=jnp.float32)
            s = s + mask[None]
            s = s - s.max(-1, keepdims=True)
            p = jnp.exp(s)
            p = p / p.sum(-1, keepdims=True)
            oh = jnp.einsum("bqk,bkd->bqd", p.astype(jnp.bfloat16), vh,
                            preferred_element_type=jnp.float32)
            sa = sa + jnp.dot(oh.reshape(BT, D).astype(jnp.bfloat16), wproj[lo:lo + D],
                              preferred_element_type=jnp.float32)
        sa = sa + bproj
        x1 = ln(x + sa, ln1g, ln1b)
        hid = jnp.maximum(jnp.dot(x1.astype(jnp.bfloat16), w_in[:, 4 * C:],
                                  preferred_element_type=jnp.float32) + b1, 0.0)
        ff = jnp.dot(hid.astype(jnp.bfloat16), packed["w2"][l],
                     preferred_element_type=jnp.float32) + b2
        x = ln(x1 + ff, ln2g, ln2b)

    xf = ln(x, packed["ln_f_g"], packed["ln_f_b"])
    logits = jnp.dot(xf.astype(jnp.bfloat16), packed["wlm"],
                     preferred_element_type=jnp.float32) + packed["blm"]
    return logits.reshape(B, T, VOCAB_SIZE)


if __name__ == "__main__":
    key = jax.random.PRNGKey(0)
    pkey, ikey = jax.random.split(key)
    params = init_params(pkey)
    packed = pack_params(params)

    B, T = BATCH, BLOCK_SIZE  # (8, 16) -> BT = 128 lane-dense slab
    index = jax.random.randint(ikey, (B, T), 0, VOCAB_SIZE, dtype=jnp.int32)

    logits = jax.block_until_ready(gpt_forward(packed, index))
    ref = gpt_forward_ref(packed, index)

    assert logits.shape == (B, T, VOCAB_SIZE)
    max_diff = float(jnp.max(jnp.abs(logits - ref)))
    assert jnp.allclose(logits, ref, atol=2e-3, rtol=2e-3), (
        f"mismatch vs JAX reference (max abs diff {max_diff})")

    # TODO(synk): cross-entropy loss path (targets != None) and autoregressive
    # generate() with multinomial sampling are host-side control flow; not kernelized.
    print("KERNEL_OK")
</pallas_src>

<mosaic_0001>
module attributes {stable_mosaic.version = 11 : i64} {
  func.func @gpt_fused_kernel(%arg0: i32, %arg1: memref<128x128xf32, #tpu.memory_space<vmem>>, %arg2: memref<16x16xf32, #tpu.memory_space<vmem>>, %arg3: memref<1x128x1024xbf16, #tpu.memory_space<vmem>>, %arg4: memref<1x512x128xbf16, #tpu.memory_space<vmem>>, %arg5: memref<1x6x128xf32, #tpu.memory_space<vmem>>, %arg6: memref<1x1x512xf32, #tpu.memory_space<vmem>>, %arg7: memref<1x128xf32, #tpu.memory_space<vmem>>, %arg8: memref<1x128xf32, #tpu.memory_space<vmem>>, %arg9: memref<128x128xbf16, #tpu.memory_space<vmem>>, %arg10: memref<1x128xf32, #tpu.memory_space<vmem>>, %arg11: memref<128x128xf32, #tpu.memory_space<vmem>>, %arg12: memref<128x128xf32, #tpu.memory_space<vmem>>) attributes {dimension_semantics = [#tpu.dimension_semantics<arbitrary>], iteration_bounds = array<i64: 2>, scalar_prefetch = 0 : i64, scratch_operands = 1 : i64, tpu.core_type = #tpu.core_type<tc>, window_params = [{pipeline_mode = #tpu.pipeline_mode<synchronous>, transform_indices = @transform_0, window_bounds = array<i64: 128, 128>}, {pipeline_mode = #tpu.pipeline_mode<synchronous>, transform_indices = @transform_1, window_bounds = array<i64: 16, 16>}, {transform_indices = @transform_2, window_bounds = array<i64: 1, 128, 1024>}, {transform_indices = @transform_3, window_bounds = array<i64: 1, 512, 128>}, {transform_indices = @transform_4, window_bounds = array<i64: 1, 6, 128>}, {transform_indices = @transform_5, window_bounds = array<i64: 1, 1, 512>}, {pipeline_mode = #tpu.pipeline_mode<synchronous>, transform_indices = @transform_6, window_bounds = array<i64: 1, 128>}, {pipeline_mode = #tpu.pipeline_mode<synchronous>, transform_indices = @transform_7, window_bounds = array<i64: 1, 128>}, {pipeline_mode = #tpu.pipeline_mode<synchronous>, transform_indices = @transform_8, window_bounds = array<i64: 128, 128>}, {pipeline_mode = #tpu.pipeline_mode<synchronous>, transform_indices = @transform_9, window_bounds = array<i64: 1, 128>}, {pipeline_mode = #tpu.pipeline_mode<synchronous>, transform_indices = @transform_10, window_bounds = array<i64: 128, 128>}]} {
    %c0_i32 = arith.constant 0 : i32
    %0 = arith.cmpi eq, %arg0, %c0_i32 : i32
    %1 = arith.extui %0 : i1 to i32
    %c0_i32_0 = arith.constant 0 : i32
    %2 = arith.cmpi ne, %1, %c0_i32_0 : i32
    scf.if %2 {
      %c0_63 = arith.constant 0 : index
      %c0_64 = arith.constant 0 : index
      %195 = vector.load %arg1[%c0_63, %c0_64] : memref<128x128xf32, #tpu.memory_space<vmem>>, vector<128x128xf32>
      %c0_65 = arith.constant 0 : index
      %c0_66 = arith.constant 0 : index
      %196 = vector.load %arg12[%c0_65, %c0_66] : memref<128x128xf32, #tpu.memory_space<vmem>>, vector<128x128xf32>
      tpu.vector_store %arg12[%c0_65, %c0_66], %195 {strides = array<i32>} : memref<128x128xf32, #tpu.memory_space<vmem>>, vector<128x128xf32>,
    } else {
    }
    %c0 = arith.constant 0 : index
    %c0_1 = arith.constant 0 : index
    %3 = vector.load %arg12[%c0, %c0_1] : memref<128x128xf32, #tpu.memory_space<vmem>>, vector<128x128xf32>
    %c0_2 = arith.constant 0 : index
    %c0_3 = arith.constant 0 : index
    %4 = vector.load %arg2[%c0_2, %c0_3] : memref<16x16xf32, #tpu.memory_space<vmem>>, vector<16x16xf32>
    %c0_4 = arith.constant 0 : index
    %c0_5 = arith.constant 0 : index
    %c0_6 = arith.constant 0 : index
    %5 = vector.load %arg5[%c0_4, %c0_5, %c0_6] : memref<1x6x128xf32, #tpu.memory_space<vmem>>, vector<1x6x128xf32>
    %6 = vector.shape_cast %5 : vector<1x6x128xf32> to vector<6x128xf32>
    %7 = vector.extract_strided_slice %6 {offsets = [0, 0], sizes = [1, 128], strides = [1, 1]} : vector<6x128xf32> to vector<1x128xf32>
    %8 = vector.extract_strided_slice %6 {offsets = [1, 0], sizes = [1, 128], strides = [1, 1]} : vector<6x128xf32> to vector<1x128xf32>
    %9 = vector.extract_strided_slice %6 {offsets = [2, 0], sizes = [1, 128], strides = [1, 1]} : vector<6x128xf32> to vector<1x128xf32>
    %10 = vector.extract_strided_slice %6 {offsets = [3, 0], sizes = [1, 128], strides = [1, 1]} : vector<6x128xf32> to vector<1x128xf32>
    %11 = vector.extract_strided_slice %6 {offsets = [4, 0], sizes = [1, 128], strides = [1, 1]} : vector<6x128xf32> to vector<1x128xf32>
    %12 = vector.extract_strided_slice %6 {offsets = [5, 0], sizes = [1, 128], strides = [1, 1]} : vector<6x128xf32> to vector<1x128xf32>
    %c0_7 = arith.constant 0 : index
    %c0_8 = arith.constant 0 : index
    %c0_9 = arith.constant 0 : index
    %13 = vector.load %arg6[%c0_7, %c0_8, %c0_9] : memref<1x1x512xf32, #tpu.memory_space<vmem>>, vector<1x1x512xf32>
    %14 = vector.shape_cast %13 : vector<1x1x512xf32> to vector<1x512xf32>
    %15 = arith.truncf %3 : vector<128x128xf32> to vector<128x128xbf16>
    %c0_10 = arith.constant 0 : index
    %c0_11 = arith.constant 0 : index
    %c0_12 = arith.constant 0 : index
    %16 = vector.load %arg3[%c0_10, %c0_11, %c0_12] : memref<1x128x1024xbf16, #tpu.memory_space<vmem>>, vector<1x128x384xbf16>
    %17 = vector.shape_cast %16 : vector<1x128x384xbf16> to vector<128x384xbf16>
    %cst = arith.constant dense<0.000000e+00> : vector<128x384xf32>
    %18 = tpu.matmul %15, %17, %cst {dimension_numbers = #tpu.dot_dimension_numbers<[1], [0], [0], [1], [0, 0, 1, 1], [], []>} : vector<128x128xbf16>, vector<128x384xbf16>, vector<128x384xf32> -> vector<128x384xf32>
    %19 = arith.truncf %18 : vector<128x384xf32> to vector<128x384xbf16>
    %cst_13 = arith.constant 0.000000e+00 : f32
    %20 = vector.broadcast %cst_13 : f32 to vector<128x128xf32>
    %21 = vector.extract_strided_slice %19 {offsets = [0, 0], sizes = [128, 32], strides = [1, 1]} : vector<128x384xbf16> to vector<128x32xbf16>
    %22 = vector.shape_cast %21 : vector<128x32xbf16> to vector<8x16x32xbf16>
    %23 = vector.extract_strided_slice %19 {offsets = [0, 128], sizes = [128, 32], strides = [1, 1]} : vector<128x384xbf16> to vector<128x32xbf16>
    %24 = vector.shape_cast %23 : vector<128x32xbf16> to vector<8x16x32xbf16>
    %25 = vector.extract_strided_slice %19 {offsets = [0, 256], sizes = [128, 32], strides = [1, 1]} : vector<128x384xbf16> to vector<128x32xbf16>
    %26 = vector.shape_cast %25 : vector<128x32xbf16> to vector<8x16x32xbf16>
    "tpu.trace_start"() <{level = 10 : i32, message = "bqd,bkd->bqk"}> : () -> ()
    %cst_14 = arith.constant dense<0.000000e+00> : vector<8x16x16xf32>
    %27 = tpu.matmul %22, %24, %cst_14 {dimension_numbers = #tpu.dot_dimension_numbers<[2], [2], [1], [1], [0, 0, 0, 1, 1, 1], [0], [0]>} : vector<8x16x32xbf16>, vector<8x16x32xbf16>, vector<8x16x16xf32> -> vector<8x16x16xf32>
    "tpu.trace_stop"() : () -> ()
    %28 = vector.shape_cast %4 : vector<16x16xf32> to vector<1x16x16xf32>
    %29 = vector.broadcast %28 : vector<1x16x16xf32> to vector<8x16x16xf32>
    %30 = arith.addf %27, %29 : vector<8x16x16xf32>
    %cst_15 = arith.constant dense<0xFF800000> : vector<8x16xf32>
    %31 = vector.multi_reduction <maximumf>, %30, %cst_15 [2] : vector<8x16x16xf32> to vector<8x16xf32>
    %32 = vector.shape_cast %31 : vector<8x16xf32> to vector<8x16x1xf32>
    %33 = vector.broadcast %32 : vector<8x16x1xf32> to vector<8x16x16xf32>
    %34 = arith.subf %30, %33 : vector<8x16x16xf32>
    %35 = math.exp %34 : vector<8x16x16xf32>
    %cst_16 = arith.constant dense<0.000000e+00> : vector<8x16xf32>
    %36 = vector.multi_reduction <add>, %35, %cst_16 [2] : vector<8x16x16xf32> to vector<8x16xf32>
    %37 = vector.shape_cast %36 : vector<8x16xf32> to vector<8x16x1xf32>
    %38 = vector.broadcast %37 : vector<8x16x1xf32> to vector<8x16x16xf32>
    %39 = arith.divf %35, %38 : vector<8x16x16xf32>
    %40 = arith.truncf %39 : vector<8x16x16xf32> to vector<8x16x16xbf16>
    "tpu.trace_start"() <{level = 10 : i32, message = "bqk,bkd->bqd"}> : () -> ()
    %cst_17 = arith.constant dense<0.000000e+00> : vector<8x16x32xf32>
    %41 = tpu.matmul %40, %26, %cst_17 {dimension_numbers = #tpu.dot_dimension_numbers<[2], [1], [1], [2], [0, 0, 0, 1, 1, 2], [0], [0]>} : vector<8x16x16xbf16>, vector<8x16x32xbf16>, vector<8x16x32xf32> -> vector<8x16x32xf32>
    "tpu.trace_stop"() : () -> ()
    %42 = vector.shape_cast %41 : vector<8x16x32xf32> to vector<128x32xf32>
    %43 = arith.truncf %42 : vector<128x32xf32> to vector<128x32xbf16>
    %c0_18 = arith.constant 0 : index
    %c0_19 = arith.constant 0 : index
    %c384 = arith.constant 384 : index
    %44 = vector.load %arg3[%c0_18, %c0_19, %c384] : memref<1x128x1024xbf16, #tpu.memory_space<vmem>>, vector<1x32x128xbf16>
    %45 = vector.shape_cast %44 : vector<1x32x128xbf16> to vector<32x128xbf16>
    %cst_20 = arith.constant dense<0.000000e+00> : vector<128x128xf32>
    %46 = tpu.matmul %43, %45, %cst_20 {dimension_numbers = #tpu.dot_dimension_numbers<[1], [0], [0], [1], [0, 0, 1, 1], [], []>} : vector<128x32xbf16>, vector<32x128xbf16>, vector<128x128xf32> -> vector<128x128xf32>
    %47 = arith.addf %20, %46 : vector<128x128xf32>
    %48 = vector.extract_strided_slice %19 {offsets = [0, 32], sizes = [128, 32], strides = [1, 1]} : vector<128x384xbf16> to vector<128x32xbf16>
    %49 = vector.shape_cast %48 : vector<128x32xbf16> to vector<8x16x32xbf16>
    %50 = vector.extract_strided_slice %19 {offsets = [0, 160], sizes = [128, 32], strides = [1, 1]} : vector<128x384xbf16> to vector<128x32xbf16>
    %51 = vector.shape_cast %50 : vector<128x32xbf16> to vector<8x16x32xbf16>
    %52 = vector.extract_strided_slice %19 {offsets = [0, 288], sizes = [128, 32], strides = [1, 1]} : vector<128x384xbf16> to vector<128x32xbf16>
    %53 = vector.shape_cast %52 : vector<128x32xbf16> to vector<8x16x32xbf16>
    "tpu.trace_start"() <{level = 10 : i32, message = "bqd,bkd->bqk"}> : () -> ()
    %cst_21 = arith.constant dense<0.000000e+00> : vector<8x16x16xf32>
    %54 = tpu.matmul %49, %51, %cst_21 {dimension_numbers = #tpu.dot_dimension_numbers<[2], [2], [1], [1], [0, 0, 0, 1, 1, 1], [0], [0]>} : vector<8x16x32xbf16>, vector<8x16x32xbf16>, vector<8x16x16xf32> -> vector<8x16x16xf32>
    "tpu.trace_stop"() : () -> ()
    %55 = vector.shape_cast %4 : vector<16x16xf32> to vector<1x16x16xf32>
    %56 = vector.broadcast %55 : vector<1x16x16xf32> to vector<8x16x16xf32>
    %57 = arith.addf %54, %56 : vector<8x16x16xf32>
    %cst_22 = arith.constant dense<0xFF800000> : vector<8x16xf32>
    %58 = vector.multi_reduction <maximumf>, %57, %cst_22 [2] : vector<8x16x16xf32> to vector<8x16xf32>
    %59 = vector.shape_cast %58 : vector<8x16xf32> to vector<8x16x1xf32>
    %60 = vector.broadcast %59 : vector<8x16x1xf32> to vector<8x16x16xf32>
    %61 = arith.subf %57, %60 : vector<8x16x16xf32>
    %62 = math.exp %61 : vector<8x16x16xf32>
    %cst_23 = arith.constant dense<0.000000e+00> : vector<8x16xf32>
    %63 = vector.multi_reduction <add>, %62, %cst_23 [2] : vector<8x16x16xf32> to vector<8x16xf32>
    %64 = vector.shape_cast %63 : vector<8x16xf32> to vector<8x16x1xf32>
    %65 = vector.broadcast %64 : vector<8x16x1xf32> to vector<8x16x16xf32>
    %66 = arith.divf %62, %65 : vector<8x16x16xf32>
    %67 = arith.truncf %66 : vector<8x16x16xf32> to vector<8x16x16xbf16>
    "tpu.trace_start"() <{level = 10 : i32, message = "bqk,bkd->bqd"}> : () -> ()
    %cst_24 = arith.constant dense<0.000000e+00> : vector<8x16x32xf32>
    %68 = tpu.matmul %67, %53, %cst_24 {dimension_numbers = #tpu.dot_dimension_numbers<[2], [1], [1], [2], [0, 0, 0, 1, 1, 2], [0], [0]>} : vector<8x16x16xbf16>, vector<8x16x32xbf16>, vector<8x16x32xf32> -> vector<8x16x32xf32>
    "tpu.trace_stop"() : () -> ()
    %69 = vector.shape_cast %68 : vector<8x16x32xf32> to vector<128x32xf32>
    %70 = arith.truncf %69 : vector<128x32xf32> to vector<128x32xbf16>
    %c0_25 = arith.constant 0 : index
    %c32 = arith.constant 32 : index
    %c384_26 = arith.constant 384 : index
    %71 = vector.load %arg3[%c0_25, %c32, %c384_26] : memref<1x128x1024xbf16, #tpu.memory_space<vmem>>, vector<1x32x128xbf16>
    %72 = vector.shape_cast %71 : vector<1x32x128xbf16> to vector<32x128xbf16>
    %cst_27 = arith.constant dense<0.000000e+00> : vector<128x128xf32>
    %73 = tpu.matmul %70, %72, %cst_27 {dimension_numbers = #tpu.dot_dimension_numbers<[1], [0], [0], [1], [0, 0, 1, 1], [], []>} : vector<128x32xbf16>, vector<32x128xbf16>, vector<128x128xf32> -> vector<128x128xf32>
    %74 = arith.addf %47, %73 : vector<128x128xf32>
    %75 = vector.extract_strided_slice %19 {offsets = [0, 64], sizes = [128, 32], strides = [1, 1]} : vector<128x384xbf16> to vector<128x32xbf16>
    %76 = vector.shape_cast %75 : vector<128x32xbf16> to vector<8x16x32xbf16>
    %77 = vector.extract_strided_slice %19 {offsets = [0, 192], sizes = [128, 32], strides = [1, 1]} : vector<128x384xbf16> to vector<128x32xbf16>
    %78 = vector.shape_cast %77 : vector<128x32xbf16> to vector<8x16x32xbf16>
    %79 = vector.extract_strided_slice %19 {offsets = [0, 320], sizes = [128, 32], strides = [1, 1]} : vector<128x384xbf16> to vector<128x32xbf16>
    %80 = vector.shape_cast %79 : vector<128x32xbf16> to vector<8x16x32xbf16>
    "tpu.trace_start"() <{level = 10 : i32, message = "bqd,bkd->bqk"}> : () -> ()
    %cst_28 = arith.constant dense<0.000000e+00> : vector<8x16x16xf32>
    %81 = tpu.matmul %76, %78, %cst_28 {dimension_numbers = #tpu.dot_dimension_numbers<[2], [2], [1], [1], [0, 0, 0, 1, 1, 1], [0], [0]>} : vector<8x16x32xbf16>, vector<8x16x32xbf16>, vector<8x16x16xf32> -> vector<8x16x16xf32>
    "tpu.trace_stop"() : () -> ()
    %82 = vector.shape_cast %4 : vector<16x16xf32> to vector<1x16x16xf32>
    %83 = vector.broadcast %82 : vector<1x16x16xf32> to vector<8x16x16xf32>
    %84 = arith.addf %81, %83 : vector<8x16x16xf32>
    %cst_29 = arith.constant dense<0xFF800000> : vector<8x16xf32>
    %85 = vector.multi_reduction <maximumf>, %84, %cst_29 [2] : vector<8x16x16xf32> to vector<8x16xf32>
    %86 = vector.shape_cast %85 : vector<8x16xf32> to vector<8x16x1xf32>
    %87 = vector.broadcast %86 : vector<8x16x1xf32> to vector<8x16x16xf32>
    %88 = arith.subf %84, %87 : vector<8x16x16xf32>
    %89 = math.exp %88 : vector<8x16x16xf32>
    %cst_30 = arith.constant dense<0.000000e+00> : vector<8x16xf32>
    %90 = vector.multi_reduction <add>, %89, %cst_30 [2] : vector<8x16x16xf32> to vector<8x16xf32>
    %91 = vector.shape_cast %90 : vector<8x16xf32> to vector<8x16x1xf32>
    %92 = vector.broadcast %91 : vector<8x16x1xf32> to vector<8x16x16xf32>
    %93 = arith.divf %89, %92 : vector<8x16x16xf32>
    %94 = arith.truncf %93 : vector<8x16x16xf32> to vector<8x16x16xbf16>
    "tpu.trace_start"() <{level = 10 : i32, message = "bqk,bkd->bqd"}> : () -> ()
    %cst_31 = arith.constant dense<0.000000e+00> : vector<8x16x32xf32>
    %95 = tpu.matmul %94, %80, %cst_31 {dimension_numbers = #tpu.dot_dimension_numbers<[2], [1], [1], [2], [0, 0, 0, 1, 1, 2], [0], [0]>} : vector<8x16x16xbf16>, vector<8x16x32xbf16>, vector<8x16x32xf32> -> vector<8x16x32xf32>
    "tpu.trace_stop"() : () -> ()
    %96 = vector.shape_cast %95 : vector<8x16x32xf32> to vector<128x32xf32>
    %97 = arith.truncf %96 : vector<128x32xf32> to vector<128x32xbf16>
    %c0_32 = arith.constant 0 : index
    %c64 = arith.constant 64 : index
    %c384_33 = arith.constant 384 : index
    %98 = vector.load %arg3[%c0_32, %c64, %c384_33] : memref<1x128x1024xbf16, #tpu.memory_space<vmem>>, vector<1x32x128xbf16>
    %99 = vector.shape_cast %98 : vector<1x32x128xbf16> to vector<32x128xbf16>
    %cst_34 = arith.constant dense<0.000000e+00> : vector<128x128xf32>
    %100 = tpu.matmul %97, %99, %cst_34 {dimension_numbers = #tpu.dot_dimension_numbers<[1], [0], [0], [1], [0, 0, 1, 1], [], []>} : vector<128x32xbf16>, vector<32x128xbf16>, vector<128x128xf32> -> vector<128x128xf32>
    %101 = arith.addf %74, %100 : vector<128x128xf32>
    %102 = vector.extract_strided_slice %19 {offsets = [0, 96], sizes = [128, 32], strides = [1, 1]} : vector<128x384xbf16> to vector<128x32xbf16>
    %103 = vector.shape_cast %102 : vector<128x32xbf16> to vector<8x16x32xbf16>
    %104 = vector.extract_strided_slice %19 {offsets = [0, 224], sizes = [128, 32], strides = [1, 1]} : vector<128x384xbf16> to vector<128x32xbf16>
    %105 = vector.shape_cast %104 : vector<128x32xbf16> to vector<8x16x32xbf16>
    %106 = vector.extract_strided_slice %19 {offsets = [0, 352], sizes = [128, 32], strides = [1, 1]} : vector<128x384xbf16> to vector<128x32xbf16>
    %107 = vector.shape_cast %106 : vector<128x32xbf16> to vector<8x16x32xbf16>
    "tpu.trace_start"() <{level = 10 : i32, message = "bqd,bkd->bqk"}> : () -> ()
    %cst_35 = arith.constant dense<0.000000e+00> : vector<8x16x16xf32>
    %108 = tpu.matmul %103, %105, %cst_35 {dimension_numbers = #tpu.dot_dimension_numbers<[2], [2], [1], [1], [0, 0, 0, 1, 1, 1], [0], [0]>} : vector<8x16x32xbf16>, vector<8x16x32xbf16>, vector<8x16x16xf32> -> vector<8x16x16xf32>
    "tpu.trace_stop"() : () -> ()
    %109 = vector.shape_cast %4 : vector<16x16xf32> to vector<1x16x16xf32>
    %110 = vector.broadcast %109 : vector<1x16x16xf32> to vector<8x16x16xf32>
    %111 = arith.addf %108, %110 : vector<8x16x16xf32>
    %cst_36 = arith.constant dense<0xFF800000> : vector<8x16xf32>
    %112 = vector.multi_reduction <maximumf>, %111, %cst_36 [2] : vector<8x16x16xf32> to vector<8x16xf32>
    %113 = vector.shape_cast %112 : vector<8x16xf32> to vector<8x16x1xf32>
    %114 = vector.broadcast %113 : vector<8x16x1xf32> to vector<8x16x16xf32>
    %115 = arith.subf %111, %114 : vector<8x16x16xf32>
    %116 = math.exp %115 : vector<8x16x16xf32>
    %cst_37 = arith.constant dense<0.000000e+00> : vector<8x16xf32>
    %117 = vector.multi_reduction <add>, %116, %cst_37 [2] : vector<8x16x16xf32> to vector<8x16xf32>
    %118 = vector.shape_cast %117 : vector<8x16xf32> to vector<8x16x1xf32>
    %119 = vector.broadcast %118 : vector<8x16x1xf32> to vector<8x16x16xf32>
    %120 = arith.divf %116, %119 : vector<8x16x16xf32>
    %121 = arith.truncf %120 : vector<8x16x16xf32> to vector<8x16x16xbf16>
    "tpu.trace_start"() <{level = 10 : i32, message = "bqk,bkd->bqd"}> : () -> ()
    %cst_38 = arith.constant dense<0.000000e+00> : vector<8x16x32xf32>
    %122 = tpu.matmul %121, %107, %cst_38 {dimension_numbers = #tpu.dot_dimension_numbers<[2], [1], [1], [2], [0, 0, 0, 1, 1, 2], [0], [0]>} : vector<8x16x16xbf16>, vector<8x16x32xbf16>, vector<8x16x32xf32> -> vector<8x16x32xf32>
    "tpu.trace_stop"() : () -> ()
    %123 = vector.shape_cast %122 : vector<8x16x32xf32> to vector<128x32xf32>
    %124 = arith.truncf %123 : vector<128x32xf32> to vector<128x32xbf16>
    %c0_39 = arith.constant 0 : index
    %c96 = arith.constant 96 : index
    %c384_40 = arith.constant 384 : index
    %125 = vector.load %arg3[%c0_39, %c96, %c384_40] : memref<1x128x1024xbf16, #tpu.memory_space<vmem>>, vector<1x32x128xbf16>
    %126 = vector.shape_cast %125 : vector<1x32x128xbf16> to vector<32x128xbf16>
    %cst_41 = arith.constant dense<0.000000e+00> : vector<128x128xf32>
    %127 = tpu.matmul %124, %126, %cst_41 {dimension_numbers = #tpu.dot_dimension_numbers<[1], [0], [0], [1], [0, 0, 1, 1], [], []>} : vector<128x32xbf16>, vector<32x128xbf16>, vector<128x128xf32> -> vector<128x128xf32>
    %128 = arith.addf %101, %127 : vector<128x128xf32>
    %129 = vector.broadcast %7 : vector<1x128xf32> to vector<128x128xf32>
    %130 = arith.addf %128, %129 : vector<128x128xf32>
    %131 = arith.addf %3, %130 : vector<128x128xf32>
    %cst_42 = arith.constant dense<0.000000e+00> : vector<128xf32>
    %132 = vector.multi_reduction <add>, %131, %cst_42 [1] : vector<128x128xf32> to vector<128xf32>
    %133 = vector.shape_cast %132 : vector<128xf32> to vector<128x1xf32>
    %cst_43 = arith.constant 1.280000e+02 : f32
    %134 = vector.broadcast %cst_43 : f32 to vector<128x1xf32>
    %135 = arith.divf %133, %134 : vector<128x1xf32>
    %136 = vector.broadcast %135 : vector<128x1xf32> to vector<128x128xf32>
    %137 = arith.subf %131, %136 : vector<128x128xf32>
    %138 = arith.mulf %137, %137 : vector<128x128xf32>
    %cst_44 = arith.constant dense<0.000000e+00> : vector<128xf32>
    %139 = vector.multi_reduction <add>, %138, %cst_44 [1] : vector<128x128xf32> to vector<128xf32>
    %140 = vector.shape_cast %139 : vector<128xf32> to vector<128x1xf32>
    %cst_45 = arith.constant 1.280000e+02 : f32
    %141 = vector.broadcast %cst_45 : f32 to vector<128x1xf32>
    %142 = arith.divf %140, %141 : vector<128x1xf32>
    %cst_46 = arith.constant 9.99999974E-6 : f32
    %143 = vector.broadcast %cst_46 : f32 to vector<128x1xf32>
    %144 = arith.addf %142, %143 : vector<128x1xf32>
    %145 = math.rsqrt %144 : vector<128x1xf32>
    %146 = vector.broadcast %135 : vector<128x1xf32> to vector<128x128xf32>
    %147 = arith.subf %131, %146 : vector<128x128xf32>
    %148 = vector.broadcast %145 : vector<128x1xf32> to vector<128x128xf32>
    %149 = arith.mulf %147, %148 : vector<128x128xf32>
    %150 = vector.broadcast %8 : vector<1x128xf32> to vector<128x128xf32>
    %151 = arith.mulf %149, %150 : vector<128x128xf32>
    %152 = vector.broadcast %9 : vector<1x128xf32> to vector<128x128xf32>
    %153 = arith.addf %151, %152 : vector<128x128xf32>
    %154 = arith.truncf %153 : vector<128x128xf32> to vector<128x128xbf16>
    %c0_47 = arith.constant 0 : index
    %c0_48 = arith.constant 0 : index
    %c512 = arith.constant 512 : index
    %155 = vector.load %arg3[%c0_47, %c0_48, %c512] : memref<1x128x1024xbf16, #tpu.memory_space<vmem>>, vector<1x128x512xbf16>
    %156 = vector.shape_cast %155 : vector<1x128x512xbf16> to vector<128x512xbf16>
    %cst_49 = arith.constant dense<0.000000e+00> : vector<128x512xf32>
    %157 = tpu.matmul %154, %156, %cst_49 {dimension_numbers = #tpu.dot_dimension_numbers<[1], [0], [0], [1], [0, 0, 1, 1], [], []>} : vector<128x128xbf16>, vector<128x512xbf16>, vector<128x512xf32> -> vector<128x512xf32>
    %158 = vector.broadcast %14 : vector<1x512xf32> to vector<128x512xf32>
    %159 = arith.addf %157, %158 : vector<128x512xf32>
    %cst_50 = arith.constant 0.000000e+00 : f32
    %160 = vector.broadcast %cst_50 : f32 to vector<128x512xf32>
    %161 = arith.maximumf %159, %160 : vector<128x512xf32>
    %162 = arith.truncf %161 : vector<128x512xf32> to vector<128x512xbf16>
    %c0_51 = arith.constant 0 : index
    %c0_52 = arith.constant 0 : index
    %c0_53 = arith.constant 0 : index
    %163 = vector.load %arg4[%c0_51, %c0_52, %c0_53] : memref<1x512x128xbf16, #tpu.memory_space<vmem>>, vector<1x512x128xbf16>
    %164 = vector.shape_cast %163 : vector<1x512x128xbf16> to vector<512x128xbf16>
    %cst_54 = arith.constant dense<0.000000e+00> : vector<128x128xf32>
    %165 = tpu.matmul %162, %164, %cst_54 {dimension_numbers = #tpu.dot_dimension_numbers<[1], [0], [0], [1], [0, 0, 1, 1], [], []>} : vector<128x512xbf16>, vector<512x128xbf16>, vector<128x128xf32> -> vector<128x128xf32>
    %166 = vector.broadcast %10 : vector<1x128xf32> to vector<128x128xf32>
    %167 = arith.addf %165, %166 : vector<128x128xf32>
    %168 = arith.addf %153, %167 : vector<128x128xf32>
    %cst_55 = arith.constant dense<0.000000e+00> : vector<128xf32>
    %169 = vector.multi_reduction <add>, %168, %cst_55 [1] : vector<128x128xf32> to vector<128xf32>
    %170 = vector.shape_cast %169 : vector<128xf32> to vector<128x1xf32>
    %cst_56 = arith.constant 1.280000e+02 : f32
    %171 = vector.broadcast %cst_56 : f32 to vector<128x1xf32>
    %172 = arith.divf %170, %171 : vector<128x1xf32>
    %173 = vector.broadcast %172 : vector<128x1xf32> to vector<128x128xf32>
    %174 = arith.subf %168, %173 : vector<128x128xf32>
    %175 = arith.mulf %174, %174 : vector<128x128xf32>
    %cst_57 = arith.constant dense<0.000000e+00> : vector<128xf32>
    %176 = vector.multi_reduction <add>, %175, %cst_57 [1] : vector<128x128xf32> to vector<128xf32>
    %177 = vector.shape_cast %176 : vector<128xf32> to vector<128x1xf32>
    %cst_58 = arith.constant 1.280000e+02 : f32
    %178 = vector.broadcast %cst_58 : f32 to vector<128x1xf32>
    %179 = arith.divf %177, %178 : vector<128x1xf32>
    %cst_59 = arith.constant 9.99999974E-6 : f32
    %180 = vector.broadcast %cst_59 : f32 to vector<128x1xf32>
    %181 = arith.addf %179, %180 : vector<128x1xf32>
    %182 = math.rsqrt %181 : vector<128x1xf32>
    %183 = vector.broadcast %172 : vector<128x1xf32> to vector<128x128xf32>
    %184 = arith.subf %168, %183 : vector<128x128xf32>
    %185 = vector.broadcast %182 : vector<128x1xf32> to vector<128x128xf32>
    %186 = arith.mulf %184, %185 : vector<128x128xf32>
    %187 = vector.broadcast %11 : vector<1x128xf32> to vector<128x128xf32>
    %188 = arith.mulf %186, %187 : vector<128x128xf32>
    %189 = vector.broadcast %12 : vector<1x128xf32> to vector<128x128xf32>
    %190 = arith.addf %188, %189 : vector<128x128xf32>
    %c0_60 = arith.constant 0 : index
    %c0_61 = arith.constant 0 : index
    %191 = vector.load %arg12[%c0_60, %c0_61] : memref<128x128xf32, #tpu.memory_space<vmem>>, vector<128x128xf32>
    tpu.vector_store %arg12[%c0_60, %c0_61], %190 {strides = array<i32>} : memref<128x128xf32, #tpu.memory_space<vmem>>, vector<128x128xf32>,
    %c1_i32 = arith.constant 1 : i32
    %192 = arith.cmpi eq, %arg0, %c1_i32 : i32
    %193 = arith.extui %192 : i1 to i32
    %c0_i32_62 = arith.constant 0 : i32
    %194 = arith.cmpi ne, %193, %c0_i32_62 : i32
    scf.if %194 {
      %c0_63 = arith.constant 0 : index
      %c0_64 = arith.constant 0 : index
      %195 = vector.load %arg7[%c0_63, %c0_64] : memref<1x128xf32, #tpu.memory_space<vmem>>, vector<1x128xf32>
      %c0_65 = arith.constant 0 : index
      %c0_66 = arith.constant 0 : index
      %196 = vector.load %arg8[%c0_65, %c0_66] : memref<1x128xf32, #tpu.memory_space<vmem>>, vector<1x128xf32>
      %cst_67 = arith.constant dense<0.000000e+00> : vector<128xf32>
      %197 = vector.multi_reduction <add>, %190, %cst_67 [1] : vector<128x128xf32> to vector<128xf32>
      %198 = vector.shape_cast %197 : vector<128xf32> to vector<128x1xf32>
      %cst_68 = arith.constant 1.280000e+02 : f32
      %199 = vector.broadcast %cst_68 : f32 to vector<128x1xf32>
      %200 = arith.divf %198, %199 : vector<128x1xf32>
      %201 = vector.broadcast %200 : vector<128x1xf32> to vector<128x128xf32>
      %202 = arith.subf %190, %201 : vector<128x128xf32>
      %203 = arith.mulf %202, %202 : vector<128x128xf32>
      %cst_69 = arith.constant dense<0.000000e+00> : vector<128xf32>
      %204 = vector.multi_reduction <add>, %203, %cst_69 [1] : vector<128x128xf32> to vector<128xf32>
      %205 = vector.shape_cast %204 : vector<128xf32> to vector<128x1xf32>
      %cst_70 = arith.constant 1.280000e+02 : f32
      %206 = vector.broadcast %cst_70 : f32 to vector<128x1xf32>
      %207 = arith.divf %205, %206 : vector<128x1xf32>
      %cst_71 = arith.constant 9.99999974E-6 : f32
      %208 = vector.broadcast %cst_71 : f32 to vector<128x1xf32>
      %209 = arith.addf %207, %208 : vector<128x1xf32>
      %210 = math.rsqrt %209 : vector<128x1xf32>
      %211 = vector.broadcast %200 : vector<128x1xf32> to vector<128x128xf32>
      %212 = arith.subf %190, %211 : vector<128x128xf32>
      %213 = vector.broadcast %210 : vector<128x1xf32> to vector<128x128xf32>
      %214 = arith.mulf %212, %213 : vector<128x128xf32>
      %215 = vector.broadcast %195 : vector<1x128xf32> to vector<128x128xf32>
      %216 = arith.mulf %214, %215 : vector<128x128xf32>
      %217 = vector.broadcast %196 : vector<1x128xf32> to vector<128x128xf32>
      %218 = arith.addf %216, %217 : vector<128x128xf32>
      %219 = arith.truncf %218 : vector<128x128xf32> to vector<128x128xbf16>
      %c0_72 = arith.constant 0 : index
      %c0_73 = arith.constant 0 : index
      %220 = vector.load %arg9[%c0_72, %c0_73] : memref<128x128xbf16, #tpu.memory_space<vmem>>, vector<128x128xbf16>
      %cst_74 = arith.constant dense<0.000000e+00> : vector<128x128xf32>
      %221 = tpu.matmul %219, %220, %cst_74 {dimension_numbers = #tpu.dot_dimension_numbers<[1], [0], [0], [1], [0, 0, 1, 1], [], []>} : vector<128x128xbf16>, vector<128x128xbf16>, vector<128x128xf32> -> vector<128x128xf32>
      %c0_75 = arith.constant 0 : index
      %c0_76 = arith.constant 0 : index
      %222 = vector.load %arg10[%c0_75, %c0_76] : memref<1x128xf32, #tpu.memory_space<vmem>>, vector<1x128xf32>
      %223 = vector.broadcast %222 : vector<1x128xf32> to vector<128x128xf32>
      %224 = arith.addf %221, %223 : vector<128x128xf32>
      %c0_77 = arith.constant 0 : index
      %c0_78 = arith.constant 0 : index
      %225 = vector.load %arg11[%c0_77, %c0_78] : memref<128x128xf32, #tpu.memory_space<vmem>>, vector<128x128xf32>
      tpu.vector_store %arg11[%c0_77, %c0_78], %224 {strides = array<i32>} : memref<128x128xf32, #tpu.memory_space<vmem>>, vector<128x128xf32>,
    } else {
    }
    return
  }
  func.func @transform_0(%arg0: i32) -> (i32, i32) {
    %c0_i32 = arith.constant 0 : i32
    %c0_i32_0 = arith.constant 0 : i32
    %c0_i32_1 = arith.constant 0 : i32
    return %c0_i32, %c0_i32_0 : i32, i32
  }
  func.func @transform_1(%arg0: i32) -> (i32, i32) {
    %c0_i32 = arith.constant 0 : i32
    %c0_i32_0 = arith.constant 0 : i32
    %c0_i32_1 = arith.constant 0 : i32
    return %c0_i32, %c0_i32_0 : i32, i32
  }
  func.func @transform_2(%arg0: i32) -> (i32, i32, i32) {
    %c0_i32 = arith.constant 0 : i32
    %c0_i32_0 = arith.constant 0 : i32
    %c0_i32_1 = arith.constant 0 : i32
    return %arg0, %c0_i32, %c0_i32_0 : i32, i32, i32
  }
  func.func @transform_3(%arg0: i32) -> (i32, i32, i32) {
    %c0_i32 = arith.constant 0 : i32
    %c0_i32_0 = arith.constant 0 : i32
    %c0_i32_1 = arith.constant 0 : i32
    return %arg0, %c0_i32, %c0_i32_0 : i32, i32, i32
  }
  func.func @transform_4(%arg0: i32) -> (i32, i32, i32) {
    %c0_i32 = arith.constant 0 : i32
    %c0_i32_0 = arith.constant 0 : i32
    %c0_i32_1 = arith.constant 0 : i32
    return %arg0, %c0_i32, %c0_i32_0 : i32, i32, i32
  }
  func.func @transform_5(%arg0: i32) -> (i32, i32, i32) {
    %c0_i32 = arith.constant 0 : i32
    %c0_i32_0 = arith.constant 0 : i32
    %c0_i32_1 = arith.constant 0 : i32
    return %arg0, %c0_i32, %c0_i32_0 : i32, i32, i32
  }
  func.func @transform_6(%arg0: i32) -> (i32, i32) {
    %c0_i32 = arith.constant 0 : i32
    %c0_i32_0 = arith.constant 0 : i32
    %c0_i32_1 = arith.constant 0 : i32
    return %c0_i32, %c0_i32_0 : i32, i32
  }
  func.func @transform_7(%arg0: i32) -> (i32, i32) {
    %c0_i32 = arith.constant 0 : i32
    %c0_i32_0 = arith.constant 0 : i32
    %c0_i32_1 = arith.constant 0 : i32
    return %c0_i32, %c0_i32_0 : i32, i32
  }
  func.func @transform_8(%arg0: i32) -> (i32, i32) {
    %c0_i32 = arith.constant 0 : i32
    %c0_i32_0 = arith.constant 0 : i32
    %c0_i32_1 = arith.constant 0 : i32
    return %c0_i32, %c0_i32_0 : i32, i32
  }
  func.func @transform_9(%arg0: i32) -> (i32, i32) {
    %c0_i32 = arith.constant 0 : i32
    %c0_i32_0 = arith.constant 0 : i32
    %c0_i32_1 = arith.constant 0 : i32
    return %c0_i32, %c0_i32_0 : i32, i32
  }
  func.func @transform_10(%arg0: i32) -> (i32, i32) {
    %c0_i32 = arith.constant 0 : i32
    %c0_i32_0 = arith.constant 0 : i32
    %c0_i32_1 = arith.constant 0 : i32
    return %c0_i32, %c0_i32_0 : i32, i32
  }
}

</mosaic_0001>

<bundles_post_ra>
// kernel: tpu_custom_call.1
= control target key start
LH: loop header
LB: loop body
LE: loop exit
PB: predicated region body
PF: predicated region fallthrough
CT: control target
= control target key end

     0   :  { %s12078_s0 = inlined_call_operand.hbm [shape: f32[128,128], index: 0, kind: input, shape index: {}]   ;;  %s12079_s1 = inlined_call_operand.vmem [shape: f32[16,16], index: 1, kind: input, shape index: {}]   ;;  %s12080_s2 = inlined_call_operand.hbm [shape: bf16[2,128,1024], index: 2, kind: input, shape index: {}]   ;;  %s12081_s3 = inlined_call_operand.hbm [shape: bf16[2,512,128], index: 3, kind: input, shape index: {}]   ;;  %s12082_s4 = inlined_call_operand.vmem [shape: f32[2,6,128], index: 4, kind: input, shape index: {}]   ;;  %s12083_s5 = inlined_call_operand.vmem [shape: f32[2,1,512], index: 5, kind: input, shape index: {}]   ;;  %s12084_s6 = inlined_call_operand.vmem [shape: f32[1,128], index: 6, kind: input, shape index: {}]   ;;  %s12085_s7 = inlined_call_operand.vmem [shape: f32[1,128], index: 7, kind: input, shape index: {}]   ;;  %s12086_s8 = inlined_call_operand.hbm [shape: bf16[128,128], index: 8, kind: input, shape index: {}]   ;;  %s12087_s9 = inlined_call_operand.vmem [shape: f32[1,128], index: 9, kind: input, shape index: {}]   ;;  %s12088_s10 = inlined_call_operand.hbm [shape: f32[128,128], index: 10, kind: output, shape index: {}]  }
   0x1   :  { %12148 = sst [smem:[#allocation60_spill]] %s12078_s0 }
   0x2   :  { %12149 = sst [smem:[#allocation61_spill]] %s12080_s2 }
   0x3   :  { %12150 = sst [smem:[#allocation62_spill]] %s12087_s9 }
   0x4   :  { %12151 = sst [smem:[#allocation63_spill]] %s12088_s10 }
   0x5   :  { %15 = vsyncpa [#allocation4], 0 }
   0x6   :  { %16 = vsyncpa [#allocation7], 0 }
   0x7   :  { %18 = vsyncpa [#allocation7 + $0x1], 0 }
   0x8   :  { %19 = vsyncpa [#allocation10], 0 }
   0x9   :  { %20 = vsyncpa [#allocation5], 0  ;;  %s8487_s13 = smov 0   ;;  %s8489_s14 = smov 0  }
   0xa   :  { %s8491_s15 = smov 0   ;;  %s8493_s16 = smov 0  }
   0xb LB: > { %12152 = sst [smem:[#allocation16_spill]] %s8411_s15  ;;  %s8508_s17 = sadd.s32 1, %s8415_s16   ;;  %s8415_s16 = sphi %s8493_s16, %s12372_s16   ;;  %s8411_s15 = sphi %s8491_s15, %s12374_s15   ;;  %s8407_s14 = sphi %s8489_s14, %s12376_s14   ;;  %s8403_s13 = sphi %s8487_s13, %s12375_s13  }
   0xc   : > { %12153 = sst [smem:[#allocation17_spill]] %s8508_s17  ;;  %s75_s18 = sadd.s32 1, %s8411_s15 }
   0xd   : > { %s72_s19 = ssub.s32 %s8415_s16, %s8508_s17  ;;  %p82_p0 = scmp.ne.s32.totalorder %s8411_s15, %s8407_s14 }
   0xe   : > { %p73_p1 = scmp.eq.s32.totalorder %s72_s19, 0  ;;  %p83_p2 = scmp.eq.s32.totalorder %s8415_s16, 0 }
   0xf   : > { %p7789_p3 = scmp.lt.s32.totalorder %s8415_s16, 2  ;;  %s335_s21 = sand.u32 1, %s8415_s16  }
  0x10   : > { %s8518_s20 = scalar_select %p73_p1, %s8411_s15, %s75_s18  }
  0x11   : > { %p84_p4 = por %p83_p2, %p82_p0  ;;  %s337_s22 = sand.u32 1, %s8411_s15  }
  0x12   : > { %12154 = sst [smem:[#allocation18_spill]] %s8518_s20  ;;  %s7080_s23 = sshll.u32 %s337_s22, 9 }
  0x13   : > { %s7611_s24 = sshll.u32 %s8415_s16, 9  ;;  %s12155_s2 = sld [smem:[#allocation61_spill]] }
  0x14   : > { %s339_s29 = scalar_lea.vmem [#allocation6], %s7080_s23  ;;  %p8528_p5 = pnand %p7789_p3, %p84_p4 }
  0x15   : > { %s347_s30 = sshll.u32 %s339_s29, 4  ;;  %s7083_s12 = sshll.u32 %s337_s22, 8  ;;  %s348_s30 = int_to_ptr.vmem [resolvable:$true] %s347_s30 }
  0x16   : > { %s8532_s18 = scalar_lea.sflag [#allocation7], %s335_s21  ;;  %p8225_p7 = pneg %p8528_p5 }
  0x19   : > { %s344_s27 = scalar_lea.hbm %s12155_s2, %s7611_s24  ;;  %s8228_s25 = scalar_lea.hbm %s12155_s2, 1024 }
  0x1a   : > { %s345_s28 = sshll.u32 %s344_s27, 4  ;;  %s346_s28 = int_to_ptr.hbm [resolvable:$true] %s345_s28 }
  0x1b   : > { %s8221_s19 = sshra.s32 %s346_s28, 4  ;;  %s8222_s19 = int_to_ptr.hbm [resolvable:$true] %s8221_s19 }
  0x1c   : > { %s8223_s20 = scalar_lea.hbm %s8222_s19, 512  ;;  %p8229_p10 = scmp.lt.s32.totalorder %s8222_s19, %s12155_s2 }
  0x1d   : > { %p8224_p6 = scmp.ne.s32.totalorder %s8222_s19, %s8223_s20  ;;  %p8230_p11 = scmp.lt.s32.totalorder %s8228_s25, %s8223_s20 }
  0x1f   : > { %p8226_p8 = pnand %p8225_p7, %p8224_p6  ;;  %p8231_p12 = por %p8230_p11, %p8229_p10 }
  0x21   : > { %p8227_p9 = pneg %p8226_p8 }
  0x23   : > { %p8232_p13 = pnand %p8231_p12, %p8227_p9 }
  0x25   : > { %8235 = shalt.err (!%p8232_p13)
}
  0x26   : > { %s8417_s21 = smov 512   ;;  %s8418_s22 = smov 32  }
  0x27   : > { %7783 = dma.hbm_to_vmem [thread:$0]  (!%p8528_p5), %s346_s28, 8192, %s348_s30, %s8532_s18, %s8417_s21, %s8417_s21, %s8418_s22  }
  0x28   : > { %s361_s29 = scalar_lea.vmem [#allocation8], %s7083_s12  ;;  %s8551_s24 = sadd.s32 4294967295, %s8415_s16  }
  0x29   : > { %s8548_s23 = sshll.u32 %s361_s29, 4  ;;  %p88_p0 = scmp.ne.s32.totalorder %s8407_s14, %s8403_s13  ;;  %s370_s23 = int_to_ptr.vmem [resolvable:$true] %s8548_s23 }
  0x2a   : > { %p89_p1 = scmp.eq.s32.totalorder %s8551_s24, 0  ;;  %p7076_p2 = scmp.ge.s32.totalorder %s8415_s16, 1 }
  0x2b   : > { %p282_p3 = scmp.lt.s32.totalorder %s8415_s16, 3  ;;  %p7077_p6 = scmp.ne.s32.totalorder %s8551_s24, 0 }
  0x2c   : > { %p8560_p4 = por %p89_p1, %p88_p0  ;;  %s12159_s0 = sld [smem:[#allocation60_spill]] }
  0x2d   : > { %p8565_p8 = pnand %p7076_p2, %p282_p3  ;;  %s8419_s13 = smov [#allocation3]  }
  0x2e   : > { %s295_s25 = sshll.u32 %s8419_s13, 4  ;;  %s316_s21 = sshll.u32 %s12086_s8, 4  ;;  %s296_s25 = int_to_ptr.vmem [resolvable:$true] %s295_s25  ;;  %s317_s21 = int_to_ptr.hbm [resolvable:$true] %s316_s21 }
  0x2f   : > { %p7773_p9 = pneg %p8565_p8  ;;  %s8420_s22 = smov 128  }
  0x30   : > { %s8421_s29 = smov 8   ;;  %s8422_s30 = smov [#allocation9]  }
  0x31   : > { %p7774_p10 = pnand %p7773_p9, %p89_p1  ;;  %s318_s12 = sshll.u32 %s8422_s30, 4  ;;  %s319_s12 = int_to_ptr.vmem [resolvable:$true] %s318_s12 }
  0x32   : > { %s293_s19 = sshll.u32 %s12159_s0, 4  ;;  %s8423_s0 = smov 64   ;;  %s294_s19 = int_to_ptr.hbm [resolvable:$true] %s293_s19 }
  0x33   : > { %7776 = dma.hbm_to_vmem [thread:$0]  (!%p7774_p10), %s294_s19, 2048, %s296_s25, [#allocation4], %s8420_s22, %s8420_s22, %s8421_s29  }
  0x34   : > { %s8424_s2 = smov 4   ;;  %s7612_s13 = sshll.u32 %s8415_s16, 8 }
  0x35   : > { %7779 = dma.hbm_to_vmem [thread:$0]  (!%p7774_p10), %s317_s21, 1024, %s319_s12, [#allocation10], %s8423_s0, %s8423_s0, %s8424_s2  }
  0x36   : > { %s366_s10 = scalar_lea.hbm %s12081_s3, %s7612_s13  ;;  %s8318_s21 = scalar_lea.hbm %s12081_s3, 512 }
  0x37   : > { %s367_s9 = sshll.u32 %s366_s10, 4  ;;  %s368_s9 = int_to_ptr.hbm [resolvable:$true] %s367_s9 }
  0x38   : > { %s8311_s26 = sshra.s32 %s368_s9, 4  ;;  %s8312_s26 = int_to_ptr.hbm [resolvable:$true] %s8311_s26 }
  0x39   : > { %s8313_s27 = scalar_lea.hbm %s8312_s26, 256  ;;  %p8319_p0 = scmp.lt.s32.totalorder %s8312_s26, %s12081_s3 }
  0x3a   : > { %p8314_p11 = scmp.ne.s32.totalorder %s8312_s26, %s8313_s27  ;;  %p8320_p2 = scmp.lt.s32.totalorder %s8318_s21, %s8313_s27 }
  0x3c   : > { %p8316_p12 = pnand %p8314_p11, %p8225_p7  ;;  %p8321_p3 = por %p8320_p2, %p8319_p0 }
  0x3e   : > { %p8317_p13 = pneg %p8316_p12 }
  0x40   : > { %p8322_p9 = pnand %p8321_p3, %p8317_p13 }
  0x42   : > { %8325 = shalt.err (!%p8322_p9)
}
  0x43   : > { %7786 = dma.hbm_to_vmem [thread:$0]  (!%p8528_p5), %s368_s9, 4096, %s370_s23, %s8532_s18, %s8423_s0, %s8423_s0, %s8424_s2  }
  0x44   : > { %395 = sbr.rel (%p8565_p8) target bundleno = 4246 (0x1096), region = 60 }
  0x49   : > { %8386 = dma.done.wait (%p89_p1), [#allocation4], 2048  }
  0x4a   : > { %8388 = vsyncadd (%p89_p1), [#allocation4], 4294965248  ;;  %s402_s10 = sand.u32 1, %s8551_s24   ;;  %s404_s15 = sand.u32 1, %s8407_s14  }
  0x4b   : > { %s7088_s17 = sshll.u32 %s404_s15, 9  ;;  %s403_s29 = scalar_lea.sflag [#allocation7], %s402_s10 }
  0x4c   : > { %s8604_s30 = scalar_lea.vmem [#allocation6], %s7088_s17 }
  0x4d   : > { %8390 = dma.done.wait (%p8560_p4), %s403_s29, 12288  }
  0x4e   : > { %8392 = vsyncadd (%p8560_p4), %s403_s29, 4294955008  ;;  %s7089_s0 = sshll.u32 %s404_s15, 8 }
  0x4f   : > { %s8610_s2 = scalar_lea.vmem [#allocation8], %s7089_s0 }
  0x50   : > { %8394 = dma.done.wait (%p89_p1), [#allocation10], 1024  }
  0x51   : > { %8396 = vsyncadd (%p89_p1), [#allocation10], 4294966272  ;;  %p467_p5 = scmp.lt.s32.totalorder %s8551_s24, 1 }
  0x52   : > { %479 = sbr.rel (%p7077_p6) target bundleno = 104 (0x68), region = 80 }
  0x53   : > { %s468_s9 = scalar_select %p467_p5, %s8551_s24, 1 }
  0x55   : > { %s7091_s11 = sshll.u32 %s468_s9, 3  ;;  %s7092_s18 = sshll.u32 %s468_s9, 2 }
  0x56   : > { %s8621_s20 = scalar_lea.vmem %s12082_s4, %s7091_s11  ;;  %s8626_s26 = scalar_lea.vmem %s12083_s5, %s7092_s18 }
  0x57   : > { %v480_v0 = vld [vmem:[#allocation3] sm:$0xff]  ;;  %v481_v1 = vld [vmem:[#allocation3 + $0x8] sm:$0xff]  ;;  %v482_v2 = vld [vmem:[#allocation3 + $0x10] sm:$0xff] }
  0x58   : > { %496 = vst [vmem:[#allocation2 + $0x30] sm:$0xff] %v480_v0  ;;  %v483_v3 = vld [vmem:[#allocation3 + $0x18] sm:$0xff]  ;;  %v484_v4 = vld [vmem:[#allocation3 + $0x20] sm:$0xff]  ;;  %v485_v5 = vld [vmem:[#allocation3 + $0x28] sm:$0xff] }
  0x59   : > { %497 = vst [vmem:[#allocation2] sm:$0xff] %v481_v1  ;;  %v486_v6 = vld [vmem:[#allocation3 + $0x30] sm:$0xff]  ;;  %v487_v7 = vld [vmem:[#allocation3 + $0x38] sm:$0xff]  ;;  %v488_v8 = vld [vmem:[#allocation3 + $0x40] sm:$0xff] }
  0x5a   : > { %498 = vst [vmem:[#allocation2 + $0x58] sm:$0xff] %v482_v2  ;;  %v489_v9 = vld [vmem:[#allocation3 + $0x48] sm:$0xff]  ;;  %v490_v10 = vld [vmem:[#allocation3 + $0x50] sm:$0xff]  ;;  %v491_v11 = vld [vmem:[#allocation3 + $0x58] sm:$0xff] }
  0x5b   : > { %499 = vst [vmem:[#allocation2 + $0x18] sm:$0xff] %v483_v3  ;;  %v492_v12 = vld [vmem:[#allocation3 + $0x60] sm:$0xff]  ;;  %v493_v13 = vld [vmem:[#allocation3 + $0x68] sm:$0xff]  ;;  %v494_v14 = vld [vmem:[#allocation3 + $0x70] sm:$0xff] }
  0x5c   : > { %500 = vst [vmem:[#allocation2 + $0x50] sm:$0xff] %v484_v4  ;;  %v495_v15 = vld [vmem:[#allocation3 + $0x78] sm:$0xff] }
  0x5d   : > { %501 = vst [vmem:[#allocation2 + $0x68] sm:$0xff] %v485_v5 }
  0x5e   : > { %502 = vst [vmem:[#allocation2 + $0x8] sm:$0xff] %v486_v6 }
  0x5f   : > { %503 = vst [vmem:[#allocation2 + $0x48] sm:$0xff] %v487_v7 }
  0x60   : > { %504 = vst [vmem:[#allocation2 + $0x40] sm:$0xff] %v488_v8 }
  0x61   : > { %505 = vst [vmem:[#allocation2 + $0x20] sm:$0xff] %v489_v9 }
  0x62   : > { %506 = vst [vmem:[#allocation2 + $0x10] sm:$0xff] %v490_v10 }
  0x63   : > { %507 = vst [vmem:[#allocation2 + $0x38] sm:$0xff] %v491_v11 }
  0x64   : > { %508 = vst [vmem:[#allocation2 + $0x60] sm:$0xff] %v492_v12 }
  0x65   : > { %509 = vst [vmem:[#allocation2 + $0x70] sm:$0xff] %v493_v13 }
  0x66   : > { %510 = vst [vmem:[#allocation2 + $0x78] sm:$0xff] %v494_v14 }
  0x67   : > { %511 = vst [vmem:[#allocation2 + $0x28] sm:$0xff] %v495_v15 }
  0x68 PF: > { %v7180_v16 = vld [vmem:[%s8604_s30 + $0x1c0] sm:$0xf]  ;;  %v7634_v39 = vld [vmem:[%s8604_s30 + $0x1c4] sm:$0xf]  ;;  %v512_v51 = vld [vmem:[#allocation2 + $0x30] sm:$0xff]  ;;  %vm917_vm0 = vcmask 261120  }
  0x69   : > { %v7635_v17 = vld [vmem:[%s8604_s30 + $0x1dc] sm:$0xf0]  ;;  %v7182_v40 = vld [vmem:[%s8604_s30 + $0x1e0] sm:$0xf0]  ;;  %v522_v60 = vld [vmem:[#allocation2 + $0x10] sm:$0xff]  ;;  %s8425_s27 = smov 96  }
  0x6a   : > { %v7168_v18 = vld [vmem:[%s8604_s30 + $0x180] sm:$0xf]  ;;  %v7181_v19 = vor.u32 %v7635_v17, %v7180_v16  ;;  %v7185_v44 = vor.u32 %v7634_v39, %v7182_v40  ;;  %v7631_v45 = vld [vmem:[%s8604_s30 + $0x184] sm:$0xf]  ;;  %v523_v61 = vld [vmem:[#allocation2 + $0x38] sm:$0xff]  ;;  %vm1120_vm1 = vcmask 130048  }
  0x6b   : > { %v7632_v20 = vld [vmem:[%s8604_s30 + $0x19c] sm:$0xf0]  ;;  %v7170_v46 = vld [vmem:[%s8604_s30 + $0x1a0] sm:$0xf0]  ;;  %v8664_v1 = vpack.c.bf16 %v523_v61, %v522_v60  ;;  %v514_v5 = vld [vmem:[#allocation2 + $0x58] sm:$0xff]  ;;  %s8426_s22 = smov 64  }
  0x6c   : > { %7717 = vmatpush.bf16.msra.mxu1 %v7181_v19  ;;  %v7169_v21 = vor.u32 %v7632_v20, %v7168_v18  ;;  %700 = vmatpush.bf16.msra.mxu0 %v7181_v19  ;;  %v7156_v22 = vld [vmem:[%s8604_s30 + $0x140] sm:$0xf]  ;;  %v7173_v48 = vor.u32 %v7631_v45, %v7170_v46  ;;  %v7628_v49 = vld [vmem:[%s8604_s30 + $0x144] sm:$0xf]  ;;  %v515_v6 = vld [vmem:[#allocation2 + $0x18] sm:$0xff]  ;;  %s8427_s0 = smov 32  }
  0x6d   : > { %v7629_v23 = vld [vmem:[%s8604_s30 + $0x15c] sm:$0xf0]  ;;  %7718 = vmatpush.bf16.msra.mxu3 %v7181_v19  ;;  %v7158_v50 = vld [vmem:[%s8604_s30 + $0x160] sm:$0xf0]  ;;  %v533_v7 = vpack.c.bf16 %v515_v6, %v514_v5  ;;  %v525_v13 = vld [vmem:[#allocation2 + $0x70] sm:$0xff]  ;;  %p7574_p7 = scmp.ne.s32.totalorder %s8551_s24, 1 }
  0x6e   : > { %v7157_v24 = vor.u32 %v7629_v23, %v7156_v22  ;;  %v7144_v25 = vld [vmem:[%s8604_s30 + $0x100] sm:$0xf]  ;;  %v7161_v53 = vor.u32 %v7628_v49, %v7158_v50  ;;  %v7625_v55 = vld [vmem:[%s8604_s30 + $0x104] sm:$0xf]  ;;  %v7188_v15 = vld [vmem:[%s8604_s30 + $0x1c8] sm:$0xf] }
  0x6f   : > { %v7626_v26 = vld [vmem:[%s8604_s30 + $0x11c] sm:$0xf0]  ;;  %v7146_v56 = vld [vmem:[%s8604_s30 + $0x120] sm:$0xf0]  ;;  %v7636_v16 = vld [vmem:[%s8604_s30 + $0x1e4] sm:$0xf0] }
  0x70   : > { %7719 = vmatpush.bf16.msra.mxu1 %v7169_v21  ;;  %701 = vmatpush.bf16.msra.mxu0 %v7169_v21  ;;  %v7145_v27 = vor.u32 %v7626_v26, %v7144_v25  ;;  %v7132_v28 = vld [vmem:[%s8604_s30 + $0xc0] sm:$0xf]  ;;  %v7149_v57 = vor.u32 %v7625_v55, %v7146_v56  ;;  %v7622_v58 = vld [vmem:[%s8604_s30 + $0xc4] sm:$0xf]  ;;  %v7189_v17 = vor.u32 %v7636_v16, %v7188_v15  ;;  %v7176_v18 = vld [vmem:[%s8604_s30 + $0x188] sm:$0xf] }
  0x71   : > { %7720 = vmatpush.bf16.msra.mxu3 %v7169_v21  ;;  %v7623_v29 = vld [vmem:[%s8604_s30 + $0xdc] sm:$0xf0]  ;;  %v7134_v59 = vld [vmem:[%s8604_s30 + $0xe0] sm:$0xf0]  ;;  %v7633_v19 = vld [vmem:[%s8604_s30 + $0x1a4] sm:$0xf0] }
  0x72   : > { %v7133_v30 = vor.u32 %v7623_v29, %v7132_v28  ;;  %v7120_v31 = vld [vmem:[%s8604_s30 + $0x80] sm:$0xf]  ;;  %v7137_v62 = vor.u32 %v7622_v58, %v7134_v59  ;;  %v7619_v63 = vld [vmem:[%s8604_s30 + $0x84] sm:$0xf]  ;;  %798 = vmatpush.bf16.msra.mxu2 %v7189_v17  ;;  %v516_v20 = vld [vmem:[#allocation2 + $0x50] sm:$0xff]  ;;  %v7177_v21 = vor.u32 %v7633_v19, %v7176_v18  ;;  %s12370_s21 = sld [smem:[#allocation62_spill]] (!%p7574_p7) }
  0x73   : > { %v7620_v32 = vld [vmem:[%s8604_s30 + $0x9c] sm:$0xf0]  ;;  %v7122_v0 = vld [vmem:[%s8604_s30 + $0xa0] sm:$0xf0]  ;;  %v517_v22 = vld [vmem:[#allocation2 + $0x68] sm:$0xff] }
  0x74   : > { %7721 = vmatpush.bf16.msra.mxu1 %v7157_v24  ;;  %702 = vmatpush.bf16.msra.mxu0 %v7157_v24  ;;  %v7121_v33 = vor.u32 %v7620_v32, %v7120_v31  ;;  %v7108_v34 = vld [vmem:[%s8604_s30 + $0x40] sm:$0xf]  ;;  %v7125_v2 = vor.u32 %v7619_v63, %v7122_v0  ;;  %v7616_v3 = vld [vmem:[%s8604_s30 + $0x44] sm:$0xf]  ;;  %v7164_v23 = vld [vmem:[%s8604_s30 + $0x148] sm:$0xf]  ;;  %v534_v25 = vpack.c.bf16 %v517_v22, %v516_v20 }
  0x75   : > { %7722 = vmatpush.bf16.msra.mxu3 %v7157_v24  ;;  %v7617_v35 = vld [vmem:[%s8604_s30 + $0x5c] sm:$0xf0]  ;;  %v7110_v4 = vld [vmem:[%s8604_s30 + $0x60] sm:$0xf0]  ;;  %v7630_v24 = vld [vmem:[%s8604_s30 + $0x164] sm:$0xf0] }
  0x76   : > { %v7109_v36 = vor.u32 %v7617_v35, %v7108_v34  ;;  %v7096_v37 = vld [vmem:[%s8604_s30] sm:$0xf]  ;;  %v7113_v8 = vor.u32 %v7616_v3, %v7110_v4  ;;  %v7613_v9 = vld [vmem:[%s8604_s30 + $0x4] sm:$0xf]  ;;  %799 = vmatpush.bf16.msra.mxu2 %v7177_v21  ;;  %v7165_v26 = vor.u32 %v7630_v24, %v7164_v23  ;;  %v7627_v28 = vld [vmem:[%s8604_s30 + $0x124] sm:$0xf0] }
  0x77   : > { %v7614_v38 = vld [vmem:[%s8604_s30 + $0x1c] sm:$0xf0]  ;;  %v7098_v10 = vld [vmem:[%s8604_s30 + $0x20] sm:$0xf0]  ;;  %v7624_v31 = vld [vmem:[%s8604_s30 + $0xe4] sm:$0xf0] }
  0x78   : > { %7723 = vmatpush.bf16.msra.mxu1 %v7145_v27  ;;  %703 = vmatpush.bf16.msra.mxu0 %v7145_v27  ;;  %v7097_v41 = vor.u32 %v7614_v38, %v7096_v37  ;;  %v520_v42 = vld [vmem:[#allocation2 + $0x40] sm:$0xff]  ;;  %v7101_v11 = vor.u32 %v7613_v9, %v7098_v10  ;;  %v7621_v34 = vld [vmem:[%s8604_s30 + $0xa4] sm:$0xf0]  ;;  %v526_v45 = vld [vmem:[#allocation2 + $0x78] sm:$0xff] }
  0x79   : > { %7724 = vmatpush.bf16.msra.mxu3 %v7145_v27  ;;  %v521_v43 = vld [vmem:[#allocation2 + $0x20] sm:$0xff]  ;;  %v7152_v27 = vld [vmem:[%s8604_s30 + $0x108] sm:$0xf] }
  0x7a   : > { %v8650_v47 = vpack.c.bf16 %v521_v43, %v520_v42  ;;  %v513_v52 = vld [vmem:[#allocation2] sm:$0xff]  ;;  %800 = vmatpush.bf16.msra.mxu2 %v7165_v26  ;;  %v7153_v29 = vor.u32 %v7627_v28, %v7152_v27  ;;  %v518_v35 = vld [vmem:[#allocation2 + $0x8] sm:$0xff] }
  0x7b   : > { %v8655_v54 = vpack.c.bf16 %v513_v52, %v512_v51  ;;  %v524_v12 = vld [vmem:[#allocation2 + $0x60] sm:$0xff]  ;;  %v519_v37 = vld [vmem:[#allocation2 + $0x48] sm:$0xff] }
  0x7c   : > { %7725 = vmatpush.bf16.msra.mxu1 %v7133_v30  ;;  %704 = vmatpush.bf16.msra.mxu0 %v7133_v30  ;;  %v8671_v14 = vpack.c.bf16 %v525_v13, %v524_v12  ;;  %v7116_v38 = vld [vmem:[%s8604_s30 + $0x48] sm:$0xf]  ;;  %v535_v40 = vpack.c.bf16 %v519_v37, %v518_v35 }
  0x7d   : > { %7726 = vmatpush.bf16.msra.mxu3 %v7133_v30  ;;  %v7140_v30 = vld [vmem:[%s8604_s30 + $0xc8] sm:$0xf] }
  0x7e   : > { %801 = vmatpush.bf16.msra.mxu2 %v7153_v29  ;;  %v7141_v32 = vor.u32 %v7624_v31, %v7140_v30  ;;  %v7618_v39 = vld [vmem:[%s8604_s30 + $0x64] sm:$0xf0] }
  0x7f   : > { %v7104_v42 = vld [vmem:[%s8604_s30 + $0x8] sm:$0xf] }
  0x80   : > { %7727 = vmatpush.bf16.msra.mxu1 %v7121_v33  ;;  %705 = vmatpush.bf16.msra.mxu0 %v7121_v33  ;;  %v7615_v43 = vld [vmem:[%s8604_s30 + $0x24] sm:$0xf0] }
  0x81   : > { %7728 = vmatpush.bf16.msra.mxu3 %v7121_v33  ;;  %v7128_v33 = vld [vmem:[%s8604_s30 + $0x88] sm:$0xf] }
  0x82   : > { %802 = vmatpush.bf16.msra.mxu2 %v7141_v32  ;;  %v527_v46 = vld [vmem:[#allocation2 + $0x28] sm:$0xff] }
  0x84   : > { %7729 = vmatpush.bf16.msra.mxu1 %v7109_v36  ;;  %706 = vmatpush.bf16.msra.mxu0 %v7109_v36 }
  0x85   : > { %7730 = vmatpush.bf16.msra.mxu3 %v7109_v36  ;;  %v7129_v36 = vor.u32 %v7621_v34, %v7128_v33 }
  0x87   : > { %803 = vmatpush.bf16.msra.mxu2 %v7129_v36 }
  0x88   : > { %7731 = vmatpush.bf16.msra.mxu1 %v7097_v41  ;;  %707 = vmatpush.bf16.msra.mxu0 %v7097_v41 }
  0x89   : > { %7732 = vmatpush.bf16.msra.mxu3 %v7097_v41  ;;  %v7117_v41 = vor.u32 %v7618_v39, %v7116_v38 }
  0x8b   : > { %728 = vmatmul.bf16.vlgmr.msra.gmra.mxu1 %v8650_v47  ;;  %708 = vmatmul.bf16.vlgmr.msra.gmra.mxu0 %v8655_v54 }
  0x8c   : > { %749 = vmatpush.bf16.msrb.mxu1 %v7185_v44  ;;  %804 = vmatpush.bf16.msra.mxu2 %v7117_v41  ;;  %v7105_v44 = vor.u32 %v7615_v43, %v7104_v42 }
  0x90   : > { %750 = vmatpush.bf16.msrb.mxu1 %v7173_v48  ;;  %805 = vmatpush.bf16.msra.mxu2 %v7105_v44  ;;  %v539_v48 = vpack.c.bf16 %v527_v46, %v526_v45 }
  0x92   : > { %743 = vmatmul.bf16.vlgmr.msra.gmra.mxu3 %v539_v48 }
  0x93   : > { %806 = vmatmul.bf16.vlgmr.msra.gmra.mxu2 %v8655_v54 }
  0x94   : > { %751 = vmatpush.bf16.msrb.mxu1 %v7161_v53 }
  0x98   : > { %752 = vmatpush.bf16.msrb.mxu1 %v7149_v57 }
  0x9b   : > { %733 = vmatmul.bf16.gmra.mxu1 %v8664_v1  ;;  %713 = vmatmul.bf16.gmra.mxu0 %v533_v7 }
  0x9c   : > { %753 = vmatpush.bf16.msrb.mxu1 %v7137_v62 }
  0xa0   : > { %754 = vmatpush.bf16.msrb.mxu1 %v7125_v2 }
  0xa3   : > { %811 = vmatmul.bf16.gmra.mxu2 %v533_v7 }
  0xa4   : > { %755 = vmatpush.bf16.msrb.mxu1 %v7113_v8 }
  0xa8   : > { %756 = vmatpush.bf16.msrb.mxu1 %v7101_v11 }
  0xab   : > { %738 = vmatmul.bf16.gmra.mxu1 %v8671_v14  ;;  %718 = vmatmul.bf16.gmra.mxu0 %v534_v25 }
  0xb3   : > { %816 = vmatmul.bf16.gmra.mxu2 %v534_v25 }
  0xbb   : > { %757 = vmatmul.bf16.vlgmr.msrb.gmra.mxu1 %v8655_v54  ;;  %723 = vmatmul.bf16.gmra.mxu0 %v535_v40 }
  0xc3   : > { %821 = vmatmul.bf16.gmra.mxu2 %v535_v40 }
  0xcb   : > { %762 = vmatmul.bf16.gmra.mxu1 %v533_v7 }
  0xd3   : > { %826 = vmatmul.bf16.gmra.mxu2 %v8650_v47 }
  0xdb   : > { %767 = vmatmul.bf16.gmra.mxu1 %v534_v25 }
  0xe3   : > { %831 = vmatmul.bf16.gmra.mxu2 %v8664_v1 }
  0xeb   : > { %772 = vmatmul.bf16.gmra.mxu1 %v535_v40 }
  0xf3   : > { %836 = vmatmul.bf16.gmra.mxu2 %v8671_v14 }
  0xfb   : > { %777 = vmatmul.bf16.gmra.mxu1 %v8650_v47 }
 0x103   : > { %841 = vmatmul.bf16.gmra.mxu2 %v539_v48 }
 0x108   : > { %v8693_v49 = vpop.f32.mrf.mxu1  ;;  %v709_v54 = vpop.f32.mrf.mxu0 }
 0x10b   : > { %782 = vmatmul.bf16.gmra.mxu1 %v8664_v1 }
 0x110   : > { %v8697_v50 = vpop.f32.mrf.mxu1  ;;  %v711_v47 = vpop.f32.mrf.mxu0 }
 0x116   : > { %v8721_v8 = vpop.f32.mrf.mxu2 }
 0x118   : > { %v8699_v51 = vpop.f32.mrf.mxu1  ;;  %v714_v58 = vpop.f32.mrf.mxu0 }
 0x11b   : > { %787 = vmatmul.bf16.gmra.mxu1 %v8671_v14 }
 0x11e   : > { %v8731_v17 = vpop.f32.mrf.mxu2 }
 0x120   : > { %v8703_v52 = vpop.f32.mrf.mxu1  ;;  %v716_v2 = vpop.f32.mrf.mxu0 }
 0x126   : > { %v8740_v25 = vpop.f32.mrf.mxu2 }
 0x128   : > { %v8705_v53 = vpop.f32.mrf.mxu1  ;;  %v719_v13 = vpop.f32.mrf.mxu0 }
 0x12b   : > { %792 = vmatmul.bf16.gmra.mxu1 %v539_v48 }
 0x12e   : > { %v8756_v36 = vpop.f32.mrf.mxu2 }
 0x130   : > { %v8708_v55 = vpop.f32.mrf.mxu1  ;;  %v721_v23 = vpop.f32.mrf.mxu0 }
 0x136   : > { %v817_v42 = vpop.f32.mrf.mxu2 }
 0x137   : > { %v856_v48 = vpack.c.bf16 %v817_v42, %v817_v42 }
 0x138   : > { %v758_v56 = vpop.f32.mrf.mxu1  ;;  %v724_v37 = vpop.f32.mrf.mxu0 }
 0x139   : > { %v8710_v57 = vpack.c.bf16 %v758_v56, %v709_v54 }
 0x13b   : > { %12160 = vst [vmem:[#allocation19_spill] sm:$0xff] %v8710_v57  ;;  %v895_v61 = vrot.slane %v8710_v57, 4  ;;  %v911_v7 = vunpack.c.l.b16 %v8710_v57 }
 0x13d   : > { %v914_v63 = vunpack.c.l.b16 %v895_v61 }
 0x140   : > { %v760_v59 = vpop.f32.mrf.mxu1  ;;  %v726_v43 = vpop.f32.mrf.mxu0 }
 0x141   : > { %v8712_v60 = vpack.c.bf16 %v760_v59, %v711_v47 }
 0x143   : > { %12161 = vst [vmem:[#allocation20_spill] sm:$0xff] %v8712_v60  ;;  %v896_v62 = vrot.slane %v8712_v60, 4  ;;  %v912_v5 = vunpack.c.l.b16 %v8712_v60 }
 0x145   : > { %v915_v0 = vunpack.c.l.b16 %v896_v62  ;;  %v8723_v9 = vpack.c.b16 %v912_v5, %v911_v7  ;;  %v819_v62 = vpop.f32.mrf.mxu2 }
 0x147   : > { %v916_v1 = vpack.c.b16 %v915_v0, %v914_v63  ;;  %v1584_v63 = vunpack.c.l.b16 %v856_v48  ;;  %v858_v0 = vpack.c.bf16 %v819_v62, %v819_v62 }
 0x148   : > { %v763_v3 = vpop.f32.mrf.mxu1 }
 0x149   : > { %v922_v4 = vsel %vm917_vm0, %v916_v1, 0  ;;  %v8718_v6 = vpack.c.bf16 %v763_v3, %v714_v58  ;;  %v1585_v3 = vunpack.c.l.b16 %v858_v0 }
 0x14a   : > { %931 = vmatpush.bf16.xpose.msrb.mxu3 %v922_v4 }
 0x14b   : > { %12162 = vst [vmem:[#allocation21_spill] sm:$0xff] %v8718_v6  ;;  %v897_v12 = vrot.slane %v8718_v6, 4  ;;  %v938_v24 = vunpack.c.l.b16 %v8718_v6  ;;  %v8780_v5 = vpack.c.b16 %v1585_v3, %v1584_v63 }
 0x14d   : > { %v941_v15 = vunpack.c.l.b16 %v897_v12  ;;  %12170 = vst [vmem:[#allocation29_spill] sm:$0xff] %v8780_v5  ;;  %1598 = vmatpush.bf16.msrb.mxu2 %v8780_v5 }
 0x150   : > { %v765_v10 = vpop.f32.mrf.mxu1 }
 0x151   : > { %v8725_v11 = vpack.c.bf16 %v765_v10, %v716_v2  ;;  %7190 = vmatmul.msk.bf16.vlgmr.msrb.gmra.mxu3 %vm917_vm0, %v8723_v9  ;;  %v822_v10 = vpop.f32.mrf.mxu2 }
 0x153   : > { %v898_v14 = vrot.slane %v8725_v11, 4  ;;  %v939_v22 = vunpack.c.l.b16 %v8725_v11 }
 0x155   : > { %v942_v16 = vunpack.c.l.b16 %v898_v14  ;;  %v8742_v26 = vpack.c.b16 %v939_v22, %v938_v24 }
 0x157   : > { %v943_v18 = vpack.c.b16 %v942_v16, %v941_v15  ;;  %12164 = vst [vmem:[#allocation23_spill] sm:$0xff] %v8742_v26  ;;  %v860_v15 = vpack.c.bf16 %v822_v10, %v822_v10 }
 0x158   : > { %v768_v19 = vpop.f32.mrf.mxu1 }
 0x159   : > { %v8733_v20 = vpack.c.bf16 %v768_v19, %v719_v13  ;;  %v948_v21 = vsel %vm917_vm0, %v943_v18, 0  ;;  %v1612_v22 = vunpack.c.l.b16 %v860_v15 }
 0x15a   : > { %957 = vmatpush.bf16.xpose.msra.mxu3 %v948_v21  ;;  %v824_v21 = vpop.f32.mrf.mxu2 }
 0x15b   : > { %12163 = vst [vmem:[#allocation22_spill] sm:$0xff] %v8733_v20  ;;  %1765 = vrot.lane.b32.xlu0 %v8733_v20, %s8425_s27  ;;  %v899_v29 = vrot.slane %v8733_v20, 4  ;;  %v964_v30 = vunpack.c.l.b16 %v8733_v20 }
 0x15d   : > { %v967_v34 = vunpack.c.l.b16 %v899_v29 }
 0x160   : > { %v770_v27 = vpop.f32.mrf.mxu1 }
 0x161   : > { %v8744_v28 = vpack.c.bf16 %v770_v27, %v721_v23  ;;  %7191 = vmatmul.msk.bf16.vlgmr.msra.gmra.mxu3 %vm917_vm0, %v8742_v26  ;;  %v862_v23 = vpack.c.bf16 %v824_v21, %v824_v21 }
 0x163   : > { %12165 = vst [vmem:[#allocation24_spill] sm:$0xff] %v8744_v28  ;;  %1767 = vrot.lane.b32.xlu1 %v8744_v28, %s8425_s27  ;;  %v965_v31 = vunpack.c.l.b16 %v8744_v28  ;;  %v900_v32 = vrot.slane %v8744_v28, 4  ;;  %v1613_v27 = vunpack.c.l.b16 %v862_v23 }
 0x165   : > { %v8754_v33 = vpack.c.b16 %v965_v31, %v964_v30  ;;  %v968_v35 = vunpack.c.l.b16 %v900_v32 }
 0x167   : > { %12166 = vst [vmem:[#allocation25_spill] sm:$0xff] %v8754_v33  ;;  %1855 = vrot.lane.b32.xlu2 %v8754_v33, %s8425_s27  ;;  %v969_v38 = vpack.c.b16 %v968_v35, %v967_v34  ;;  %v827_v34 = vpop.f32.mrf.mxu2 }
 0x168   : > { %v773_v39 = vpop.f32.mrf.mxu1 }
 0x169   : > { %v8760_v40 = vpack.c.bf16 %v773_v39, %v724_v37  ;;  %v974_v41 = vsel %vm917_vm0, %v969_v38, 0 }
 0x16a   : > { %983 = vmatpush.bf16.xpose.msrb.mxu3 %v974_v41  ;;  %v864_v41 = vpack.c.bf16 %v827_v34, %v827_v34 }
 0x16b   : > { %12167 = vst [vmem:[#allocation26_spill] sm:$0xff] %v8760_v40  ;;  %1769 = vrot.lane.b32.xlu1 %v8760_v40, %s8425_s27  ;;  %v901_v46 = vrot.slane %v8760_v40, 4  ;;  %v990_v54 = vunpack.c.l.b16 %v8760_v40 }
 0x16d   : > { %v993_v59 = vunpack.c.l.b16 %v901_v46 }
 0x16f   : > { %v829_v46 = vpop.f32.mrf.mxu2 }
 0x170   : > { %v775_v44 = vpop.f32.mrf.mxu1  ;;  %v866_v48 = vpack.c.bf16 %v829_v46, %v829_v46 }
 0x171   : > { %v8765_v45 = vpack.c.bf16 %v775_v44, %v726_v43  ;;  %7192 = vmatmul.msk.bf16.vlgmr.msrb.gmra.mxu3 %vm917_vm0, %v8754_v33 }
 0x173   : > { %12168 = vst [vmem:[#allocation27_spill] sm:$0xff] %v8765_v45  ;;  %1771 = vrot.lane.b32.xlu0 %v8765_v45, %s8425_s27  ;;  %v991_v47 = vunpack.c.l.b16 %v8765_v45  ;;  %v902_v56 = vrot.slane %v8765_v45, 4 }
 0x175   : > { %v8775_v58 = vpack.c.b16 %v991_v47, %v990_v54  ;;  %v994_v61 = vunpack.c.l.b16 %v902_v56  ;;  %v1641_v56 = vunpack.c.l.b16 %v866_v48  ;;  %v852_v48 = vpack.c.bf16 %v8740_v25, %v8740_v25 }
 0x177   : > { %12169 = vst [vmem:[#allocation28_spill] sm:$0xff] %v8775_v58  ;;  %1880 = vrot.lane.b32.xlu1 %v8775_v58, %s8425_s27  ;;  %v995_v1 = vpack.c.b16 %v994_v61, %v993_v59  ;;  %v8822_v0 = vpop.f32.mrf.mxu2 }
 0x178   : > { %v778_v2 = vpop.f32.mrf.mxu1 }
 0x179   : > { %v1000_v4 = vsel %vm917_vm0, %v995_v1, 0  ;;  %v8784_v7 = vpack.c.bf16 %v778_v2, %v8693_v49 }
 0x17a   : > { %1009 = vmatpush.bf16.xpose.msra.mxu3 %v1000_v4 }
 0x17b   : > { %12171 = vst [vmem:[#allocation30_spill] sm:$0xff] %v8784_v7  ;;  %v903_v14 = vrot.slane %v8784_v7, 4  ;;  %v1016_v31 = vunpack.c.l.b16 %v8784_v7 }
 0x17d   : > { %v1019_v18 = vunpack.c.l.b16 %v903_v14 }
 0x17f   : > { %v8836_v15 = vpop.f32.mrf.mxu2 }
 0x180   : > { %v780_v12 = vpop.f32.mrf.mxu1 }
 0x181   : > { %v8787_v13 = vpack.c.bf16 %v780_v12, %v8697_v50  ;;  %7193 = vmatmul.msk.bf16.vlgmr.msra.gmra.mxu3 %vm917_vm0, %v8775_v58  ;;  %v8794_v50 = vpack.c.b16 %v1613_v27, %v1612_v22  ;;  %v850_v27 = vpack.c.bf16 %v8731_v17, %v8731_v17 }
 0x183   : > { %12172 = vst [vmem:[#allocation31_spill] sm:$0xff] %v8787_v13  ;;  %v904_v16 = vrot.slane %v8787_v13, 4  ;;  %v1017_v30 = vunpack.c.l.b16 %v8787_v13  ;;  %1626 = vmatpush.bf16.msra.mxu1 %v8794_v50 }
 0x184   : > { %12173 = vst [vmem:[#allocation32_spill] sm:$0xff] %v8794_v50 }
 0x185   : > { %v1020_v19 = vunpack.c.l.b16 %v904_v16  ;;  %v8802_v35 = vpack.c.b16 %v1017_v30, %v1016_v31  ;;  %v744_v16 = vpop.f32.mrf.mxu3 }
 0x187   : > { %v1021_v49 = vpack.c.b16 %v1020_v19, %v1019_v18  ;;  %12175 = vst [vmem:[#allocation34_spill] sm:$0xff] %v8802_v35 }
 0x188   : > { %v783_v24 = vpop.f32.mrf.mxu1 }
 0x189   : > { %v1026_v29 = vsel %vm917_vm0, %v1021_v49, 0  ;;  %v8800_v32 = vpack.c.bf16 %v783_v24, %v8699_v51  ;;  %v1640_v51 = vunpack.c.l.b16 %v864_v41  ;;  %v837_v49 = vpop.f32.mrf.mxu2  ;;  %v848_v24 = vpack.c.bf16 %v8721_v8, %v8721_v8 }
 0x18a   : > { %1035 = vmatpush.bf16.xpose.msrb.mxu3 %v1026_v29  ;;  %v1529_v41 = vunpack.c.l.b16 %v850_v27 }
 0x18b   : > { %12174 = vst [vmem:[#allocation33_spill] sm:$0xff] %v8800_v32  ;;  %v905_v39 = vrot.slane %v8800_v32, 4  ;;  %v8815_v61 = vpack.c.b16 %v1641_v56, %v1640_v51  ;;  %v1042_v63 = vunpack.c.l.b16 %v8800_v32 }
 0x18d   : > { %v1045_v43 = vunpack.c.l.b16 %v905_v39  ;;  %12178 = vst [vmem:[#allocation37_spill] sm:$0xff] %v8815_v61  ;;  %1654 = vmatpush.bf16.msra.mxu2 %v8815_v61  ;;  %v746_v29 = vpop.f32.mrf.mxu3  ;;  %v872_v39 = vpack.c.bf16 %v837_v49, %v837_v49 }
 0x190   : > { %v785_v37 = vpop.f32.mrf.mxu1 }
 0x191   : > { %v8805_v38 = vpack.c.bf16 %v785_v37, %v8703_v52  ;;  %7194 = vmatmul.msk.bf16.vlgmr.msrb.gmra.mxu3 %vm917_vm0, %v8802_v35  ;;  %v1528_v37 = vunpack.c.l.b16 %v848_v24  ;;  %v839_v51 = vpop.f32.mrf.mxu2 }
 0x192   : > { %v874_v56 = vpack.c.bf16 %v839_v51, %v839_v51 }
 0x193   : > { %12176 = vst [vmem:[#allocation35_spill] sm:$0xff] %v8805_v38  ;;  %v906_v42 = vrot.slane %v8805_v38, 4  ;;  %v1043_v62 = vunpack.c.l.b16 %v8805_v38 }
 0x195   : > { %v1046_v44 = vunpack.c.l.b16 %v906_v42  ;;  %v8824_v1 = vpack.c.b16 %v1043_v62, %v1042_v63  ;;  %v1697_v63 = vunpack.c.l.b16 %v874_v56 }
 0x197   : > { %v1047_v54 = vpack.c.b16 %v1046_v44, %v1045_v43  ;;  %12179 = vst [vmem:[#allocation38_spill] sm:$0xff] %v8824_v1 }
 0x198   : > { %v788_v47 = vpop.f32.mrf.mxu1 }
 0x199   : > { %v8812_v59 = vpack.c.bf16 %v788_v47, %v8705_v53  ;;  %v1052_v52 = vsel %vm917_vm0, %v1047_v54, 0  ;;  %v854_v54 = vpack.c.bf16 %v8756_v36, %v8756_v36  ;;  %v1696_v47 = vunpack.c.l.b16 %v872_v39 }
 0x19a   : > { %1061 = vmatpush.bf16.xpose.msra.mxu3 %v1052_v52  ;;  %v8868_v52 = vpack.c.b16 %v1529_v41, %v1528_v37 }
 0x19b   : > { %12177 = vst [vmem:[#allocation36_spill] sm:$0xff] %v8812_v59  ;;  %1781 = vrot.lane.b32.xlu0 %v8812_v59, %s8425_s27  ;;  %v907_v3 = vrot.slane %v8812_v59, 4 }
 0x19c   : > { %12185 = vst [vmem:[#allocation44_spill] sm:$0xff] %v8868_v52 }
 0x19d   : > { %v1071_v10 = vunpack.c.l.b16 %v907_v3  ;;  %v1556_v3 = vunpack.c.l.b16 %v852_v48 }
 0x1a0   : > { %v790_v53 = vpop.f32.mrf.mxu1 }
 0x1a1   : > { %v8827_v2 = vpack.c.bf16 %v790_v53, %v8708_v55  ;;  %7195 = vmatmul.msk.bf16.vlgmr.msra.gmra.mxu3 %vm917_vm0, %v8824_v1  ;;  %v1068_v55 = vunpack.c.l.b16 %v8812_v59 }
 0x1a3   : > { %12180 = vst [vmem:[#allocation39_spill] sm:$0xff] %v8827_v2  ;;  %1783 = vrot.lane.b32.xlu2 %v8827_v2, %s8425_s27  ;;  %v908_v4 = vrot.slane %v8827_v2, 4  ;;  %v1069_v14 = vunpack.c.l.b16 %v8827_v2 }
 0x1a5   : > { %v1072_v12 = vunpack.c.l.b16 %v908_v4  ;;  %v8842_v23 = vpack.c.b16 %v1069_v14, %v1068_v55  ;;  %v1557_v4 = vunpack.c.l.b16 %v854_v54 }
 0x1a7   : > { %v1073_v18 = vpack.c.b16 %v1072_v12, %v1071_v10  ;;  %12182 = vst [vmem:[#allocation41_spill] sm:$0xff] %v8842_v23  ;;  %v8873_v10 = vpack.c.b16 %v1697_v63, %v1696_v47  ;;  %v8877_v25 = vpack.c.b16 %v1557_v4, %v1556_v3  ;;  %v8885_v12 = vld [vmem:[%s12079_s1] sm:$0xff] }
 0x1a8   : > { %v793_v19 = vpop.f32.mrf.mxu1 }
 0x1a9   : > { %v8839_v21 = vpack.c.bf16 %v793_v19, %v744_v16  ;;  %v1078_v22 = vsel %vm917_vm0, %v1073_v18, 0  ;;  %12186 = vst [vmem:[#allocation45_spill] sm:$0xff] %v8873_v10  ;;  %1710 = vmatpush.bf16.msrb.mxu0 %v8873_v10 }
 0x1aa   : > { %1087 = vmatpush.bf16.xpose.msrb.mxu3 %v1078_v22  ;;  %12187 = vst [vmem:[#allocation46_spill] sm:$0xff] %v8877_v25 }
 0x1ab   : > { %12181 = vst [vmem:[#allocation40_spill] sm:$0xff] %v8839_v21  ;;  %1955 = vrot.lane.b32.xlu2 %v8842_v23, %s8425_s27  ;;  %1785 = vrot.lane.b32.xlu0 %v8839_v21, %s8425_s27  ;;  %v909_v34 = vrot.slane %v8839_v21, 4  ;;  %v1094_v8 = vunpack.c.l.b16 %v8839_v21 }
 0x1ad   : > { %v1097_v44 = vunpack.c.l.b16 %v909_v34 }
 0x1b0   : > { %v795_v30 = vpop.f32.mrf.mxu1 }
 0x1b1   : > { %v8852_v31 = vpack.c.bf16 %v795_v30, %v746_v29  ;;  %7196 = vmatmul.msk.bf16.vlgmr.msrb.gmra.mxu3 %vm917_vm0, %v8842_v23 }
 0x1b3   : > { %12183 = vst [vmem:[#allocation42_spill] sm:$0xff] %v8852_v31  ;;  %1787 = vrot.lane.b32.xlu2 %v8852_v31, %s8425_s27  ;;  %v1095_v42 = vunpack.c.l.b16 %v8852_v31  ;;  %v910_v17 = vrot.slane %v8852_v31, 4 }
 0x1b5   : > { %v8862_v43 = vpack.c.b16 %v1095_v42, %v1094_v8  ;;  %v1098_v46 = vunpack.c.l.b16 %v910_v17 }
 0x1b7   : > { %12184 = vst [vmem:[#allocation43_spill] sm:$0xff] %v8862_v43  ;;  %1980 = vrot.lane.b32.xlu1 %v8862_v43, %s8425_s27  ;;  %v1099_v62 = vpack.c.b16 %v1098_v46, %v1097_v44  ;;  %v8905_v44 = vld [vmem:[%s12079_s1 + $0x8] sm:$0xff] }
 0x1b9   : > { %v1104_v53 = vsel %vm917_vm0, %v1099_v62, 0 }
 0x1ba   : > { %1113 = vmatpush.bf16.xpose.msra.mxu3 %v1104_v53 }
 0x1c1   : > { %7197 = vmatmul.msk.bf16.vlgmr.msra.gmra.mxu3 %vm917_vm0, %v8862_v43  ;;  %v8967_v43 = vpop.permute.xlu2 %1855 }
 0x1c2   : > { %1542 = vmatpush.bf16.msrb.mxu3 %v8868_v52 }
 0x1c6   : > { %1570 = vmatpush.bf16.msra.mxu3 %v8877_v25 }
 0x1cd   : > { %v1766_v36 = vpop.permute.xlu0 %1765 }
 0x1ce   : > { %v1793_v14 = vrot.slane %v1766_v36, 4 }
 0x1d0   : > { %v1857_v49 = vunpack.c.l.b16 %v1793_v14 }
 0x1d4   : > { %v933_v16 = vpop.f32.mrf.mxu3 }
 0x1d5   : > { %v8888_v18 = vadd.f32 %v933_v16, %v8885_v12  ;;  %v1768_v55 = vpop.permute.xlu1 %1767 }
 0x1d6   : > { %v1794_v19 = vrot.slane %v1768_v55, 4 }
 0x1d7   : > { %v1121_v22 = vsel %vm1120_vm1, %v8888_v18, -inf }
 0x1d8   : > { %v1858_v24 = vunpack.c.l.b16 %v1794_v19  ;;  %1122 = vmax.xlane.f32.xlu0 %v1121_v22 }
 0x1da   : > { %v1859_v27 = vpack.c.b16 %v1858_v24, %v1857_v49 }
 0x1dc   : > { %v935_v29 = vpop.f32.mrf.mxu3  ;;  %v1864_v30 = vsel %vm917_vm0, %v1859_v27, 0 }
 0x1dd   : > { %1873 = vmatpush.bf16.xpose.msra.mxu0 %v1864_v30 }
 0x1e4   : > { %v959_v34 = vpop.f32.mrf.mxu3 }
 0x1e5   : > { %v960_v54 = vadd.f32 %v959_v34, %v8885_v12 }
 0x1e7   : > { %v1127_v56 = vsel %vm1120_vm1, %v960_v54, -inf }
 0x1ec   : > { %v961_v37 = vpop.f32.mrf.mxu3 }
 0x1ed   : > { %v962_v49 = vadd.f32 %v961_v37, %v8905_v44 }
 0x1ef   : > { %v1130_v34 = vsel %vm1120_vm1, %v962_v49, -inf }
 0x1f4   : > { %v8893_v39 = vpop.f32.mrf.mxu3 }
 0x1fc   : > { %v8895_v41 = vpop.f32.mrf.mxu3 }
 0x204   : > { %v1011_v8 = vpop.f32.mrf.mxu3 }
 0x205   : > { %v8898_v42 = vadd.f32 %v1011_v8, %v8885_v12 }
 0x207   : > { %v1139_v17 = vsel %vm1120_vm1, %v8898_v42, -inf }
 0x208   : > { %1140 = vmax.xlane.f32.xlu1 %v1139_v17 }
 0x20c   : > { %v1013_v46 = vpop.f32.mrf.mxu3 }
 0x20d   : > { %v8908_v51 = vadd.f32 %v1013_v46, %v8905_v44 }
 0x20f   : > { %v1142_v48 = vsel %vm1120_vm1, %v8908_v51, -inf }
 0x210   : > { %1143 = vmax.xlane.f32.xlu1 %v1142_v48  ;;  %v8937_v48 = vadd.f32 %v935_v29, %v8905_v44  ;;  %v8952_v29 = vpop.permute.xlu1 %1769 }
 0x212   : > { %v1124_v37 = vsel %vm1120_vm1, %v8937_v48, -inf }
 0x214   : > { %v8913_v47 = vpop.f32.mrf.mxu3 }
 0x218   : > { %1128 = vmax.xlane.f32.xlu1 %v1127_v56  ;;  %v8941_v56 = vpop.permute.xlu0 %1771 }
 0x21c   : > { %v8916_v62 = vpop.f32.mrf.mxu3 }
 0x224   : > { %v1063_v63 = vpop.f32.mrf.mxu3 }
 0x22c   : > { %v1065_v53 = vpop.f32.mrf.mxu3 }
 0x22d   : > { %v1066_v3 = vadd.f32 %v1065_v53, %v8905_v44  ;;  %v8944_v53 = vadd.f32 %v1063_v63, %v8885_v12 }
 0x22f   : > { %v1154_v4 = vsel %vm1120_vm1, %v1066_v3, -inf }
 0x230   : > { %1155 = vmax.xlane.f32.xlu1 %v1154_v4  ;;  %v1151_v4 = vsel %vm1120_vm1, %v8944_v53, -inf }
 0x234   : > { %v1089_v36 = vpop.f32.mrf.mxu3 }
 0x235   : > { %v8921_v14 = vadd.f32 %v1089_v36, %v8885_v12  ;;  %v8950_v36 = vpop.permute.xlu0 %1781 }
 0x237   : > { %v1157_v16 = vsel %vm1120_vm1, %v8921_v14, -inf }
 0x238   : > { %1158 = vmax.xlane.f32.xlu0 %v1157_v16 }
 0x23c   : > { %v1091_v55 = vpop.f32.mrf.mxu3 }
 0x23d   : > { %v1092_v19 = vadd.f32 %v1091_v55, %v8905_v44  ;;  %v8954_v16 = vpop.permute.xlu0 %1785  ;;  %v8956_v55 = vpop.permute.xlu1 %1880 }
 0x23f   : > { %v1160_v22 = vsel %vm1120_vm1, %v1092_v19, -inf }
 0x240   : > { %1161 = vmax.xlane.f32.xlu0 %v1160_v22 }
 0x244   : > { %v1115_v24 = vpop.f32.mrf.mxu3 }
 0x245   : > { %v1116_v27 = vadd.f32 %v1115_v24, %v8885_v12  ;;  %v8958_v24 = vpop.permute.xlu1 %1980 }
 0x247   : > { %v1163_v30 = vsel %vm1120_vm1, %v1116_v27, -inf }
 0x248   : > { %1164 = vmax.xlane.f32.xlu2 %v1163_v30  ;;  %1131 = vmax.xlane.f32.xlu0 %v1130_v34 }
 0x24b   : > { %v1123_v22 = vpop.xlane.xlu0 %1122 }
 0x24c   : > { %v1117_v8 = vpop.f32.mrf.mxu3  ;;  %v1169_v63 = vsub.f32 %v8888_v18, %v1123_v22  ;;  %v8971_v22 = vpop.permute.xlu2 %1783 }
 0x24d   : > { %v8932_v17 = vadd.f32 %v1117_v8, %v8905_v44 }
 0x24e   : > { %v1185_v30 = vmul.f32 1.442695, %v1169_v63 }
 0x24f   : > { %v1166_v46 = vsel %vm1120_vm1, %v8932_v17, -inf }
 0x250   : > { %1167 = vmax.xlane.f32.xlu2 %v1166_v46  ;;  %7841 = vpow2.f32 %v1185_v30 }
 0x254   : > { %v8973_v21 = vpop.permute.xlu2 %1955 }
 0x256   : > { %v8961_v8 = vpop.eup %7841 }
 0x258   : > { %1125 = vmax.xlane.f32.xlu2 %v1124_v37  ;;  %v1217_v37 = vsel %vm1120_vm1, %v8961_v8, 0.0 }
 0x25c   : > { %1761 = vrot.lane.b32.xlu0 %v8718_v6, %s8425_s27 }
 0x260   : > { %1152 = vmax.xlane.f32.xlu2 %v1151_v4 }
 0x27b   : > { %v1141_v34 = vpop.xlane.xlu1 %1140 }
 0x283   : > { %v1144_v46 = vpop.xlane.xlu1 %1143 }
 0x284   : > { %v1176_v2 = vsub.f32 %v8908_v51, %v1144_v46 }
 0x286   : > { %1218 = vadd.xlane.f32.xlu0 %v1217_v37 }
 0x28b   : > { %v1129_v4 = vpop.xlane.xlu1 %1128 }
 0x28c   : > { %v1171_v61 = vsub.f32 %v960_v54, %v1129_v4 }
 0x28e   : > { %v1189_v52 = vmul.f32 1.442695, %v1171_v61 }
 0x290   : > { %7843 = vpow2.f32 %v1189_v52  ;;  %v8979_v52 = vpop.permute.xlu2 %1787 }
 0x296   : > { %v8965_v25 = vpop.eup %7843 }
 0x297   : > { %v1223_v18 = vsel %vm1120_vm1, %v8965_v25, 0.0 }
 0x298   : > { %1224 = vadd.xlane.f32.xlu1 %v1223_v18 }
 0x2a3   : > { %v1156_v63 = vpop.xlane.xlu1 %1155 }
 0x2a4   : > { %v1180_v30 = vsub.f32 %v1066_v3, %v1156_v63 }
 0x2a6   : > { %v1207_v31 = vmul.f32 1.442695, %v1180_v30 }
 0x2a8   : > { %7845 = vpow2.f32 %v1207_v31 }
 0x2ab   : > { %v1159_v37 = vpop.xlane.xlu0 %1158 }
 0x2ae   : > { %v8975_v54 = vpop.eup %7845 }
 0x2af   : > { %v1250_v61 = vsel %vm1120_vm1, %v8975_v54, 0.0 }
 0x2b0   : > { %1251 = vadd.xlane.f32.xlu1 %v1250_v61  ;;  %v1199_v61 = vmul.f32 1.442695, %v1176_v2 }
 0x2b3   : > { %v1162_v4 = vpop.xlane.xlu0 %1161 }
 0x2b4   : > { %v1182_v23 = vsub.f32 %v1092_v19, %v1162_v4 }
 0x2b6   : > { %v1211_v18 = vmul.f32 1.442695, %v1182_v23 }
 0x2b8   : > { %7847 = vpow2.f32 %v1211_v18 }
 0x2bb   : > { %v1165_v58 = vpop.xlane.xlu2 %1164  ;;  %v1132_v45 = vpop.xlane.xlu0 %1131 }
 0x2bc   : > { %v1183_v3 = vsub.f32 %v1116_v27, %v1165_v58  ;;  %v1172_v63 = vsub.f32 %v962_v49, %v1132_v45  ;;  %v1181_v45 = vsub.f32 %v8921_v14, %v1159_v37  ;;  %v1175_v27 = vsub.f32 %v8898_v42, %v1141_v34 }
 0x2be   : > { %v8981_v31 = vpop.eup %7847  ;;  %v1213_v30 = vmul.f32 1.442695, %v1183_v3  ;;  %v1191_v59 = vmul.f32 1.442695, %v1172_v63  ;;  %v1209_v49 = vmul.f32 1.442695, %v1181_v45 }
 0x2bf   : > { %v1256_v35 = vsel %vm1120_vm1, %v8981_v31, 0.0  ;;  %v1197_v37 = vmul.f32 1.442695, %v1175_v27 }
 0x2c0   : > { %7849 = vpow2.f32 %v1213_v30  ;;  %1257 = vadd.xlane.f32.xlu1 %v1256_v35 }
 0x2c1   : > { %7851 = vpow2.f32 %v1191_v59 }
 0x2c2   : > { %7853 = vpow2.f32 %v1199_v61  ;;  %v842_v61 = vpop.f32.mrf.mxu2 }
 0x2c3   : > { %v1168_v19 = vpop.xlane.xlu2 %1167  ;;  %7855 = vpow2.f32 %v1209_v49 }
 0x2c6   : > { %v8986_v23 = vpop.eup %7849 }
 0x2c7   : > { %v8988_v4 = vpop.eup %7851  ;;  %v1259_v58 = vsel %vm1120_vm1, %v8986_v23, 0.0 }
 0x2c8   : > { %v1226_v51 = vsel %vm1120_vm1, %v8988_v4, 0.0  ;;  %1260 = vadd.xlane.f32.xlu1 %v1259_v58  ;;  %v8996_v2 = vpop.eup %7853  ;;  %v1184_v58 = vsub.f32 %v8932_v17, %v1168_v19 }
 0x2c9   : > { %1227 = vadd.xlane.f32.xlu0 %v1226_v51  ;;  %v1238_v14 = vsel %vm1120_vm1, %v8996_v2, 0.0  ;;  %v9001_v3 = vpop.eup %7855 }
 0x2ca   : > { %v1253_v42 = vsel %vm1120_vm1, %v9001_v3, 0.0  ;;  %v844_v49 = vpop.f32.mrf.mxu2 }
 0x2cb   : > { %v1126_v35 = vpop.xlane.xlu2 %1125  ;;  %v878_v27 = vpack.c.bf16 %v844_v49, %v844_v49  ;;  %v9069_v49 = vadd.f32 %v8916_v62, %v8905_v44 }
 0x2cc   : > { %v1170_v59 = vsub.f32 %v8937_v48, %v1126_v35 }
 0x2cd   : > { %12190 = vst [vmem:[#allocation49_spill] sm:$0xff] %v9069_v49 }
 0x2ce   : > { %v1187_v46 = vmul.f32 1.442695, %v1170_v59  ;;  %v876_v59 = vpack.c.bf16 %v842_v61, %v842_v61 }
 0x2d0   : > { %7857 = vpow2.f32 %v1187_v46  ;;  %v1724_v46 = vunpack.c.l.b16 %v876_v59 }
 0x2d1   : > { %1239 = vadd.xlane.f32.xlu0 %v1238_v14  ;;  %7859 = vpow2.f32 %v1197_v37  ;;  %v1725_v14 = vunpack.c.l.b16 %v878_v27 }
 0x2d3   : > { %v1153_v18 = vpop.xlane.xlu2 %1152  ;;  %v9021_v19 = vpack.c.b16 %v1725_v14, %v1724_v46  ;;  %v1148_v46 = vsel %vm1120_vm1, %v9069_v49, -inf  ;;  %v9080_v14 = vadd.f32 %v8893_v39, %v8885_v12 }
 0x2d4   : > { %v1179_v48 = vsub.f32 %v8944_v53, %v1153_v18  ;;  %v1215_v53 = vmul.f32 1.442695, %v1184_v58 }
 0x2d5   : > { %12188 = vst [vmem:[#allocation47_spill] sm:$0xff] %v9021_v19  ;;  %1738 = vmatpush.bf16.msrb.mxu1 %v9021_v19 }
 0x2d6   : > { %v9003_v63 = vpop.eup %7857  ;;  %v1205_v34 = vmul.f32 1.442695, %v1179_v48  ;;  %v9052_v48 = vadd.f32 %v8895_v41, %v8905_v44  ;;  %12191 = vst [vmem:[#allocation50_spill] sm:$0xff] %v9080_v14 }
 0x2d7   : > { %v1220_v30 = vsel %vm1120_vm1, %v9003_v63, 0.0  ;;  %v9010_v45 = vpop.eup %7859 }
 0x2d8   : > { %1221 = vadd.xlane.f32.xlu2 %v1220_v30  ;;  %7861 = vpow2.f32 %v1205_v34  ;;  %v1235_v51 = vsel %vm1120_vm1, %v9010_v45, 0.0  ;;  %12189 = vst [vmem:[#allocation48_spill] sm:$0xff] %v9052_v48  ;;  %v1136_v30 = vsel %vm1120_vm1, %v9052_v48, -inf }
 0x2d9   : > { %1254 = vadd.xlane.f32.xlu0 %v1253_v42  ;;  %7863 = vpow2.f32 %v1215_v53  ;;  %v9056_v42 = vpop.permute.xlu0 %1761 }
 0x2de   : > { %v9017_v35 = vpop.eup %7861 }
 0x2df   : > { %v1247_v17 = vsel %vm1120_vm1, %v9017_v35, 0.0  ;;  %v9026_v37 = vpop.eup %7863 }
 0x2e0   : > { %1236 = vadd.xlane.f32.xlu2 %v1235_v51  ;;  %v1262_v18 = vsel %vm1120_vm1, %v9026_v37, 0.0 }
 0x2e1   : > { %1830 = vrot.lane.b32.xlu1 %v8742_v26, %s8425_s27 }
 0x2e8   : > { %1248 = vadd.xlane.f32.xlu2 %v1247_v17 }
 0x2e9   : > { %2560 = vrot.lane.b32.xlu1 %v8873_v10, %s8425_s27 }
 0x2ed   : > { %1777 = vrot.lane.b32.xlu0 %v8800_v32, %s8425_s27 }
 0x2f0   : > { %1263 = vadd.xlane.f32.xlu2 %v1262_v18 }
 0x2f1   : > { %2789 = vrot.lane.b32.xlu1 %v8712_v60, %s8426_s22  ;;  %v1795_v60 = vrot.slane %v8952_v29, 4 }
 0x2f3   : > { %v9158_v49 = vunpack.c.l.b16 %v1795_v60 }
 0x2f5   : > { %2460 = vrot.lane.b32.xlu0 %v8780_v5, %s8425_s27 }
 0x2f9   : > { %2485 = vrot.lane.b32.xlu1 %v8794_v50, %s8425_s27  ;;  %v1219_v61 = vpop.xlane.xlu0 %1218  ;;  %v868_v50 = vpack.c.bf16 %v8822_v0, %v8822_v0 }
 0x2fa   : > { %7865 = vrcp.f32 %v1219_v61  ;;  %v1276_v39 = vand.u32 2147483648, %v1219_v61  ;;  %vm1270_vm3 = vweird.f32 %v1219_v61 }
 0x2fb   : > { %v1668_v0 = vunpack.c.l.b16 %v868_v50 }
 0x300   : > { %v7866_v51 = vpop.eup %7865 }
 0x301   : > { %2795 = vrot.lane.b32.xlu1 %v8733_v20, %s8426_s22  ;;  %v1266_v53 = vmul.f32 %v7866_v51, %v1219_v61  ;;  %vm1271_vm2 = vweird.f32 %v7866_v51 }
 0x302   : > { %vm1272_vm4 = vmor %vm1270_vm3, %vm1271_vm2 }
 0x303   : > { %v1267_v59 = vsub.f32 1.0, %v1266_v53 }
 0x305   : > { %v1268_v18 = vmul.f32 %v7866_v51, %v1267_v59 }
 0x307   : > { %v1269_v20 = vadd.f32 %v7866_v51, %v1268_v18 }
 0x308   : > { %1763 = vrot.lane.b32.xlu2 %v8725_v11, %s8425_s27 }
 0x309   : > { %2585 = vrot.lane.b32.xlu1 %v9021_v19, %s8425_s27  ;;  %v1274_v19 = vand.u32 2147483647, %v1219_v61  ;;  %v1273_v10 = vsel %vm1272_vm4, %v7866_v51, %v1269_v20  ;;  %v1796_v61 = vrot.slane %v8941_v56, 4  ;;  %v1801_v56 = vrot.slane %v8950_v36, 4 }
 0x30b   : > { %v9058_v34 = vpop.xlane.xlu1 %1224  ;;  %vm1275_vm5 = vcmp.eq.f32.partialorder %v1274_v19, 8.507059e+37 }
 0x30c   : > { %7867 = vrcp.f32 %v9058_v34  ;;  %vm1300_vm7 = vweird.f32 %v9058_v34  ;;  %v1304_v36 = vand.u32 2147483647, %v9058_v34 }
 0x30e   : > { %vm1305_vm12 = vcmp.eq.f32.partialorder %v1304_v36, 8.507059e+37 }
 0x310   : > { %1779 = vrot.lane.b32.xlu2 %v8805_v38, %s8425_s27 }
 0x311   : > { %2885 = vrot.lane.b32.xlu1 %v8754_v33, %s8426_s22  ;;  %v1133_v33 = vsel %vm1120_vm1, %v9080_v14, -inf }
 0x312   : > { %v9072_v27 = vpop.eup %7867 }
 0x313   : > { %vm1301_vm6 = vweird.f32 %v9072_v27 }
 0x314   : > { %vm9126_vm8 = vmor %vm1300_vm7, %vm1301_vm6 }
 0x318   : > { %1930 = vrot.lane.b32.xlu2 %v8824_v1, %s8425_s27 }
 0x31f   : > { %1137 = vmax.xlane.f32.xlu0 %v1136_v30  ;;  %v1296_v30 = vmul.f32 %v9072_v27, %v9058_v34 }
 0x323   : > { %v9060_v58 = vpop.xlane.xlu1 %1251 }
 0x333   : > { %2791 = vrot.lane.b32.xlu0 %v8718_v6, %s8426_s22  ;;  %v9065_v41 = vpop.xlane.xlu1 %1257 }
 0x334   : > { %7869 = vrcp.f32 %v9065_v41  ;;  %vm1465_vm10 = vweird.f32 %v9065_v41 }
 0x33a   : > { %v9084_v62 = vpop.eup %7869 }
 0x33b   : > { %2803 = vrot.lane.b32.xlu0 %v8784_v7, %s8426_s22  ;;  %1149 = vmax.xlane.f32.xlu1 %v1148_v46  ;;  %v1461_v53 = vmul.f32 %v9084_v62, %v9065_v41  ;;  %v1297_v46 = vsub.f32 1.0, %v1296_v30  ;;  %v9100_v30 = vpop.xlane.xlu1 %1260  ;;  %vm1466_vm9 = vweird.f32 %v9084_v62 }
 0x33c   : > { %v9082_v17 = vpop.xlane.xlu0 %1227  ;;  %vm9152_vm11 = vmor %vm1465_vm10, %vm1466_vm9 }
 0x33d   : > { %v1462_v59 = vsub.f32 1.0, %v1461_v53  ;;  %7871 = vrcp.f32 %v9082_v17  ;;  %v1298_v18 = vmul.f32 %v9072_v27, %v1297_v46  ;;  %v1277_v53 = vor.u32 1.1754944e-38, %v1276_v39 }
 0x33e   : > { %vm1315_vm4 = vweird.f32 %v9082_v17 }
 0x33f   : > { %v1278_v5 = vsel %vm1275_vm5, %v1277_v53, %v1273_v10  ;;  %v1463_v7 = vmul.f32 %v9084_v62, %v1462_v59  ;;  %v1299_v20 = vadd.f32 %v9072_v27, %v1298_v18  ;;  %v1306_v10 = vand.u32 2147483648, %v9058_v34 }
 0x340   : > { %v1279_v39 = vmul.f32 %v8961_v8, %v1278_v5  ;;  %v1471_v8 = vand.u32 2147483648, %v9065_v41 }
 0x341   : > { %1134 = vmax.xlane.f32.xlu2 %v1133_v33  ;;  %v870_v33 = vpack.c.bf16 %v8836_v15, %v8836_v15  ;;  %v9113_v15 = vunpack.c.l.b16 %v1796_v61  ;;  %v1464_v59 = vadd.f32 %v9084_v62, %v1463_v7  ;;  %v1802_v61 = vrot.slane %v8971_v22, 4 }
 0x342   : > { %v1303_v5 = vsel %vm9126_vm8, %v9072_v27, %v1299_v20  ;;  %v1469_v7 = vand.u32 2147483647, %v9065_v41  ;;  %v9150_v22 = vunpack.c.l.b16 %v1801_v56  ;;  %v1505_v29 = vpack.c.bf16 %v1279_v39, %v1279_v39 }
 0x343   : > { %2805 = vrot.lane.b32.xlu0 %v8787_v13, %s8426_s22  ;;  %v9110_v51 = vpop.eup %7871  ;;  %v1669_v46 = vunpack.c.l.b16 %v870_v33  ;;  %v1468_v41 = vsel %vm9152_vm11, %v9084_v62, %v1464_v59  ;;  %v9165_v56 = vunpack.c.l.b16 %v1802_v61  ;;  %v1472_v48 = vor.u32 1.1754944e-38, %v1471_v8 }
 0x344   : > { %v9095_v6 = vpop.xlane.xlu0 %1239  ;;  %v1311_v53 = vmul.f32 %v9110_v51, %v9082_v17  ;;  %vm1470_vm13 = vcmp.eq.f32.partialorder %v1469_v7, 8.507059e+37  ;;  %v9181_v59 = vunpack.c.l.b16 %v1505_v29  ;;  %vm1316_vm15 = vweird.f32 %v9110_v51 }
 0x345   : > { %7873 = vrcp.f32 %v9095_v6  ;;  %v9156_v13 = vpack.c.b16 %v1669_v46, %v1668_v0  ;;  %v1379_v46 = vand.u32 2147483647, %v9095_v6  ;;  %vm1375_vm14 = vweird.f32 %v9095_v6 }
 0x346   : > { %7875 = vrcp.f32 %v9100_v30  ;;  %v1312_v60 = vsub.f32 1.0, %v1311_v53  ;;  %v1381_v27 = vand.u32 2147483648, %v9095_v6 }
 0x347   : > { %7877 = vrcp.f32 %v9060_v58  ;;  %12196 = vst [vmem:[#allocation51_spill] sm:$0xff] %v9156_v13  ;;  %vm9198_vm2 = vcmp.eq.f32.partialorder %v1379_v46, 8.507059e+37 }
 0x34b   : > { %v9116_v19 = vpop.eup %7873  ;;  %2860 = vrot.lane.b32.xlu0 %v8742_v26, %s8426_s22  ;;  %v9123_v50 = vpop.xlane.xlu2 %1221  ;;  %v1307_v26 = vor.u32 1.1754944e-38, %v1306_v10 }
 0x34c   : > { %v1371_v18 = vmul.f32 %v9116_v19, %v9095_v6  ;;  %v9135_v33 = vpop.xlane.xlu0 %1254  ;;  %7879 = vrcp.f32 %v9123_v50  ;;  %v9143_v34 = vpop.eup %7875  ;;  %vm1376_vm3 = vweird.f32 %v9116_v19  ;;  %v1289_v46 = vand.u32 2147483647, %v9123_v50 }
 0x34d   : > { %7881 = vrcp.f32 %v9135_v33  ;;  %v9163_v1 = vpop.eup %7877  ;;  %v1308_v10 = vsel %vm1305_vm12, %v1307_v26, %v1303_v5  ;;  %v9169_v38 = vmul.f32 %v9143_v34, %v9100_v30  ;;  %v1456_v62 = vand.u32 2147483648, %v9135_v33  ;;  %vm9219_vm7 = vmor %vm1375_vm14, %vm1376_vm3 }
 0x34e   : > { %v1372_v20 = vsub.f32 1.0, %v1371_v18  ;;  %v1473_v18 = vsel %vm1470_vm13, %v1472_v48, %v1468_v41  ;;  %v9185_v5 = vmul.f32 %v9163_v1, %v9060_v58  ;;  %v9190_v7 = vmul.f32 %v8965_v25, %v1308_v10 }
 0x34f   : > { %v1477_v53 = vsub.f32 1.0, %v9169_v38  ;;  %v9203_v25 = vmul.f32 %v8981_v31, %v1473_v18  ;;  %v1291_v10 = vand.u32 2147483648, %v9123_v50  ;;  %v1454_v31 = vand.u32 2147483647, %v9135_v33 }
 0x350   : > { %v1373_v36 = vmul.f32 %v9116_v19, %v1372_v20  ;;  %v1313_v20 = vmul.f32 %v9110_v51, %v1312_v60  ;;  %vm1285_vm8 = vweird.f32 %v9123_v50  ;;  %vm1450_vm9 = vweird.f32 %v9135_v33 }
 0x351   : > { %vm1290_vm11 = vcmp.eq.f32.partialorder %v1289_v46, 8.507059e+37  ;;  %vm1455_vm13 = vcmp.eq.f32.partialorder %v1454_v31, 8.507059e+37  ;;  %v1319_v46 = vand.u32 2147483647, %v9082_v17 }
 0x352   : > { %v7880_v39 = vpop.eup %7879  ;;  %v1374_v38 = vadd.f32 %v9116_v19, %v1373_v36  ;;  %v1314_v18 = vadd.f32 %v9110_v51, %v1313_v20 }
 0x353   : > { %2799 = vrot.lane.b32.xlu0 %v8760_v40, %s8426_s22  ;;  %v9179_v26 = vpop.xlane.xlu2 %1236  ;;  %v7882_v61 = vpop.eup %7881  ;;  %v1281_v8 = vmul.f32 %v7880_v39, %v9123_v50  ;;  %vm1286_vm5 = vweird.f32 %v7880_v39  ;;  %v1382_v40 = vor.u32 1.1754944e-38, %v1381_v27  ;;  %v1292_v27 = vor.u32 1.1754944e-38, %v1291_v10 }
 0x354   : > { %7883 = vrcp.f32 %v9179_v26  ;;  %v1446_v48 = vmul.f32 %v7882_v61, %v9135_v33  ;;  %vm1451_vm6 = vweird.f32 %v7882_v61  ;;  %vm1287_vm10 = vmor %vm1285_vm8, %vm1286_vm5  ;;  %vm1360_vm3 = vweird.f32 %v9179_v26 }
 0x355   : > { %v1282_v41 = vsub.f32 1.0, %v1281_v8  ;;  %vm1452_vm12 = vmor %vm1450_vm9, %vm1451_vm6  ;;  %vm1320_vm5 = vcmp.eq.f32.partialorder %v1319_v46, 8.507059e+37  ;;  %vm1481_vm6 = vweird.f32 %v9143_v34 }
 0x356   : > { %v1447_v0 = vsub.f32 1.0, %v1446_v48 }
 0x357   : > { %v1283_v60 = vmul.f32 %v7880_v39, %v1282_v41 }
 0x358   : > { %v1448_v8 = vmul.f32 %v7882_v61, %v1447_v0  ;;  %v1378_v0 = vsel %vm9219_vm7, %v9116_v19, %v1374_v38  ;;  %v1366_v38 = vand.u32 2147483648, %v9179_v26  ;;  %vm1480_vm7 = vweird.f32 %v9100_v30 }
 0x359   : > { %2787 = vrot.lane.b32.xlu2 %v8710_v57, %s8426_s22  ;;  %v1284_v41 = vadd.f32 %v7880_v39, %v1283_v60  ;;  %v1457_v60 = vor.u32 1.1754944e-38, %v1456_v62  ;;  %v1383_v19 = vsel %vm9198_vm2, %v1382_v40, %v1378_v0  ;;  %vm9248_vm2 = vmor %vm1315_vm4, %vm1316_vm15 }
 0x35a   : > { %v7884_v36 = vpop.eup %7883  ;;  %v1449_v20 = vadd.f32 %v7882_v61, %v1448_v8  ;;  %v1384_v0 = vmul.f32 %v8996_v2, %v1383_v19  ;;  %v1791_v19 = vrot.slane %v9056_v42, 4  ;;  %vm9286_vm8 = vmor %vm1480_vm7, %vm1481_vm6 }
 0x35b   : > { %v1356_v57 = vmul.f32 %v7884_v36, %v9179_v26  ;;  %v9230_v6 = vpop.xlane.xlu2 %1248  ;;  %v1288_v14 = vsel %vm1287_vm10, %v7880_v39, %v1284_v41  ;;  %vm1361_vm14 = vweird.f32 %v7884_v36  ;;  %v1364_v39 = vand.u32 2147483647, %v9179_v26 }
 0x35c   : > { %7885 = vrcp.f32 %v9230_v6  ;;  %v1293_v50 = vsel %vm1290_vm11, %v1292_v27, %v1288_v14  ;;  %v1453_v48 = vsel %vm1452_vm12, %v7882_v61, %v1449_v20  ;;  %v1321_v14 = vand.u32 2147483648, %v9082_v17  ;;  %vm1362_vm15 = vmor %vm1360_vm3, %vm1361_vm14 }
 0x35d   : > { %v1357_v33 = vsub.f32 1.0, %v1356_v57  ;;  %v1294_v10 = vmul.f32 %v9003_v63, %v1293_v50  ;;  %v1458_v8 = vsel %vm1455_vm13, %v1457_v60, %v1453_v48  ;;  %v1518_v61 = vpack.c.bf16 %v9203_v25, %v9203_v25 }
 0x35e   : > { %v1459_v62 = vmul.f32 %v9001_v3, %v1458_v8  ;;  %v1478_v63 = vmul.f32 %v9143_v34, %v1477_v53  ;;  %v1318_v25 = vsel %vm9248_vm2, %v9110_v51, %v1314_v18  ;;  %v1367_v17 = vor.u32 1.1754944e-38, %v1366_v38 }
 0x35f   : > { %v1358_v32 = vmul.f32 %v7884_v36, %v1357_v33  ;;  %v1506_v57 = vpack.c.bf16 %v1294_v10, %v1294_v10  ;;  %vm1365_vm4 = vcmp.eq.f32.partialorder %v1364_v39, 8.507059e+37  ;;  %v1322_v20 = vor.u32 1.1754944e-38, %v1321_v14 }
 0x360   : > { %v1517_v3 = vpack.c.bf16 %v1459_v62, %v1459_v62  ;;  %v1692_v50 = vunpack.c.l.b16 %v1518_v61  ;;  %v1479_v51 = vadd.f32 %v9143_v34, %v1478_v63  ;;  %v1512_v48 = vpack.c.bf16 %v1384_v0, %v1384_v0 }
 0x361   : > { %v1359_v29 = vadd.f32 %v7884_v36, %v1358_v32  ;;  %2835 = vrot.lane.b32.xlu2 %v8723_v9, %s8426_s22  ;;  %v1524_v41 = vunpack.c.l.b16 %v1506_v57  ;;  %v1486_v38 = vand.u32 2147483648, %v9100_v30  ;;  %v12203_v8 = vpack.c.b16 %v9165_v56, %v9150_v22 }
 0x362   : > { %v9256_v31 = vpop.eup %7885  ;;  %v1691_v27 = vunpack.c.l.b16 %v1517_v3  ;;  %v1432_v62 = vsub.f32 1.0, %v9185_v5  ;;  %v12206_v22 = vpack.c.b16 %v9113_v15, %v9158_v49  ;;  %v1507_v5 = vpack.c.bf16 %v9190_v7, %v9190_v7  ;;  %v9306_v7 = vpop.permute.xlu1 %1830 }
 0x363   : > { %v1363_v53 = vsel %vm1362_vm15, %v7884_v36, %v1359_v29  ;;  %v1416_v32 = vmul.f32 %v9256_v31, %v9230_v6  ;;  %v9265_v26 = vpop.xlane.xlu2 %1263  ;;  %v1525_v2 = vpack.c.b16 %v1524_v41, %v9181_v59  ;;  %v1323_v36 = vsel %vm1320_vm5, %v1322_v20, %v1318_v25 }
 0x364   : > { %v1368_v60 = vsel %vm1365_vm4, %v1367_v17, %v1363_v53  ;;  %7887 = vrcp.f32 %v9265_v26  ;;  %v1693_v18 = vpack.c.b16 %v1692_v50, %v1691_v27  ;;  %v1964_v39 = vsel %vm917_vm0, %v12203_v8, 0 }
 0x365   : > { %v1369_v33 = vmul.f32 %v9010_v45, %v1368_v60  ;;  %v1417_v10 = vsub.f32 1.0, %v1416_v32  ;;  %7198 = vmatmul.msk.bf16.vlgmr.msrb.gmra.mxu3 %vm1120_vm1, %v1525_v2  ;;  %v1484_v59 = vand.u32 2147483647, %v9100_v30  ;;  %v1889_v30 = vsel %vm917_vm0, %v12206_v22, 0 }
 0x366   : > { %1682 = vmatpush.bf16.msrb.mxu3 %v9156_v13  ;;  %7204 = vmatmul.msk.bf16.vlgmr.msrb.gmra.mxu0 %vm1120_vm1, %v1693_v18  ;;  %v1324_v56 = vmul.f32 %v8988_v4, %v1323_v36  ;;  %v1803_v14 = vrot.slane %v8954_v16, 4  ;;  %v1483_v57 = vsel %vm9286_vm8, %v9143_v34, %v1479_v51  ;;  %v1608_v40 = vunpack.c.l.b16 %v1512_v48  ;;  %v1778_v36 = vpop.permute.xlu0 %1777 }
 0x367   : > { %v1511_v45 = vpack.c.bf16 %v1369_v33, %v1369_v33  ;;  %1973 = vmatpush.bf16.xpose.msrb.mxu0 %v1964_v39  ;;  %v1832_v63 = vunpack.c.l.b16 %v1791_v19  ;;  %v1487_v29 = vor.u32 1.1754944e-38, %v1486_v38  ;;  %v1418_v49 = vmul.f32 %v9256_v31, %v1417_v10 }
 0x368   : > { %v1433_v4 = vmul.f32 %v9163_v1, %v1432_v62  ;;  %vm1485_vm9 = vcmp.eq.f32.partialorder %v1484_v59, 8.507059e+37  ;;  %v1508_v0 = vpack.c.bf16 %v1324_v56, %v1324_v56  ;;  %v1551_v34 = vunpack.c.l.b16 %v1507_v5 }
 0x369   : > { %2797 = vrot.lane.b32.xlu2 %v8744_v28, %s8426_s22  ;;  %v1607_v61 = vunpack.c.l.b16 %v1511_v45  ;;  %v1488_v17 = vsel %vm1485_vm9, %v1487_v29, %v1483_v57  ;;  %vm1436_vm10 = vweird.f32 %v9163_v1  ;;  %vm1421_vm11 = vweird.f32 %v9256_v31 }
 0x36a   : > { %v7888_v46 = vpop.eup %7887  ;;  %v1499_v53 = vand.u32 2147483647, %v9265_v26  ;;  %v1501_v32 = vand.u32 2147483648, %v9265_v26  ;;  %v1419_v27 = vadd.f32 %v9256_v31, %v1418_v49  ;;  %v1434_v50 = vadd.f32 %v9163_v1, %v1433_v4 }
 0x36b   : > { %v1491_v15 = vmul.f32 %v7888_v46, %v9265_v26  ;;  %v1764_v3 = vpop.permute.xlu2 %1763  ;;  %v1609_v16 = vpack.c.b16 %v1608_v40, %v1607_v61  ;;  %vm1496_vm12 = vweird.f32 %v7888_v46  ;;  %v1489_v51 = vmul.f32 %v8986_v23, %v1488_v17 }
 0x36c   : > { %v1792_v25 = vrot.slane %v1764_v3, 4  ;;  %vm1420_vm13 = vweird.f32 %v9230_v6  ;;  %v1426_v2 = vand.u32 2147483648, %v9230_v6  ;;  %v1424_v33 = vand.u32 2147483647, %v9230_v6 }
 0x36d   : > { %v1492_v41 = vsub.f32 1.0, %v1491_v15  ;;  %7201 = vmatmul.msk.bf16.vlgmr.msra.gmra.mxu1 %vm1120_vm1, %v1609_v16  ;;  %vm9318_vm14 = vmor %vm1420_vm13, %vm1421_vm11  ;;  %vm1495_vm2 = vweird.f32 %v9265_v26  ;;  %v1552_v19 = vunpack.c.l.b16 %v1508_v0  ;;  %vm1435_vm3 = vweird.f32 %v9060_v58 }
 0x36e   : > { %v1833_v60 = vunpack.c.l.b16 %v1792_v25  ;;  %1898 = vmatpush.bf16.xpose.msra.mxu1 %v1889_v30  ;;  %v1439_v23 = vand.u32 2147483647, %v9060_v58  ;;  %v1441_v38 = vand.u32 2147483648, %v9060_v58  ;;  %vm1497_vm15 = vmor %vm1495_vm2, %vm1496_vm12  ;;  %v1502_v10 = vor.u32 1.1754944e-38, %v1501_v32 }
 0x36f   : > { %v1493_v20 = vmul.f32 %v7888_v46, %v1492_v41  ;;  %vm9332_vm4 = vmor %vm1435_vm3, %vm1436_vm10  ;;  %v1423_v26 = vsel %vm9318_vm14, %v9256_v31, %v1419_v27  ;;  %vm1500_vm5 = vcmp.eq.f32.partialorder %v1499_v53, 8.507059e+37  ;;  %v1804_v62 = vrot.slane %v8979_v52, 4  ;;  %v2561_v31 = vpop.permute.xlu1 %2560 }
 0x370   : > { %v1834_v39 = vpack.c.b16 %v1833_v60, %v1832_v63  ;;  %v1438_v58 = vsel %vm9332_vm4, %v9163_v1, %v1434_v50  ;;  %v1427_v59 = vor.u32 1.1754944e-38, %v1426_v2  ;;  %v1519_v42 = vpack.c.bf16 %v1489_v51, %v1489_v51  ;;  %v2461_v1 = vpop.permute.xlu0 %2460 }
 0x371   : > { %v1494_v48 = vadd.f32 %v7888_v46, %v1493_v20  ;;  %2793 = vrot.lane.b32.xlu2 %v8725_v11, %s8426_s22  ;;  %vm1425_vm6 = vcmp.eq.f32.partialorder %v1424_v33, 8.507059e+37  ;;  %v1553_v30 = vpack.c.b16 %v1552_v19, %v1551_v34  ;;  %v1982_v56 = vunpack.c.l.b16 %v1803_v14 }
 0x372   : > { %v1442_v5 = vor.u32 1.1754944e-38, %v1441_v38  ;;  %v1428_v57 = vsel %vm1425_vm6, %v1427_v59, %v1423_v26  ;;  %vm1440_vm7 = vcmp.eq.f32.partialorder %v1439_v23, 8.507059e+37  ;;  %v1839_v52 = vsel %vm917_vm0, %v1834_v39, 0 }
 0x373   : > { %v1498_v8 = vsel %vm1497_vm15, %v7888_v46, %v1494_v48  ;;  %v1983_v61 = vunpack.c.l.b16 %v1804_v62  ;;  %v1780_v63 = vpop.permute.xlu2 %1779  ;;  %v1429_v14 = vmul.f32 %v9017_v35, %v1428_v57  ;;  %v1799_v25 = vrot.slane %v1778_v36, 4 }
 0x374   : > { %v1503_v45 = vsel %vm1500_vm5, %v1502_v10, %v1498_v8  ;;  %v1443_v40 = vsel %vm1440_vm7, %v1442_v5, %v1438_v58  ;;  %v1800_v15 = vrot.slane %v1780_v63, 4  ;;  %v9364_v50 = vadd.f32 %v8913_v47, %v8885_v12  ;;  %v12218_v63 = vld [vmem:[#allocation39_spill] sm:$0xff] }
 0x375   : > { %v1504_v22 = vmul.f32 %v9026_v37, %v1503_v45  ;;  %7199 = vmatmul.msk.bf16.vlgmr.msra.gmra.mxu3 %vm1120_vm1, %v1553_v30  ;;  %v1719_v37 = vunpack.c.l.b16 %v1519_v42  ;;  %v1984_v49 = vpack.c.b16 %v1983_v61, %v1982_v56  ;;  %v1444_v4 = vmul.f32 %v8975_v54, %v1443_v40  ;;  %v12217_v40 = vld [vmem:[#allocation34_spill] sm:$0xff] }
 0x376   : > { %1848 = vmatpush.bf16.xpose.msra.mxu3 %v1839_v52  ;;  %7208 = vmatmul.msk.bf16.vlgmr.msra.gmra.mxu0 %vm917_vm0, %v8967_v43  ;;  %v1515_v16 = vpack.c.bf16 %v1429_v14, %v1429_v14  ;;  %v1933_v41 = vunpack.c.l.b16 %v1800_v15  ;;  %v1932_v34 = vunpack.c.l.b16 %v1799_v25  ;;  %v1145_v51 = vsel %vm1120_vm1, %v9364_v50, -inf  ;;  %v9428_v52 = vld [vmem:[%s12079_s1 + $0x8] sm:$0xff]  ;;  %v12220_v14 = vld [vmem:[#allocation27_spill] sm:$0xff]  ;;  %v12223_v25 = vld [vmem:[#allocation50_spill] sm:$0xff] }
 0x377   : > { %v1520_v46 = vpack.c.bf16 %v1504_v22, %v1504_v22  ;;  %2473 = vmatpush.bf16.msra.mxu0 %v2461_v1  ;;  %v1989_v17 = vsel %vm917_vm0, %v1984_v49, 0  ;;  %v1516_v0 = vpack.c.bf16 %v1444_v4, %v1444_v4  ;;  %v9352_v43 = vpop.permute.xlu1 %2789  ;;  %v12221_v49 = vld [vmem:[#allocation28_spill] sm:$0xff]  ;;  %v12222_v4 = vld [vmem:[#allocation33_spill] sm:$0xff] }
 0x378   : > { %v1663_v53 = vunpack.c.l.b16 %v1515_v16  ;;  %v1934_v32 = vpack.c.b16 %v1933_v41, %v1932_v34 }
 0x379   : > { %v1720_v29 = vunpack.c.l.b16 %v1520_v46  ;;  %v1664_v35 = vunpack.c.l.b16 %v1516_v0  ;;  %v12224_v0 = vld [vmem:[#allocation35_spill] sm:$0xff] }
 0x37a   : > { %v1939_v54 = vsel %vm917_vm0, %v1934_v32, 0 }
 0x37b   : > { %v1721_v3 = vpack.c.b16 %v1720_v29, %v1719_v37  ;;  %v1665_v27 = vpack.c.b16 %v1664_v35, %v1663_v53  ;;  %v12219_v37 = vld [vmem:[#allocation36_spill] sm:$0xff] }
 0x37c   : > { %v12225_v53 = vld [vmem:[#allocation48_spill] sm:$0xff] }
 0x37d   : > { %7205 = vmatmul.msk.bf16.vlgmr.msrb.gmra.mxu1 %vm1120_vm1, %v1721_v3 }
 0x37e   : > { %1998 = vmatpush.bf16.xpose.msrb.mxu1 %v1989_v17 }
 0x37f   : > { %v2486_v20 = vpop.permute.xlu1 %2485 }
 0x385   : > { %7203 = vmatmul.msk.bf16.vlgmr.msrb.gmra.mxu3 %vm1120_vm1, %v1665_v27  ;;  %v12226_v27 = vld [vmem:[#allocation41_spill] sm:$0xff] }
 0x386   : > { %1948 = vmatpush.bf16.xpose.msrb.mxu3 %v1939_v54  ;;  %7212 = vmatmul.msk.bf16.vlgmr.msrb.gmra.mxu0 %vm917_vm0, %v8973_v21 }
 0x387   : > { %2573 = vmatpush.bf16.msrb.mxu0 %v2561_v31  ;;  %v9360_v60 = vpop.permute.xlu1 %2795 }
 0x38d   : > { %7209 = vmatmul.msk.bf16.vlgmr.msra.gmra.mxu1 %vm917_vm0, %v8956_v55  ;;  %v1931_v55 = vpop.permute.xlu2 %1930 }
 0x38e   : > { %2498 = vmatpush.bf16.msra.mxu1 %v2486_v20 }
 0x38f   : > { %v2586_v21 = vpop.permute.xlu1 %2585 }
 0x392   : > { %v1138_v1 = vpop.xlane.xlu0 %1137 }
 0x393   : > { %v1174_v32 = vsub.f32 %v12225_v53, %v1138_v1 }
 0x395   : > { %7207 = vmatmul.msk.bf16.vlgmr.msra.gmra.mxu3 %vm917_vm0, %v9306_v7  ;;  %v1195_v54 = vmul.f32 1.442695, %v1174_v32 }
 0x39a   : > { %1146 = vmax.xlane.f32.xlu2 %v1145_v51 }
 0x39d   : > { %7213 = vmatmul.msk.bf16.vlgmr.msrb.gmra.mxu1 %vm917_vm0, %v8958_v24 }
 0x39e   : > { %2598 = vmatpush.bf16.msrb.mxu1 %v2586_v21 }
 0x3a5   : > { %7211 = vmatmul.msk.bf16.vlgmr.msrb.gmra.mxu3 %vm917_vm0, %v1931_v55  ;;  %v9441_v29 = vpop.permute.xlu0 %2791 }
 0x3ad   : > { %v9447_v3 = vpop.permute.xlu0 %2803 }
 0x3b4   : > { %v1135_v15 = vpop.xlane.xlu2 %1134 }
 0x3b5   : > { %v1173_v16 = vsub.f32 %v12223_v25, %v1135_v15  ;;  %v9454_v41 = vpop.permute.xlu0 %2805 }
 0x3b7   : > { %v1193_v34 = vmul.f32 1.442695, %v1173_v16 }
 0x3b9   : > { %7889 = vpow2.f32 %v1193_v34 }
 0x3ba   : > { %7891 = vpow2.f32 %v1195_v54 }
 0x3bc   : > { %v9452_v17 = vpop.permute.xlu2 %2787 }
 0x3bd   : > { %v9463_v20 = vpop.permute.xlu0 %2860 }
 0x3bf   : > { %v9465_v51 = vpop.eup %7889 }
 0x3c0   : > { %v1229_v21 = vsel %vm1120_vm1, %v9465_v51, 0.0 }
 0x3c4   : > { %v9459_v35 = vpop.permute.xlu2 %2835 }
 0x3cc   : > { %v9469_v55 = vpop.permute.xlu2 %2797 }
 0x3e3   : > { %v9373_v2 = vpop.f32.mrf.mxu0 }
 0x3e4   : > { %12211 = vst [vmem:[#allocation52_spill] sm:$0xff] %v9373_v2 }
 0x3ea   : > { %v9375_v36 = vpop.f32.mrf.mxu1 }
 0x3eb   : > { %12212 = vst [vmem:[#allocation53_spill] sm:$0xff] %v9375_v36  ;;  %v9377_v47 = vpop.f32.mrf.mxu0 }
 0x3ec   : > { %12213 = vst [vmem:[#allocation54_spill] sm:$0xff] %v9377_v47 }
 0x3f2   : > { %v9379_v18 = vpop.f32.mrf.mxu1 }
 0x3f3   : > { %12214 = vst [vmem:[#allocation55_spill] sm:$0xff] %v9379_v18  ;;  %v1875_v7 = vpop.f32.mrf.mxu0 }
 0x3f4   : > { %v9382_v33 = vadd.f32 %v1875_v7, %v8885_v12  ;;  %v9398_v12 = vld [vmem:[%s12079_s1] sm:$0xff]  ;;  %v9471_v7 = vpop.permute.xlu1 %2885 }
 0x3f6   : > { %v2017_v48 = vsel %vm1120_vm1, %v9382_v33, -inf }
 0x3f7   : > { %2018 = vmax.xlane.f32.xlu0 %v2017_v48  ;;  %v9473_v48 = vpop.eup %7891 }
 0x3fa   : > { %v9386_v24 = vpop.f32.mrf.mxu1 }
 0x3fb   : > { %12215 = vst [vmem:[#allocation56_spill] sm:$0xff] %v9386_v24  ;;  %v1877_v19 = vpop.f32.mrf.mxu0 }
 0x3fc   : > { %v9389_v23 = vadd.f32 %v1877_v19, %v8905_v44  ;;  %v9475_v19 = vpop.permute.xlu0 %2799 }
 0x3fe   : > { %v2020_v38 = vsel %vm1120_vm1, %v9389_v23, -inf }
 0x3ff   : > { %2021 = vmax.xlane.f32.xlu1 %v2020_v38  ;;  %v1232_v38 = vsel %vm1120_vm1, %v9473_v48, 0.0 }
 0x402   : > { %v9393_v10 = vpop.f32.mrf.mxu1 }
 0x403   : > { %12216 = vst [vmem:[#allocation57_spill] sm:$0xff] %v9393_v10  ;;  %v1975_v6 = vpop.f32.mrf.mxu0 }
 0x404   : > { %v9401_v26 = vadd.f32 %v9398_v12, %v1975_v6  ;;  %v9479_v6 = vpop.xlane.xlu1 %1149 }
 0x406   : > { %v2041_v8 = vsel %vm1120_vm1, %v9401_v26, -inf }
 0x407   : > { %2042 = vmax.xlane.f32.xlu2 %v2041_v8  ;;  %v9481_v8 = vpop.permute.xlu2 %2793 }
 0x40a   : > { %v1900_v39 = vpop.f32.mrf.mxu1 }
 0x40b   : > { %v9406_v62 = vadd.f32 %v9398_v12, %v1900_v39  ;;  %v1977_v58 = vpop.f32.mrf.mxu0 }
 0x40c   : > { %v9409_v59 = vadd.f32 %v1977_v58, %v8905_v44 }
 0x40d   : > { %v2023_v45 = vsel %vm1120_vm1, %v9406_v62, -inf }
 0x40e   : > { %2024 = vmax.xlane.f32.xlu1 %v2023_v45  ;;  %v2044_v42 = vsel %vm1120_vm1, %v9409_v59, -inf }
 0x40f   : > { %2045 = vmax.xlane.f32.xlu0 %v2044_v42  ;;  %v9484_v42 = vpop.xlane.xlu2 %1146 }
 0x412   : > { %v1902_v22 = vpop.f32.mrf.mxu1 }
 0x413   : > { %v9416_v30 = vadd.f32 %v1902_v22, %v8905_v44 }
 0x415   : > { %v2026_v56 = vsel %vm1120_vm1, %v9416_v30, -inf }
 0x417   : > { %2027 = vmax.xlane.f32.xlu0 %v2026_v56 }
 0x41a   : > { %v2000_v5 = vpop.f32.mrf.mxu1 }
 0x41b   : > { %v9421_v57 = vadd.f32 %v9398_v12, %v2000_v5 }
 0x41d   : > { %v2047_v31 = vsel %vm1120_vm1, %v9421_v57, -inf }
 0x41e   : > { %2048 = vmax.xlane.f32.xlu1 %v2047_v31 }
 0x422   : > { %v2002_v46 = vpop.f32.mrf.mxu1 }
 0x423   : > { %v9431_v44 = vadd.f32 %v9428_v52, %v2002_v46 }
 0x425   : > { %v2050_v61 = vsel %vm1120_vm1, %v9431_v44, -inf }
 0x426   : > { %2051 = vmax.xlane.f32.xlu2 %v2050_v61 }
 0x42b   : > { %2935 = vrot.lane.b32.xlu0 %v12217_v40, %s8426_s22 }
 0x433   : > { %2813 = vrot.lane.b32.xlu0 %v12218_v63, %s8426_s22  ;;  %v1177_v63 = vsub.f32 %v9364_v50, %v9484_v42 }
 0x437   : > { %2811 = vrot.lane.b32.xlu1 %v12219_v37, %s8426_s22 }
 0x43e   : > { %2801 = vrot.lane.b32.xlu2 %v12220_v14, %s8426_s22 }
 0x43f   : > { %2910 = vrot.lane.b32.xlu1 %v12221_v49, %s8426_s22 }
 0x447   : > { %2807 = vrot.lane.b32.xlu1 %v12222_v4, %s8426_s22 }
 0x44f   : > { %2809 = vrot.lane.b32.xlu1 %v12224_v0, %s8426_s22 }
 0x457   : > { %2985 = vrot.lane.b32.xlu1 %v12226_v27, %s8426_s22 }
 0x45d   : > { %1230 = vadd.xlane.f32.xlu0 %v1229_v21 }
 0x467   : > { %1233 = vadd.xlane.f32.xlu2 %v1232_v38 }
 0x46a   : > { %v2019_v39 = vpop.xlane.xlu0 %2018 }
 0x46b   : > { %v2057_v58 = vsub.f32 %v9382_v33, %v2019_v39  ;;  %v9494_v33 = vpop.f32.mrf.mxu3 }
 0x46d   : > { %v2077_v45 = vmul.f32 1.442695, %v2057_v58 }
 0x46f   : > { %7893 = vpow2.f32 %v2077_v45 }
 0x472   : > { %v2022_v22 = vpop.xlane.xlu1 %2021 }
 0x473   : > { %v2058_v56 = vsub.f32 %v9389_v23, %v2022_v22  ;;  %v9504_v39 = vpop.f32.mrf.mxu3 }
 0x474   : > { %12227 = vst [vmem:[#allocation34_spill] sm:$0xff] %v9504_v39 }
 0x475   : > { %v9487_v5 = vpop.eup %7893  ;;  %v2079_v31 = vmul.f32 1.442695, %v2058_v56 }
 0x476   : > { %v2113_v46 = vsel %vm1120_vm1, %v9487_v5, 0.0 }
 0x477   : > { %7895 = vpow2.f32 %v2079_v31  ;;  %2114 = vadd.xlane.f32.xlu0 %v2113_v46 }
 0x47a   : > { %v2043_v61 = vpop.xlane.xlu2 %2042 }
 0x47b   : > { %v2065_v1 = vsub.f32 %v9401_v26, %v2043_v61  ;;  %v9515_v46 = vpop.f32.mrf.mxu3 }
 0x47c   : > { %12228 = vst [vmem:[#allocation50_spill] sm:$0xff] %v9515_v46 }
 0x47d   : > { %v9492_v15 = vpop.eup %7895  ;;  %v2093_v25 = vmul.f32 1.442695, %v2065_v1 }
 0x47e   : > { %v2116_v23 = vsel %vm1120_vm1, %v9492_v15, 0.0 }
 0x47f   : > { %7897 = vpow2.f32 %v2093_v25 }
 0x481   : > { %2117 = vadd.xlane.f32.xlu1 %v2116_v23  ;;  %v2025_v16 = vpop.xlane.xlu1 %2024 }
 0x482   : > { %v2059_v34 = vsub.f32 %v9406_v62, %v2025_v16  ;;  %v2046_v53 = vpop.xlane.xlu0 %2045 }
 0x483   : > { %v2066_v32 = vsub.f32 %v9409_v59, %v2046_v53  ;;  %v9522_v23 = vpop.f32.mrf.mxu3  ;;  %v12230_v53 = vld [vmem:[#allocation38_spill] sm:$0xff] }
 0x484   : > { %v2081_v54 = vmul.f32 1.442695, %v2059_v34  ;;  %12229 = vst [vmem:[#allocation48_spill] sm:$0xff] %v9522_v23 }
 0x485   : > { %v9500_v21 = vpop.eup %7897  ;;  %v2095_v26 = vmul.f32 1.442695, %v2066_v32 }
 0x486   : > { %7899 = vpow2.f32 %v2081_v54  ;;  %v2137_v38 = vsel %vm1120_vm1, %v9500_v21, 0.0 }
 0x487   : > { %7901 = vpow2.f32 %v2095_v26  ;;  %2138 = vadd.xlane.f32.xlu2 %v2137_v38  ;;  %v12232_v26 = vld [vmem:[#allocation40_spill] sm:$0xff] }
 0x48a   : > { %v2028_v58 = vpop.xlane.xlu0 %2027 }
 0x48b   : > { %v2060_v62 = vsub.f32 %v9416_v30, %v2028_v58  ;;  %v9530_v54 = vpop.f32.mrf.mxu3 }
 0x48c   : > { %v9506_v45 = vpop.eup %7899  ;;  %12231 = vst [vmem:[#allocation58_spill] sm:$0xff] %v9530_v54 }
 0x48d   : > { %v2119_v59 = vsel %vm1120_vm1, %v9506_v45, 0.0  ;;  %v9511_v22 = vpop.eup %7901  ;;  %v2083_v56 = vmul.f32 1.442695, %v2060_v62  ;;  %v12234_v62 = vld [vmem:[#allocation42_spill] sm:$0xff] }
 0x48e   : > { %2120 = vadd.xlane.f32.xlu1 %v2119_v59  ;;  %v2140_v31 = vsel %vm1120_vm1, %v9511_v22, 0.0 }
 0x48f   : > { %7903 = vpow2.f32 %v2083_v56  ;;  %2141 = vadd.xlane.f32.xlu0 %v2140_v31 }
 0x491   : > { %v2049_v58 = vpop.xlane.xlu1 %2048 }
 0x492   : > { %v2067_v59 = vsub.f32 %v9421_v57, %v2049_v58  ;;  %v12235_v57 = vld [vmem:[#allocation49_spill] sm:$0xff] }
 0x493   : > { %v9534_v38 = vpop.f32.mrf.mxu3  ;;  %v1178_v58 = vsub.f32 %v12235_v57, %v9479_v6 }
 0x494   : > { %12233 = vst [vmem:[#allocation59_spill] sm:$0xff] %v9534_v38  ;;  %v2097_v31 = vmul.f32 1.442695, %v2067_v59 }
 0x495   : > { %v9517_v61 = vpop.eup %7903 }
 0x496   : > { %v2122_v1 = vsel %vm1120_vm1, %v9517_v61, 0.0 }
 0x497   : > { %2123 = vadd.xlane.f32.xlu2 %v2122_v1 }
 0x499   : > { %v2052_v30 = vpop.xlane.xlu2 %2051 }
 0x49a   : > { %v2068_v25 = vsub.f32 %v9431_v44, %v2052_v30 }
 0x49b   : > { %v1850_v44 = vpop.f32.mrf.mxu3 }
 0x49c   : > { %v2099_v16 = vmul.f32 1.442695, %v2068_v25 }
 0x49d   : > { %v9539_v56 = vpop.permute.xlu0 %2935 }
 0x49e   : > { %7905 = vpow2.f32 %v2099_v16 }
 0x49f   : > { %7907 = vpow2.f32 %v2097_v31 }
 0x4a1   : > { %v9561_v37 = vpop.permute.xlu2 %2801 }
 0x4a3   : > { %2960 = vrot.lane.b32.xlu0 %v12230_v53, %s8426_s22  ;;  %v1852_v1 = vpop.f32.mrf.mxu3  ;;  %v1203_v53 = vmul.f32 1.442695, %v1178_v58 }
 0x4a4   : > { %v9524_v34 = vpop.eup %7905  ;;  %v9544_v25 = vadd.f32 %v9428_v52, %v1852_v1 }
 0x4a5   : > { %v2146_v32 = vsel %vm1120_vm1, %v9524_v34, 0.0  ;;  %v9546_v16 = vpop.permute.xlu0 %2813 }
 0x4a6   : > { %2147 = vadd.xlane.f32.xlu2 %v2146_v32  ;;  %v9548_v32 = vpop.eup %7907 }
 0x4a7   : > { %2815 = vrot.lane.b32.xlu1 %v12232_v26, %s8426_s22  ;;  %v2014_v26 = vsel %vm1120_vm1, %v9544_v25, -inf  ;;  %v2143_v59 = vsel %vm1120_vm1, %v9548_v32, 0.0 }
 0x4a9   : > { %v9541_v30 = vpop.permute.xlu1 %2811 }
 0x4b1   : > { %v9552_v27 = vpop.permute.xlu1 %2910 }
 0x4b9   : > { %v9570_v4 = vpop.permute.xlu1 %2807 }
 0x4be   : > { %2817 = vrot.lane.b32.xlu2 %v12234_v62, %s8426_s22  ;;  %v1950_v62 = vpop.f32.mrf.mxu3 }
 0x4bf   : > { %v9559_v31 = vadd.f32 %v9398_v12, %v1950_v62  ;;  %v1201_v62 = vmul.f32 1.442695, %v1177_v63 }
 0x4c1   : > { %v2035_v6 = vsel %vm1120_vm1, %v9559_v31, -inf }
 0x4cd   : > { %2015 = vmax.xlane.f32.xlu0 %v2014_v26  ;;  %v9566_v26 = vadd.f32 %v9398_v12, %v1850_v44 }
 0x4d0   : > { %v1231_v1 = vpop.xlane.xlu0 %1230 }
 0x4d1   : > { %2144 = vadd.xlane.f32.xlu1 %v2143_v59  ;;  %7909 = vrcp.f32 %v1231_v1  ;;  %v2011_v59 = vsel %vm1120_vm1, %v9566_v26, -inf  ;;  %v1336_v44 = vand.u32 2147483648, %v1231_v1  ;;  %vm1330_vm9 = vweird.f32 %v1231_v1 }
 0x4d2   : > { %7911 = vpow2.f32 %v1203_v53 }
 0x4d3   : > { %v1337_v28 = vor.u32 1.1754944e-38, %v1336_v44 }
 0x4d5   : > { %2036 = vmax.xlane.f32.xlu0 %v2035_v6  ;;  %v1334_v6 = vand.u32 2147483647, %v1231_v1 }
 0x4d7   : > { %v7910_v57 = vpop.eup %7909  ;;  %vm1335_vm11 = vcmp.eq.f32.partialorder %v1334_v6, 8.507059e+37 }
 0x4d8   : > { %v1326_v0 = vmul.f32 %v7910_v57, %v1231_v1  ;;  %v9574_v50 = vpop.eup %7911  ;;  %vm1331_vm8 = vweird.f32 %v7910_v57  ;;  %v1952_v1 = vpop.f32.mrf.mxu3 }
 0x4d9   : > { %2012 = vmax.xlane.f32.xlu1 %v2011_v59  ;;  %v1244_v63 = vsel %vm1120_vm1, %v9574_v50, 0.0  ;;  %v9580_v59 = vpop.permute.xlu1 %2809  ;;  %vm1332_vm10 = vmor %vm1330_vm9, %vm1331_vm8 }
 0x4da   : > { %v1234_v58 = vpop.xlane.xlu2 %1233  ;;  %v1327_v49 = vsub.f32 1.0, %v1326_v0 }
 0x4db   : > { %7913 = vrcp.f32 %v1234_v58  ;;  %v1349_v47 = vand.u32 2147483647, %v1234_v58  ;;  %vm1345_vm13 = vweird.f32 %v1234_v58 }
 0x4dc   : > { %7915 = vpow2.f32 %v1201_v62  ;;  %v1328_v12 = vmul.f32 %v7910_v57, %v1327_v49  ;;  %v1351_v49 = vand.u32 2147483648, %v1234_v58 }
 0x4dd   : > { %vm1350_vm2 = vcmp.eq.f32.partialorder %v1349_v47, 8.507059e+37 }
 0x4de   : > { %v1329_v42 = vadd.f32 %v7910_v57, %v1328_v12  ;;  %v1352_v38 = vor.u32 1.1754944e-38, %v1351_v49 }
 0x4e0   : > { %v1333_v62 = vsel %vm1332_vm10, %v7910_v57, %v1329_v42  ;;  %v9586_v57 = vadd.f32 %v9428_v52, %v1952_v1 }
 0x4e1   : > { %v7914_v53 = vpop.eup %7913  ;;  %1245 = vadd.xlane.f32.xlu1 %v1244_v63  ;;  %v1338_v2 = vsel %vm1335_vm11, %v1337_v28, %v1333_v62 }
 0x4e2   : > { %v9578_v14 = vpop.eup %7915  ;;  %v1341_v0 = vmul.f32 %v7914_v53, %v1234_v58  ;;  %vm1346_vm12 = vweird.f32 %v7914_v53  ;;  %v1339_v54 = vmul.f32 %v9465_v51, %v1338_v2 }
 0x4e3   : > { %v1241_v12 = vsel %vm1120_vm1, %v9578_v14, 0.0  ;;  %vm1347_vm14 = vmor %vm1345_vm13, %vm1346_vm12 }
 0x4e4   : > { %v1342_v10 = vsub.f32 1.0, %v1341_v0  ;;  %v9588_v0 = vpop.permute.xlu1 %2985 }
 0x4e6   : > { %v1343_v24 = vmul.f32 %v7914_v53, %v1342_v10  ;;  %v1509_v10 = vpack.c.bf16 %v1339_v54, %v1339_v54  ;;  %v12236_v54 = vld [vmem:[#allocation43_spill] sm:$0xff] }
 0x4e7   : > { %1242 = vadd.xlane.f32.xlu2 %v1241_v12 }
 0x4e8   : > { %v1344_v63 = vadd.f32 %v7914_v53, %v1343_v24  ;;  %v2038_v24 = vsel %vm1120_vm1, %v9586_v57, -inf  ;;  %v1579_v62 = vunpack.c.l.b16 %v1509_v10 }
 0x4ea   : > { %v1348_v42 = vsel %vm1347_vm14, %v7914_v53, %v1344_v63  ;;  %v2115_v44 = vpop.xlane.xlu0 %2114 }
 0x4eb   : > { %v1353_v6 = vsel %vm1350_vm2, %v1352_v38, %v1348_v42  ;;  %7917 = vrcp.f32 %v2115_v44  ;;  %vm2214_vm15 = vweird.f32 %v2115_v44  ;;  %v2218_v63 = vand.u32 2147483647, %v2115_v44 }
 0x4ec   : > { %v1354_v28 = vmul.f32 %v9473_v48, %v1353_v6  ;;  %v2220_v48 = vand.u32 2147483648, %v2115_v44 }
 0x4ed   : > { %vm2219_vm5 = vcmp.eq.f32.partialorder %v2218_v63, 8.507059e+37 }
 0x4ee   : > { %v1510_v58 = vpack.c.bf16 %v1354_v28, %v1354_v28  ;;  %v2221_v10 = vor.u32 1.1754944e-38, %v2220_v48 }
 0x4ef   : > { %2039 = vmax.xlane.f32.xlu2 %v2038_v24 }
 0x4f0   : > { %v1580_v2 = vunpack.c.l.b16 %v1510_v58  ;;  %v2819_v58 = vrot.slane %v9452_v17, 4 }
 0x4f1   : > { %v7918_v51 = vpop.eup %7917 }
 0x4f2   : > { %v2210_v52 = vmul.f32 %v7918_v51, %v2115_v44  ;;  %v1581_v49 = vpack.c.b16 %v1580_v2, %v1579_v62  ;;  %vm2215_vm3 = vweird.f32 %v7918_v51  ;;  %v2820_v44 = vrot.slane %v9352_v43, 4 }
 0x4f3   : > { %vm2216_vm4 = vmor %vm2214_vm15, %vm2215_vm3  ;;  %v2837_v63 = vunpack.c.l.b16 %v2819_v58 }
 0x4f4   : > { %v2118_v47 = vpop.xlane.xlu1 %2117  ;;  %v2211_v53 = vsub.f32 1.0, %v2210_v52  ;;  %7200 = vmatmul.msk.bf16.vlgmr.msrb.gmra.mxu2 %vm1120_vm1, %v1581_v49 }
 0x4f5   : > { %7919 = vrcp.f32 %v2118_v47  ;;  %v2235_v62 = vand.u32 2147483648, %v2118_v47  ;;  %v2233_v49 = vand.u32 2147483647, %v2118_v47  ;;  %vm2229_vm7 = vweird.f32 %v2118_v47 }
 0x4f6   : > { %v2212_v38 = vmul.f32 %v7918_v51, %v2211_v53 }
 0x4f7   : > { %vm2234_vm9 = vcmp.eq.f32.partialorder %v2233_v49, 8.507059e+37 }
 0x4f8   : > { %v2213_v12 = vadd.f32 %v7918_v51, %v2212_v38 }
 0x4fa   : > { %3010 = vrot.lane.b32.xlu1 %v12236_v54, %s8426_s22  ;;  %v2139_v42 = vpop.xlane.xlu2 %2138  ;;  %v2217_v28 = vsel %vm2216_vm4, %v7918_v51, %v2213_v12  ;;  %v2236_v51 = vor.u32 1.1754944e-38, %v2235_v62 }
 0x4fb   : > { %v7920_v1 = vpop.eup %7919  ;;  %7921 = vrcp.f32 %v2139_v42  ;;  %v2222_v2 = vsel %vm2219_vm5, %v2221_v10, %v2217_v28  ;;  %vm2334_vm11 = vweird.f32 %v2139_v42 }
 0x4fc   : > { %v2225_v6 = vmul.f32 %v7920_v1, %v2118_v47  ;;  %vm2230_vm6 = vweird.f32 %v7920_v1  ;;  %v2223_v17 = vmul.f32 %v9487_v5, %v2222_v2  ;;  %v2340_v5 = vand.u32 2147483648, %v2139_v42 }
 0x4fd   : > { %vm2231_vm8 = vmor %vm2229_vm7, %vm2230_vm6 }
 0x4fe   : > { %v2226_v24 = vsub.f32 1.0, %v2225_v6 }
 0x500   : > { %v2227_v52 = vmul.f32 %v7920_v1, %v2226_v24  ;;  %v2838_v24 = vunpack.c.l.b16 %v2820_v44 }
 0x501   : > { %v9597_v53 = vpop.xlane.xlu1 %2120  ;;  %v7922_v38 = vpop.eup %7921 }
 0x502   : > { %v2228_v54 = vadd.f32 %v7920_v1, %v2227_v52  ;;  %7923 = vrcp.f32 %v9597_v53  ;;  %v2330_v12 = vmul.f32 %v7922_v38, %v2139_v42  ;;  %v2142_v48 = vpop.xlane.xlu0 %2141  ;;  %v2393_v52 = vpack.c.bf16 %v2223_v17, %v2223_v17 }
 0x503   : > { %7925 = vrcp.f32 %v2142_v48  ;;  %v2839_v36 = vpack.c.b16 %v2838_v24, %v2837_v63  ;;  %vm2335_vm10 = vweird.f32 %v7922_v38  ;;  %vm2244_vm3 = vweird.f32 %v9597_v53 }
 0x504   : > { %v2232_v6 = vsel %vm2231_vm8, %v7920_v1, %v2228_v54  ;;  %v2331_v10 = vsub.f32 1.0, %v2330_v12  ;;  %v2338_v1 = vand.u32 2147483647, %v2139_v42  ;;  %v2457_v44 = vunpack.c.l.b16 %v2393_v52  ;;  %vm9604_vm12 = vmor %vm2334_vm11, %vm2335_vm10 }
 0x505   : > { %v2237_v28 = vsel %vm2234_vm9, %v2236_v51, %v2232_v6  ;;  %v2341_v6 = vor.u32 1.1754944e-38, %v2340_v5  ;;  %v2355_v42 = vand.u32 2147483648, %v2142_v48  ;;  %vm2349_vm15 = vweird.f32 %v2142_v48 }
 0x506   : > { %v2238_v18 = vmul.f32 %v9492_v15, %v2237_v28  ;;  %v2332_v43 = vmul.f32 %v7922_v38, %v2331_v10  ;;  %vm2339_vm14 = vcmp.eq.f32.partialorder %v2338_v1, 8.507059e+37 }
 0x507   : > { %v2356_v5 = vor.u32 1.1754944e-38, %v2355_v42 }
 0x508   : > { %v7924_v47 = vpop.eup %7923  ;;  %v2394_v23 = vpack.c.bf16 %v2238_v18, %v2238_v18  ;;  %v2333_v46 = vadd.f32 %v7922_v38, %v2332_v43  ;;  %v2844_v18 = vsel %vm917_vm0, %v2839_v36, 0  ;;  %v2250_v36 = vand.u32 2147483648, %v9597_v53 }
 0x509   : > { %v2240_v62 = vmul.f32 %v7924_v47, %v9597_v53  ;;  %v7926_v39 = vpop.eup %7925  ;;  %vm2245_vm13 = vweird.f32 %v7924_v47  ;;  %v2248_v43 = vand.u32 2147483647, %v9597_v53 }
 0x50a   : > { %v2458_v54 = vunpack.c.l.b16 %v2394_v23  ;;  %v2345_v58 = vmul.f32 %v7926_v39, %v2142_v48  ;;  %v2124_v49 = vpop.xlane.xlu2 %2123  ;;  %v2337_v51 = vsel %vm9604_vm12, %v7922_v38, %v2333_v46  ;;  %v2353_v23 = vand.u32 2147483647, %v2142_v48  ;;  %vm9614_vm4 = vmor %vm2244_vm3, %vm2245_vm13 }
 0x50b   : > { %v2241_v2 = vsub.f32 1.0, %v2240_v62  ;;  %7927 = vrcp.f32 %v2124_v49  ;;  %vm2350_vm2 = vweird.f32 %v7926_v39  ;;  %v2342_v24 = vsel %vm2339_vm14, %v2341_v6, %v2337_v51 }
 0x50c   : > { %v2346_v12 = vsub.f32 1.0, %v2345_v58  ;;  %v2459_v63 = vpack.c.b16 %v2458_v54, %v2457_v44  ;;  %v2824_v62 = vrot.slane %v9469_v55, 4  ;;  %vm2351_vm5 = vmor %vm2349_vm15, %vm2350_vm2  ;;  %vm2354_vm6 = vcmp.eq.f32.partialorder %v2353_v23, 8.507059e+37 }
 0x50d   : > { %v2242_v17 = vmul.f32 %v7924_v47, %v2241_v2  ;;  %v2343_v2 = vmul.f32 %v9500_v21, %v2342_v24  ;;  %v2823_v48 = vrot.slane %v9360_v60, 4  ;;  %v2251_v15 = vor.u32 1.1754944e-38, %v2250_v36 }
 0x50e   : > { %v2347_v28 = vmul.f32 %v7926_v39, %v2346_v12  ;;  %7216 = vmatmul.msk.bf16.vlgmr.msra.gmra.mxu0 %vm1120_vm1, %v2459_v63  ;;  %vm2249_vm7 = vcmp.eq.f32.partialorder %v2248_v43, 8.507059e+37  ;;  %v2888_v51 = vunpack.c.l.b16 %v2824_v62  ;;  %v2263_v12 = vand.u32 2147483647, %v2124_v49 }
 0x50f   : > { %v2243_v10 = vadd.f32 %v7924_v47, %v2242_v17  ;;  %2853 = vmatpush.bf16.xpose.msra.mxu0 %v2844_v18  ;;  %v2265_v17 = vand.u32 2147483648, %v2124_v49  ;;  %v2822_v23 = vrot.slane %v9481_v8, 4  ;;  %vm2259_vm9 = vweird.f32 %v2124_v49 }
 0x510   : > { %v2348_v46 = vadd.f32 %v7926_v39, %v2347_v28  ;;  %v2821_v28 = vrot.slane %v9441_v29, 4  ;;  %vm2264_vm11 = vcmp.eq.f32.partialorder %v2263_v12, 8.507059e+37 }
 0x511   : > { %v7928_v52 = vpop.eup %7927  ;;  %v2247_v1 = vsel %vm9614_vm4, %v7924_v47, %v2243_v10  ;;  %v2887_v47 = vunpack.c.l.b16 %v2823_v48  ;;  %v2863_v38 = vunpack.c.l.b16 %v2822_v23 }
 0x512   : > { %v2352_v54 = vsel %vm2351_vm5, %v7926_v39, %v2348_v46  ;;  %v2255_v58 = vmul.f32 %v7928_v52, %v2124_v49  ;;  %v2252_v55 = vsel %vm2249_vm7, %v2251_v15, %v2247_v1  ;;  %vm2260_vm8 = vweird.f32 %v7928_v52 }
 0x513   : > { %v2357_v44 = vsel %vm2354_vm6, %v2356_v5, %v2352_v54  ;;  %v2401_v39 = vpack.c.bf16 %v2343_v2, %v2343_v2  ;;  %v2253_v21 = vmul.f32 %v9506_v45, %v2252_v55  ;;  %vm2261_vm10 = vmor %vm2259_vm9, %vm2260_vm8  ;;  %v2889_v10 = vpack.c.b16 %v2888_v51, %v2887_v47 }
 0x514   : > { %v2256_v18 = vsub.f32 1.0, %v2255_v58  ;;  %v2358_v53 = vmul.f32 %v9511_v22, %v2357_v44  ;;  %v2266_v22 = vor.u32 1.1754944e-38, %v2265_v17  ;;  %v2862_v8 = vunpack.c.l.b16 %v2821_v28 }
 0x515   : > { %v2557_v36 = vunpack.c.l.b16 %v2401_v39  ;;  %v2395_v43 = vpack.c.bf16 %v2253_v21, %v2253_v21  ;;  %v2894_v45 = vsel %vm917_vm0, %v2889_v10, 0  ;;  %v2827_v2 = vrot.slane %v9447_v3, 4  ;;  %v9640_v17 = vpop.permute.xlu0 %2960 }
 0x516   : > { %v2257_v63 = vmul.f32 %v7928_v52, %v2256_v18  ;;  %v2402_v6 = vpack.c.bf16 %v2358_v53, %v2358_v53  ;;  %v2864_v29 = vpack.c.b16 %v2863_v38, %v2862_v8  ;;  %v2832_v3 = vrot.slane %v9546_v16, 4 }
 0x517   : > { %v2482_v49 = vunpack.c.l.b16 %v2395_v43  ;;  %v2937_v44 = vunpack.c.l.b16 %v2827_v2 }
 0x518   : > { %v2258_v60 = vadd.f32 %v7928_v52, %v2257_v63  ;;  %v2558_v42 = vunpack.c.l.b16 %v2402_v6  ;;  %v2988_v12 = vunpack.c.l.b16 %v2832_v3 }
 0x519   : > { %v2148_v53 = vpop.xlane.xlu2 %2147  ;;  %v9642_v6 = vpop.permute.xlu1 %2815 }
 0x51a   : > { %v2262_v24 = vsel %vm2261_vm10, %v7928_v52, %v2258_v60  ;;  %v2559_v5 = vpack.c.b16 %v2558_v42, %v2557_v36  ;;  %v2828_v52 = vrot.slane %v9454_v41, 4  ;;  %v2831_v41 = vrot.slane %v9541_v30, 4 }
 0x51b   : > { %v2267_v46 = vsel %vm2264_vm11, %v2266_v22, %v2262_v24  ;;  %7929 = vrcp.f32 %v2148_v53  ;;  %v2385_v28 = vand.u32 2147483648, %v2148_v53  ;;  %vm2379_vm13 = vweird.f32 %v2148_v53 }
 0x51c   : > { %v2268_v62 = vmul.f32 %v9517_v61, %v2267_v46  ;;  %v2869_v61 = vsel %vm917_vm0, %v2864_v29, 0  ;;  %v2938_v48 = vunpack.c.l.b16 %v2828_v52  ;;  %v2987_v51 = vunpack.c.l.b16 %v2831_v41 }
 0x51d   : > { %v2383_v22 = vand.u32 2147483647, %v2148_v53  ;;  %v2386_v43 = vor.u32 1.1754944e-38, %v2385_v28  ;;  %v2826_v52 = vrot.slane %v9561_v37, 4 }
 0x51e   : > { %v2396_v54 = vpack.c.bf16 %v2268_v62, %v2268_v62  ;;  %7220 = vmatmul.msk.bf16.vlgmr.msrb.gmra.mxu0 %vm1120_vm1, %v2559_v5  ;;  %v2939_v15 = vpack.c.b16 %v2938_v48, %v2937_v44  ;;  %v2989_v63 = vpack.c.b16 %v2988_v12, %v2987_v51 }
 0x51f   : > { %2903 = vmatpush.bf16.xpose.msrb.mxu0 %v2894_v45  ;;  %vm2384_vm2 = vcmp.eq.f32.partialorder %v2383_v22, 8.507059e+37  ;;  %v2830_v22 = vrot.slane %v9580_v59, 4 }
 0x520   : > { %v2483_v1 = vunpack.c.l.b16 %v2396_v54  ;;  %v2944_v18 = vsel %vm917_vm0, %v2939_v15, 0 }
 0x521   : > { %v7930_v55 = vpop.eup %7929 }
 0x522   : > { %v2484_v58 = vpack.c.b16 %v2483_v1, %v2482_v49  ;;  %v2375_v39 = vmul.f32 %v7930_v55, %v2148_v53  ;;  %vm2380_vm12 = vweird.f32 %v7930_v55 }
 0x523   : > { %vm2381_vm14 = vmor %vm2379_vm13, %vm2380_vm12 }
 0x524   : > { %7217 = vmatmul.msk.bf16.vlgmr.msra.gmra.mxu1 %vm1120_vm1, %v2484_v58  ;;  %v2376_v47 = vsub.f32 1.0, %v2375_v39 }
 0x525   : > { %2878 = vmatpush.bf16.xpose.msra.mxu1 %v2869_v61 }
 0x526   : > { %v2377_v16 = vmul.f32 %v7930_v55, %v2376_v47 }
 0x528   : > { %v2378_v42 = vadd.f32 %v7930_v55, %v2377_v16 }
 0x52a   : > { %v2382_v24 = vsel %vm2381_vm14, %v7930_v55, %v2378_v42 }
 0x52b   : > { %v2387_v8 = vsel %vm2384_vm2, %v2386_v43, %v2382_v24 }
 0x52c   : > { %v2388_v58 = vmul.f32 %v9524_v34, %v2387_v8 }
 0x52e   : > { %7254 = vmatmul.msk.bf16.vlgmr.msra.gmra.mxu0 %vm917_vm0, %v9459_v35  ;;  %v2994_v35 = vsel %vm917_vm0, %v2989_v63, 0  ;;  %v2404_v53 = vpack.c.bf16 %v2388_v58, %v2388_v58 }
 0x52f   : > { %2953 = vmatpush.bf16.xpose.msra.mxu0 %v2944_v18  ;;  %v2913_v18 = vunpack.c.l.b16 %v2826_v52 }
 0x53e   : > { %7256 = vmatmul.msk.bf16.vlgmr.msrb.gmra.mxu0 %vm917_vm0, %v9471_v7 }
 0x53f   : > { %3003 = vmatpush.bf16.xpose.msrb.mxu0 %v2994_v35 }
 0x540   : > { %v2016_v30 = vpop.xlane.xlu0 %2015 }
 0x541   : > { %v2056_v23 = vsub.f32 %v9544_v25, %v2016_v30 }
 0x543   : > { %v2075_v21 = vmul.f32 1.442695, %v2056_v23 }
 0x544   : > { %v2145_v60 = vpop.xlane.xlu1 %2144 }
 0x545   : > { %7931 = vrcp.f32 %v2145_v60  ;;  %v2370_v54 = vand.u32 2147483648, %v2145_v60  ;;  %v2368_v1 = vand.u32 2147483647, %v2145_v60  ;;  %vm2364_vm15 = vweird.f32 %v2145_v60 }
 0x546   : > { %7933 = vpow2.f32 %v2075_v21 }
 0x547   : > { %v2371_v61 = vor.u32 1.1754944e-38, %v2370_v54  ;;  %vm2369_vm5 = vcmp.eq.f32.partialorder %v2368_v1, 8.507059e+37  ;;  %v2963_v54 = vunpack.c.l.b16 %v2830_v22 }
 0x548   : > { %v2037_v46 = vpop.xlane.xlu0 %2036 }
 0x549   : > { %v2063_v45 = vsub.f32 %v9559_v31, %v2037_v46  ;;  %v2825_v31 = vrot.slane %v9475_v19, 4  ;;  %v2583_v19 = vunpack.c.l.b16 %v2404_v53 }
 0x54b   : > { %v7932_v10 = vpop.eup %7931  ;;  %v2089_v48 = vmul.f32 1.442695, %v2063_v45  ;;  %v2912_v34 = vunpack.c.l.b16 %v2825_v31 }
 0x54c   : > { %v9648_v7 = vpop.eup %7933  ;;  %v2360_v36 = vmul.f32 %v7932_v10, %v2145_v60  ;;  %v2013_v38 = vpop.xlane.xlu1 %2012  ;;  %vm2365_vm3 = vweird.f32 %v7932_v10 }
 0x54d   : > { %v2110_v25 = vsel %vm1120_vm1, %v9648_v7, 0.0  ;;  %v2055_v62 = vsub.f32 %v9566_v26, %v2013_v38  ;;  %v9658_v26 = vpop.permute.xlu2 %2817  ;;  %vm2366_vm4 = vmor %vm2364_vm15, %vm2365_vm3  ;;  %v2914_v55 = vpack.c.b16 %v2913_v18, %v2912_v34  ;;  %v12242_v34 = vld [vmem:[#allocation19_spill] sm:$0xff] }
 0x54e   : > { %v2361_v5 = vsub.f32 1.0, %v2360_v36  ;;  %2111 = vadd.xlane.f32.xlu2 %v2110_v25  ;;  %7258 = vmatmul.msk.bf16.vlgmr.msra.gmra.mxu0 %vm917_vm0, %v9539_v56 }
 0x54f   : > { %v2073_v29 = vmul.f32 1.442695, %v2055_v62  ;;  %v2919_v23 = vsel %vm917_vm0, %v2914_v55, 0 }
 0x550   : > { %v2362_v49 = vmul.f32 %v7932_v10, %v2361_v5 }
 0x551   : > { %7935 = vpow2.f32 %v2073_v29  ;;  %v12241_v29 = vld [vmem:[#allocation46_spill] sm:$0xff] }
 0x552   : > { %v2363_v2 = vadd.f32 %v7932_v10, %v2362_v49 }
 0x554   : > { %v2367_v44 = vsel %vm2366_vm4, %v7932_v10, %v2363_v2  ;;  %v1246_v56 = vpop.xlane.xlu1 %1245 }
 0x555   : > { %v2372_v15 = vsel %vm2369_vm5, %v2371_v61, %v2367_v44  ;;  %7937 = vrcp.f32 %v1246_v56  ;;  %v1411_v16 = vand.u32 2147483648, %v1246_v56  ;;  %v1409_v60 = vand.u32 2147483647, %v1246_v56 }
 0x556   : > { %v2373_v37 = vmul.f32 %v9548_v32, %v2372_v15  ;;  %7939 = vpow2.f32 %v2089_v48  ;;  %vm1405_vm7 = vweird.f32 %v1246_v56 }
 0x557   : > { %v9662_v41 = vpop.eup %7935  ;;  %v1412_v46 = vor.u32 1.1754944e-38, %v1411_v16  ;;  %vm1410_vm9 = vcmp.eq.f32.partialorder %v1409_v60, 8.507059e+37  ;;  %v12250_v16 = vld [vmem:[#allocation45_spill] sm:$0xff] }
 0x558   : > { %v2403_v3 = vpack.c.bf16 %v2373_v37, %v2373_v37  ;;  %v2107_v51 = vsel %vm1120_vm1, %v9662_v41, 0.0  ;;  %v2833_v37 = vrot.slane %v9642_v6, 4 }
 0x559   : > { %2108 = vadd.xlane.f32.xlu0 %v2107_v51 }
 0x55a   : > { %v2582_v12 = vunpack.c.l.b16 %v2403_v3  ;;  %v1243_v63 = vpop.xlane.xlu2 %1242  ;;  %v12243_v3 = vld [vmem:[#allocation31_spill] sm:$0xff]  ;;  %v3012_v51 = vunpack.c.l.b16 %v2833_v37 }
 0x55b   : > { %v7938_v39 = vpop.eup %7937  ;;  %7941 = vrcp.f32 %v1243_v63  ;;  %v1396_v5 = vand.u32 2147483648, %v1243_v63  ;;  %v1394_v59 = vand.u32 2147483647, %v1243_v63  ;;  %vm1390_vm11 = vweird.f32 %v1243_v63 }
 0x55c   : > { %v1401_v35 = vmul.f32 %v7938_v39, %v1246_v56  ;;  %v2584_v47 = vpack.c.b16 %v2583_v19, %v2582_v12  ;;  %v9666_v30 = vpop.eup %7939  ;;  %vm1406_vm6 = vweird.f32 %v7938_v39  ;;  %v12244_v19 = vld [vmem:[#allocation20_spill] sm:$0xff] }
 0x55d   : > { %v2131_v42 = vsel %vm1120_vm1, %v9666_v30, 0.0  ;;  %vm1407_vm8 = vmor %vm1405_vm7, %vm1406_vm6  ;;  %vm1395_vm13 = vcmp.eq.f32.partialorder %v1394_v59, 8.507059e+37 }
 0x55e   : > { %v1402_v32 = vsub.f32 1.0, %v1401_v35  ;;  %7221 = vmatmul.msk.bf16.vlgmr.msrb.gmra.mxu1 %vm1120_vm1, %v2584_v47  ;;  %7260 = vmatmul.msk.bf16.vlgmr.msrb.gmra.mxu0 %vm917_vm0, %v9588_v0  ;;  %v2829_v0 = vrot.slane %v9570_v4, 4  ;;  %v1397_v4 = vor.u32 1.1754944e-38, %v1396_v5  ;;  %v12248_v35 = vld [vmem:[#allocation44_spill] sm:$0xff]  ;;  %v12249_v47 = vld [vmem:[#allocation37_spill] sm:$0xff] }
 0x55f   : > { %2928 = vmatpush.bf16.xpose.msrb.mxu1 %v2919_v23 }
 0x560   : > { %v1403_v21 = vmul.f32 %v7938_v39, %v1402_v32  ;;  %v2962_v49 = vunpack.c.l.b16 %v2829_v0 }
 0x561   : > { %v7942_v28 = vpop.eup %7941  ;;  %2132 = vadd.xlane.f32.xlu0 %v2131_v42  ;;  %v9740_v42 = vld [vmem:[%s12079_s1] sm:$0xff] }
 0x562   : > { %v1404_v10 = vadd.f32 %v7938_v39, %v1403_v21  ;;  %v1386_v24 = vmul.f32 %v7942_v28, %v1243_v63  ;;  %v2040_v36 = vpop.xlane.xlu2 %2039  ;;  %vm1391_vm10 = vweird.f32 %v7942_v28  ;;  %v2964_v52 = vpack.c.b16 %v2963_v54, %v2962_v49  ;;  %v12246_v63 = vld [vmem:[#allocation30_spill] sm:$0xff]  ;;  %v12251_v21 = vld [vmem:[#allocation32_spill] sm:$0xff] }
 0x563   : > { %v2064_v38 = vsub.f32 %v9586_v57, %v2040_v36  ;;  %vm1392_vm12 = vmor %vm1390_vm11, %vm1391_vm10 }
 0x564   : > { %v1408_v43 = vsel %vm1407_vm8, %v7938_v39, %v1404_v10  ;;  %v1387_v25 = vsub.f32 1.0, %v1386_v24  ;;  %v2969_v44 = vsel %vm917_vm0, %v2964_v52, 0  ;;  %v12252_v24 = vld [vmem:[#allocation21_spill] sm:$0xff] }
 0x565   : > { %v1413_v62 = vsel %vm1410_vm9, %v1412_v46, %v1408_v43  ;;  %v2091_v8 = vmul.f32 1.442695, %v2064_v38 }
 0x566   : > { %v1388_v45 = vmul.f32 %v7942_v28, %v1387_v25  ;;  %2435 = vrot.lane.b32.xlu2 %v12241_v29, %s8425_s27  ;;  %v1414_v57 = vmul.f32 %v9574_v50, %v1413_v62 }
 0x567   : > { %7943 = vpow2.f32 %v2091_v8 }
 0x568   : > { %v1389_v1 = vadd.f32 %v7942_v28, %v1388_v45  ;;  %v1514_v48 = vpack.c.bf16 %v1414_v57, %v1414_v57 }
 0x56a   : > { %v1393_v58 = vsel %vm1392_vm12, %v7942_v28, %v1389_v1  ;;  %v1636_v18 = vunpack.c.l.b16 %v1514_v48 }
 0x56b   : > { %v1398_v2 = vsel %vm1395_vm13, %v1397_v4, %v1393_v58 }
 0x56c   : > { %v1399_v61 = vmul.f32 %v9578_v14, %v1398_v2  ;;  %v2834_v14 = vrot.slane %v9658_v26, 4  ;;  %v12245_v26 = vld [vmem:[#allocation23_spill] sm:$0xff]  ;;  %v3011_v23 = vpop.permute.xlu1 %3010 }
 0x56d   : > { %v9681_v31 = vpop.eup %7943 }
 0x56e   : > { %2535 = vrot.lane.b32.xlu2 %v9156_v13, %s8425_s27  ;;  %7255 = vmatmul.msk.bf16.vlgmr.msra.gmra.mxu1 %vm917_vm0, %v9463_v20  ;;  %v2134_v50 = vsel %vm1120_vm1, %v9681_v31, 0.0  ;;  %v1513_v56 = vpack.c.bf16 %v1399_v61, %v1399_v61  ;;  %v3013_v20 = vunpack.c.l.b16 %v2834_v14 }
 0x56f   : > { %2978 = vmatpush.bf16.xpose.msra.mxu1 %v2969_v44  ;;  %2135 = vadd.xlane.f32.xlu1 %v2134_v50 }
 0x570   : > { %v1635_v15 = vunpack.c.l.b16 %v1513_v56  ;;  %v3014_v55 = vpack.c.b16 %v3013_v20, %v3012_v51 }
 0x572   : > { %v1637_v53 = vpack.c.b16 %v1636_v18, %v1635_v15  ;;  %v3019_v6 = vsel %vm917_vm0, %v3014_v55, 0 }
 0x574   : > { %7202 = vmatmul.msk.bf16.vlgmr.msra.gmra.mxu2 %vm1120_vm1, %v1637_v53 }
 0x575   : > { %1757 = vrot.lane.b32.xlu0 %v12242_v34, %s8425_s27 }
 0x576   : > { %1775 = vrot.lane.b32.xlu2 %v12243_v3, %s8425_s27 }
 0x57d   : > { %1759 = vrot.lane.b32.xlu0 %v12244_v19, %s8425_s27 }
 0x57e   : > { %3748 = vrot.lane.b32.xlu2 %v12242_v34, %s8427_s0  ;;  %7257 = vmatmul.msk.bf16.vlgmr.msrb.gmra.mxu1 %vm917_vm0, %v9552_v27  ;;  %v12247_v27 = vld [vmem:[#allocation29_spill] sm:$0xff] }
 0x57f   : > { %3028 = vmatpush.bf16.xpose.msrb.mxu1 %v3019_v6 }
 0x585   : > { %1805 = vrot.lane.b32.xlu0 %v8723_v9, %s8425_s27 }
 0x586   : > { %3821 = vrot.lane.b32.xlu2 %v12245_v26, %s8427_s0 }
 0x588   : > { %1905 = vrot.lane.b32.xlu1 %v12217_v40, %s8425_s27 }
 0x58b   : > { %v9710_v12 = vpop.f32.mrf.mxu0 }
 0x58d   : > { %1773 = vrot.lane.b32.xlu0 %v12246_v63, %s8425_s27 }
 0x58e   : > { %7259 = vmatmul.msk.bf16.vlgmr.msra.gmra.mxu1 %vm917_vm0, %v9640_v17 }
 0x590   : > { %3490 = vrot.lane.b32.xlu1 %v12247_v27, %s8426_s22 }
 0x593   : > { %v9718_v39 = vpop.f32.mrf.mxu0 }
 0x595   : > { %3440 = vrot.lane.b32.xlu0 %v12248_v35, %s8426_s22 }
 0x598   : > { %3540 = vrot.lane.b32.xlu1 %v12249_v47, %s8426_s22 }
 0x59b   : > { %v9724_v32 = vpop.f32.mrf.mxu0 }
 0x59d   : > { %3465 = vrot.lane.b32.xlu0 %v12241_v29, %s8426_s22 }
 0x59e   : > { %7261 = vmatmul.msk.bf16.vlgmr.msrb.gmra.mxu1 %vm917_vm0, %v3011_v23 }
 0x5a0   : > { %3750 = vrot.lane.b32.xlu1 %v12244_v19, %s8427_s0 }
 0x5a1   : > { %v9761_v43 = vpop.f32.mrf.mxu1 }
 0x5a3   : > { %v9731_v17 = vpop.f32.mrf.mxu0 }
 0x5a5   : > { %3590 = vrot.lane.b32.xlu0 %v12250_v16, %s8426_s22 }
 0x5a8   : > { %3515 = vrot.lane.b32.xlu1 %v12251_v21, %s8426_s22 }
 0x5a9   : > { %v9770_v2 = vpop.f32.mrf.mxu1 }
 0x5ab   : > { %v2855_v60 = vpop.f32.mrf.mxu0 }
 0x5ac   : > { %v9743_v28 = vadd.f32 %v9740_v42, %v2855_v60 }
 0x5ad   : > { %3796 = vrot.lane.b32.xlu0 %v8723_v9, %s8427_s0  ;;  %v12253_v9 = vld [vmem:[#allocation47_spill] sm:$0xff] }
 0x5ae   : > { %v3035_v22 = vsel %vm1120_vm1, %v9743_v28, -inf }
 0x5af   : > { %3036 = vmax.xlane.f32.xlu2 %v3035_v22 }
 0x5b0   : > { %3565 = vrot.lane.b32.xlu1 %v9156_v13, %s8426_s22 }
 0x5b3   : > { %v9751_v10 = vpop.f32.mrf.mxu0 }
 0x5b5   : > { %3752 = vrot.lane.b32.xlu0 %v12252_v24, %s8427_s0 }
 0x5bb   : > { %v2905_v36 = vpop.f32.mrf.mxu0 }
 0x5bc   : > { %v9773_v50 = vadd.f32 %v9740_v42, %v2905_v36 }
 0x5bd   : > { %3754 = vrot.lane.b32.xlu0 %v8725_v11, %s8427_s0  ;;  %v12254_v11 = vld [vmem:[#allocation22_spill] sm:$0xff] }
 0x5be   : > { %v3047_v34 = vsel %vm1120_vm1, %v9773_v50, -inf }
 0x5c1   : > { %v2112_v46 = vpop.xlane.xlu2 %2111 }
 0x5c2   : > { %7945 = vrcp.f32 %v2112_v46  ;;  %v2205_v57 = vand.u32 2147483648, %v2112_v46  ;;  %vm2199_vm2 = vweird.f32 %v2112_v46  ;;  %v2203_v52 = vand.u32 2147483647, %v2112_v46 }
 0x5c3   : > { %v9757_v38 = vpop.f32.mrf.mxu0 }
 0x5c4   : > { %v2206_v56 = vor.u32 1.1754944e-38, %v2205_v57  ;;  %vm2204_vm15 = vcmp.eq.f32.partialorder %v2203_v52, 8.507059e+37  ;;  %v7637_v52 = vld [vmem:[%s8604_s30 + $0x28] sm:$0xf0] }
 0x5c5   : > { %3615 = vrot.lane.b32.xlu0 %v12253_v9, %s8426_s22 }
 0x5c8   : > { %v7946_v0 = vpop.eup %7945 }
 0x5c9   : > { %v2195_v25 = vmul.f32 %v7946_v0, %v2112_v46  ;;  %v2436_v62 = vpop.permute.xlu2 %2435  ;;  %vm2200_vm14 = vweird.f32 %v7946_v0 }
 0x5ca   : > { %2448 = vmatpush.bf16.msra.mxu3 %v2436_v62  ;;  %vm2201_vm3 = vmor %vm2199_vm2, %vm2200_vm14 }
 0x5cb   : > { %v2196_v5 = vsub.f32 1.0, %v2195_v25  ;;  %v2955_v8 = vpop.f32.mrf.mxu0 }
 0x5cc   : > { %v2109_v54 = vpop.xlane.xlu0 %2108  ;;  %v9764_v59 = vadd.f32 %v9740_v42, %v2955_v8 }
 0x5cd   : > { %v2197_v45 = vmul.f32 %v7946_v0, %v2196_v5  ;;  %7947 = vrcp.f32 %v2109_v54  ;;  %3756 = vrot.lane.b32.xlu0 %v12254_v11, %s8427_s0  ;;  %v2190_v14 = vand.u32 2147483648, %v2109_v54  ;;  %v2188_v37 = vand.u32 2147483647, %v2109_v54 }
 0x5ce   : > { %v3059_v49 = vsel %vm1120_vm1, %v9764_v59, -inf  ;;  %vm2184_vm5 = vweird.f32 %v2109_v54 }
 0x5cf   : > { %v2198_v1 = vadd.f32 %v7946_v0, %v2197_v45  ;;  %3060 = vmax.xlane.f32.xlu2 %v3059_v49  ;;  %v2191_v19 = vor.u32 1.1754944e-38, %v2190_v14  ;;  %vm2189_vm7 = vcmp.eq.f32.partialorder %v2188_v37, 8.507059e+37  ;;  %v7638_v45 = vld [vmem:[%s8604_s30 + $0x68] sm:$0xf0] }
 0x5d1   : > { %v2536_v4 = vpop.permute.xlu2 %2535  ;;  %v2202_v61 = vsel %vm2201_vm3, %v7946_v0, %v2198_v1 }
 0x5d2   : > { %2548 = vmatpush.bf16.msrb.mxu3 %v2536_v4  ;;  %v2207_v18 = vsel %vm2204_vm15, %v2206_v56, %v2202_v61  ;;  %v7240_v4 = vld [vmem:[%s8604_s30 + $0xc] sm:$0xf] }
 0x5d3   : > { %v7948_v58 = vpop.eup %7947  ;;  %v2208_v20 = vmul.f32 %v9648_v7, %v2207_v18  ;;  %v7241_v61 = vor.u32 %v7637_v52, %v7240_v4 }
 0x5d4   : > { %v2180_v48 = vmul.f32 %v7948_v58, %v2109_v54  ;;  %v2133_v44 = vpop.xlane.xlu0 %2132  ;;  %vm2185_vm4 = vweird.f32 %v7948_v58  ;;  %v7244_v54 = vld [vmem:[%s8604_s30 + $0x4c] sm:$0xf] }
 0x5d5   : > { %7949 = vrcp.f32 %v2133_v44  ;;  %vm2186_vm6 = vmor %vm2184_vm5, %vm2185_vm4  ;;  %v2392_v22 = vpack.c.bf16 %v2208_v20, %v2208_v20  ;;  %v7245_v49 = vor.u32 %v7638_v45, %v7244_v54  ;;  %vm2304_vm9 = vweird.f32 %v2133_v44 }
 0x5d6   : > { %v2181_v15 = vsub.f32 1.0, %v2180_v48  ;;  %v2308_v57 = vand.u32 2147483647, %v2133_v44 }
 0x5d7   : > { %v2433_v7 = vunpack.c.l.b16 %v2392_v22 }
 0x5d8   : > { %v2182_v53 = vmul.f32 %v7948_v58, %v2181_v15  ;;  %vm2309_vm11 = vcmp.eq.f32.partialorder %v2308_v57, 8.507059e+37 }
 0x5da   : > { %v2183_v51 = vadd.f32 %v7948_v58, %v2182_v53  ;;  %3048 = vmax.xlane.f32.xlu1 %v3047_v34 }
 0x5db   : > { %v7950_v55 = vpop.eup %7949  ;;  %v9778_v6 = vpop.f32.mrf.mxu1 }
 0x5dc   : > { %12255 = vst [vmem:[#allocation49_spill] sm:$0xff] %v9778_v6  ;;  %v2187_v26 = vsel %vm2186_vm6, %v7948_v58, %v2183_v51  ;;  %v2300_v23 = vmul.f32 %v7950_v55, %v2133_v44  ;;  %vm2305_vm8 = vweird.f32 %v7950_v55 }
 0x5dd   : > { %v2192_v60 = vsel %vm2189_vm7, %v2191_v19, %v2187_v26  ;;  %vm2306_vm10 = vmor %vm2304_vm9, %vm2305_vm8 }
 0x5de   : > { %v2193_v24 = vmul.f32 %v9662_v41, %v2192_v60  ;;  %v2301_v36 = vsub.f32 1.0, %v2300_v23  ;;  %v2310_v41 = vand.u32 2147483648, %v2133_v44  ;;  %v9791_v44 = vpop.f32.mrf.mxu0 }
 0x5e0   : > { %v2391_v46 = vpack.c.bf16 %v2193_v24, %v2193_v24  ;;  %v2302_v25 = vmul.f32 %v7950_v55, %v2301_v36  ;;  %v2311_v15 = vor.u32 1.1754944e-38, %v2310_v41  ;;  %v9799_v24 = vld [vmem:[%s12079_s1 + $0x8] sm:$0xff] }
 0x5e1   : > { %v9803_v36 = vadd.f32 %v9799_v24, %v9751_v10 }
 0x5e2   : > { %v2432_v0 = vunpack.c.l.b16 %v2391_v46  ;;  %v2136_v62 = vpop.xlane.xlu1 %2135  ;;  %v2303_v11 = vadd.f32 %v7950_v55, %v2302_v25  ;;  %v9807_v46 = vadd.f32 %v9799_v24, %v9757_v38 }
 0x5e3   : > { %7951 = vrcp.f32 %v2136_v62  ;;  %v9781_v5 = vpop.f32.mrf.mxu1  ;;  %v2323_v34 = vand.u32 2147483647, %v2136_v62  ;;  %v2325_v20 = vand.u32 2147483648, %v2136_v62  ;;  %vm2319_vm13 = vweird.f32 %v2136_v62 }
 0x5e4   : > { %12256 = vst [vmem:[#allocation46_spill] sm:$0xff] %v9781_v5  ;;  %v2434_v8 = vpack.c.b16 %v2433_v7, %v2432_v0  ;;  %v2307_v48 = vsel %vm2306_vm10, %v7950_v55, %v2303_v11  ;;  %v3050_v10 = vsel %vm1120_vm1, %v9807_v46, -inf  ;;  %v3038_v38 = vsel %vm1120_vm1, %v9803_v36, -inf }
 0x5e5   : > { %v2312_v37 = vsel %vm2309_vm11, %v2311_v15, %v2307_v48  ;;  %v2326_v7 = vor.u32 1.1754944e-38, %v2325_v20  ;;  %vm2324_vm2 = vcmp.eq.f32.partialorder %v2323_v34, 8.507059e+37  ;;  %v1776_v48 = vpop.permute.xlu2 %1775 }
 0x5e6   : > { %7215 = vmatmul.msk.bf16.vlgmr.msra.gmra.mxu3 %vm1120_vm1, %v2434_v8  ;;  %v2313_v23 = vmul.f32 %v9666_v30, %v2312_v37  ;;  %v3005_v4 = vpop.f32.mrf.mxu0 }
 0x5e7   : > { %v1758_v1 = vpop.permute.xlu0 %1757  ;;  %2744 = vmatpush.bf16.msra.mxu3 %v7245_v49 }
 0x5e8   : > { %v1789_v19 = vrot.slane %v1758_v1, 4  ;;  %v2399_v54 = vpack.c.bf16 %v2313_v23, %v2313_v23 }
 0x5e9   : > { %v7952_v58 = vpop.eup %7951 }
 0x5ea   : > { %v2315_v56 = vmul.f32 %v7952_v58, %v2136_v62  ;;  %vm2320_vm12 = vweird.f32 %v7952_v58  ;;  %v1807_v30 = vunpack.c.l.b16 %v1789_v19  ;;  %v2532_v57 = vunpack.c.l.b16 %v2399_v54 }
 0x5eb   : > { %v2880_v18 = vpop.f32.mrf.mxu1  ;;  %2745 = vmatpush.bf16.msra.mxu3 %v7241_v61  ;;  %vm2321_vm14 = vmor %vm2319_vm13, %vm2320_vm12 }
 0x5ec   : > { %v2316_v14 = vsub.f32 1.0, %v2315_v56  ;;  %v9789_v53 = vadd.f32 %v9740_v42, %v2880_v18  ;;  %v9819_v56 = vadd.f32 %v9740_v42, %v3005_v4  ;;  %v1798_v18 = vrot.slane %v1776_v48, 4 }
 0x5ee   : > { %v2317_v51 = vmul.f32 %v7952_v58, %v2316_v14  ;;  %v3041_v55 = vsel %vm1120_vm1, %v9789_v53, -inf  ;;  %v3071_v37 = vsel %vm1120_vm1, %v9819_v56, -inf }
 0x5ef   : > { %3042 = vmax.xlane.f32.xlu1 %v3041_v55  ;;  %v1760_v26 = vpop.permute.xlu0 %1759 }
 0x5f0   : > { %v2318_v60 = vadd.f32 %v7952_v58, %v2317_v51  ;;  %v1790_v22 = vrot.slane %v1760_v26, 4  ;;  %v1908_v51 = vunpack.c.l.b16 %v1798_v18 }
 0x5f2   : > { %v2322_v0 = vsel %vm2321_vm14, %v7952_v58, %v2318_v60  ;;  %v1808_v25 = vunpack.c.l.b16 %v1790_v22 }
 0x5f3   : > { %v2327_v62 = vsel %vm2324_vm2, %v2326_v7, %v2322_v0  ;;  %v2882_v8 = vpop.f32.mrf.mxu1 }
 0x5f4   : > { %v2328_v45 = vmul.f32 %v9681_v31, %v2327_v62  ;;  %v1809_v11 = vpack.c.b16 %v1808_v25, %v1807_v30  ;;  %v9816_v58 = vadd.f32 %v9799_v24, %v2882_v8  ;;  %v12257_v30 = vld [vmem:[#allocation34_spill] sm:$0xff]  ;;  %v9839_v8 = vadd.f32 %v9799_v24, %v9791_v44 }
 0x5f5   : > { %v1745_v25 = vpack.c.bf16 %v12257_v30, %v9494_v33 }
 0x5f6   : > { %v2400_v49 = vpack.c.bf16 %v2328_v45, %v2328_v45  ;;  %v1814_v41 = vsel %vm917_vm0, %v1809_v11, 0  ;;  %v3044_v14 = vsel %vm1120_vm1, %v9816_v58, -inf  ;;  %v3749_v11 = vpop.permute.xlu2 %3748  ;;  %v3062_v33 = vsel %vm1120_vm1, %v9839_v8, -inf }
 0x5f7   : > { %3051 = vmax.xlane.f32.xlu1 %v3050_v10  ;;  %3039 = vmax.xlane.f32.xlu0 %v3038_v38  ;;  %v1806_v1 = vpop.permute.xlu0 %1805  ;;  %v3007_v10 = vpop.f32.mrf.mxu0  ;;  %v3780_v44 = vrot.slane %v3749_v11, 4 }
 0x5f8   : > { %v2533_v52 = vunpack.c.l.b16 %v2400_v49  ;;  %1823 = vmatpush.bf16.xpose.msrb.mxu2 %v1814_v41  ;;  %v9851_v41 = vadd.f32 %v9799_v24, %v3007_v10 }
 0x5fa   : > { %v1906_v31 = vpop.permute.xlu1 %1905  ;;  %v2534_v61 = vpack.c.b16 %v2533_v52, %v2532_v57 }
 0x5fb   : > { %v2930_v15 = vpop.f32.mrf.mxu1 }
 0x5fc   : > { %7219 = vmatmul.msk.bf16.vlgmr.msrb.gmra.mxu3 %vm1120_vm1, %v2534_v61  ;;  %v9828_v19 = vadd.f32 %v9740_v42, %v2930_v15  ;;  %v3074_v15 = vsel %vm1120_vm1, %v9851_v41, -inf }
 0x5fe   : > { %v3053_v22 = vsel %vm1120_vm1, %v9828_v19, -inf }
 0x5ff   : > { %7206 = vmatmul.msk.bf16.vlgmr.msrb.gmra.mxu2 %vm917_vm0, %v1806_v1  ;;  %3045 = vmax.xlane.f32.xlu1 %v3044_v14  ;;  %v1774_v34 = vpop.permute.xlu0 %1773 }
 0x600   : > { %3072 = vmax.xlane.f32.xlu0 %v3071_v37  ;;  %v1797_v20 = vrot.slane %v1774_v34, 4 }
 0x602   : > { %v1907_v55 = vunpack.c.l.b16 %v1797_v20  ;;  %v3491_v26 = vpop.permute.xlu1 %3490  ;;  %v12258_v20 = vld [vmem:[#allocation50_spill] sm:$0xff] }
 0x603   : > { %v2932_v23 = vpop.f32.mrf.mxu1 }
 0x604   : > { %v1909_v60 = vpack.c.b16 %v1908_v51, %v1907_v55  ;;  %v9854_v57 = vadd.f32 %v9799_v24, %v2932_v23  ;;  %v12259_v51 = vld [vmem:[#allocation48_spill] sm:$0xff]  ;;  %v9868_v23 = vpop.permute.xlu2 %3821 }
 0x605   : > { %v1746_v55 = vpack.c.bf16 %v12259_v51, %v12258_v20 }
 0x606   : > { %v1914_v7 = vsel %vm917_vm0, %v1909_v60, 0  ;;  %v3056_v37 = vsel %vm1120_vm1, %v9854_v57, -inf }
 0x607   : > { %3054 = vmax.xlane.f32.xlu1 %v3053_v22  ;;  %v3441_v0 = vpop.permute.xlu0 %3440  ;;  %1923 = vmatpush.bf16.xpose.msra.mxu2 %v1914_v7  ;;  %v1600_v7 = vpop.f32.mrf.mxu2 }
 0x608   : > { %3453 = vmatpush.bf16.msra.mxu0 %v3441_v0 }
 0x60a   : > { %v9835_v62 = vpop.permute.xlu1 %3540 }
 0x60b   : > { %v2980_v54 = vpop.f32.mrf.mxu1 }
 0x60c   : > { %3503 = vmatpush.bf16.msrb.mxu0 %v3491_v26  ;;  %v9842_v45 = vadd.f32 %v9740_v42, %v2980_v54  ;;  %7246 = vmatmul.msk.bf16.vlgmr.msra.gmra.mxu3 %vm917_vm0, %v1745_v25 }
 0x60e   : > { %v3065_v49 = vsel %vm1120_vm1, %v9842_v45, -inf }
 0x60f   : > { %7210 = vmatmul.msk.bf16.vlgmr.msra.gmra.mxu2 %vm917_vm0, %v1906_v31  ;;  %3066 = vmax.xlane.f32.xlu2 %v3065_v49  ;;  %v3466_v38 = vpop.permute.xlu0 %3465  ;;  %v3798_v31 = vunpack.c.l.b16 %v3780_v44 }
 0x610   : > { %3063 = vmax.xlane.f32.xlu1 %v3062_v33  ;;  %3478 = vmatpush.bf16.msra.mxu1 %v3466_v38  ;;  %v1602_v33 = vpop.f32.mrf.mxu2 }
 0x611   : > { %v1747_v38 = vpack.c.bf16 %v1602_v33, %v1600_v7 }
 0x612   : > { %v3751_v1 = vpop.permute.xlu1 %3750 }
 0x613   : > { %v3781_v4 = vrot.slane %v3751_v1, 4  ;;  %v2982_v52 = vpop.f32.mrf.mxu1 }
 0x614   : > { %v9857_v61 = vadd.f32 %v9799_v24, %v2982_v52  ;;  %v12260_v52 = vld [vmem:[#allocation53_spill] sm:$0xff] }
 0x615   : > { %v3799_v48 = vunpack.c.l.b16 %v3781_v4 }
 0x616   : > { %v3068_v18 = vsel %vm1120_vm1, %v9857_v61, -inf }
 0x617   : > { %v3800_v14 = vpack.c.b16 %v3799_v48, %v3798_v31  ;;  %3075 = vmax.xlane.f32.xlu2 %v3074_v15  ;;  %3069 = vmax.xlane.f32.xlu0 %v3068_v18  ;;  %v9885_v1 = vpop.permute.xlu0 %3590  ;;  %v12261_v31 = vld [vmem:[#allocation55_spill] sm:$0xff] }
 0x618   : > { %3057 = vmax.xlane.f32.xlu1 %v3056_v37  ;;  %v1748_v48 = vpack.c.bf16 %v12261_v31, %v12260_v52  ;;  %v1656_v15 = vpop.f32.mrf.mxu2  ;;  %v12264_v31 = vld [vmem:[#allocation52_spill] sm:$0xff] }
 0x619   : > { %v3805_v34 = vsel %vm917_vm0, %v3800_v14, 0 }
 0x61a   : > { %3814 = vmatpush.bf16.xpose.msrb.mxu3 %v3805_v34  ;;  %v3516_v26 = vpop.permute.xlu1 %3515 }
 0x61b   : > { %v3030_v60 = vpop.f32.mrf.mxu1  ;;  %3528 = vmatpush.bf16.msrb.mxu1 %v3516_v26 }
 0x61c   : > { %v9871_v22 = vadd.f32 %v9740_v42, %v3030_v60  ;;  %7247 = vmatmul.msk.bf16.gmra.mxu3 %vm917_vm0, %v1746_v55 }
 0x61e   : > { %v3077_v0 = vsel %vm1120_vm1, %v9871_v22, -inf }
 0x61f   : > { %3078 = vmax.xlane.f32.xlu2 %v3077_v0  ;;  %v9889_v4 = vpop.permute.xlu0 %3796 }
 0x620   : > { %v1658_v37 = vpop.f32.mrf.mxu2 }
 0x621   : > { %v1749_v34 = vpack.c.bf16 %v1658_v37, %v1656_v15 }
 0x622   : > { %v3037_v30 = vpop.xlane.xlu2 %3036  ;;  %v9896_v14 = vpop.permute.xlu1 %3565 }
 0x623   : > { %v3032_v25 = vpop.f32.mrf.mxu1  ;;  %v3083_v54 = vsub.f32 %v9743_v28, %v3037_v30  ;;  %v12262_v30 = vld [vmem:[#allocation58_spill] sm:$0xff] }
 0x624   : > { %v9878_v11 = vadd.f32 %v9799_v24, %v3032_v25  ;;  %v12263_v25 = vld [vmem:[#allocation59_spill] sm:$0xff] }
 0x625   : > { %v3099_v49 = vmul.f32 1.442695, %v3083_v54  ;;  %v1750_v54 = vpack.c.bf16 %v12263_v25, %v12262_v30 }
 0x626   : > { %v3080_v10 = vsel %vm1120_vm1, %v9878_v11, -inf }
 0x627   : > { %3081 = vmax.xlane.f32.xlu0 %v3080_v10  ;;  %7953 = vpow2.f32 %v3099_v49  ;;  %v9894_v18 = vpop.permute.xlu0 %3752 }
 0x62c   : > { %7248 = vmatmul.msk.bf16.gmra.mxu3 %vm917_vm0, %v1747_v38 }
 0x62d   : > { %v9883_v44 = vpop.eup %7953 }
 0x62e   : > { %v3131_v28 = vsel %vm1120_vm1, %v9883_v44, 0.0 }
 0x62f   : > { %3132 = vadd.xlane.f32.xlu1 %v3131_v28  ;;  %v9899_v20 = vpop.permute.xlu0 %3754 }
 0x637   : > { %v9902_v60 = vpop.permute.xlu0 %3615 }
 0x63c   : > { %7249 = vmatmul.msk.bf16.gmra.mxu3 %vm917_vm0, %v1748_v48  ;;  %v12265_v48 = vld [vmem:[#allocation54_spill] sm:$0xff] }
 0x63d   : > { %v1751_v15 = vpack.c.bf16 %v12265_v48, %v12264_v31 }
 0x63f   : > { %v9911_v49 = vpop.permute.xlu0 %3756 }
 0x642   : > { %v3061_v10 = vpop.xlane.xlu2 %3060 }
 0x643   : > { %v3091_v38 = vsub.f32 %v9764_v59, %v3061_v10 }
 0x645   : > { %v3115_v52 = vmul.f32 1.442695, %v3091_v38 }
 0x64c   : > { %7250 = vmatmul.msk.bf16.gmra.mxu3 %vm917_vm0, %v1749_v34 }
 0x64d   : > { %v3049_v51 = vpop.xlane.xlu1 %3048 }
 0x64e   : > { %v3087_v55 = vsub.f32 %v9773_v50, %v3049_v51 }
 0x650   : > { %v3107_v26 = vmul.f32 1.442695, %v3087_v55 }
 0x652   : > { %7955 = vpow2.f32 %v3107_v26 }
 0x658   : > { %v9904_v7 = vpop.eup %7955 }
 0x659   : > { %v3143_v0 = vsel %vm1120_vm1, %v9904_v7, 0.0 }
 0x65a   : > { %3144 = vadd.xlane.f32.xlu2 %v3143_v0 }
 0x65c   : > { %7251 = vmatmul.msk.bf16.gmra.mxu3 %vm917_vm0, %v1750_v54 }
 0x662   : > { %v3043_v33 = vpop.xlane.xlu1 %3042 }
 0x663   : > { %v3085_v50 = vsub.f32 %v9789_v53, %v3043_v33  ;;  %v12266_v33 = vld [vmem:[#allocation56_spill] sm:$0xff] }
 0x665   : > { %v3103_v28 = vmul.f32 1.442695, %v3085_v50  ;;  %v12267_v50 = vld [vmem:[#allocation57_spill] sm:$0xff] }
 0x666   : > { %v1752_v38 = vpack.c.bf16 %v12267_v50, %v12266_v33 }
 0x667   : > { %7957 = vpow2.f32 %v3103_v28 }
 0x668   : > { %7959 = vpow2.f32 %v3115_v52 }
 0x66a   : > { %v3040_v37 = vpop.xlane.xlu0 %3039  ;;  %v9917_v34 = vpop.xlane.xlu1 %3051 }
 0x66b   : > { %v3084_v51 = vsub.f32 %v9803_v36, %v3040_v37 }
 0x66c   : > { %7252 = vmatmul.msk.bf16.gmra.mxu3 %vm917_vm0, %v1751_v15 }
 0x66d   : > { %v9921_v55 = vpop.eup %7957  ;;  %v3101_v26 = vmul.f32 1.442695, %v3084_v51 }
 0x66e   : > { %v3137_v59 = vsel %vm1120_vm1, %v9921_v55, 0.0  ;;  %v9925_v0 = vpop.eup %7959 }
 0x66f   : > { %7961 = vpow2.f32 %v3101_v26  ;;  %3138 = vadd.xlane.f32.xlu1 %v3137_v59  ;;  %v3155_v10 = vsel %vm1120_vm1, %v9925_v0, 0.0 }
 0x672   : > { %v3046_v53 = vpop.xlane.xlu1 %3045 }
 0x673   : > { %v3086_v30 = vsub.f32 %v9816_v58, %v3046_v53  ;;  %v12268_v53 = vld [vmem:[#allocation24_spill] sm:$0xff] }
 0x675   : > { %v9928_v25 = vpop.eup %7961  ;;  %v3105_v54 = vmul.f32 1.442695, %v3086_v30  ;;  %v3073_v30 = vpop.xlane.xlu0 %3072 }
 0x676   : > { %v3134_v36 = vsel %vm1120_vm1, %v9928_v25, 0.0 }
 0x677   : > { %7963 = vpow2.f32 %v3105_v54  ;;  %3135 = vadd.xlane.f32.xlu0 %v3134_v36  ;;  %3156 = vadd.xlane.f32.xlu1 %v3155_v10  ;;  %v3095_v10 = vsub.f32 %v9819_v56, %v3073_v30 }
 0x679   : > { %v3123_v50 = vmul.f32 1.442695, %v3095_v10 }
 0x67a   : > { %v3055_v28 = vpop.xlane.xlu1 %3054 }
 0x67b   : > { %v3089_v52 = vsub.f32 %v9828_v19, %v3055_v28 }
 0x67c   : > { %7253 = vmatmul.msk.bf16.gmra.mxu3 %vm917_vm0, %v1752_v38 }
 0x67d   : > { %v9938_v58 = vpop.eup %7963  ;;  %v3111_v31 = vmul.f32 1.442695, %v3089_v52 }
 0x67e   : > { %v3140_v48 = vsel %vm1120_vm1, %v9938_v58, 0.0 }
 0x67f   : > { %7965 = vpow2.f32 %v3111_v31  ;;  %3141 = vadd.xlane.f32.xlu2 %v3140_v48 }
 0x682   : > { %v3067_v38 = vpop.xlane.xlu2 %3066 }
 0x683   : > { %v3064_v15 = vpop.xlane.xlu1 %3063 }
 0x684   : > { %v3092_v37 = vsub.f32 %v9839_v8, %v3064_v15 }
 0x685   : > { %v9943_v51 = vpop.eup %7965 }
 0x686   : > { %v3117_v26 = vmul.f32 1.442695, %v3092_v37  ;;  %v3149_v59 = vsel %vm1120_vm1, %v9943_v51, 0.0  ;;  %v12269_v37 = vld [vmem:[#allocation26_spill] sm:$0xff] }
 0x687   : > { %3150 = vadd.xlane.f32.xlu1 %v3149_v59 }
 0x688   : > { %7967 = vpow2.f32 %v3117_v26 }
 0x68a   : > { %v3070_v31 = vpop.xlane.xlu0 %3069 }
 0x68b   : > { %v3058_v19 = vpop.xlane.xlu1 %3057  ;;  %3758 = vrot.lane.b32.xlu0 %v12268_v53, %s8427_s0  ;;  %v3094_v56 = vsub.f32 %v9857_v61, %v3070_v31  ;;  %v3076_v53 = vpop.xlane.xlu2 %3075 }
 0x68c   : > { %v3090_v54 = vsub.f32 %v9854_v57, %v3058_v19  ;;  %7286 = vmatmul.msk.bf16.vlgmr.msrb.gmra.mxu3 %vm917_vm0, %v9889_v4  ;;  %v3093_v57 = vsub.f32 %v9842_v45, %v3067_v38  ;;  %v3088_v45 = vsub.f32 %v9807_v46, %v9917_v34  ;;  %v3096_v61 = vsub.f32 %v9851_v41, %v3076_v53 }
 0x68d   : > { %v3121_v26 = vmul.f32 1.442695, %v3094_v56  ;;  %v1825_v56 = vpop.f32.mrf.mxu2 }
 0x68e   : > { %v9952_v36 = vpop.eup %7967  ;;  %v3113_v8 = vmul.f32 1.442695, %v3090_v54  ;;  %v3119_v52 = vmul.f32 1.442695, %v3093_v57  ;;  %v3109_v19 = vmul.f32 1.442695, %v3088_v45 }
 0x68f   : > { %v3158_v33 = vsel %vm1120_vm1, %v9952_v36, 0.0 }
 0x690   : > { %3159 = vadd.xlane.f32.xlu2 %v3158_v33  ;;  %7969 = vpow2.f32 %v3113_v8  ;;  %v3125_v8 = vmul.f32 1.442695, %v3096_v61 }
 0x691   : > { %7971 = vpow2.f32 %v3123_v50 }
 0x692   : > { %7973 = vpow2.f32 %v3119_v52  ;;  %v12270_v52 = vld [vmem:[#allocation27_spill] sm:$0xff] }
 0x693   : > { %7975 = vpow2.f32 %v3121_v26  ;;  %v3079_v33 = vpop.xlane.xlu2 %3078  ;;  %v12272_v26 = vld [vmem:[#allocation28_spill] sm:$0xff] }
 0x694   : > { %7977 = vpow2.f32 %v3109_v19  ;;  %v3097_v50 = vsub.f32 %v9871_v22, %v3079_v33  ;;  %v9996_v22 = vadd.f32 %v9740_v42, %v1825_v56 }
 0x695   : > { %7979 = vpow2.f32 %v3125_v8 }
 0x696   : > { %v9957_v28 = vpop.eup %7969  ;;  %v3127_v41 = vmul.f32 1.442695, %v3097_v50 }
 0x697   : > { %v3152_v4 = vsel %vm1120_vm1, %v9957_v28, 0.0  ;;  %v9962_v48 = vpop.eup %7971 }
 0x698   : > { %3153 = vadd.xlane.f32.xlu2 %v3152_v4  ;;  %v3167_v15 = vsel %vm1120_vm1, %v9962_v48, 0.0  ;;  %v9971_v59 = vpop.eup %7973  ;;  %7981 = vpow2.f32 %v3127_v41 }
 0x699   : > { %v3161_v30 = vsel %vm1120_vm1, %v9971_v59, 0.0  ;;  %v9976_v54 = vpop.eup %7975 }
 0x69a   : > { %v3164_v10 = vsel %vm1120_vm1, %v9976_v54, 0.0  ;;  %v9980_v46 = vpop.eup %7977  ;;  %v3082_v19 = vpop.xlane.xlu0 %3081 }
 0x69b   : > { %v3146_v34 = vsel %vm1120_vm1, %v9980_v46, 0.0  ;;  %v9985_v38 = vpop.eup %7979 }
 0x69c   : > { %v3170_v57 = vsel %vm1120_vm1, %v9985_v38, 0.0 }
 0x69e   : > { %v9989_v4 = vpop.eup %7981 }
 0x69f   : > { %v3173_v31 = vsel %vm1120_vm1, %v9989_v4, 0.0 }
 0x6a0   : > { %3760 = vrot.lane.b32.xlu1 %v12269_v37, %s8427_s0  ;;  %3168 = vadd.xlane.f32.xlu2 %v3167_v15  ;;  %v12271_v15 = vld [vmem:[#allocation25_spill] sm:$0xff]  ;;  %v2005_v37 = vsel %vm1120_vm1, %v9996_v22, -inf }
 0x6a2   : > { %v3133_v45 = vpop.xlane.xlu1 %3132 }
 0x6a3   : > { %7983 = vrcp.f32 %v3133_v45  ;;  %v3190_v56 = vand.u32 2147483648, %v3133_v45  ;;  %vm3184_vm15 = vweird.f32 %v3133_v45 }
 0x6a8   : > { %3162 = vadd.xlane.f32.xlu2 %v3161_v30  ;;  %v3098_v30 = vsub.f32 %v9878_v11, %v3082_v19 }
 0x6a9   : > { %v7984_v53 = vpop.eup %7983 }
 0x6aa   : > { %v3180_v61 = vmul.f32 %v7984_v53, %v3133_v45  ;;  %v3129_v8 = vmul.f32 1.442695, %v3098_v30  ;;  %vm3185_vm3 = vweird.f32 %v7984_v53 }
 0x6ab   : > { %vm3186_vm4 = vmor %vm3184_vm15, %vm3185_vm3 }
 0x6b0   : > { %3165 = vadd.xlane.f32.xlu2 %v3164_v10  ;;  %v3181_v10 = vsub.f32 1.0, %v3180_v61  ;;  %v3191_v61 = vor.u32 1.1754944e-38, %v3190_v56 }
 0x6b2   : > { %v3182_v33 = vmul.f32 %v7984_v53, %v3181_v10 }
 0x6b5   : > { %3147 = vadd.xlane.f32.xlu0 %v3146_v34 }
 0x6bd   : > { %3171 = vadd.xlane.f32.xlu0 %v3170_v57  ;;  %v10020_v57 = vpop.f32.mrf.mxu3 }
 0x6c5   : > { %v10036_v16 = vpop.f32.mrf.mxu3 }
 0x6c8   : > { %3762 = vrot.lane.b32.xlu2 %v12270_v52, %s8427_s0  ;;  %v3183_v52 = vadd.f32 %v7984_v53, %v3182_v33 }
 0x6ca   : > { %3174 = vadd.xlane.f32.xlu1 %v3173_v31  ;;  %v3187_v19 = vsel %vm3186_vm4, %v7984_v53, %v3183_v52 }
 0x6cd   : > { %v10014_v50 = vpop.xlane.xlu2 %3144 }
 0x6d1   : > { %3846 = vrot.lane.b32.xlu0 %v12271_v15, %s8427_s0 }
 0x6d2   : > { %2006 = vmax.xlane.f32.xlu1 %v2005_v37 }
 0x6d9   : > { %3871 = vrot.lane.b32.xlu0 %v12272_v26, %s8427_s0  ;;  %v1827_v26 = vpop.f32.mrf.mxu2 }
 0x6da   : > { %v10032_v53 = vadd.f32 %v9799_v24, %v1827_v26 }
 0x6e1   : > { %3764 = vrot.lane.b32.xlu0 %v12246_v63, %s8427_s0  ;;  %v12273_v63 = vld [vmem:[#allocation35_spill] sm:$0xff] }
 0x6e2   : > { %v10007_v42 = vpop.xlane.xlu1 %3138 }
 0x6e3   : > { %7985 = vrcp.f32 %v10007_v42  ;;  %vm3214_vm8 = vweird.f32 %v10007_v42  ;;  %v3218_v24 = vand.u32 2147483647, %v10007_v42 }
 0x6e4   : > { %7987 = vpow2.f32 %v3129_v8 }
 0x6e5   : > { %vm3219_vm13 = vcmp.eq.f32.partialorder %v3218_v24, 8.507059e+37 }
 0x6e9   : > { %v10010_v34 = vpop.eup %7985  ;;  %3766 = vrot.lane.b32.xlu0 %v12243_v3, %s8427_s0  ;;  %v3188_v3 = vand.u32 2147483647, %v3133_v45 }
 0x6ea   : > { %v3210_v11 = vmul.f32 %v10010_v34, %v10007_v42  ;;  %v3136_v41 = vpop.xlane.xlu0 %3135  ;;  %v10022_v31 = vpop.eup %7987  ;;  %vm3215_vm6 = vweird.f32 %v10010_v34 }
 0x6eb   : > { %7989 = vrcp.f32 %v3136_v41  ;;  %3770 = vrot.lane.b32.xlu1 %v12273_v63, %s8427_s0  ;;  %v3176_v30 = vsel %vm1120_vm1, %v10022_v31, 0.0  ;;  %v10029_v33 = vpop.xlane.xlu1 %3156  ;;  %vm3189_vm5 = vcmp.eq.f32.partialorder %v3188_v3, 8.507059e+37  ;;  %v3205_v52 = vand.u32 2147483648, %v3136_v41  ;;  %vm10041_vm9 = vmor %vm3214_vm8, %vm3215_vm6 }
 0x6ec   : > { %v3211_v15 = vsub.f32 1.0, %v3210_v11  ;;  %v3192_v45 = vsel %vm3189_vm5, %v3191_v61, %v3187_v19  ;;  %v3220_v3 = vand.u32 2147483648, %v10007_v42  ;;  %vm3199_vm10 = vweird.f32 %v3136_v41 }
 0x6ee   : > { %v3212_v8 = vmul.f32 %v10010_v34, %v3211_v15  ;;  %v3203_v15 = vand.u32 2147483647, %v3136_v41 }
 0x6f0   : > { %vm3204_vm12 = vcmp.eq.f32.partialorder %v3203_v15, 8.507059e+37 }
 0x6f1   : > { %v7990_v37 = vpop.eup %7989  ;;  %3896 = vrot.lane.b32.xlu0 %v12217_v40, %s8427_s0  ;;  %3177 = vadd.xlane.f32.xlu2 %v3176_v30  ;;  %v3213_v40 = vadd.f32 %v10010_v34, %v3212_v8  ;;  %v3193_v30 = vmul.f32 %v9883_v44, %v3192_v45  ;;  %v3206_v8 = vor.u32 1.1754944e-38, %v3205_v52  ;;  %v12276_v44 = vld [vmem:[#allocation33_spill] sm:$0xff] }
 0x6f2   : > { %v3195_v10 = vmul.f32 %v7990_v37, %v3136_v41  ;;  %v3142_v11 = vpop.xlane.xlu2 %3141  ;;  %vm3200_vm7 = vweird.f32 %v7990_v37  ;;  %v3221_v41 = vor.u32 1.1754944e-38, %v3220_v3 }
 0x6f3   : > { %7991 = vrcp.f32 %v3142_v11  ;;  %vm3201_vm11 = vmor %vm3199_vm10, %vm3200_vm7  ;;  %v3217_v45 = vsel %vm10041_vm9, %v10010_v34, %v3213_v40  ;;  %v3235_v5 = vand.u32 2147483648, %v3142_v11  ;;  %v3233_v19 = vand.u32 2147483647, %v3142_v11  ;;  %v10054_v34 = vpop.f32.mrf.mxu3 }
 0x6f4   : > { %v3196_v63 = vsub.f32 1.0, %v3195_v10  ;;  %v2008_v10 = vsel %vm1120_vm1, %v10032_v53, -inf  ;;  %v3222_v21 = vsel %vm3219_vm13, %v3221_v41, %v3217_v45  ;;  %vm3229_vm2 = vweird.f32 %v3142_v11 }
 0x6f5   : > { %v3223_v40 = vmul.f32 %v9921_v55, %v3222_v21  ;;  %v3236_v24 = vor.u32 1.1754944e-38, %v3235_v5  ;;  %vm3234_vm15 = vcmp.eq.f32.partialorder %v3233_v19, 8.507059e+37  ;;  %vm3244_vm13 = vweird.f32 %v10014_v50 }
 0x6f6   : > { %v3197_v56 = vmul.f32 %v7990_v37, %v3196_v63 }
 0x6f8   : > { %v3198_v26 = vadd.f32 %v7990_v37, %v3197_v56  ;;  %v3419_v56 = vpack.c.bf16 %v3193_v30, %v3193_v30 }
 0x6f9   : > { %v7992_v61 = vpop.eup %7991  ;;  %3768 = vrot.lane.b32.xlu0 %v12276_v44, %s8427_s0  ;;  %2009 = vmax.xlane.f32.xlu2 %v2008_v10 }
 0x6fa   : > { %v3202_v63 = vsel %vm3201_vm11, %v7990_v37, %v3198_v26  ;;  %v3225_v13 = vmul.f32 %v7992_v61, %v3142_v11  ;;  %v3151_v42 = vpop.xlane.xlu1 %3150  ;;  %vm3230_vm14 = vweird.f32 %v7992_v61  ;;  %v3437_v37 = vunpack.c.l.b16 %v3419_v56 }
 0x6fb   : > { %v3207_v9 = vsel %vm3204_vm12, %v3206_v8, %v3202_v63  ;;  %7993 = vrcp.f32 %v3151_v42  ;;  %vm3231_vm3 = vmor %vm3229_vm2, %vm3230_vm14  ;;  %v3421_v8 = vpack.c.bf16 %v3223_v40, %v3223_v40  ;;  %v10064_v11 = vpop.f32.mrf.mxu3  ;;  %vm3274_vm5 = vweird.f32 %v3151_v42 }
 0x6fc   : > { %v3208_v52 = vmul.f32 %v9928_v25, %v3207_v9  ;;  %v3226_v27 = vsub.f32 1.0, %v3225_v13  ;;  %v12277_v9 = vld [vmem:[#allocation39_spill] sm:$0xff] }
 0x6fe   : > { %v3420_v44 = vpack.c.bf16 %v3208_v52, %v3208_v52  ;;  %v3227_v6 = vmul.f32 %v7992_v61, %v3226_v27  ;;  %v3278_v52 = vand.u32 2147483647, %v3151_v42 }
 0x700   : > { %v3438_v15 = vunpack.c.l.b16 %v3420_v44  ;;  %v3228_v30 = vadd.f32 %v7992_v61, %v3227_v6  ;;  %v3462_v6 = vunpack.c.l.b16 %v3421_v8  ;;  %v12279_v44 = vld [vmem:[#allocation36_spill] sm:$0xff]  ;;  %vm3279_vm7 = vcmp.eq.f32.partialorder %v3278_v52, 8.507059e+37 }
 0x701   : > { %v7994_v3 = vpop.eup %7993  ;;  %3774 = vrot.lane.b32.xlu0 %v12277_v9, %s8427_s0 }
 0x702   : > { %v3439_v13 = vpack.c.b16 %v3438_v15, %v3437_v37  ;;  %v3232_v25 = vsel %vm3231_vm3, %v7992_v61, %v3228_v30  ;;  %v3270_v45 = vmul.f32 %v7994_v3, %v3151_v42  ;;  %v12278_v61 = vld [vmem:[#allocation38_spill] sm:$0xff]  ;;  %vm3275_vm4 = vweird.f32 %v7994_v3 }
 0x703   : > { %v3237_v27 = vsel %vm3234_vm15, %v3236_v24, %v3232_v25  ;;  %v10059_v26 = vpop.xlane.xlu2 %3159  ;;  %v10073_v37 = vpop.f32.mrf.mxu3  ;;  %vm3276_vm6 = vmor %vm3274_vm5, %vm3275_vm4 }
 0x704   : > { %v3238_v10 = vmul.f32 %v9938_v58, %v3237_v27  ;;  %7262 = vmatmul.msk.bf16.vlgmr.msra.gmra.mxu0 %vm1120_vm1, %v3439_v13  ;;  %v3271_v55 = vsub.f32 1.0, %v3270_v45  ;;  %v3280_v58 = vand.u32 2147483648, %v3151_v42  ;;  %12280 = vst [vmem:[#allocation19_spill] sm:$0xff] %v10073_v37 }
 0x705   : > { %3553 = vmatpush.bf16.msra.mxu0 %v9835_v62 }
 0x706   : > { %v3422_v21 = vpack.c.bf16 %v3238_v10, %v3238_v10  ;;  %v3272_v56 = vmul.f32 %v7994_v3, %v3271_v55  ;;  %v3281_v24 = vor.u32 1.1754944e-38, %v3280_v58  ;;  %v10087_v58 = vpop.permute.xlu0 %3758 }
 0x708   : > { %v3463_v5 = vunpack.c.l.b16 %v3422_v21  ;;  %v3273_v62 = vadd.f32 %v7994_v3, %v3272_v56 }
 0x709   : > { %3921 = vrot.lane.b32.xlu0 %v12278_v61, %s8427_s0 }
 0x70a   : > { %v3464_v63 = vpack.c.b16 %v3463_v5, %v3462_v6  ;;  %v3277_v40 = vsel %vm3276_vm6, %v7994_v3, %v3273_v62  ;;  %v12281_v3 = vld [vmem:[#allocation41_spill] sm:$0xff] }
 0x70b   : > { %v3154_v41 = vpop.xlane.xlu2 %3153  ;;  %v3282_v13 = vsel %vm3279_vm7, %v3281_v24, %v3277_v40  ;;  %v10084_v55 = vpop.f32.mrf.mxu3  ;;  %v12283_v40 = vld [vmem:[#allocation40_spill] sm:$0xff] }
 0x70c   : > { %7263 = vmatmul.msk.bf16.vlgmr.msra.gmra.mxu1 %vm1120_vm1, %v3464_v63  ;;  %7995 = vrcp.f32 %v3154_v41  ;;  %v3295_v25 = vand.u32 2147483648, %v3154_v41  ;;  %v3293_v42 = vand.u32 2147483647, %v3154_v41  ;;  %v3283_v10 = vmul.f32 %v9943_v51, %v3282_v13  ;;  %12282 = vst [vmem:[#allocation31_spill] sm:$0xff] %v10084_v55 }
 0x70d   : > { %3578 = vmatpush.bf16.msra.mxu1 %v9896_v14  ;;  %7997 = vrcp.f32 %v10014_v50  ;;  %vm3289_vm9 = vweird.f32 %v3154_v41  ;;  %v3250_v13 = vand.u32 2147483648, %v10014_v50 }
 0x70e   : > { %v3296_v21 = vor.u32 1.1754944e-38, %v3295_v25  ;;  %vm3294_vm11 = vcmp.eq.f32.partialorder %v3293_v42, 8.507059e+37  ;;  %v3425_v56 = vpack.c.bf16 %v3283_v10, %v3283_v10  ;;  %v3248_v42 = vand.u32 2147483647, %v10014_v50 }
 0x710   : > { %v3512_v52 = vunpack.c.l.b16 %v3425_v56  ;;  %vm3249_vm15 = vcmp.eq.f32.partialorder %v3248_v42, 8.507059e+37 }
 0x711   : > { %3772 = vrot.lane.b32.xlu2 %v12279_v44, %s8427_s0 }
 0x712   : > { %v7996_v19 = vpop.eup %7995 }
 0x713   : > { %v3285_v15 = vmul.f32 %v7996_v19, %v3154_v41  ;;  %v10075_v30 = vpop.xlane.xlu2 %3168  ;;  %v10077_v14 = vpop.eup %7997  ;;  %vm3290_vm8 = vweird.f32 %v7996_v19 }
 0x714   : > { %v3240_v8 = vmul.f32 %v10077_v14, %v10014_v50  ;;  %vm3291_vm10 = vmor %vm3289_vm9, %vm3290_vm8  ;;  %vm3245_vm12 = vweird.f32 %v10077_v14 }
 0x715   : > { %v3286_v9 = vsub.f32 1.0, %v3285_v15  ;;  %vm10106_vm14 = vmor %vm3244_vm13, %vm3245_vm12 }
 0x716   : > { %v3241_v61 = vsub.f32 1.0, %v3240_v8  ;;  %v3761_v8 = vpop.permute.xlu1 %3760 }
 0x717   : > { %v3287_v27 = vmul.f32 %v7996_v19, %v3286_v9 }
 0x718   : > { %v3242_v41 = vmul.f32 %v10077_v14, %v3241_v61  ;;  %v3251_v61 = vor.u32 1.1754944e-38, %v3250_v13  ;;  %v3784_v13 = vrot.slane %v9911_v49, 4  ;;  %v3785_v49 = vrot.slane %v10087_v58, 4 }
 0x719   : > { %v3288_v45 = vadd.f32 %v7996_v19, %v3287_v27  ;;  %3946 = vrot.lane.b32.xlu2 %v12281_v3, %s8427_s0  ;;  %v10101_v27 = vpop.f32.mrf.mxu3 }
 0x71a   : > { %12284 = vst [vmem:[#allocation20_spill] sm:$0xff] %v10101_v27 }
 0x71b   : > { %v3292_v6 = vsel %vm3291_vm10, %v7996_v19, %v3288_v45  ;;  %v3163_v5 = vpop.xlane.xlu2 %3162 }
 0x71c   : > { %v3297_v63 = vsel %vm3294_vm11, %v3296_v21, %v3292_v6  ;;  %7999 = vrcp.f32 %v3163_v5  ;;  %vm3334_vm3 = vweird.f32 %v3163_v5 }
 0x71d   : > { %v3298_v62 = vmul.f32 %v9957_v28, %v3297_v63  ;;  %8001 = vrcp.f32 %v10029_v33  ;;  %v3243_v28 = vadd.f32 %v10077_v14, %v3242_v41  ;;  %v3340_v63 = vand.u32 2147483648, %v3163_v5 }
 0x71e   : > { %8003 = vrcp.f32 %v10059_v26 }
 0x71f   : > { %v3426_v51 = vpack.c.bf16 %v3298_v62, %v3298_v62  ;;  %v3247_v6 = vsel %vm10106_vm14, %v10077_v14, %v3243_v28  ;;  %v3338_v62 = vand.u32 2147483647, %v3163_v5  ;;  %v3341_v28 = vor.u32 1.1754944e-38, %v3340_v63 }
 0x721   : > { %v3513_v44 = vunpack.c.l.b16 %v3426_v51  ;;  %3776 = vrot.lane.b32.xlu2 %v12283_v40, %s8427_s0  ;;  %v12287_v51 = vld [vmem:[#allocation42_spill] sm:$0xff]  ;;  %vm3339_vm5 = vcmp.eq.f32.partialorder %v3338_v62, 8.507059e+37  ;;  %v10133_v63 = vpop.f32.mrf.mxu3 }
 0x722   : > { %v8000_v19 = vpop.eup %7999  ;;  %12288 = vst [vmem:[#allocation23_spill] sm:$0xff] %v10133_v63 }
 0x723   : > { %v3330_v15 = vmul.f32 %v8000_v19, %v3163_v5  ;;  %v10094_v24 = vpop.xlane.xlu2 %3165  ;;  %v3514_v9 = vpack.c.b16 %v3513_v44, %v3512_v52  ;;  %vm3335_vm2 = vweird.f32 %v8000_v19  ;;  %v10112_v21 = vpop.eup %8001  ;;  %v3252_v52 = vsel %vm3249_vm15, %v3251_v61, %v3247_v6 }
 0x724   : > { %8005 = vrcp.f32 %v10094_v24  ;;  %v10118_v50 = vpop.eup %8003  ;;  %vm3336_vm4 = vmor %vm3334_vm3, %vm3335_vm2  ;;  %v3253_v61 = vmul.f32 %v9904_v7, %v3252_v52  ;;  %vm3349_vm7 = vweird.f32 %v10094_v24  ;;  %vm3319_vm2 = vweird.f32 %v10059_v26 }
 0x725   : > { %v3331_v25 = vsub.f32 1.0, %v3330_v15  ;;  %7265 = vmatmul.msk.bf16.vlgmr.msrb.gmra.mxu1 %vm1120_vm1, %v3514_v9  ;;  %v3300_v15 = vmul.f32 %v10112_v21, %v10029_v33  ;;  %v3315_v9 = vmul.f32 %v10118_v50, %v10059_v26  ;;  %vm3320_vm14 = vweird.f32 %v10118_v50 }
 0x726   : > { %3628 = vmatpush.bf16.msrb.mxu1 %v9902_v60  ;;  %v3786_v60 = vrot.slane %v3761_v8, 4  ;;  %vm3305_vm3 = vweird.f32 %v10112_v21  ;;  %vm10161_vm15 = vmor %vm3319_vm2, %vm3320_vm14 }
 0x727   : > { %v3332_v45 = vmul.f32 %v8000_v19, %v3331_v25 }
 0x728   : > { %v10110_v3 = vpop.xlane.xlu0 %3147  ;;  %v3873_v25 = vunpack.c.l.b16 %v3786_v60  ;;  %v3316_v60 = vsub.f32 1.0, %v3315_v9 }
 0x729   : > { %8007 = vrcp.f32 %v10110_v3  ;;  %v3333_v56 = vadd.f32 %v8000_v19, %v3332_v45  ;;  %3778 = vrot.lane.b32.xlu2 %v12287_v51, %s8427_s0  ;;  %v3355_v45 = vand.u32 2147483648, %v10094_v24  ;;  %v3265_v52 = vand.u32 2147483648, %v10110_v3 }
 0x72a   : > { %v8006_v41 = vpop.eup %8005  ;;  %v3263_v58 = vand.u32 2147483647, %v10110_v3  ;;  %v3317_v9 = vmul.f32 %v10118_v50, %v3316_v60  ;;  %vm3259_vm11 = vweird.f32 %v10110_v3 }
 0x72b   : > { %v3337_v44 = vsel %vm3336_vm4, %v8000_v19, %v3333_v56  ;;  %v3345_v14 = vmul.f32 %v8006_v41, %v10094_v24  ;;  %v3763_v40 = vpop.permute.xlu2 %3762  ;;  %v3353_v19 = vand.u32 2147483647, %v10094_v24  ;;  %vm3350_vm6 = vweird.f32 %v8006_v41 }
 0x72c   : > { %v3787_v5 = vrot.slane %v3763_v40, 4  ;;  %v3342_v10 = vsel %vm3339_vm5, %v3341_v28, %v3337_v44  ;;  %v3301_v40 = vsub.f32 1.0, %v3300_v15  ;;  %vm3351_vm8 = vmor %vm3349_vm7, %vm3350_vm6  ;;  %v3356_v7 = vor.u32 1.1754944e-38, %v3355_v45 }
 0x72d   : > { %v3346_v42 = vsub.f32 1.0, %v3345_v14  ;;  %v3343_v44 = vmul.f32 %v9971_v59, %v3342_v10  ;;  %vm3354_vm9 = vcmp.eq.f32.partialorder %v3353_v19, 8.507059e+37  ;;  %v3849_v59 = vunpack.c.l.b16 %v3785_v49 }
 0x72e   : > { %v3874_v6 = vunpack.c.l.b16 %v3787_v5  ;;  %v3848_v45 = vunpack.c.l.b16 %v3784_v13  ;;  %vm3264_vm13 = vcmp.eq.f32.partialorder %v3263_v58, 8.507059e+37  ;;  %vm3304_vm4 = vweird.f32 %v10029_v33 }
 0x72f   : > { %v8008_v8 = vpop.eup %8007  ;;  %v3347_v56 = vmul.f32 %v8006_v41, %v3346_v42  ;;  %v3310_v58 = vand.u32 2147483648, %v10029_v33  ;;  %vm3306_vm5 = vmor %vm3304_vm4, %vm3305_vm3 }
 0x730   : > { %v3255_v51 = vmul.f32 %v8008_v8, %v10110_v3  ;;  %v3875_v62 = vpack.c.b16 %v3874_v6, %v3873_v25  ;;  %v10138_v5 = vpop.xlane.xlu0 %3171  ;;  %vm3260_vm10 = vweird.f32 %v8008_v8  ;;  %v3429_v25 = vpack.c.bf16 %v3343_v44, %v3343_v44 }
 0x731   : > { %v3348_v14 = vadd.f32 %v8006_v41, %v3347_v56  ;;  %8009 = vrcp.f32 %v10138_v5  ;;  %v3423_v6 = vpack.c.bf16 %v3253_v61, %v3253_v61  ;;  %vm3261_vm12 = vmor %vm3259_vm11, %vm3260_vm10  ;;  %v3302_v56 = vmul.f32 %v10112_v21, %v3301_v40 }
 0x732   : > { %v3256_v28 = vsub.f32 1.0, %v3255_v51  ;;  %v3880_v42 = vsel %vm917_vm0, %v3875_v62, 0  ;;  %8011 = vrcp.f32 %v10075_v30  ;;  %v3850_v60 = vpack.c.b16 %v3849_v59, %v3848_v45 }
 0x733   : > { %v3352_v15 = vsel %vm3351_vm8, %v8006_v41, %v3348_v14  ;;  %3889 = vmatpush.bf16.xpose.msra.mxu3 %v3880_v42  ;;  %v3266_v41 = vor.u32 1.1754944e-38, %v3265_v52  ;;  %v3318_v62 = vadd.f32 %v10118_v50, %v3317_v9  ;;  %v3562_v3 = vunpack.c.l.b16 %v3429_v25  ;;  %v10155_v14 = vpop.f32.mrf.mxu3 }
 0x734   : > { %v3257_v63 = vmul.f32 %v8008_v8, %v3256_v28  ;;  %v3357_v24 = vsel %vm3354_vm9, %v3356_v7, %v3352_v15  ;;  %12289 = vst [vmem:[#allocation30_spill] sm:$0xff] %v10155_v14  ;;  %v3487_v40 = vunpack.c.l.b16 %v3423_v6  ;;  %v3303_v28 = vadd.f32 %v10112_v21, %v3302_v56 }
 0x735   : > { %v3358_v10 = vmul.f32 %v9976_v54, %v3357_v24  ;;  %v3308_v15 = vand.u32 2147483647, %v10029_v33  ;;  %v3311_v6 = vor.u32 1.1754944e-38, %v3310_v58  ;;  %vm3379_vm10 = vweird.f32 %v10138_v5 }
 0x736   : > { %v3258_v19 = vadd.f32 %v8008_v8, %v3257_v63  ;;  %v3325_v63 = vand.u32 2147483648, %v10059_v26  ;;  %v3307_v33 = vsel %vm3306_vm5, %v10112_v21, %v3303_v28  ;;  %v3783_v21 = vrot.slane %v9899_v20, 4 }
 0x737   : > { %v3430_v51 = vpack.c.bf16 %v3358_v10, %v3358_v10  ;;  %v10153_v44 = vpop.eup %8009  ;;  %v3855_v10 = vsel %vm917_vm0, %v3850_v60, 0  ;;  %vm3309_vm7 = vcmp.eq.f32.partialorder %v3308_v15, 8.507059e+37 }
 0x738   : > { %v3262_v49 = vsel %vm3261_vm12, %v8008_v8, %v3258_v19  ;;  %v3323_v8 = vand.u32 2147483647, %v10059_v26  ;;  %v3322_v26 = vsel %vm10161_vm15, %v10118_v50, %v3318_v62  ;;  %v3326_v9 = vor.u32 1.1754944e-38, %v3325_v63 }
 0x739   : > { %v3267_v54 = vsel %vm3264_vm13, %v3266_v41, %v3262_v49  ;;  %v3563_v13 = vunpack.c.l.b16 %v3430_v51  ;;  %v3375_v25 = vmul.f32 %v10153_v44, %v10138_v5  ;;  %v3312_v56 = vsel %vm3309_vm7, %v3311_v6, %v3307_v33 }
 0x73a   : > { %v3268_v61 = vmul.f32 %v9980_v46, %v3267_v54  ;;  %v10165_v46 = vpop.eup %8011  ;;  %vm3324_vm6 = vcmp.eq.f32.partialorder %v3323_v8, 8.507059e+37  ;;  %v3313_v63 = vmul.f32 %v9925_v0, %v3312_v56  ;;  %v3824_v28 = vunpack.c.l.b16 %v3783_v21 }
 0x73b   : > { %v3564_v42 = vpack.c.b16 %v3563_v13, %v3562_v3  ;;  %v3327_v19 = vsel %vm3324_vm6, %v3326_v9, %v3322_v26  ;;  %v3360_v50 = vmul.f32 %v10165_v46, %v10075_v30  ;;  %v3376_v41 = vsub.f32 1.0, %v3375_v25  ;;  %v10190_v62 = vpop.f32.mrf.mxu3  ;;  %v10208_v26 = vld [vmem:[%s12079_s1] sm:$0xff] }
 0x73c   : > { %v3424_v52 = vpack.c.bf16 %v3268_v61, %v3268_v61  ;;  %v3328_v51 = vmul.f32 %v9952_v36, %v3327_v19  ;;  %12292 = vst [vmem:[#allocation44_spill] sm:$0xff] %v10190_v62  ;;  %v3782_v61 = vrot.slane %v9894_v18, 4  ;;  %v1925_v36 = vpop.f32.mrf.mxu2  ;;  %v3427_v7 = vpack.c.bf16 %v3313_v63, %v3313_v63 }
 0x73d   : > { %v10173_v59 = vpop.xlane.xlu1 %3174  ;;  %7267 = vmatmul.msk.bf16.vlgmr.msra.gmra.mxu1 %vm1120_vm1, %v3564_v42  ;;  %v3361_v60 = vsub.f32 1.0, %v3360_v50  ;;  %v3377_v3 = vmul.f32 %v10153_v44, %v3376_v41  ;;  %vm3380_vm8 = vweird.f32 %v10153_v44  ;;  %v3385_v42 = vand.u32 2147483648, %v10138_v5 }
 0x73e   : > { %v3488_v24 = vunpack.c.l.b16 %v3424_v52  ;;  %3864 = vmatpush.bf16.xpose.msra.mxu1 %v3855_v10  ;;  %v3823_v52 = vunpack.c.l.b16 %v3782_v61  ;;  %vm3365_vm9 = vweird.f32 %v10165_v46  ;;  %v3383_v18 = vand.u32 2147483647, %v10138_v5  ;;  %vm3381_vm11 = vmor %vm3379_vm10, %vm3380_vm8 }
 0x73f   : > { %v3378_v20 = vadd.f32 %v10153_v44, %v3377_v3  ;;  %v10211_v9 = vadd.f32 %v10208_v26, %v1925_v36  ;;  %v3537_v25 = vunpack.c.l.b16 %v3427_v7  ;;  %vm3364_vm12 = vweird.f32 %v10075_v30  ;;  %v10241_v3 = vld [vmem:[%s12079_s1 + $0x8] sm:$0xff] }
 0x740   : > { %v3489_v45 = vpack.c.b16 %v3488_v24, %v3487_v40  ;;  %v3428_v40 = vpack.c.bf16 %v3328_v51, %v3328_v51  ;;  %v3825_v58 = vpack.c.b16 %v3824_v28, %v3823_v52  ;;  %v3370_v24 = vand.u32 2147483648, %v10075_v30  ;;  %vm10221_vm13 = vmor %vm3364_vm12, %vm3365_vm9 }
 0x741   : > { %v3368_v5 = vand.u32 2147483647, %v10075_v30  ;;  %v3382_v10 = vsel %vm3381_vm11, %v10153_v44, %v3378_v20  ;;  %v3386_v50 = vor.u32 1.1754944e-38, %v3385_v42  ;;  %vm3384_vm14 = vcmp.eq.f32.partialorder %v3383_v18, 8.507059e+37 }
 0x742   : > { %7264 = vmatmul.msk.bf16.vlgmr.msrb.gmra.mxu0 %vm1120_vm1, %v3489_v45  ;;  %v3538_v0 = vunpack.c.l.b16 %v3428_v40  ;;  %v3371_v56 = vor.u32 1.1754944e-38, %v3370_v24  ;;  %v3830_v21 = vsel %vm917_vm0, %v3825_v58, 0  ;;  %vm3394_vm15 = vweird.f32 %v10173_v59 }
 0x743   : > { %3603 = vmatpush.bf16.msrb.mxu0 %v9885_v1  ;;  %v10187_v49 = vpop.permute.xlu0 %3846  ;;  %v3362_v1 = vmul.f32 %v10165_v46, %v3361_v60  ;;  %v10219_v33 = vpop.f32.mrf.mxu3  ;;  %v3387_v51 = vsel %vm3384_vm14, %v3386_v50, %v3382_v10  ;;  %vm3369_vm2 = vcmp.eq.f32.partialorder %v3368_v5, 8.507059e+37  ;;  %v2029_v60 = vsel %vm1120_vm1, %v10211_v9, -inf }
 0x744   : > { %12293 = vst [vmem:[#allocation37_spill] sm:$0xff] %v10219_v33  ;;  %v3539_v41 = vpack.c.b16 %v3538_v0, %v3537_v25  ;;  %v1927_v44 = vpop.f32.mrf.mxu2  ;;  %v3388_v63 = vmul.f32 %v9985_v38, %v3387_v51 }
 0x745   : > { %v2007_v54 = vpop.xlane.xlu1 %2006 }
 0x746   : > { %v2053_v13 = vsub.f32 %v9996_v22, %v2007_v54  ;;  %v3363_v22 = vadd.f32 %v10165_v46, %v3362_v1  ;;  %v3432_v40 = vpack.c.bf16 %v3388_v63, %v3388_v63 }
 0x748   : > { %v2069_v8 = vmul.f32 1.442695, %v2053_v13  ;;  %v3367_v6 = vsel %vm10221_vm13, %v10165_v46, %v3363_v22  ;;  %v10244_v13 = vadd.f32 %v10241_v3, %v1927_v44  ;;  %v3588_v20 = vunpack.c.l.b16 %v3432_v40 }
 0x749   : > { %v3372_v54 = vsel %vm3369_vm2, %v3371_v56, %v3367_v6  ;;  %v3400_v6 = vand.u32 2147483648, %v10173_v59 }
 0x74a   : > { %8013 = vpow2.f32 %v2069_v8  ;;  %v3373_v61 = vmul.f32 %v9962_v48, %v3372_v54  ;;  %v2032_v1 = vsel %vm1120_vm1, %v10244_v13, -inf }
 0x74b   : > { %v3872_v15 = vpop.permute.xlu0 %3871  ;;  %8015 = vrcp.f32 %v10173_v59  ;;  %v10247_v36 = vpop.f32.mrf.mxu3  ;;  %v3401_v54 = vor.u32 1.1754944e-38, %v3400_v6 }
 0x74c   : > { %7289 = vmatmul.msk.bf16.vlgmr.msra.gmra.mxu3 %vm917_vm0, %v3872_v15  ;;  %12296 = vst [vmem:[#allocation21_spill] sm:$0xff] %v10247_v36  ;;  %v3431_v38 = vpack.c.bf16 %v3373_v61, %v3373_v61 }
 0x74e   : > { %v3587_v42 = vunpack.c.l.b16 %v3431_v38 }
 0x750   : > { %v10225_v45 = vpop.eup %8013  ;;  %v3589_v18 = vpack.c.b16 %v3588_v20, %v3587_v42 }
 0x751   : > { %v2101_v30 = vsel %vm1120_vm1, %v10225_v45, 0.0  ;;  %v8016_v8 = vpop.eup %8015 }
 0x752   : > { %7266 = vmatmul.msk.bf16.vlgmr.msra.gmra.mxu0 %vm1120_vm1, %v3539_v41  ;;  %2102 = vadd.xlane.f32.xlu0 %v2101_v30  ;;  %v3390_v0 = vmul.f32 %v8016_v8, %v10173_v59  ;;  %vm3395_vm3 = vweird.f32 %v8016_v8  ;;  %v3398_v41 = vand.u32 2147483647, %v10173_v59 }
 0x753   : > { %2030 = vmax.xlane.f32.xlu2 %v2029_v60  ;;  %3839 = vmatpush.bf16.xpose.msra.mxu0 %v3830_v21  ;;  %v3765_v46 = vpop.permute.xlu0 %3764  ;;  %v10254_v25 = vpop.f32.mrf.mxu3  ;;  %vm3396_vm4 = vmor %vm3394_vm15, %vm3395_vm3 }
 0x754   : > { %v3788_v28 = vrot.slane %v3765_v46, 4  ;;  %v3391_v58 = vsub.f32 1.0, %v3390_v0  ;;  %12297 = vst [vmem:[#allocation22_spill] sm:$0xff] %v10254_v25  ;;  %vm3399_vm5 = vcmp.eq.f32.partialorder %v3398_v41, 8.507059e+37 }
 0x756   : > { %v3898_v15 = vunpack.c.l.b16 %v3788_v28  ;;  %v3392_v10 = vmul.f32 %v8016_v8, %v3391_v58 }
 0x758   : > { %v3393_v50 = vadd.f32 %v8016_v8, %v3392_v10 }
 0x75a   : > { %2033 = vmax.xlane.f32.xlu0 %v2032_v1  ;;  %v3397_v44 = vsel %vm3396_vm4, %v8016_v8, %v3393_v50 }
 0x75b   : > { %v3767_v7 = vpop.permute.xlu0 %3766  ;;  %v10261_v30 = vpop.f32.mrf.mxu3  ;;  %v3402_v61 = vsel %vm3399_vm5, %v3401_v54, %v3397_v44 }
 0x75c   : > { %v3789_v52 = vrot.slane %v3767_v7, 4  ;;  %12298 = vst [vmem:[#allocation34_spill] sm:$0xff] %v10261_v30  ;;  %v3403_v8 = vmul.f32 %v9989_v4, %v3402_v61 }
 0x75d   : > { %v3771_v28 = vpop.permute.xlu1 %3770 }
 0x75e   : > { %v3899_v22 = vunpack.c.l.b16 %v3789_v52  ;;  %v3791_v42 = vrot.slane %v3771_v28, 4  ;;  %v3433_v10 = vpack.c.bf16 %v3403_v8, %v3403_v8 }
 0x760   : > { %v3900_v48 = vpack.c.b16 %v3899_v22, %v3898_v15  ;;  %v3924_v6 = vunpack.c.l.b16 %v3791_v42  ;;  %v3612_v44 = vunpack.c.l.b16 %v3433_v10 }
 0x762   : > { %7268 = vmatmul.msk.bf16.vlgmr.msrb.gmra.mxu0 %vm1120_vm1, %v3589_v18  ;;  %v3905_v24 = vsel %vm917_vm0, %v3900_v48, 0 }
 0x763   : > { %v10256_v5 = vpop.permute.xlu0 %3896  ;;  %3914 = vmatpush.bf16.xpose.msrb.mxu0 %v3905_v24  ;;  %v10269_v24 = vpop.f32.mrf.mxu3 }
 0x764   : > { %v3178_v19 = vpop.xlane.xlu2 %3177  ;;  %12299 = vst [vmem:[#allocation50_spill] sm:$0xff] %v10269_v24 }
 0x765   : > { %8017 = vrcp.f32 %v3178_v19  ;;  %v3415_v40 = vand.u32 2147483648, %v3178_v19  ;;  %v3413_v38 = vand.u32 2147483647, %v3178_v19  ;;  %vm3409_vm7 = vweird.f32 %v3178_v19 }
 0x767   : > { %v3416_v52 = vor.u32 1.1754944e-38, %v3415_v40  ;;  %vm3414_vm9 = vcmp.eq.f32.partialorder %v3413_v38, 8.507059e+37 }
 0x76b   : > { %v3769_v56 = vpop.permute.xlu0 %3768  ;;  %v8018_v51 = vpop.eup %8017 }
 0x76c   : > { %v3405_v60 = vmul.f32 %v8018_v51, %v3178_v19  ;;  %v2010_v21 = vpop.xlane.xlu2 %2009  ;;  %vm3410_vm6 = vweird.f32 %v8018_v51  ;;  %v10279_v61 = vpop.f32.mrf.mxu3 }
 0x76d   : > { %v2054_v46 = vsub.f32 %v10032_v53, %v2010_v21  ;;  %v3790_v53 = vrot.slane %v3769_v56, 4  ;;  %vm3411_vm8 = vmor %vm3409_vm7, %vm3410_vm6  ;;  %12300 = vst [vmem:[#allocation48_spill] sm:$0xff] %v10279_v61 }
 0x76e   : > { %2410 = vrot.lane.b32.xlu0 %v12248_v35, %s8425_s27  ;;  %v3406_v63 = vsub.f32 1.0, %v3405_v60 }
 0x76f   : > { %v2071_v1 = vmul.f32 1.442695, %v2054_v46  ;;  %v3923_v4 = vunpack.c.l.b16 %v3790_v53 }
 0x770   : > { %v3407_v59 = vmul.f32 %v8018_v51, %v3406_v63 }
 0x771   : > { %8019 = vpow2.f32 %v2071_v1  ;;  %v3925_v21 = vpack.c.b16 %v3924_v6, %v3923_v4 }
 0x772   : > { %7287 = vmatmul.msk.bf16.vlgmr.msra.gmra.mxu0 %vm917_vm0, %v9868_v23  ;;  %v3408_v7 = vadd.f32 %v8018_v51, %v3407_v59 }
 0x773   : > { %v3775_v20 = vpop.permute.xlu0 %3774 }
 0x774   : > { %v3793_v0 = vrot.slane %v3775_v20, 4  ;;  %v3412_v15 = vsel %vm3411_vm8, %v8018_v51, %v3408_v7  ;;  %v3773_v22 = vpop.permute.xlu2 %3772  ;;  %v10284_v1 = vpop.f32.mrf.mxu3  ;;  %v12302_v20 = vld [vmem:[#allocation43_spill] sm:$0xff] }
 0x775   : > { %v3417_v18 = vsel %vm3414_vm9, %v3416_v52, %v3412_v15  ;;  %v3792_v58 = vrot.slane %v3773_v22, 4  ;;  %12301 = vst [vmem:[#allocation53_spill] sm:$0xff] %v10284_v1 }
 0x776   : > { %v3949_v48 = vunpack.c.l.b16 %v3793_v0  ;;  %v3418_v23 = vmul.f32 %v10022_v31, %v3417_v18  ;;  %v3930_v31 = vsel %vm917_vm0, %v3925_v21, 0 }
 0x777   : > { %v10272_v50 = vpop.eup %8019  ;;  %v3948_v19 = vunpack.c.l.b16 %v3792_v58 }
 0x778   : > { %v3434_v41 = vpack.c.bf16 %v3418_v23, %v3418_v23  ;;  %v2104_v56 = vsel %vm1120_vm1, %v10272_v50, 0.0 }
 0x779   : > { %v3950_v51 = vpack.c.b16 %v3949_v48, %v3948_v19  ;;  %2105 = vadd.xlane.f32.xlu1 %v2104_v56 }
 0x77a   : > { %v3613_v60 = vunpack.c.l.b16 %v3434_v41 }
 0x77b   : > { %v3955_v54 = vsel %vm917_vm0, %v3950_v51, 0  ;;  %v3922_v0 = vpop.permute.xlu0 %3921 }
 0x77c   : > { %v3947_v46 = vpop.permute.xlu2 %3946  ;;  %3964 = vmatpush.bf16.xpose.msrb.mxu3 %v3955_v54  ;;  %v3614_v63 = vpack.c.b16 %v3613_v60, %v3612_v44 }
 0x77e   : > { %7269 = vmatmul.msk.bf16.vlgmr.msrb.gmra.mxu1 %vm1120_vm1, %v3614_v63 }
 0x77f   : > { %3939 = vmatpush.bf16.xpose.msrb.mxu1 %v3930_v31 }
 0x782   : > { %7290 = vmatmul.msk.bf16.vlgmr.msrb.gmra.mxu0 %vm917_vm0, %v10256_v5  ;;  %v10291_v5 = vpop.f32.mrf.mxu3 }
 0x783   : > { %7292 = vmatmul.msk.bf16.vlgmr.msrb.gmra.mxu3 %vm917_vm0, %v3947_v46  ;;  %12303 = vst [vmem:[#allocation55_spill] sm:$0xff] %v10291_v5 }
 0x784   : > { %v3777_v40 = vpop.permute.xlu2 %3776 }
 0x785   : > { %v3794_v59 = vrot.slane %v3777_v40, 4 }
 0x787   : > { %v3973_v8 = vunpack.c.l.b16 %v3794_v59 }
 0x78a   : > { %v10295_v42 = vpop.f32.mrf.mxu3 }
 0x78b   : > { %12304 = vst [vmem:[#allocation58_spill] sm:$0xff] %v10295_v42 }
 0x78c   : > { %v3779_v38 = vpop.permute.xlu2 %3778 }
 0x78d   : > { %v3795_v28 = vrot.slane %v3779_v38, 4 }
 0x78e   : > { %7288 = vmatmul.msk.bf16.vlgmr.msra.gmra.mxu1 %vm917_vm0, %v10187_v49 }
 0x78f   : > { %v3974_v7 = vunpack.c.l.b16 %v3795_v28  ;;  %v10330_v28 = vpop.f32.mrf.mxu1 }
 0x791   : > { %v3975_v53 = vpack.c.b16 %v3974_v7, %v3973_v8 }
 0x792   : > { %3971 = vrot.lane.b32.xlu1 %v12302_v20, %s8427_s0  ;;  %v10298_v49 = vpop.f32.mrf.mxu3 }
 0x793   : > { %v3980_v52 = vsel %vm917_vm0, %v3975_v53, 0  ;;  %12305 = vst [vmem:[#allocation59_spill] sm:$0xff] %v10298_v49 }
 0x794   : > { %3989 = vmatpush.bf16.xpose.msra.mxu0 %v3980_v52 }
 0x797   : > { %v10336_v20 = vpop.f32.mrf.mxu1 }
 0x79a   : > { %2510 = vrot.lane.b32.xlu1 %v12249_v47, %s8425_s27  ;;  %v3816_v15 = vpop.f32.mrf.mxu3 }
 0x79b   : > { %v10321_v54 = vadd.f32 %v10208_v26, %v3816_v15 }
 0x79d   : > { %v3996_v63 = vsel %vm1120_vm1, %v10321_v54, -inf }
 0x79e   : > { %7291 = vmatmul.msk.bf16.vlgmr.msrb.gmra.mxu1 %vm917_vm0, %v3922_v0 }
 0x7a2   : > { %v3818_v22 = vpop.f32.mrf.mxu3 }
 0x7a3   : > { %v10301_v18 = vadd.f32 %v10241_v3, %v3818_v22 }
 0x7a5   : > { %v3999_v48 = vsel %vm1120_vm1, %v10301_v18, -inf }
 0x7c4   : > { %4000 = vmax.xlane.f32.xlu1 %v3999_v48 }
 0x7c5   : > { %v2103_v58 = vpop.xlane.xlu0 %2102 }
 0x7c6   : > { %v2031_v10 = vpop.xlane.xlu2 %2030  ;;  %v2160_v0 = vand.u32 2147483648, %v2103_v58  ;;  %vm2154_vm11 = vweird.f32 %v2103_v58  ;;  %v2158_v15 = vand.u32 2147483647, %v2103_v58 }
 0x7c7   : > { %v2061_v23 = vsub.f32 %v10211_v9, %v2031_v10 }
 0x7c8   : > { %vm2159_vm13 = vcmp.eq.f32.partialorder %v2158_v15, 8.507059e+37 }
 0x7c9   : > { %v2085_v4 = vmul.f32 1.442695, %v2061_v23  ;;  %v10338_v23 = vpop.f32.mrf.mxu0 }
 0x7cb   : > { %8021 = vpow2.f32 %v2085_v4  ;;  %v2161_v4 = vor.u32 1.1754944e-38, %v2160_v0 }
 0x7cd   : > { %v2034_v19 = vpop.xlane.xlu0 %2033 }
 0x7ce   : > { %v2062_v6 = vsub.f32 %v10244_v13, %v2034_v19 }
 0x7cf   : > { %v3891_v44 = vpop.f32.mrf.mxu3 }
 0x7d0   : > { %v2087_v41 = vmul.f32 1.442695, %v2062_v6  ;;  %v10312_v60 = vadd.f32 %v10208_v26, %v3891_v44 }
 0x7d1   : > { %v10307_v56 = vpop.eup %8021 }
 0x7d2   : > { %8023 = vpow2.f32 %v2087_v41  ;;  %v2125_v51 = vsel %vm1120_vm1, %v10307_v56, 0.0  ;;  %v4014_v13 = vsel %vm1120_vm1, %v10312_v60, -inf }
 0x7d3   : > { %2126 = vadd.xlane.f32.xlu0 %v2125_v51  ;;  %8025 = vrcp.f32 %v2103_v58  ;;  %v10340_v51 = vpop.f32.mrf.mxu1 }
 0x7d7   : > { %v3893_v40 = vpop.f32.mrf.mxu3 }
 0x7d8   : > { %v10314_v21 = vpop.eup %8023  ;;  %v10328_v38 = vadd.f32 %v10241_v3, %v3893_v40 }
 0x7d9   : > { %v2128_v9 = vsel %vm1120_vm1, %v10314_v21, 0.0  ;;  %v8026_v31 = vpop.eup %8025 }
 0x7da   : > { %2129 = vadd.xlane.f32.xlu2 %v2128_v9  ;;  %v2150_v59 = vmul.f32 %v8026_v31, %v2103_v58  ;;  %v4017_v7 = vsel %vm1120_vm1, %v10328_v38, -inf  ;;  %vm2155_vm10 = vweird.f32 %v8026_v31 }
 0x7db   : > { %4015 = vmax.xlane.f32.xlu0 %v4014_v13  ;;  %vm2156_vm12 = vmor %vm2154_vm11, %vm2155_vm10 }
 0x7dc   : > { %v2151_v8 = vsub.f32 1.0, %v2150_v59  ;;  %v10344_v59 = vpop.f32.mrf.mxu0 }
 0x7dd   : > { %4426 = vrot.lane.b32.xlu1 %v12241_v29, %s8427_s0 }
 0x7de   : > { %v2152_v29 = vmul.f32 %v8026_v31, %v2151_v8 }
 0x7e0   : > { %v2411_v46 = vpop.permute.xlu0 %2410  ;;  %v2153_v52 = vadd.f32 %v8026_v31, %v2152_v29 }
 0x7e1   : > { %2423 = vmatpush.bf16.msrb.mxu2 %v2411_v46 }
 0x7e2   : > { %3997 = vmax.xlane.f32.xlu2 %v3996_v63  ;;  %v2157_v48 = vsel %vm2156_vm12, %v8026_v31, %v2153_v52 }
 0x7e3   : > { %v2162_v6 = vsel %vm2159_vm13, %v2161_v4, %v2157_v48 }
 0x7e4   : > { %v2163_v9 = vmul.f32 %v10225_v45, %v2162_v6 }
 0x7e6   : > { %v2389_v31 = vpack.c.bf16 %v2163_v9, %v2163_v9 }
 0x7e8   : > { %v2407_v29 = vunpack.c.l.b16 %v2389_v31 }
 0x7ea   : > { %4018 = vmax.xlane.f32.xlu2 %v4017_v7  ;;  %v10346_v7 = vpop.f32.mrf.mxu1 }
 0x7ec   : > { %v2106_v53 = vpop.xlane.xlu1 %2105 }
 0x7ed   : > { %8027 = vrcp.f32 %v2106_v53  ;;  %v2175_v41 = vand.u32 2147483648, %v2106_v53  ;;  %v2173_v44 = vand.u32 2147483647, %v2106_v53  ;;  %vm2169_vm2 = vweird.f32 %v2106_v53 }
 0x7ef   : > { %4401 = vrot.lane.b32.xlu0 %v12248_v35, %s8427_s0  ;;  %v2176_v58 = vor.u32 1.1754944e-38, %v2175_v41  ;;  %vm2174_vm15 = vcmp.eq.f32.partialorder %v2173_v44, 8.507059e+37 }
 0x7f3   : > { %v8028_v22 = vpop.eup %8027 }
 0x7f4   : > { %v2165_v10 = vmul.f32 %v8028_v22, %v2106_v53  ;;  %vm2170_vm14 = vweird.f32 %v8028_v22  ;;  %v10350_v53 = vpop.f32.mrf.mxu0 }
 0x7f5   : > { %vm2171_vm3 = vmor %vm2169_vm2, %vm2170_vm14 }
 0x7f6   : > { %v2166_v19 = vsub.f32 1.0, %v2165_v10 }
 0x7f8   : > { %v2167_v35 = vmul.f32 %v8028_v22, %v2166_v19 }
 0x7fa   : > { %v2168_v13 = vadd.f32 %v8028_v22, %v2167_v35 }
 0x7fc   : > { %v2172_v46 = vsel %vm2171_vm3, %v8028_v22, %v2168_v13  ;;  %v10352_v22 = vpop.f32.mrf.mxu1  ;;  %v10357_v4 = vpop.f32.mrf.mxu0 }
 0x7fd   : > { %v2177_v63 = vsel %vm2174_vm15, %v2176_v58, %v2172_v46 }
 0x7fe   : > { %v2178_v40 = vmul.f32 %v10272_v50, %v2177_v63 }
 0x800   : > { %v2390_v8 = vpack.c.bf16 %v2178_v40, %v2178_v40 }
 0x802   : > { %v2408_v52 = vunpack.c.l.b16 %v2390_v8 }
 0x804   : > { %v2409_v0 = vpack.c.b16 %v2408_v52, %v2407_v29  ;;  %v3972_v15 = vpop.permute.xlu1 %3971  ;;  %v10364_v41 = vpop.f32.mrf.mxu1 }
 0x805   : > { %7293 = vmatmul.msk.bf16.vlgmr.msra.gmra.mxu0 %vm917_vm0, %v3972_v15  ;;  %v10368_v44 = vpop.f32.mrf.mxu0 }
 0x806   : > { %7214 = vmatmul.msk.bf16.vlgmr.msrb.gmra.mxu2 %vm1120_vm1, %v2409_v0  ;;  %v3966_v45 = vpop.f32.mrf.mxu3 }
 0x807   : > { %v10362_v6 = vadd.f32 %v10208_v26, %v3966_v45 }
 0x809   : > { %v4032_v35 = vsel %vm1120_vm1, %v10362_v6, -inf }
 0x80c   : > { %v2511_v48 = vpop.permute.xlu1 %2510  ;;  %v10370_v9 = vpop.f32.mrf.mxu1 }
 0x80d   : > { %2523 = vmatpush.bf16.msra.mxu2 %v2511_v48  ;;  %v10372_v13 = vpop.f32.mrf.mxu0 }
 0x80e   : > { %v3968_v50 = vpop.f32.mrf.mxu3 }
 0x80f   : > { %v10355_v10 = vadd.f32 %v10241_v3, %v3968_v50 }
 0x811   : > { %v4035_v19 = vsel %vm1120_vm1, %v10355_v10, -inf }
 0x812   : > { %4036 = vmax.xlane.f32.xlu2 %v4035_v19 }
 0x814   : > { %v10374_v58 = vpop.f32.mrf.mxu1 }
 0x815   : > { %12306 = vst [vmem:[#allocation52_spill] sm:$0xff] %v10374_v58  ;;  %v10376_v46 = vpop.f32.mrf.mxu0 }
 0x819   : > { %4033 = vmax.xlane.f32.xlu0 %v4032_v35 }
 0x81c   : > { %v10378_v63 = vpop.f32.mrf.mxu1 }
 0x81d   : > { %v10381_v8 = vpop.f32.mrf.mxu0 }
 0x824   : > { %v10383_v29 = vpop.f32.mrf.mxu1 }
 0x825   : > { %v10387_v15 = vpop.f32.mrf.mxu0 }
 0x82c   : > { %v3941_v48 = vpop.f32.mrf.mxu1 }
 0x82d   : > { %v10392_v19 = vadd.f32 %v10208_v26, %v3941_v48 }
 0x837   : > { %v4001_v31 = vpop.xlane.xlu1 %4000 }
 0x838   : > { %v4045_v40 = vsub.f32 %v10301_v18, %v4001_v31  ;;  %v4026_v18 = vsel %vm1120_vm1, %v10392_v19, -inf }
 0x83a   : > { %v4062_v52 = vmul.f32 1.442695, %v4045_v40  ;;  %v10396_v40 = vpop.f32.mrf.mxu0 }
 0x83c   : > { %8029 = vpow2.f32 %v4062_v52 }
 0x842   : > { %v10385_v0 = vpop.eup %8029 }
 0x843   : > { %v4095_v45 = vsel %vm1120_vm1, %v10385_v0, 0.0 }
 0x844   : > { %4096 = vadd.xlane.f32.xlu1 %v4095_v45 }
 0x846   : > { %v2127_v50 = vpop.xlane.xlu0 %2126 }
 0x847   : > { %8031 = vrcp.f32 %v2127_v50  ;;  %v2280_v48 = vand.u32 2147483648, %v2127_v50  ;;  %v2278_v24 = vand.u32 2147483647, %v2127_v50  ;;  %vm2274_vm5 = vweird.f32 %v2127_v50 }
 0x849   : > { %v2281_v62 = vor.u32 1.1754944e-38, %v2280_v48  ;;  %vm2279_vm7 = vcmp.eq.f32.partialorder %v2278_v24, 8.507059e+37 }
 0x84c   : > { %4027 = vmax.xlane.f32.xlu1 %v4026_v18 }
 0x84d   : > { %v8032_v35 = vpop.eup %8031  ;;  %v2130_v31 = vpop.xlane.xlu2 %2129 }
 0x84e   : > { %v2270_v52 = vmul.f32 %v8032_v35, %v2127_v50  ;;  %v4016_v49 = vpop.xlane.xlu0 %4015  ;;  %8033 = vrcp.f32 %v2130_v31  ;;  %vm2275_vm4 = vweird.f32 %v8032_v35  ;;  %vm2289_vm9 = vweird.f32 %v2130_v31 }
 0x84f   : > { %v4050_v42 = vsub.f32 %v10312_v60, %v4016_v49  ;;  %v4427_v45 = vpop.permute.xlu1 %4426  ;;  %vm2276_vm6 = vmor %vm2274_vm5, %vm2275_vm4  ;;  %v3916_v60 = vpop.f32.mrf.mxu0 }
 0x850   : > { %v2271_v5 = vsub.f32 1.0, %v2270_v52  ;;  %4439 = vmatpush.bf16.msra.mxu3 %v4427_v45  ;;  %v2295_v52 = vand.u32 2147483648, %v2130_v31 }
 0x851   : > { %v4072_v1 = vmul.f32 1.442695, %v4050_v42 }
 0x852   : > { %v2272_v61 = vmul.f32 %v8032_v35, %v2271_v5 }
 0x853   : > { %8035 = vpow2.f32 %v4072_v1  ;;  %v2293_v1 = vand.u32 2147483647, %v2130_v31 }
 0x854   : > { %v8034_v30 = vpop.eup %8033  ;;  %v2273_v25 = vadd.f32 %v8032_v35, %v2272_v61 }
 0x855   : > { %v2285_v18 = vmul.f32 %v8034_v30, %v2130_v31  ;;  %v3998_v36 = vpop.xlane.xlu2 %3997  ;;  %vm2290_vm8 = vweird.f32 %v8034_v30  ;;  %vm2294_vm11 = vcmp.eq.f32.partialorder %v2293_v1, 8.507059e+37 }
 0x856   : > { %v2277_v33 = vsel %vm2276_vm6, %v8032_v35, %v2273_v25  ;;  %v4044_v14 = vsub.f32 %v10321_v54, %v3998_v36  ;;  %vm2291_vm10 = vmor %vm2289_vm9, %vm2290_vm8  ;;  %v2296_v36 = vor.u32 1.1754944e-38, %v2295_v52 }
 0x857   : > { %v2286_v49 = vsub.f32 1.0, %v2285_v18  ;;  %v2282_v42 = vsel %vm2279_vm7, %v2281_v62, %v2277_v33 }
 0x858   : > { %v4060_v5 = vmul.f32 1.442695, %v4044_v14  ;;  %v2283_v25 = vmul.f32 %v10307_v56, %v2282_v42  ;;  %v3918_v56 = vpop.f32.mrf.mxu0 }
 0x859   : > { %v10400_v45 = vpop.eup %8035  ;;  %v2287_v27 = vmul.f32 %v8034_v30, %v2286_v49 }
 0x85a   : > { %8037 = vpow2.f32 %v4060_v5  ;;  %v4110_v61 = vsel %vm1120_vm1, %v10400_v45, 0.0  ;;  %v2397_v54 = vpack.c.bf16 %v2283_v25, %v2283_v25  ;;  %v7228_v25 = vld [vmem:[%s8604_s30 + $0xcc] sm:$0xf] }
 0x85b   : > { %v2288_v50 = vadd.f32 %v8034_v30, %v2287_v27  ;;  %4111 = vadd.xlane.f32.xlu2 %v4110_v61  ;;  %v10423_v61 = vadd.f32 %v10208_v26, %v10387_v15 }
 0x85d   : > { %v2292_v24 = vsel %vm2291_vm10, %v8034_v30, %v2288_v50  ;;  %v4019_v62 = vpop.xlane.xlu2 %4018  ;;  %v2507_v30 = vunpack.c.l.b16 %v2397_v54  ;;  %v7640_v50 = vld [vmem:[%s8604_s30 + $0xe8] sm:$0xf0]  ;;  %v10433_v54 = vadd.f32 %v10241_v3, %v10396_v40  ;;  %v10447_v40 = vadd.f32 %v10208_v26, %v3916_v60 }
 0x85e   : > { %v2297_v14 = vsel %vm2294_vm11, %v2296_v36, %v2292_v24  ;;  %v4051_v33 = vsub.f32 %v10328_v38, %v4019_v62  ;;  %v10412_v38 = vadd.f32 %v10241_v3, %v3918_v56  ;;  %v7229_v36 = vor.u32 %v7640_v50, %v7228_v25  ;;  %v7224_v62 = vld [vmem:[%s8604_s30 + $0x8c] sm:$0xf] }
 0x85f   : > { %v2298_v35 = vmul.f32 %v10314_v21, %v2297_v14  ;;  %v4002_v24 = vsel %vm1120_vm1, %v10423_v61, -inf  ;;  %v7639_v14 = vld [vmem:[%s8604_s30 + $0xa8] sm:$0xf0]  ;;  %v4005_v15 = vsel %vm1120_vm1, %v10433_v54, -inf  ;;  %v4020_v56 = vsel %vm1120_vm1, %v10447_v40, -inf }
 0x860   : > { %v10407_v48 = vpop.eup %8037  ;;  %v4074_v18 = vmul.f32 1.442695, %v4051_v33  ;;  %v4023_v52 = vsel %vm1120_vm1, %v10412_v38, -inf  ;;  %2659 = vmatpush.bf16.msrb.mxu2 %v7229_v36  ;;  %v7225_v33 = vor.u32 %v7639_v14, %v7224_v62  ;;  %v2606_v36 = vpack.c.bf16 %v10036_v16, %v10020_v57 }
 0x861   : > { %v2398_v49 = vpack.c.bf16 %v2298_v35, %v2298_v35  ;;  %v4402_v5 = vpop.permute.xlu0 %4401  ;;  %v4092_v27 = vsel %vm1120_vm1, %v10407_v48, 0.0  ;;  %v10439_v35 = vadd.f32 %v10208_v26, %v10378_v63  ;;  %v2608_v14 = vpack.c.bf16 %v9770_v2, %v9761_v43 }
 0x862   : > { %8039 = vpow2.f32 %v4074_v18  ;;  %4414 = vmatpush.bf16.msra.mxu1 %v4402_v5  ;;  %4093 = vadd.xlane.f32.xlu0 %v4092_v27 }
 0x863   : > { %v2508_v31 = vunpack.c.l.b16 %v2398_v49  ;;  %v4008_v18 = vsel %vm1120_vm1, %v10439_v35, -inf }
 0x864   : > { %2660 = vmatpush.bf16.msrb.mxu2 %v7225_v33 }
 0x865   : > { %v2509_v21 = vpack.c.b16 %v2508_v31, %v2507_v30  ;;  %v10455_v30 = vadd.f32 %v10241_v3, %v10383_v29 }
 0x867   : > { %7218 = vmatmul.msk.bf16.vlgmr.msra.gmra.mxu2 %vm1120_vm1, %v2509_v21  ;;  %v4011_v31 = vsel %vm1120_vm1, %v10455_v30, -inf  ;;  %v3943_v21 = vpop.f32.mrf.mxu1 }
 0x868   : > { %v10415_v42 = vpop.eup %8039  ;;  %v10460_v60 = vadd.f32 %v10241_v3, %v3943_v21 }
 0x869   : > { %v4113_v1 = vsel %vm1120_vm1, %v10415_v42, 0.0 }
 0x86a   : > { %4024 = vmax.xlane.f32.xlu0 %v4023_v52  ;;  %4114 = vadd.xlane.f32.xlu2 %v4113_v1  ;;  %v4029_v1 = vsel %vm1120_vm1, %v10460_v60, -inf }
 0x872   : > { %4003 = vmax.xlane.f32.xlu2 %v4002_v24  ;;  %v2607_v24 = vpack.c.bf16 %v9718_v39, %v9710_v12 }
 0x87a   : > { %4006 = vmax.xlane.f32.xlu2 %v4005_v15 }
 0x882   : > { %4009 = vmax.xlane.f32.xlu2 %v4008_v18  ;;  %v3991_v49 = vpop.f32.mrf.mxu0 }
 0x883   : > { %v10444_v5 = vadd.f32 %v10208_v26, %v3991_v49 }
 0x885   : > { %v4038_v27 = vsel %vm1120_vm1, %v10444_v5, -inf }
 0x886   : > { %4039 = vmax.xlane.f32.xlu1 %v4038_v27 }
 0x889   : > { %v2425_v63 = vpop.f32.mrf.mxu2 }
 0x88a   : > { %4021 = vmax.xlane.f32.xlu2 %v4020_v56  ;;  %v3993_v25 = vpop.f32.mrf.mxu0 }
 0x88b   : > { %v10466_v29 = vadd.f32 %v10241_v3, %v3993_v25  ;;  %v10479_v3 = vpop.xlane.xlu2 %4036 }
 0x88c   : > { %v10481_v18 = vpop.xlane.xlu0 %4033 }
 0x88d   : > { %v4041_v50 = vsel %vm1120_vm1, %v10466_v29, -inf }
 0x891   : > { %v2427_v52 = vpop.f32.mrf.mxu2 }
 0x892   : > { %4012 = vmax.xlane.f32.xlu2 %v4011_v31  ;;  %v2605_v26 = vpack.c.bf16 %v2427_v52, %v2425_v63 }
 0x894   : > { %7230 = vmatmul.msk.bf16.vlgmr.msrb.gmra.mxu2 %vm917_vm0, %v2605_v26 }
 0x89a   : > { %4030 = vmax.xlane.f32.xlu2 %v4029_v1 }
 0x8a2   : > { %4042 = vmax.xlane.f32.xlu2 %v4041_v50 }
 0x8a4   : > { %7231 = vmatmul.msk.bf16.gmra.mxu2 %vm917_vm0, %v2606_v36 }
 0x8b4   : > { %7232 = vmatmul.msk.bf16.gmra.mxu2 %vm917_vm0, %v2607_v24 }
 0x8b7   : > { %v4097_v62 = vpop.xlane.xlu1 %4096 }
 0x8b8   : > { %8041 = vrcp.f32 %v4097_v62  ;;  %v4166_v43 = vand.u32 2147483648, %v4097_v62  ;;  %vm4160_vm13 = vweird.f32 %v4097_v62  ;;  %v4164_v63 = vand.u32 2147483647, %v4097_v62 }
 0x8ba   : > { %v4167_v52 = vor.u32 1.1754944e-38, %v4166_v43  ;;  %vm4165_vm2 = vcmp.eq.f32.partialorder %v4164_v63, 8.507059e+37 }
 0x8be   : > { %v8042_v33 = vpop.eup %8041 }
 0x8bf   : > { %v4156_v15 = vmul.f32 %v8042_v33, %v4097_v62  ;;  %vm4161_vm12 = vweird.f32 %v8042_v33 }
 0x8c0   : > { %vm4162_vm14 = vmor %vm4160_vm13, %vm4161_vm12 }
 0x8c1   : > { %v4157_v57 = vsub.f32 1.0, %v4156_v15 }
 0x8c3   : > { %v4158_v49 = vmul.f32 %v8042_v33, %v4157_v57 }
 0x8c4   : > { %7233 = vmatmul.msk.bf16.gmra.mxu2 %vm917_vm0, %v2608_v14 }
 0x8c5   : > { %v4159_v56 = vadd.f32 %v8042_v33, %v4158_v49 }
 0x8c7   : > { %v4163_v21 = vsel %vm4162_vm14, %v8042_v33, %v4159_v56 }
 0x8c8   : > { %v4168_v50 = vsel %vm4165_vm2, %v4167_v52, %v4163_v21 }
 0x8c9   : > { %v4169_v49 = vmul.f32 %v10385_v0, %v4168_v50 }
 0x8cb   : > { %v4381_v0 = vpack.c.bf16 %v4169_v49, %v4169_v49 }
 0x8ce   : > { %v4112_v16 = vpop.xlane.xlu2 %4111 }
 0x8cf   : > { %8043 = vrcp.f32 %v4112_v16  ;;  %vm4235_vm4 = vweird.f32 %v4112_v16  ;;  %v4241_v62 = vand.u32 2147483648, %v4112_v16 }
 0x8d5   : > { %v8044_v12 = vpop.eup %8043  ;;  %v4094_v39 = vpop.xlane.xlu0 %4093 }
 0x8d6   : > { %v4231_v27 = vmul.f32 %v8044_v12, %v4112_v16  ;;  %8045 = vrcp.f32 %v4094_v39  ;;  %vm4236_vm3 = vweird.f32 %v8044_v12  ;;  %v4151_v24 = vand.u32 2147483648, %v4094_v39 }
 0x8d7   : > { %v4149_v57 = vand.u32 2147483647, %v4094_v39  ;;  %vm10484_vm5 = vmor %vm4235_vm4, %vm4236_vm3  ;;  %vm4145_vm6 = vweird.f32 %v4094_v39 }
 0x8d8   : > { %v4232_v2 = vsub.f32 1.0, %v4231_v27  ;;  %v4239_v27 = vand.u32 2147483647, %v4112_v16 }
 0x8d9   : > { %vm4150_vm8 = vcmp.eq.f32.partialorder %v4149_v57, 8.507059e+37 }
 0x8da   : > { %v4233_v26 = vmul.f32 %v8044_v12, %v4232_v2  ;;  %v4152_v2 = vor.u32 1.1754944e-38, %v4151_v24  ;;  %vm4240_vm9 = vcmp.eq.f32.partialorder %v4239_v27, 8.507059e+37 }
 0x8dc   : > { %v8046_v31 = vpop.eup %8045  ;;  %v4234_v14 = vadd.f32 %v8044_v12, %v4233_v26 }
 0x8dd   : > { %v4141_v1 = vmul.f32 %v8046_v31, %v4094_v39  ;;  %v4115_v25 = vpop.xlane.xlu2 %4114  ;;  %vm4146_vm15 = vweird.f32 %v8046_v31 }
 0x8de   : > { %8047 = vrcp.f32 %v4115_v25  ;;  %vm4147_vm7 = vmor %vm4145_vm6, %vm4146_vm15  ;;  %v4238_v63 = vsel %vm10484_vm5, %v8044_v12, %v4234_v14  ;;  %v4256_v55 = vand.u32 2147483648, %v4115_v25  ;;  %v4254_v12 = vand.u32 2147483647, %v4115_v25 }
 0x8df   : > { %v4142_v36 = vsub.f32 1.0, %v4141_v1  ;;  %v4242_v1 = vor.u32 1.1754944e-38, %v4241_v62  ;;  %vm4250_vm11 = vweird.f32 %v4115_v25 }
 0x8e0   : > { %vm4255_vm13 = vcmp.eq.f32.partialorder %v4254_v12, 8.507059e+37 }
 0x8e1   : > { %v4143_v15 = vmul.f32 %v8046_v31, %v4142_v36  ;;  %v4243_v39 = vsel %vm4240_vm9, %v4242_v1, %v4238_v63 }
 0x8e2   : > { %v4244_v57 = vmul.f32 %v10400_v45, %v4243_v39 }
 0x8e3   : > { %v4144_v56 = vadd.f32 %v8046_v31, %v4143_v15 }
 0x8e4   : > { %v8048_v43 = vpop.eup %8047  ;;  %v4386_v63 = vpack.c.bf16 %v4244_v57, %v4244_v57 }
 0x8e5   : > { %v4148_v21 = vsel %vm4147_vm7, %v8046_v31, %v4144_v56  ;;  %v4246_v52 = vmul.f32 %v8048_v43, %v4115_v25  ;;  %v4004_v26 = vpop.xlane.xlu2 %4003  ;;  %vm4251_vm10 = vweird.f32 %v8048_v43  ;;  %v4399_v31 = vunpack.c.l.b16 %v4381_v0 }
 0x8e6   : > { %v4153_v50 = vsel %vm4150_vm8, %v4152_v2, %v4148_v21  ;;  %v4046_v36 = vsub.f32 %v10423_v61, %v4004_v26  ;;  %vm4252_vm12 = vmor %vm4250_vm11, %vm4251_vm10  ;;  %v4257_v61 = vor.u32 1.1754944e-38, %v4256_v55  ;;  %v10500_v25 = vunpack.c.l.b16 %v4386_v63  ;;  %v7641_v63 = vld [vmem:[%s8604_s30 + $0x128] sm:$0xf0] }
 0x8e7   : > { %v4154_v16 = vmul.f32 %v10407_v48, %v4153_v50  ;;  %v4247_v15 = vsub.f32 1.0, %v4246_v52 }
 0x8e8   : > { %v4064_v37 = vmul.f32 1.442695, %v4046_v36 }
 0x8e9   : > { %v4380_v24 = vpack.c.bf16 %v4154_v16, %v4154_v16  ;;  %v4248_v58 = vmul.f32 %v8048_v43, %v4247_v15  ;;  %v4025_v16 = vpop.xlane.xlu0 %4024 }
 0x8ea   : > { %8049 = vpow2.f32 %v4064_v37  ;;  %v2525_v14 = vpop.f32.mrf.mxu2  ;;  %v4053_v12 = vsub.f32 %v10412_v38, %v4025_v16  ;;  %v4056_v16 = vsub.f32 %v10362_v6, %v10481_v18 }
 0x8eb   : > { %v4398_v49 = vunpack.c.l.b16 %v4380_v24  ;;  %v4249_v62 = vadd.f32 %v8048_v43, %v4248_v58 }
 0x8ec   : > { %v4078_v57 = vmul.f32 1.442695, %v4053_v12 }
 0x8ed   : > { %v4400_v33 = vpack.c.b16 %v4399_v31, %v4398_v49  ;;  %v4253_v48 = vsel %vm4252_vm12, %v8048_v43, %v4249_v62  ;;  %v4007_v27 = vpop.xlane.xlu2 %4006 }
 0x8ee   : > { %v4258_v56 = vsel %vm4255_vm13, %v4257_v61, %v4253_v48  ;;  %v4047_v2 = vsub.f32 %v10433_v54, %v4007_v27  ;;  %v7642_v48 = vld [vmem:[%s8604_s30 + $0x168] sm:$0xf0] }
 0x8ef   : > { %v4259_v21 = vmul.f32 %v10415_v42, %v4258_v56  ;;  %7294 = vmatmul.msk.bf16.vlgmr.msra.gmra.mxu1 %vm1120_vm1, %v4400_v33 }
 0x8f0   : > { %v10496_v37 = vpop.eup %8049  ;;  %v4066_v45 = vmul.f32 1.442695, %v4047_v2  ;;  %v7272_v2 = vld [vmem:[%s8604_s30 + $0x10c] sm:$0xf] }
 0x8f1   : > { %v4387_v52 = vpack.c.bf16 %v4259_v21, %v4259_v21  ;;  %v4098_v58 = vsel %vm1120_vm1, %v10496_v37, 0.0  ;;  %v2611_v21 = vpack.c.bf16 %v9731_v17, %v9724_v32  ;;  %v3635_v17 = vpack.c.bf16 %v10344_v59, %v10338_v23 }
 0x8f2   : > { %8051 = vpow2.f32 %v4066_v45  ;;  %v2527_v55 = vpop.f32.mrf.mxu2  ;;  %4099 = vadd.xlane.f32.xlu1 %v4098_v58  ;;  %v7273_v45 = vor.u32 %v7641_v63, %v7272_v2  ;;  %v12310_v58 = vld [vmem:[#allocation46_spill] sm:$0xff]  ;;  %v3636_v23 = vpack.c.bf16 %v10336_v20, %v10330_v28 }
 0x8f3   : > { %v10502_v43 = vunpack.c.l.b16 %v4387_v52  ;;  %v2609_v54 = vpack.c.bf16 %v2527_v55, %v2525_v14  ;;  %v2610_v14 = vpack.c.bf16 %v10064_v11, %v10054_v34  ;;  %v7276_v11 = vld [vmem:[%s8604_s30 + $0x14c] sm:$0xf]  ;;  %v12309_v52 = vld [vmem:[#allocation49_spill] sm:$0xff] }
 0x8f4   : > { %v7277_v56 = vor.u32 %v7642_v48, %v7276_v11  ;;  %v2612_v55 = vpack.c.bf16 %v12310_v58, %v12309_v52  ;;  %v12314_v48 = vld [vmem:[#allocation51_spill] sm:$0xff] }
 0x8f5   : > { %v4475_v42 = vpack.c.b16 %v10502_v43, %v10500_v25  ;;  %v4010_v26 = vpop.xlane.xlu2 %4009  ;;  %7234 = vmatmul.msk.bf16.gmra.mxu2 %vm917_vm0, %v2609_v54  ;;  %v12311_v54 = vld [vmem:[#allocation32_spill] sm:$0xff] }
 0x8f6   : > { %v4048_v0 = vsub.f32 %v10439_v35, %v4010_v26  ;;  %3689 = vmatpush.bf16.msra.mxu2 %v7277_v56  ;;  %v12312_v26 = vld [vmem:[#allocation29_spill] sm:$0xff] }
 0x8f8   : > { %v10508_v1 = vpop.eup %8051  ;;  %v4068_v50 = vmul.f32 1.442695, %v4048_v0 }
 0x8f9   : > { %v4101_v36 = vsel %vm1120_vm1, %v10508_v1, 0.0 }
 0x8fa   : > { %8053 = vpow2.f32 %v4068_v50  ;;  %4102 = vadd.xlane.f32.xlu2 %v4101_v36  ;;  %3690 = vmatpush.bf16.msra.mxu2 %v7273_v45  ;;  %v4057_v50 = vsub.f32 %v10355_v10, %v10479_v3  ;;  %v4028_v36 = vpop.xlane.xlu1 %4027 }
 0x8fb   : > { %v4054_v12 = vsub.f32 %v10392_v19, %v4028_v36 }
 0x8fd   : > { %v4022_v15 = vpop.xlane.xlu2 %4021  ;;  %v4080_v10 = vmul.f32 1.442695, %v4054_v12 }
 0x8fe   : > { %v4052_v39 = vsub.f32 %v10447_v40, %v4022_v15  ;;  %v4086_v15 = vmul.f32 1.442695, %v4057_v50 }
 0x900   : > { %v10513_v24 = vpop.eup %8053  ;;  %v4076_v31 = vmul.f32 1.442695, %v4052_v39 }
 0x901   : > { %v4104_v35 = vsel %vm1120_vm1, %v10513_v24, 0.0 }
 0x902   : > { %8055 = vpow2.f32 %v4076_v31  ;;  %4105 = vadd.xlane.f32.xlu1 %v4104_v35  ;;  %v4084_v31 = vmul.f32 1.442695, %v4056_v16  ;;  %v4040_v59 = vpop.xlane.xlu1 %4039 }
 0x903   : > { %8057 = vpow2.f32 %v4078_v57  ;;  %v4058_v6 = vsub.f32 %v10444_v5, %v4040_v59 }
 0x905   : > { %v4013_v49 = vpop.xlane.xlu2 %4012  ;;  %7235 = vmatmul.msk.bf16.gmra.mxu2 %vm917_vm0, %v2610_v14  ;;  %v4088_v19 = vmul.f32 1.442695, %v4058_v6  ;;  %v3637_v14 = vpack.c.bf16 %v10357_v4, %v10350_v53  ;;  %v12313_v53 = vld [vmem:[#allocation47_spill] sm:$0xff] }
 0x906   : > { %v4049_v40 = vsub.f32 %v10455_v30, %v4013_v49 }
 0x908   : > { %v10522_v38 = vpop.eup %8055  ;;  %v4070_v62 = vmul.f32 1.442695, %v4049_v40 }
 0x909   : > { %v4116_v61 = vsel %vm1120_vm1, %v10522_v38, 0.0  ;;  %v10526_v33 = vpop.eup %8057 }
 0x90a   : > { %8059 = vpow2.f32 %v4070_v62  ;;  %4117 = vadd.xlane.f32.xlu0 %v4116_v61  ;;  %v4119_v27 = vsel %vm1120_vm1, %v10526_v33, 0.0  ;;  %v3638_v62 = vpack.c.bf16 %v10346_v7, %v10340_v51 }
 0x90d   : > { %v4031_v32 = vpop.xlane.xlu2 %4030 }
 0x90e   : > { %v4055_v0 = vsub.f32 %v10460_v60, %v4031_v32 }
 0x910   : > { %v10528_v34 = vpop.eup %8059 }
 0x911   : > { %v4107_v30 = vsel %vm1120_vm1, %v10528_v34, 0.0 }
 0x912   : > { %4120 = vadd.xlane.f32.xlu0 %v4119_v27  ;;  %4108 = vadd.xlane.f32.xlu2 %v4107_v30  ;;  %v12315_v30 = vld [vmem:[#allocation45_spill] sm:$0xff] }
 0x915   : > { %7236 = vmatmul.msk.bf16.gmra.mxu2 %vm917_vm0, %v2611_v21  ;;  %v10590_v61 = vpop.xlane.xlu2 %4042  ;;  %v3639_v21 = vpack.c.bf16 %v10372_v13, %v10368_v44 }
 0x917   : > { %v10586_v40 = vpop.f32.mrf.mxu2 }
 0x91b   : > { %4501 = vrot.lane.b32.xlu1 %v12249_v47, %s8427_s0  ;;  %v4082_v47 = vmul.f32 1.442695, %v4055_v0 }
 0x91d   : > { %8061 = vpow2.f32 %v4082_v47 }
 0x91e   : > { %8063 = vpow2.f32 %v4086_v15 }
 0x91f   : > { %8065 = vpow2.f32 %v4084_v31  ;;  %v10595_v4 = vpop.f32.mrf.mxu2 }
 0x920   : > { %8067 = vpow2.f32 %v4080_v10 }
 0x921   : > { %8069 = vpow2.f32 %v4088_v19 }
 0x923   : > { %v10558_v39 = vpop.eup %8061 }
 0x924   : > { %v4125_v60 = vsel %vm1120_vm1, %v10558_v39, 0.0  ;;  %v10567_v3 = vpop.eup %8063 }
 0x925   : > { %7237 = vmatmul.msk.bf16.gmra.mxu2 %vm917_vm0, %v2612_v55  ;;  %v10569_v18 = vpop.eup %8065  ;;  %v4131_v28 = vsel %vm1120_vm1, %v10567_v3, 0.0 }
 0x926   : > { %4476 = vrot.lane.b32.xlu0 %v12311_v54, %s8427_s0  ;;  %v10573_v20 = vpop.eup %8067  ;;  %v4128_v35 = vsel %vm1120_vm1, %v10569_v18, 0.0 }
 0x927   : > { %v4122_v5 = vsel %vm1120_vm1, %v10573_v20, 0.0  ;;  %v10581_v57 = vpop.eup %8069  ;;  %v10603_v45 = vpop.f32.mrf.mxu2 }
 0x928   : > { %v4134_v49 = vsel %vm1120_vm1, %v10581_v57, 0.0 }
 0x92a   : > { %4451 = vrot.lane.b32.xlu2 %v12312_v26, %s8427_s0 }
 0x92f   : > { %v10612_v31 = vpop.f32.mrf.mxu2 }
 0x935   : > { %7278 = vmatmul.msk.bf16.vlgmr.msra.gmra.mxu2 %vm917_vm0, %v3635_v17 }
 0x945   : > { %7279 = vmatmul.msk.bf16.gmra.mxu2 %vm917_vm0, %v3636_v23  ;;  %4126 = vadd.xlane.f32.xlu1 %v4125_v60 }
 0x94d   : > { %4132 = vadd.xlane.f32.xlu1 %v4131_v28 }
 0x950   : > { %4129 = vadd.xlane.f32.xlu0 %v4128_v35  ;;  %v4059_v35 = vsub.f32 %v10466_v29, %v10590_v61  ;;  %v10628_v29 = vpop.f32.mrf.mxu2 }
 0x953   : > { %4123 = vadd.xlane.f32.xlu2 %v4122_v5  ;;  %v3640_v5 = vpack.c.bf16 %v10364_v41, %v10352_v22 }
 0x955   : > { %7280 = vmatmul.msk.bf16.gmra.mxu2 %vm917_vm0, %v3637_v14 }
 0x958   : > { %4135 = vadd.xlane.f32.xlu0 %v4134_v49 }
 0x965   : > { %7281 = vmatmul.msk.bf16.gmra.mxu2 %vm917_vm0, %v3638_v62  ;;  %v4100_v11 = vpop.xlane.xlu1 %4099 }
 0x966   : > { %8071 = vrcp.f32 %v4100_v11  ;;  %4576 = vrot.lane.b32.xlu1 %v12313_v53, %s8427_s0  ;;  %v4181_v63 = vand.u32 2147483648, %v4100_v11  ;;  %vm4175_vm2 = vweird.f32 %v4100_v11  ;;  %v4179_v58 = vand.u32 2147483647, %v4100_v11 }
 0x968   : > { %v4182_v17 = vor.u32 1.1754944e-38, %v4181_v63  ;;  %vm4180_vm15 = vcmp.eq.f32.partialorder %v4179_v58, 8.507059e+37 }
 0x96b   : > { %4526 = vrot.lane.b32.xlu2 %v12314_v48, %s8427_s0 }
 0x96c   : > { %v8072_v27 = vpop.eup %8071  ;;  %4551 = vrot.lane.b32.xlu0 %v12315_v30, %s8427_s0 }
 0x96d   : > { %v4171_v56 = vmul.f32 %v8072_v27, %v4100_v11  ;;  %v4103_v51 = vpop.xlane.xlu2 %4102  ;;  %vm4176_vm14 = vweird.f32 %v8072_v27 }
 0x96e   : > { %8073 = vrcp.f32 %v4103_v51  ;;  %vm4177_vm3 = vmor %vm4175_vm2, %vm4176_vm14  ;;  %v4196_v44 = vand.u32 2147483648, %v4103_v51  ;;  %v4194_v50 = vand.u32 2147483647, %v4103_v51  ;;  %vm4190_vm5 = vweird.f32 %v4103_v51 }
 0x96f   : > { %v4172_v7 = vsub.f32 1.0, %v4171_v56 }
 0x970   : > { %v4197_v12 = vor.u32 1.1754944e-38, %v4196_v44  ;;  %vm4195_vm7 = vcmp.eq.f32.partialorder %v4194_v50, 8.507059e+37 }
 0x971   : > { %v4173_v2 = vmul.f32 %v8072_v27, %v4172_v7 }
 0x973   : > { %v4174_v52 = vadd.f32 %v8072_v27, %v4173_v2 }
 0x974   : > { %v8074_v55 = vpop.eup %8073 }
 0x975   : > { %v4178_v54 = vsel %vm4177_vm3, %v8072_v27, %v4174_v52  ;;  %v4186_v26 = vmul.f32 %v8074_v55, %v4103_v51  ;;  %7282 = vmatmul.msk.bf16.gmra.mxu2 %vm917_vm0, %v3639_v21  ;;  %v10606_v32 = vpop.xlane.xlu1 %4105  ;;  %vm4191_vm4 = vweird.f32 %v8074_v55 }
 0x976   : > { %8075 = vrcp.f32 %v10606_v32  ;;  %v4183_v47 = vsel %vm4180_vm15, %v4182_v17, %v4178_v54  ;;  %vm4192_vm6 = vmor %vm4190_vm5, %vm4191_vm4  ;;  %vm4205_vm10 = vweird.f32 %v10606_v32  ;;  %v4211_v56 = vand.u32 2147483648, %v10606_v32 }
 0x977   : > { %v4187_v0 = vsub.f32 1.0, %v4186_v26  ;;  %v4184_v36 = vmul.f32 %v10496_v37, %v4183_v47  ;;  %v4209_v2 = vand.u32 2147483647, %v10606_v32 }
 0x978   : > { %v4212_v47 = vor.u32 1.1754944e-38, %v4211_v56 }
 0x979   : > { %v4188_v13 = vmul.f32 %v8074_v55, %v4187_v0  ;;  %v4382_v6 = vpack.c.bf16 %v4184_v36, %v4184_v36  ;;  %vm4210_vm14 = vcmp.eq.f32.partialorder %v4209_v2, 8.507059e+37 }
 0x97b   : > { %v4189_v16 = vadd.f32 %v8074_v55, %v4188_v13  ;;  %v4423_v14 = vunpack.c.l.b16 %v4382_v6 }
 0x97c   : > { %v10610_v15 = vpop.eup %8075 }
 0x97d   : > { %v4193_v23 = vsel %vm4192_vm6, %v8074_v55, %v4189_v16  ;;  %v4201_v59 = vmul.f32 %v10610_v15, %v10606_v32  ;;  %v4118_v60 = vpop.xlane.xlu0 %4117  ;;  %vm4206_vm8 = vweird.f32 %v10610_v15 }
 0x97e   : > { %v4198_v10 = vsel %vm4195_vm7, %v4197_v12, %v4193_v23  ;;  %8077 = vrcp.f32 %v4118_v60  ;;  %v4271_v51 = vand.u32 2147483648, %v4118_v60  ;;  %vm10636_vm11 = vmor %vm4205_vm10, %vm4206_vm8  ;;  %vm4265_vm12 = vweird.f32 %v4118_v60 }
 0x97f   : > { %v4199_v19 = vmul.f32 %v10508_v1, %v4198_v10  ;;  %v4202_v28 = vsub.f32 1.0, %v4201_v59  ;;  %v4090_v1 = vmul.f32 1.442695, %v4059_v35  ;;  %v4269_v21 = vand.u32 2147483647, %v4118_v60  ;;  %v10655_v59 = vpop.f32.mrf.mxu2 }
 0x980   : > { %v4272_v44 = vor.u32 1.1754944e-38, %v4271_v51 }
 0x981   : > { %v4383_v37 = vpack.c.bf16 %v4199_v19, %v4199_v19  ;;  %v4203_v53 = vmul.f32 %v10610_v15, %v4202_v28  ;;  %vm4270_vm2 = vcmp.eq.f32.partialorder %v4269_v21, 8.507059e+37  ;;  %v3641_v19 = vpack.c.bf16 %v10381_v8, %v10376_v46 }
 0x983   : > { %v4424_v49 = vunpack.c.l.b16 %v4383_v37  ;;  %v4204_v22 = vadd.f32 %v10610_v15, %v4203_v53 }
 0x984   : > { %v8078_v62 = vpop.eup %8077 }
 0x985   : > { %v4425_v11 = vpack.c.b16 %v4424_v49, %v4423_v14  ;;  %v4261_v48 = vmul.f32 %v8078_v62, %v4118_v60  ;;  %v10622_v27 = vpop.xlane.xlu0 %4120  ;;  %v10624_v30 = vpop.xlane.xlu2 %4108  ;;  %7283 = vmatmul.msk.bf16.gmra.mxu2 %vm917_vm0, %v3640_v5  ;;  %vm4266_vm9 = vweird.f32 %v8078_v62  ;;  %v4208_v54 = vsel %vm10636_vm11, %v10610_v15, %v4204_v22 }
 0x986   : > { %8079 = vrcp.f32 %v10622_v27  ;;  %vm10641_vm13 = vmor %vm4265_vm12, %vm4266_vm9  ;;  %v4213_v16 = vsel %vm4210_vm14, %v4212_v47, %v4208_v54  ;;  %v4286_v12 = vand.u32 2147483648, %v10622_v27  ;;  %v4284_v10 = vand.u32 2147483647, %v10622_v27 }
 0x987   : > { %v4262_v61 = vsub.f32 1.0, %v4261_v48  ;;  %8081 = vrcp.f32 %v10624_v30  ;;  %7295 = vmatmul.msk.bf16.vlgmr.msra.gmra.mxu3 %vm1120_vm1, %v4425_v11  ;;  %v4226_v6 = vand.u32 2147483648, %v10624_v30  ;;  %v4224_v28 = vand.u32 2147483647, %v10624_v30  ;;  %v10671_v56 = vpop.f32.mrf.mxu2 }
 0x988   : > { %8083 = vpow2.f32 %v4090_v1  ;;  %vm4280_vm4 = vweird.f32 %v10622_v27  ;;  %v4214_v49 = vmul.f32 %v10513_v24, %v4213_v16  ;;  %vm4220_vm6 = vweird.f32 %v10624_v30 }
 0x989   : > { %v4263_v41 = vmul.f32 %v8078_v62, %v4262_v61  ;;  %vm4285_vm7 = vcmp.eq.f32.partialorder %v4284_v10, 8.507059e+37  ;;  %v4227_v8 = vor.u32 1.1754944e-38, %v4226_v6  ;;  %vm4225_vm9 = vcmp.eq.f32.partialorder %v4224_v28, 8.507059e+37 }
 0x98a   : > { %v4384_v24 = vpack.c.bf16 %v4214_v49, %v4214_v49  ;;  %v7304_v49 = vld [vmem:[%s8604_s30 + $0x18c] sm:$0xf] }
 0x98b   : > { %v4264_v63 = vadd.f32 %v8078_v62, %v4263_v41 }
 0x98c   : > { %v8080_v52 = vpop.eup %8079  ;;  %v4448_v2 = vunpack.c.l.b16 %v4384_v24 }
 0x98d   : > { %v8082_v55 = vpop.eup %8081  ;;  %v4268_v26 = vsel %vm10641_vm13, %v8078_v62, %v4264_v63  ;;  %v4276_v17 = vmul.f32 %v8080_v52, %v10622_v27  ;;  %v4452_v0 = vpop.permute.xlu2 %4451  ;;  %vm4281_vm3 = vweird.f32 %v8080_v52  ;;  %v4287_v62 = vor.u32 1.1754944e-38, %v4286_v12 }
 0x98e   : > { %v4502_v32 = vpop.permute.xlu1 %4501  ;;  %v4216_v13 = vmul.f32 %v8082_v55, %v10624_v30  ;;  %4464 = vmatpush.bf16.msrb.mxu0 %v4452_v0  ;;  %v10652_v36 = vpop.eup %8083  ;;  %v4273_v15 = vsel %vm4270_vm2, %v4272_v44, %v4268_v26  ;;  %vm4221_vm15 = vweird.f32 %v8082_v55  ;;  %vm4282_vm5 = vmor %vm4280_vm4, %vm4281_vm3 }
 0x98f   : > { %4514 = vmatpush.bf16.msrb.mxu3 %v4502_v32  ;;  %v4277_v50 = vsub.f32 1.0, %v4276_v17  ;;  %v4274_v35 = vmul.f32 %v10522_v38, %v4273_v15  ;;  %v4137_v14 = vsel %vm1120_vm1, %v10652_v36, 0.0  ;;  %vm4222_vm8 = vmor %vm4220_vm6, %vm4221_vm15  ;;  %v10681_v58 = vpop.f32.mrf.mxu2 }
 0x990   : > { %v4217_v23 = vsub.f32 1.0, %v4216_v13  ;;  %v7308_v13 = vld [vmem:[%s8604_s30 + $0x1cc] sm:$0xf] }
 0x991   : > { %v4278_v60 = vmul.f32 %v8080_v52, %v4277_v50  ;;  %v4388_v48 = vpack.c.bf16 %v4274_v35, %v4274_v35  ;;  %v7644_v50 = vld [vmem:[%s8604_s30 + $0x1e8] sm:$0xf0] }
 0x992   : > { %v4218_v37 = vmul.f32 %v8082_v55, %v4217_v23 }
 0x993   : > { %v4279_v5 = vadd.f32 %v8080_v52, %v4278_v60  ;;  %v4498_v51 = vunpack.c.l.b16 %v4388_v48 }
 0x994   : > { %v4219_v11 = vadd.f32 %v8082_v55, %v4218_v37  ;;  %4138 = vadd.xlane.f32.xlu2 %v4137_v14  ;;  %v7309_v37 = vor.u32 %v7644_v50, %v7308_v13 }
 0x995   : > { %v4283_v46 = vsel %vm4282_vm5, %v8080_v52, %v4279_v5  ;;  %7284 = vmatmul.msk.bf16.gmra.mxu2 %vm917_vm0, %v3641_v19 }
 0x996   : > { %v4288_v38 = vsel %vm4285_vm7, %v4287_v62, %v4283_v46  ;;  %v4223_v53 = vsel %vm4222_vm8, %v8082_v55, %v4219_v11  ;;  %v7643_v62 = vld [vmem:[%s8604_s30 + $0x1a8] sm:$0xf0] }
 0x997   : > { %v4289_v27 = vmul.f32 %v10526_v33, %v4288_v38  ;;  %v4228_v1 = vsel %vm4225_vm9, %v4227_v8, %v4223_v53 }
 0x998   : > { %v4229_v61 = vmul.f32 %v10528_v34, %v4228_v1  ;;  %v4477_v22 = vpop.permute.xlu0 %4476  ;;  %v12320_v34 = vld [vmem:[#allocation52_spill] sm:$0xff] }
 0x999   : > { %v4389_v41 = vpack.c.bf16 %v4289_v27, %v4289_v27  ;;  %4489 = vmatpush.bf16.msrb.mxu1 %v4477_v22  ;;  %v3642_v52 = vpack.c.bf16 %v12320_v34, %v10370_v9 }
 0x99a   : > { %v4385_v30 = vpack.c.bf16 %v4229_v61, %v4229_v61 }
 0x99b   : > { %v4499_v7 = vunpack.c.l.b16 %v4389_v41 }
 0x99c   : > { %v4449_v63 = vunpack.c.l.b16 %v4385_v30  ;;  %7297 = vmatmul.msk.bf16.vlgmr.msrb.gmra.mxu1 %vm1120_vm1, %v4475_v42  ;;  %v7305_v30 = vor.u32 %v7643_v62, %v7304_v49 }
 0x99d   : > { %v4500_v33 = vpack.c.b16 %v4499_v7, %v4498_v51 }
 0x99e   : > { %v4450_v21 = vpack.c.b16 %v4449_v63, %v4448_v2 }
 0x99f   : > { %7298 = vmatmul.msk.bf16.vlgmr.msrb.gmra.mxu3 %vm1120_vm1, %v4500_v33 }
 0x9a0   : > { %7296 = vmatmul.msk.bf16.vlgmr.msrb.gmra.mxu0 %vm1120_vm1, %v4450_v21 }
 0x9a5   : > { %7285 = vmatmul.msk.bf16.gmra.mxu2 %vm917_vm0, %v3642_v52 }
 0x9b8   : > { %v4127_v55 = vpop.xlane.xlu1 %4126 }
 0x9b9   : > { %8085 = vrcp.f32 %v4127_v55  ;;  %v4314_v9 = vand.u32 2147483647, %v4127_v55  ;;  %v4316_v44 = vand.u32 2147483648, %v4127_v55  ;;  %vm4310_vm11 = vweird.f32 %v4127_v55 }
 0x9bb   : > { %vm10689_vm12 = vcmp.eq.f32.partialorder %v4314_v9, 8.507059e+37  ;;  %v4317_v5 = vor.u32 1.1754944e-38, %v4316_v44 }
 0x9bf   : > { %v8086_v25 = vpop.eup %8085 }
 0x9c0   : > { %v4306_v43 = vmul.f32 %v8086_v25, %v4127_v55  ;;  %v4133_v42 = vpop.xlane.xlu1 %4132  ;;  %vm4311_vm10 = vweird.f32 %v8086_v25 }
 0x9c1   : > { %8087 = vrcp.f32 %v4133_v42  ;;  %v4344_v60 = vand.u32 2147483647, %v4133_v42  ;;  %v4346_v19 = vand.u32 2147483648, %v4133_v42  ;;  %vm10693_vm14 = vmor %vm4310_vm11, %vm4311_vm10  ;;  %vm4340_vm2 = vweird.f32 %v4133_v42 }
 0x9c2   : > { %v4307_v54 = vsub.f32 1.0, %v4306_v43 }
 0x9c3   : > { %v4130_v26 = vpop.xlane.xlu0 %4129  ;;  %vm10707_vm15 = vcmp.eq.f32.partialorder %v4344_v60, 8.507059e+37  ;;  %v4347_v22 = vor.u32 1.1754944e-38, %v4346_v19 }
 0x9c4   : > { %8089 = vrcp.f32 %v4130_v26  ;;  %v4308_v17 = vmul.f32 %v8086_v25, %v4307_v54  ;;  %v4331_v8 = vand.u32 2147483648, %v4130_v26  ;;  %v4329_v24 = vand.u32 2147483647, %v4130_v26 }
 0x9c5   : > { %vm4325_vm5 = vweird.f32 %v4130_v26 }
 0x9c6   : > { %v10684_v0 = vpop.xlane.xlu2 %4123  ;;  %v4309_v15 = vadd.f32 %v8086_v25, %v4308_v17  ;;  %v4332_v63 = vor.u32 1.1754944e-38, %v4331_v8  ;;  %vm4330_vm8 = vcmp.eq.f32.partialorder %v4329_v24, 8.507059e+37 }
 0x9c7   : > { %v8088_v32 = vpop.eup %8087  ;;  %8091 = vrcp.f32 %v10684_v0  ;;  %v4301_v2 = vand.u32 2147483648, %v10684_v0  ;;  %v4299_v21 = vand.u32 2147483647, %v10684_v0  ;;  %vm4295_vm9 = vweird.f32 %v10684_v0 }
 0x9c8   : > { %v4336_v47 = vmul.f32 %v8088_v32, %v4133_v42  ;;  %vm4341_vm13 = vweird.f32 %v8088_v32  ;;  %v4313_v11 = vsel %vm10693_vm14, %v8086_v25, %v4309_v15 }
 0x9c9   : > { %vm10703_vm3 = vmor %vm4340_vm2, %vm4341_vm13  ;;  %v4318_v51 = vsel %vm10689_vm12, %v4317_v5, %v4313_v11  ;;  %v4302_v54 = vor.u32 1.1754944e-38, %v4301_v2  ;;  %vm4300_vm11 = vcmp.eq.f32.partialorder %v4299_v21, 8.507059e+37  ;;  %v10729_v2 = vpop.f32.mrf.mxu2 }
 0x9ca   : > { %v8090_v16 = vpop.eup %8089  ;;  %v4337_v12 = vsub.f32 1.0, %v4336_v47  ;;  %v4319_v55 = vmul.f32 %v10558_v39, %v4318_v51 }
 0x9cb   : > { %v4321_v10 = vmul.f32 %v8090_v16, %v4130_v26  ;;  %vm4326_vm4 = vweird.f32 %v8090_v16 }
 0x9cc   : > { %v4338_v6 = vmul.f32 %v8088_v32, %v4337_v12  ;;  %vm4327_vm6 = vmor %vm4325_vm5, %vm4326_vm4  ;;  %v4391_v47 = vpack.c.bf16 %v4319_v55, %v4319_v55 }
 0x9cd   : > { %v8092_v28 = vpop.eup %8091  ;;  %v4322_v14 = vsub.f32 1.0, %v4321_v10  ;;  %v4416_v10 = vpop.f32.mrf.mxu1 }
 0x9ce   : > { %v4339_v46 = vadd.f32 %v8088_v32, %v4338_v6  ;;  %v4291_v38 = vmul.f32 %v8092_v28, %v10684_v0  ;;  %v4527_v53 = vpop.permute.xlu2 %4526  ;;  %vm4296_vm7 = vweird.f32 %v8092_v28  ;;  %v4524_v0 = vunpack.c.l.b16 %v4391_v47 }
 0x9cf   : > { %v4323_v1 = vmul.f32 %v8090_v16, %v4322_v14  ;;  %4539 = vmatpush.bf16.msra.mxu0 %v4527_v53  ;;  %vm4297_vm10 = vmor %vm4295_vm9, %vm4296_vm7 }
 0x9d0   : > { %v4343_v61 = vsel %vm10703_vm3, %v8088_v32, %v4339_v46  ;;  %v4292_v41 = vsub.f32 1.0, %v4291_v38  ;;  %v4136_v32 = vpop.xlane.xlu0 %4135 }
 0x9d1   : > { %v4324_v7 = vadd.f32 %v8090_v16, %v4323_v1  ;;  %v4348_v34 = vsel %vm10707_vm15, %v4347_v22, %v4343_v61  ;;  %8093 = vrcp.f32 %v4136_v32  ;;  %v4361_v62 = vand.u32 2147483648, %v4136_v32 }
 0x9d2   : > { %v4293_v33 = vmul.f32 %v8092_v28, %v4292_v41  ;;  %v4349_v26 = vmul.f32 %v10567_v3, %v4348_v34  ;;  %vm4355_vm13 = vweird.f32 %v4136_v32  ;;  %v4359_v11 = vand.u32 2147483647, %v4136_v32 }
 0x9d3   : > { %4650 = vmatpush.bf16.msrb.mxu0 %v7309_v37  ;;  %v4328_v52 = vsel %vm4327_vm6, %v8090_v16, %v4324_v7  ;;  %v4362_v53 = vor.u32 1.1754944e-38, %v4361_v62 }
 0x9d4   : > { %v4333_v25 = vsel %vm4330_vm8, %v4332_v63, %v4328_v52  ;;  %v4294_v43 = vadd.f32 %v8092_v28, %v4293_v33  ;;  %v4393_v50 = vpack.c.bf16 %v4349_v26, %v4349_v26  ;;  %vm4360_vm2 = vcmp.eq.f32.partialorder %v4359_v11, 8.507059e+37  ;;  %v8169_v11 = vld [vmem:[#allocation2 + $0x30] sm:$0xff] }
 0x9d5   : > { %v4334_v42 = vmul.f32 %v10569_v18, %v4333_v25  ;;  %v4418_v6 = vpop.f32.mrf.mxu1 }
 0x9d6   : > { %v4298_v17 = vsel %vm4297_vm10, %v8092_v28, %v4294_v43  ;;  %v4549_v18 = vunpack.c.l.b16 %v4393_v50  ;;  %v4596_v19 = vpack.c.bf16 %v4418_v6, %v4416_v10  ;;  %v10752_v10 = vld [vmem:[%s8621_s20] sm:$0x3f] }
 0x9d7   : > { %4651 = vmatpush.bf16.msrb.mxu0 %v7305_v30  ;;  %v4303_v9 = vsel %vm4300_vm11, %v4302_v54, %v4298_v17  ;;  %v4392_v44 = vpack.c.bf16 %v4334_v42, %v4334_v42  ;;  %v12329_v6 = vld [vmem:[#allocation19_spill] sm:$0xff] }
 0x9d8   : > { %v4304_v13 = vmul.f32 %v10573_v20, %v4303_v9  ;;  %v4577_v39 = vpop.permute.xlu1 %4576  ;;  %v8094_v20 = vpop.eup %8093 }
 0x9d9   : > { %4589 = vmatpush.bf16.msra.mxu3 %v4577_v39  ;;  %v4548_v15 = vunpack.c.l.b16 %v4392_v44  ;;  %v4351_v37 = vmul.f32 %v8094_v20, %v4136_v32  ;;  %vm4356_vm12 = vweird.f32 %v8094_v20 }
 0x9da   : > { %v4390_v16 = vpack.c.bf16 %v4304_v13, %v4304_v13  ;;  %vm4357_vm14 = vmor %vm4355_vm13, %vm4356_vm12 }
 0x9db   : > { %v4550_v3 = vpack.c.b16 %v4549_v18, %v4548_v15  ;;  %v4352_v28 = vsub.f32 1.0, %v4351_v37  ;;  %v10757_v37 = vperm.slane %v10752_v10, 0 }
 0x9dc   : > { %v4523_v12 = vunpack.c.l.b16 %v4390_v16 }
 0x9dd   : > { %v4353_v35 = vmul.f32 %v8094_v20, %v4352_v28 }
 0x9de   : > { %v4525_v23 = vpack.c.b16 %v4524_v0, %v4523_v12  ;;  %v4552_v60 = vpop.permute.xlu0 %4551 }
 0x9df   : > { %4564 = vmatpush.bf16.msra.mxu1 %v4552_v60  ;;  %v4354_v49 = vadd.f32 %v8094_v20, %v4353_v35 }
 0x9e0   : > { %7299 = vmatmul.msk.bf16.vlgmr.msra.gmra.mxu0 %vm1120_vm1, %v4525_v23 }
 0x9e1   : > { %v4358_v8 = vsel %vm4357_vm14, %v8094_v20, %v4354_v49  ;;  %v12330_v49 = vld [vmem:[#allocation31_spill] sm:$0xff] }
 0x9e2   : > { %7300 = vmatmul.msk.bf16.vlgmr.msra.gmra.mxu1 %vm1120_vm1, %v4550_v3  ;;  %v4363_v27 = vsel %vm4360_vm2, %v4362_v53, %v4358_v8  ;;  %v2750_v62 = vadd.f32 %v12330_v49, %v10595_v4 }
 0x9e3   : > { %v4364_v30 = vmul.f32 %v10581_v57, %v4363_v27  ;;  %v10732_v57 = vpop.f32.mrf.mxu2 }
 0x9e5   : > { %v4394_v21 = vpack.c.bf16 %v4364_v30, %v4364_v30 }
 0x9e7   : > { %v4573_v55 = vunpack.c.l.b16 %v4394_v21 }
 0x9eb   : > { %v10736_v32 = vpop.f32.mrf.mxu2 }
 0x9f0   : > { %7310 = vmatmul.msk.bf16.vlgmr.msrb.gmra.mxu0 %vm917_vm0, %v4596_v19  ;;  %v2748_v19 = vadd.f32 %v12329_v6, %v10586_v40 }
 0x9f3   : > { %v10738_v47 = vpop.f32.mrf.mxu2 }
 0x9fb   : > { %v10741_v13 = vpop.f32.mrf.mxu2 }
 0xa03   : > { %v10744_v16 = vpop.f32.mrf.mxu2 }
 0xa07   : > { %v4139_v5 = vpop.xlane.xlu2 %4138 }
 0xa08   : > { %8095 = vrcp.f32 %v4139_v5  ;;  %v4376_v1 = vand.u32 2147483648, %v4139_v5  ;;  %v4374_v22 = vand.u32 2147483647, %v4139_v5  ;;  %vm4370_vm15 = vweird.f32 %v4139_v5 }
 0xa0a   : > { %v4441_v14 = vpop.f32.mrf.mxu3  ;;  %v4377_v7 = vor.u32 1.1754944e-38, %v4376_v1  ;;  %vm4375_vm5 = vcmp.eq.f32.partialorder %v4374_v22, 8.507059e+37  ;;  %v8170_v1 = vld [vmem:[#allocation2] sm:$0xff] }
 0xa0b   : > { %v10746_v0 = vpop.f32.mrf.mxu2 }
 0xa0e   : > { %v8096_v46 = vpop.eup %8095 }
 0xa0f   : > { %v4366_v38 = vmul.f32 %v8096_v46, %v4139_v5  ;;  %vm4371_vm3 = vweird.f32 %v8096_v46 }
 0xa10   : > { %vm4372_vm4 = vmor %vm4370_vm15, %vm4371_vm3 }
 0xa11   : > { %v4367_v48 = vsub.f32 1.0, %v4366_v38 }
 0xa12   : > { %v4443_v24 = vpop.f32.mrf.mxu3 }
 0xa13   : > { %v4368_v61 = vmul.f32 %v8096_v46, %v4367_v48  ;;  %v4597_v41 = vpack.c.bf16 %v4443_v24, %v4441_v14  ;;  %v10748_v15 = vpop.f32.mrf.mxu2 }
 0xa15   : > { %v4369_v51 = vadd.f32 %v8096_v46, %v4368_v61  ;;  %7311 = vmatmul.msk.bf16.gmra.mxu0 %vm917_vm0, %v4597_v41  ;;  %v12331_v61 = vld [vmem:[#allocation20_spill] sm:$0xff] }
 0xa16   : > { %v2753_v22 = vadd.f32 %v12331_v61, %v10603_v45 }
 0xa17   : > { %v4373_v63 = vsel %vm4372_vm4, %v8096_v46, %v4369_v51 }
 0xa18   : > { %v4378_v33 = vsel %vm4375_vm5, %v4377_v7, %v4373_v63 }
 0xa19   : > { %v4379_v34 = vmul.f32 %v10652_v36, %v4378_v33  ;;  %v4491_v17 = vpop.f32.mrf.mxu1  ;;  %v12332_v33 = vld [vmem:[#allocation23_spill] sm:$0xff] }
 0xa1a   : > { %v2755_v21 = vadd.f32 %v12332_v33, %v10612_v31 }
 0xa1b   : > { %v4395_v52 = vpack.c.bf16 %v4379_v34, %v4379_v34  ;;  %v3692_v60 = vpop.f32.mrf.mxu2  ;;  %v8171_v34 = vld [vmem:[#allocation2 + $0x58] sm:$0xff] }
 0xa1c   : > { %v3732_v20 = vadd.f32 %v3692_v60, %v2748_v19  ;;  %v8173_v60 = vld [vmem:[#allocation2 + $0x50] sm:$0xff] }
 0xa1d   : > { %v4574_v25 = vunpack.c.l.b16 %v4395_v52  ;;  %v4466_v43 = vpop.f32.mrf.mxu0 }
 0xa1f   : > { %v4575_v42 = vpack.c.b16 %v4574_v25, %v4573_v55 }
 0xa21   : > { %7301 = vmatmul.msk.bf16.vlgmr.msra.gmra.mxu3 %vm1120_vm1, %v4575_v42  ;;  %v4493_v9 = vpop.f32.mrf.mxu1 }
 0xa22   : > { %v4599_v36 = vpack.c.bf16 %v4493_v9, %v4491_v17  ;;  %v4516_v44 = vpop.f32.mrf.mxu3  ;;  %v12333_v17 = vld [vmem:[#allocation30_spill] sm:$0xff] }
 0xa23   : > { %v3694_v14 = vpop.f32.mrf.mxu2  ;;  %v2758_v9 = vadd.f32 %v12333_v17, %v10628_v29 }
 0xa24   : > { %v3733_v38 = vadd.f32 %v3694_v14, %v2750_v62 }
 0xa25   : > { %v4468_v54 = vpop.f32.mrf.mxu0 }
 0xa26   : > { %v4598_v26 = vpack.c.bf16 %v4468_v54, %v4466_v43  ;;  %v8172_v54 = vld [vmem:[#allocation2 + $0x18] sm:$0xff] }
 0xa28   : > { %7312 = vmatmul.msk.bf16.gmra.mxu0 %vm917_vm0, %v4598_v26 }
 0xa2a   : > { %v4518_v39 = vpop.f32.mrf.mxu3 }
 0xa2b   : > { %v4600_v50 = vpack.c.bf16 %v4518_v39, %v4516_v44  ;;  %v3697_v4 = vpop.f32.mrf.mxu2 }
 0xa2c   : > { %v3734_v41 = vadd.f32 %v3697_v4, %v2753_v22 }
 0xa33   : > { %v3699_v7 = vpop.f32.mrf.mxu2 }
 0xa34   : > { %v3735_v55 = vadd.f32 %v3699_v7, %v2755_v21  ;;  %v12336_v21 = vld [vmem:[#allocation21_spill] sm:$0xff] }
 0xa38   : > { %7313 = vmatmul.msk.bf16.gmra.mxu0 %vm917_vm0, %v4599_v36 }
 0xa3b   : > { %v3702_v45 = vpop.f32.mrf.mxu2 }
 0xa3c   : > { %v3736_v31 = vadd.f32 %v3702_v45, %v2758_v9  ;;  %v8175_v45 = vld [vmem:[#allocation2 + $0x8] sm:$0xff] }
 0xa48   : > { %7314 = vmatmul.msk.bf16.gmra.mxu0 %vm917_vm0, %v4600_v50 }
 0xa5d   : > { %v4541_v12 = vpop.f32.mrf.mxu0 }
 0xa5f   : > { %v4566_v3 = vpop.f32.mrf.mxu1 }
 0xa65   : > { %v4543_v18 = vpop.f32.mrf.mxu0 }
 0xa66   : > { %v4601_v23 = vpack.c.bf16 %v4543_v18, %v4541_v12  ;;  %v3704_v12 = vpop.f32.mrf.mxu2  ;;  %v12334_v18 = vld [vmem:[#allocation44_spill] sm:$0xff] }
 0xa67   : > { %v4568_v8 = vpop.f32.mrf.mxu1 }
 0xa68   : > { %7315 = vmatmul.msk.bf16.gmra.mxu0 %vm917_vm0, %v4601_v23  ;;  %v4602_v53 = vpack.c.bf16 %v4568_v8, %v4566_v3  ;;  %v2760_v23 = vadd.f32 %v12334_v18, %v10655_v59  ;;  %v8428_v59 = vmov 128.0   ;;  %v8177_v18 = vld [vmem:[#allocation2 + $0x40] sm:$0xff] }
 0xa69   : > { %8097 = vrcp.f32 %v8428_v59 }
 0xa6a   : > { %v3737_v6 = vadd.f32 %v3704_v12, %v2760_v23 }
 0xa6d   : > { %v4653_v28 = vpop.f32.mrf.mxu0 }
 0xa6e   : > { %v4693_v35 = vadd.f32 %v4653_v28, %v3732_v20 }
 0xa6f   : > { %v8098_v49 = vpop.eup %8097 }
 0xa70   : > { %v4710_v5 = vadd.f32 %v10757_v37, %v4693_v35  ;;  %v4775_v62 = vmul.f32 128.0, %v8098_v49  ;;  %vm4779_vm1 = vweird.f32 %v8098_v49 }
 0xa72   : > { %v10762_v46 = vadd.f32 %v8169_v11, %v4710_v5  ;;  %v8174_v5 = vld [vmem:[#allocation2 + $0x68] sm:$0xff]  ;;  %v4776_v11 = vsub.f32 1.0, %v4775_v62 }
 0xa74   : > { %4742 = vadd.xlane.f32.xlu0 %v10762_v46  ;;  %v4777_v8 = vmul.f32 %v8098_v49, %v4776_v11  ;;  %v12339_v11 = vld [vmem:[#allocation50_spill] sm:$0xff] }
 0xa75   : > { %v4655_v40 = vpop.f32.mrf.mxu0 }
 0xa76   : > { %v4694_v48 = vadd.f32 %v4655_v40, %v3733_v38  ;;  %v4778_v38 = vadd.f32 %v8098_v49, %v4777_v8  ;;  %v3707_v40 = vpop.f32.mrf.mxu2  ;;  %v2773_v8 = vadd.f32 %v12339_v11, %v10736_v32  ;;  %v7416_v11 = vld [vmem:[%s8604_s30 + $0x190] sm:$0xf] }
 0xa78   : > { %v4711_v27 = vadd.f32 %v10757_v37, %v4694_v48  ;;  %7316 = vmatmul.msk.bf16.gmra.mxu0 %vm917_vm0, %v4602_v53  ;;  %v10795_v48 = vsel %vm4779_vm1, %v8098_v49, %v4778_v38 }
 0xa7a   : > { %v10767_v24 = vadd.f32 %v8170_v1, %v4711_v27  ;;  %v12335_v1 = vld [vmem:[#allocation37_spill] sm:$0xff] }
 0xa7b   : > { %v2763_v4 = vadd.f32 %v12335_v1, %v10671_v56 }
 0xa7c   : > { %4744 = vadd.xlane.f32.xlu2 %v10767_v24 }
 0xa7d   : > { %v3738_v22 = vadd.f32 %v3707_v40, %v2763_v4  ;;  %v8178_v4 = vld [vmem:[#allocation2 + $0x20] sm:$0xff] }
 0xa7e   : > { %v3709_v7 = vpop.f32.mrf.mxu2 }
 0xa86   : > { %v3712_v17 = vpop.f32.mrf.mxu2 }
 0xa92   : > { %v4658_v30 = vpop.f32.mrf.mxu0 }
 0xa93   : > { %v4695_v51 = vadd.f32 %v4658_v30, %v3734_v41 }
 0xa95   : > { %v4712_v63 = vadd.f32 %v10757_v37, %v4695_v51 }
 0xa97   : > { %v10775_v52 = vadd.f32 %v8171_v34, %v4712_v63  ;;  %v2765_v34 = vadd.f32 %v12336_v21, %v10681_v58  ;;  %v12337_v58 = vld [vmem:[#allocation22_spill] sm:$0xff] }
 0xa98   : > { %v2768_v9 = vadd.f32 %v12337_v58, %v10729_v2  ;;  %v12338_v2 = vld [vmem:[#allocation34_spill] sm:$0xff] }
 0xa99   : > { %4746 = vadd.xlane.f32.xlu1 %v10775_v52 }
 0xa9a   : > { %v4660_v25 = vpop.f32.mrf.mxu0 }
 0xa9b   : > { %v4696_v43 = vadd.f32 %v4660_v25, %v3735_v55  ;;  %v3739_v25 = vadd.f32 %v3709_v7, %v2765_v34  ;;  %v12340_v7 = vld [vmem:[#allocation48_spill] sm:$0xff] }
 0xa9d   : > { %v4713_v42 = vadd.f32 %v10757_v37, %v4696_v43 }
 0xa9f   : > { %v10779_v26 = vadd.f32 %v8172_v54, %v4713_v42 }
 0xaa1   : > { %4748 = vadd.xlane.f32.xlu2 %v10779_v26 }
 0xaa4   : > { %v4591_v36 = vpop.f32.mrf.mxu3 }
 0xaa5   : > { %v4663_v44 = vpop.f32.mrf.mxu0 }
 0xaa6   : > { %v4697_v39 = vadd.f32 %v4663_v44, %v3736_v31  ;;  %v3740_v44 = vadd.f32 %v3712_v17, %v2768_v9 }
 0xaa8   : > { %v4714_v50 = vadd.f32 %v10757_v37, %v4697_v39  ;;  %v8176_v39 = vld [vmem:[#allocation2 + $0x48] sm:$0xff] }
 0xaaa   : > { %v10787_v3 = vadd.f32 %v8173_v60, %v4714_v50  ;;  %v3714_v60 = vpop.f32.mrf.mxu2 }
 0xaac   : > { %4750 = vadd.xlane.f32.xlu2 %v10787_v3  ;;  %v4593_v19 = vpop.f32.mrf.mxu3 }
 0xaad   : > { %v4603_v20 = vpack.c.bf16 %v4593_v19, %v4591_v36  ;;  %v4665_v28 = vpop.f32.mrf.mxu0  ;;  %v2770_v19 = vadd.f32 %v12338_v2, %v10732_v57 }
 0xaae   : > { %v4698_v29 = vadd.f32 %v4665_v28, %v3737_v6 }
 0xaaf   : > { %7317 = vmatmul.msk.bf16.gmra.mxu0 %vm917_vm0, %v4603_v20 }
 0xab0   : > { %v4715_v35 = vadd.f32 %v10757_v37, %v4698_v29  ;;  %v3741_v29 = vadd.f32 %v3714_v60, %v2770_v19  ;;  %v7675_v60 = vld [vmem:[%s8604_s30 + $0x1ec] sm:$0xf0]  ;;  %v7676_v19 = vld [vmem:[%s8604_s30 + $0x1f4] sm:$0xf0] }
 0xab2   : > { %v10792_v14 = vadd.f32 %v8174_v5, %v4715_v35  ;;  %v3717_v49 = vpop.f32.mrf.mxu2 }
 0xab4   : > { %4752 = vadd.xlane.f32.xlu2 %v10792_v14 }
 0xab5   : > { %v4668_v53 = vpop.f32.mrf.mxu0 }
 0xab6   : > { %v4699_v30 = vadd.f32 %v4668_v53, %v3738_v22  ;;  %v3742_v53 = vadd.f32 %v3717_v49, %v2773_v8  ;;  %v7434_v49 = vld [vmem:[%s8604_s30 + $0x1f0] sm:$0xf0]  ;;  %v7671_v8 = vld [vmem:[%s8604_s30 + $0x1ac] sm:$0xf0] }
 0xab8   : > { %v4716_v55 = vadd.f32 %v10757_v37, %v4699_v30 }
 0xaba   : > { %v10814_v54 = vadd.f32 %v8175_v45, %v4716_v55  ;;  %v3719_v32 = vpop.f32.mrf.mxu2 }
 0xabd   : > { %v4670_v63 = vpop.f32.mrf.mxu0 }
 0xac5   : > { %v4673_v36 = vpop.f32.mrf.mxu0 }
 0xacd   : > { %v4675_v20 = vpop.f32.mrf.mxu0 }
 0xace   : > { %v4702_v5 = vadd.f32 %v4675_v20, %v3741_v29  ;;  %v7674_v20 = vld [vmem:[%s8604_s30 + $0x1dc] sm:$0xf] }
 0xad0   : > { %v4719_v38 = vadd.f32 %v10757_v37, %v4702_v5 }
 0xae5   : > { %v4678_v57 = vpop.f32.mrf.mxu0 }
 0xae7   : > { %v4743_v27 = vpop.xlane.xlu0 %4742 }
 0xae8   : > { %v4781_v61 = vmul.f32 %v10795_v48, %v4743_v27 }
 0xaea   : > { %v10801_v41 = vsub.f32 %v10762_v46, %v4781_v61  ;;  %v4700_v46 = vadd.f32 %v4670_v63, %v3739_v25  ;;  %v10844_v61 = vadd.f32 %v8178_v4, %v4719_v38  ;;  %v2775_v63 = vadd.f32 %v12340_v7, %v10738_v47  ;;  %v12341_v47 = vld [vmem:[#allocation53_spill] sm:$0xff] }
 0xaeb   : > { %v2778_v45 = vadd.f32 %v12341_v47, %v10741_v13  ;;  %v8180_v13 = vld [vmem:[#allocation2 + $0x38] sm:$0xff]  ;;  %v7669_v38 = vld [vmem:[%s8604_s30 + $0x194] sm:$0xf]  ;;  %v7667_v7 = vld [vmem:[%s8604_s30 + $0x16c] sm:$0xf0] }
 0xaec   : > { %v4813_v51 = vmul.f32 %v10801_v41, %v10801_v41  ;;  %v4717_v31 = vadd.f32 %v10757_v37, %v4700_v46  ;;  %v3743_v34 = vadd.f32 %v3719_v32, %v2775_v63  ;;  %v3722_v46 = vpop.f32.mrf.mxu2  ;;  %v7670_v32 = vld [vmem:[%s8604_s30 + $0x19c] sm:$0xf]  ;;  %v7408_v63 = vld [vmem:[%s8604_s30 + $0x158] sm:$0xf]  ;;  %v7402_v47 = vld [vmem:[%s8604_s30 + $0x170] sm:$0xf0] }
 0xaed   : > { %v4680_v30 = vpop.f32.mrf.mxu0  ;;  %v3744_v9 = vadd.f32 %v3722_v46, %v2778_v45 }
 0xaee   : > { %4829 = vadd.xlane.f32.xlu0 %v4813_v51  ;;  %v10820_v50 = vadd.f32 %v8176_v39, %v4717_v31 }
 0xaef   : > { %v4745_v33 = vpop.xlane.xlu2 %4744 }
 0xaf0   : > { %v4782_v56 = vmul.f32 %v10795_v48, %v4745_v33  ;;  %v8179_v33 = vld [vmem:[#allocation2 + $0x10] sm:$0xff] }
 0xaf2   : > { %v10810_v43 = vsub.f32 %v10767_v24, %v4782_v56  ;;  %v4701_v24 = vadd.f32 %v4673_v36, %v3740_v44  ;;  %v4704_v56 = vadd.f32 %v4680_v30, %v3743_v34  ;;  %v7666_v34 = vld [vmem:[%s8604_s30 + $0x15c] sm:$0xf] }
 0xaf4   : > { %v4814_v42 = vmul.f32 %v10810_v43, %v10810_v43  ;;  %v4718_v12 = vadd.f32 %v10757_v37, %v4701_v24  ;;  %v4721_v17 = vadd.f32 %v10757_v37, %v4704_v56  ;;  %v7410_v56 = vld [vmem:[%s8604_s30 + $0x178] sm:$0xf0] }
 0xaf5   : > { %v7413_v46 = vor.u32 %v7666_v34, %v7410_v56  ;;  %v7336_v34 = vld [vmem:[%s8604_s30 + $0x50] sm:$0xf] }
 0xaf6   : > { %4831 = vadd.xlane.f32.xlu2 %v4814_v42  ;;  %4754 = vadd.xlane.f32.xlu0 %v10814_v54  ;;  %v10824_v23 = vadd.f32 %v8177_v18, %v4718_v12  ;;  %v10868_v24 = vadd.f32 %v8180_v13, %v4721_v17  ;;  %v8181_v12 = vld [vmem:[#allocation2 + $0x60] sm:$0xff]  ;;  %v7384_v17 = vld [vmem:[%s8604_s30 + $0x110] sm:$0xf]  ;;  %v7664_v13 = vld [vmem:[%s8604_s30 + $0x134] sm:$0xf0] }
 0xaf7   : > { %v7651_v56 = vld [vmem:[%s8604_s30 + $0x6c] sm:$0xf0] }
 0xafe   : > { %4756 = vadd.xlane.f32.xlu2 %v10820_v50 }
 0xb06   : > { %4758 = vadd.xlane.f32.xlu2 %v10824_v23 }
 0xb0c   : > { %v4747_v6 = vpop.xlane.xlu1 %4746 }
 0xb0d   : > { %v4783_v28 = vmul.f32 %v10795_v48, %v4747_v6  ;;  %v7440_v6 = vld [vmem:[%s8604_s30 + $0x1d8] sm:$0xf] }
 0xb0e   : > { %v7441_v29 = vor.u32 %v7676_v19, %v7440_v6  ;;  %v7659_v19 = vld [vmem:[%s8604_s30 + $0xec] sm:$0xf0] }
 0xb0f   : > { %v10831_v35 = vsub.f32 %v10775_v52, %v4783_v28  ;;  %v4703_v52 = vadd.f32 %v4678_v57, %v3742_v53  ;;  %v7442_v28 = vld [vmem:[%s8604_s30 + $0x1f8] sm:$0xf0]  ;;  %v7417_v57 = vor.u32 %v7671_v8, %v7416_v11  ;;  %v7424_v53 = vld [vmem:[%s8604_s30 + $0x198] sm:$0xf]  ;;  %v7657_v11 = vld [vmem:[%s8604_s30 + $0xd4] sm:$0xf] }
 0xb10   : > { %v7445_v5 = vor.u32 %v7674_v20, %v7442_v28  ;;  %5410 = vmatpush.bf16.msrb.mxu2 %v7441_v29  ;;  %v7376_v20 = vld [vmem:[%s8604_s30 + $0xd8] sm:$0xf]  ;;  %v7370_v8 = vld [vmem:[%s8604_s30 + $0xf0] sm:$0xf0] }
 0xb11   : > { %v4815_v59 = vmul.f32 %v10831_v35, %v10831_v35  ;;  %v4720_v22 = vadd.f32 %v10757_v37, %v4703_v52  ;;  %v7672_v52 = vld [vmem:[%s8604_s30 + $0x1b4] sm:$0xf0] }
 0xb12   : > { %5459 = vmatpush.bf16.msra.mxu0 %v7445_v5  ;;  %v7425_v4 = vor.u32 %v7672_v52, %v7424_v53  ;;  %v7660_v29 = vld [vmem:[%s8604_s30 + $0xf4] sm:$0xf0]  ;;  %v7658_v5 = vld [vmem:[%s8604_s30 + $0xdc] sm:$0xf]  ;;  %v7653_v53 = vld [vmem:[%s8604_s30 + $0x94] sm:$0xf] }
 0xb13   : > { %4833 = vadd.xlane.f32.xlu0 %v4815_v59  ;;  %v10851_v21 = vadd.f32 %v8179_v33, %v4720_v22  ;;  %v7673_v59 = vld [vmem:[%s8604_s30 + $0x1d4] sm:$0xf]  ;;  %v7426_v22 = vld [vmem:[%s8604_s30 + $0x1b8] sm:$0xf0]  ;;  %v7668_v33 = vld [vmem:[%s8604_s30 + $0x174] sm:$0xf0] }
 0xb14   : > { %v4749_v62 = vpop.xlane.xlu2 %4748  ;;  %v7429_v30 = vor.u32 %v7670_v32, %v7426_v22  ;;  %5411 = vmatpush.bf16.msrb.mxu2 %v7425_v4  ;;  %v7360_v4 = vld [vmem:[%s8604_s30 + $0x98] sm:$0xf] }
 0xb15   : > { %v4784_v40 = vmul.f32 %v10795_v48, %v4749_v62  ;;  %v7437_v62 = vor.u32 %v7673_v59, %v7434_v49  ;;  %v7378_v59 = vld [vmem:[%s8604_s30 + $0xf8] sm:$0xf0]  ;;  %v7377_v49 = vor.u32 %v7660_v29, %v7376_v20  ;;  %v7656_v32 = vld [vmem:[%s8604_s30 + $0xb4] sm:$0xf0] }
 0xb16   : > { %5460 = vmatpush.bf16.msra.mxu0 %v7429_v30  ;;  %v7646_v29 = vld [vmem:[%s8604_s30 + $0x1c] sm:$0xf] }
 0xb17   : > { %v10840_v27 = vsub.f32 %v10779_v26, %v4784_v40  ;;  %5361 = vmatpush.bf16.msrb.mxu3 %v7437_v62  ;;  %v7418_v40 = vld [vmem:[%s8604_s30 + $0x1b0] sm:$0xf0]  ;;  %v7381_v62 = vor.u32 %v7658_v5, %v7378_v59  ;;  %v7330_v5 = vld [vmem:[%s8604_s30 + $0x38] sm:$0xf0] }
 0xb19   : > { %v4816_v1 = vmul.f32 %v10840_v27, %v10840_v27 }
 0xb1a   : > { %5461 = vmatpush.bf16.msra.mxu0 %v7413_v46 }
 0xb1b   : > { %4835 = vadd.xlane.f32.xlu1 %v4816_v1  ;;  %4760 = vadd.xlane.f32.xlu0 %v10844_v61  ;;  %v7421_v1 = vor.u32 %v7669_v38, %v7418_v40  ;;  %v7373_v38 = vor.u32 %v7657_v11, %v7370_v8  ;;  %v7655_v40 = vld [vmem:[%s8604_s30 + $0xac] sm:$0xf0]  ;;  %v12342_v11 = vld [vmem:[#allocation55_spill] sm:$0xff] }
 0xb1c   : > { %v2780_v8 = vadd.f32 %v12342_v11, %v10744_v16 }
 0xb1d   : > { %5362 = vmatpush.bf16.msrb.mxu3 %v7421_v1  ;;  %v7354_v1 = vld [vmem:[%s8604_s30 + $0xb0] sm:$0xf0] }
 0xb1e   : > { %v7357_v30 = vor.u32 %v7653_v53, %v7354_v1 }
 0xb1f   : > { %v4751_v51 = vpop.xlane.xlu2 %4750 }
 0xb20   : > { %v4785_v26 = vmul.f32 %v10795_v48, %v4751_v51  ;;  %v7400_v51 = vld [vmem:[%s8604_s30 + $0x150] sm:$0xf] }
 0xb22   : > { %v10854_v55 = vsub.f32 %v10787_v3, %v4785_v26  ;;  %v4683_v3 = vpop.f32.mrf.mxu0  ;;  %v7401_v26 = vor.u32 %v7667_v7, %v7400_v51  ;;  %v7361_v51 = vor.u32 %v7656_v32, %v7360_v4  ;;  %v7654_v7 = vld [vmem:[%s8604_s30 + $0x9c] sm:$0xf] }
 0xb23   : > { %4762 = vadd.xlane.f32.xlu0 %v10851_v21  ;;  %v4705_v36 = vadd.f32 %v4683_v3, %v3744_v9  ;;  %v7661_v3 = vld [vmem:[%s8604_s30 + $0x114] sm:$0xf] }
 0xb24   : > { %v4817_v25 = vmul.f32 %v10854_v55, %v10854_v55 }
 0xb25   : > { %v4722_v39 = vadd.f32 %v10757_v37, %v4705_v36  ;;  %v7386_v36 = vld [vmem:[%s8604_s30 + $0x130] sm:$0xf0] }
 0xb26   : > { %4837 = vadd.xlane.f32.xlu1 %v4817_v25  ;;  %v7409_v25 = vor.u32 %v7668_v33, %v7408_v63  ;;  %v7362_v63 = vld [vmem:[%s8604_s30 + $0xb8] sm:$0xf0] }
 0xb27   : > { %v4753_v42 = vpop.xlane.xlu2 %4752  ;;  %v10872_v18 = vadd.f32 %v8181_v12, %v4722_v39  ;;  %v7389_v39 = vor.u32 %v7661_v3, %v7386_v36  ;;  %v7365_v33 = vor.u32 %v7654_v7, %v7362_v63  ;;  %v7650_v3 = vld [vmem:[%s8604_s30 + $0x5c] sm:$0xf] }
 0xb28   : > { %v4786_v58 = vmul.f32 %v10795_v48, %v4753_v42  ;;  %v7665_v42 = vld [vmem:[%s8604_s30 + $0x154] sm:$0xf]  ;;  %5412 = vmatpush.bf16.msrb.mxu2 %v7409_v25 }
 0xb29   : > { %v7405_v45 = vor.u32 %v7665_v42, %v7402_v47  ;;  %v7649_v25 = vld [vmem:[%s8604_s30 + $0x54] sm:$0xf]  ;;  %v7337_v42 = vor.u32 %v7651_v56, %v7336_v34 }
 0xb2a   : > { %v10864_v31 = vsub.f32 %v10792_v14, %v4786_v58  ;;  %v7432_v14 = vld [vmem:[%s8604_s30 + $0x1d0] sm:$0xf]  ;;  %v7338_v47 = vld [vmem:[%s8604_s30 + $0x70] sm:$0xf0] }
 0xb2b   : > { %v7433_v2 = vor.u32 %v7675_v60, %v7432_v14  ;;  %v7663_v58 = vld [vmem:[%s8604_s30 + $0x12c] sm:$0xf0]  ;;  %5363 = vmatpush.bf16.msrb.mxu3 %v7405_v45  ;;  %v7662_v14 = vld [vmem:[%s8604_s30 + $0x11c] sm:$0xf]  ;;  %v7344_v45 = vld [vmem:[%s8604_s30 + $0x58] sm:$0xf] }
 0xb2c   : > { %v4818_v44 = vmul.f32 %v10864_v31, %v10864_v31  ;;  %v7385_v9 = vor.u32 %v7663_v58, %v7384_v17  ;;  %v7394_v60 = vld [vmem:[%s8604_s30 + $0x138] sm:$0xf0]  ;;  %v7341_v17 = vor.u32 %v7649_v25, %v7338_v47  ;;  %v7652_v58 = vld [vmem:[%s8604_s30 + $0x74] sm:$0xf0] }
 0xb2d   : > { %5312 = vmatpush.bf16.msrb.mxu1 %v7433_v2  ;;  %v7397_v6 = vor.u32 %v7662_v14, %v7394_v60  ;;  %v7368_v2 = vld [vmem:[%s8604_s30 + $0xd0] sm:$0xf]  ;;  %v7345_v36 = vor.u32 %v7652_v58, %v7344_v45  ;;  %v3724_v14 = vpop.f32.mrf.mxu2 }
 0xb2e   : > { %4839 = vadd.xlane.f32.xlu2 %v4818_v44  ;;  %4764 = vadd.xlane.f32.xlu1 %v10868_v24  ;;  %v7392_v44 = vld [vmem:[%s8604_s30 + $0x118] sm:$0xf]  ;;  %v7369_v28 = vor.u32 %v7659_v19, %v7368_v2 }
 0xb2f   : > { %v7393_v12 = vor.u32 %v7664_v13, %v7392_v44  ;;  %5364 = vmatpush.bf16.msrb.mxu3 %v7389_v39  ;;  %5462 = vmatpush.bf16.msra.mxu0 %v7397_v6  ;;  %v7320_v13 = vld [vmem:[%s8604_s30 + $0x10] sm:$0xf]  ;;  %v7322_v6 = vld [vmem:[%s8604_s30 + $0x30] sm:$0xf0]  ;;  %v7328_v2 = vld [vmem:[%s8604_s30 + $0x18] sm:$0xf] }
 0xb30   : > { %v7647_v39 = vld [vmem:[%s8604_s30 + $0x2c] sm:$0xf0]  ;;  %v7648_v19 = vld [vmem:[%s8604_s30 + $0x34] sm:$0xf0] }
 0xb31   : > { %5313 = vmatpush.bf16.msrb.mxu1 %v7417_v57  ;;  %5413 = vmatpush.bf16.msrb.mxu2 %v7393_v12  ;;  %v7352_v57 = vld [vmem:[%s8604_s30 + $0x90] sm:$0xf]  ;;  %v7645_v12 = vld [vmem:[%s8604_s30 + $0x14] sm:$0xf]  ;;  %v7321_v60 = vor.u32 %v7647_v39, %v7320_v13 }
 0xb32   : > { %v7353_v52 = vor.u32 %v7655_v40, %v7352_v57  ;;  %v7325_v20 = vor.u32 %v7645_v12, %v7322_v6  ;;  %v4685_v40 = vpop.f32.mrf.mxu0 }
 0xb33   : > { %5463 = vmatpush.bf16.msra.mxu0 %v7381_v62  ;;  %5365 = vmatpush.bf16.msrb.mxu3 %v7373_v38  ;;  %v7333_v62 = vor.u32 %v7646_v29, %v7330_v5 }
 0xb35   : > { %5314 = vmatpush.bf16.msrb.mxu1 %v7401_v26  ;;  %5414 = vmatpush.bf16.msrb.mxu2 %v7377_v49 }
 0xb36   : > { %4766 = vadd.xlane.f32.xlu1 %v10872_v18 }
 0xb37   : > { %5366 = vmatpush.bf16.msrb.mxu3 %v7357_v30  ;;  %5464 = vmatpush.bf16.msra.mxu0 %v7365_v33 }
 0xb39   : > { %5315 = vmatpush.bf16.msrb.mxu1 %v7385_v9  ;;  %5415 = vmatpush.bf16.msrb.mxu2 %v7361_v51  ;;  %v7346_v9 = vld [vmem:[%s8604_s30 + $0x78] sm:$0xf0]  ;;  %v3727_v51 = vpop.f32.mrf.mxu2 }
 0xb3a   : > { %v7349_v44 = vor.u32 %v7650_v3, %v7346_v9  ;;  %v4688_v56 = vpop.f32.mrf.mxu0  ;;  %v8182_v9 = vld [vmem:[#allocation2 + $0x70] sm:$0xff] }
 0xb3b   : > { %5367 = vmatpush.bf16.msrb.mxu3 %v7341_v17 }
 0xb3c   : > { %5465 = vmatpush.bf16.msra.mxu0 %v7349_v44 }
 0xb3d   : > { %5316 = vmatpush.bf16.msrb.mxu1 %v7369_v28  ;;  %5416 = vmatpush.bf16.msrb.mxu2 %v7345_v36  ;;  %v7329_v28 = vor.u32 %v7648_v19, %v7328_v2  ;;  %v12344_v2 = vld [vmem:[#allocation59_spill] sm:$0xff] }
 0xb3e   : > { %v2785_v19 = vadd.f32 %v12344_v2, %v10748_v15 }
 0xb3f   : > { %5368 = vmatpush.bf16.msrb.mxu3 %v7325_v20 }
 0xb40   : > { %5466 = vmatpush.bf16.msra.mxu0 %v7333_v62 }
 0xb41   : > { %5317 = vmatpush.bf16.msrb.mxu1 %v7353_v52  ;;  %v3745_v52 = vadd.f32 %v3724_v14, %v2780_v8  ;;  %5417 = vmatpush.bf16.msrb.mxu2 %v7329_v28 }
 0xb42   : > { %v4690_v29 = vpop.f32.mrf.mxu0 }
 0xb45   : > { %5318 = vmatpush.bf16.msrb.mxu1 %v7337_v42 }
 0xb49   : > { %5319 = vmatpush.bf16.msrb.mxu1 %v7321_v60  ;;  %v3729_v60 = vpop.f32.mrf.mxu2 }
 0xb61   : > { %v4830_v22 = vpop.xlane.xlu0 %4829 }
 0xb62   : > { %v4861_v26 = vmul.f32 %v4830_v22, %v10795_v48  ;;  %v4706_v22 = vadd.f32 %v4685_v40, %v3745_v52 }
 0xb64   : > { %v10927_v46 = vadd.f32 1e-05, %v4861_v26  ;;  %v12343_v26 = vld [vmem:[#allocation58_spill] sm:$0xff] }
 0xb65   : > { %v2783_v33 = vadd.f32 %v12343_v26, %v10746_v0 }
 0xb66   : > { %8099 = vrsqrt.f32 %v10927_v46  ;;  %vm4899_vm6 = vweird.f32 %v10927_v46 }
 0xb67   : > { %v3746_v47 = vadd.f32 %v3727_v51, %v2783_v33 }
 0xb69   : > { %v4832_v59 = vpop.xlane.xlu2 %4831  ;;  %v4755_v49 = vpop.xlane.xlu0 %4754  ;;  %v4707_v3 = vadd.f32 %v4688_v56, %v3746_v47 }
 0xb6a   : > { %v4862_v38 = vmul.f32 %v4832_v59, %v10795_v48  ;;  %v4787_v57 = vmul.f32 %v10795_v48, %v4755_v49  ;;  %v3747_v59 = vadd.f32 %v3729_v60, %v2785_v19  ;;  %v8183_v49 = vld [vmem:[#allocation2 + $0x78] sm:$0xff] }
 0xb6b   : > { %v4724_v12 = vadd.f32 %v10757_v37, %v4707_v3 }
 0xb6c   : > { %v8100_v53 = vpop.eup %8099  ;;  %v4878_v1 = vadd.f32 1e-05, %v4862_v38  ;;  %v10948_v4 = vsub.f32 %v10814_v54, %v4787_v57  ;;  %v4723_v54 = vadd.f32 %v10757_v37, %v4706_v22  ;;  %v4708_v8 = vadd.f32 %v4690_v29, %v3747_v59 }
 0xb6d   : > { %v4894_v32 = vmul.f32 %v8100_v53, %v10927_v46  ;;  %vm4900_vm0 = vweird.f32 %v8100_v53  ;;  %v10971_v46 = vperm.slane %v10752_v10, 1  ;;  %v10977_v62 = vadd.f32 %v8183_v49, %v4724_v12 }
 0xb6e   : > { %8101 = vrsqrt.f32 %v4878_v1  ;;  %v4819_v16 = vmul.f32 %v10948_v4, %v10948_v4  ;;  %v10960_v36 = vadd.f32 %v8182_v9, %v4723_v54  ;;  %vm4901_vm7 = vmor %vm4899_vm6, %vm4900_vm0  ;;  %vm4909_vm9 = vweird.f32 %v4878_v1 }
 0xb6f   : > { %v4895_v30 = vmul.f32 %v8100_v53, %v4894_v32  ;;  %v10982_v38 = vperm.slane %v10752_v10, 2  ;;  %v4725_v40 = vadd.f32 %v10757_v37, %v4708_v8 }
 0xb70   : > { %4841 = vadd.xlane.f32.xlu2 %v4819_v16 }
 0xb71   : > { %v4896_v7 = vmul.f32 0.5, %v4895_v30  ;;  %v4757_v63 = vpop.xlane.xlu2 %4756 }
 0xb72   : > { %v4788_v34 = vmul.f32 %v10795_v48, %v4757_v63 }
 0xb73   : > { %v4897_v25 = vsub.f32 1.5, %v4896_v7 }
 0xb74   : > { %v8102_v42 = vpop.eup %8101  ;;  %v10958_v45 = vsub.f32 %v10820_v50, %v4788_v34 }
 0xb75   : > { %v4898_v17 = vmul.f32 %v8100_v53, %v4897_v25  ;;  %v4904_v58 = vmul.f32 %v8102_v42, %v4878_v1  ;;  %vm4910_vm8 = vweird.f32 %v8102_v42 }
 0xb76   : > { %v4820_v0 = vmul.f32 %v10958_v45, %v10958_v45  ;;  %vm4911_vm10 = vmor %vm4909_vm9, %vm4910_vm8 }
 0xb77   : > { %v4905_v44 = vmul.f32 %v8102_v42, %v4904_v58  ;;  %v4902_v13 = vsel %vm4901_vm7, %v8100_v53, %v4898_v17 }
 0xb78   : > { %4768 = vadd.xlane.f32.xlu2 %v10960_v36  ;;  %4843 = vadd.xlane.f32.xlu0 %v4820_v0  ;;  %v5053_v20 = vmul.f32 %v4902_v13, %v10801_v41 }
 0xb79   : > { %v4906_v50 = vmul.f32 0.5, %v4905_v44  ;;  %v4759_v39 = vpop.xlane.xlu2 %4758 }
 0xb7a   : > { %v4789_v14 = vmul.f32 %v10795_v48, %v4759_v39  ;;  %v5070_v41 = vmul.f32 %v10971_v46, %v5053_v20 }
 0xb7b   : > { %v4907_v6 = vsub.f32 1.5, %v4906_v50 }
 0xb7c   : > { %v10975_v28 = vsub.f32 %v10824_v23, %v4789_v14  ;;  %v10990_v53 = vadd.f32 %v10982_v38, %v5070_v41 }
 0xb7d   : > { %v4908_v5 = vmul.f32 %v8102_v42, %v4907_v6 }
 0xb7e   : > { %v4821_v11 = vmul.f32 %v10975_v28, %v10975_v28 }
 0xb7f   : > { %v4912_v15 = vsel %vm4911_vm10, %v8102_v42, %v4908_v5 }
 0xb80   : > { %v5054_v23 = vmul.f32 %v4912_v15, %v10810_v43  ;;  %4770 = vadd.xlane.f32.xlu2 %v10977_v62  ;;  %4845 = vadd.xlane.f32.xlu0 %v4821_v11  ;;  %v8184_v43 = vld [vmem:[#allocation2 + $0x28] sm:$0xff] }
 0xb81   : > { %v10998_v22 = vadd.f32 %v8184_v43, %v4725_v40 }
 0xb82   : > { %v5071_v57 = vmul.f32 %v10971_v46, %v5054_v23 }
 0xb84   : > { %v10993_v52 = vadd.f32 %v10982_v38, %v5071_v57 }
 0xb86   : > { %v4834_v1 = vpop.xlane.xlu0 %4833  ;;  %v5103_v10 = vpack.c.bf16 %v10993_v52, %v10990_v53 }
 0xb87   : > { %v4863_v32 = vmul.f32 %v4834_v1, %v10795_v48 }
 0xb88   : > { %5320 = vmatmul.bf16.vlgmr.msrb.gmra.mxu1 %v5103_v10  ;;  %5369 = vmatmul.bf16.vlgmr.msrb.gmra.mxu3 %v5103_v10 }
 0xb89   : > { %v4879_v16 = vadd.f32 1e-05, %v4863_v32  ;;  %5418 = vmatmul.bf16.vlgmr.msrb.gmra.mxu2 %v5103_v10  ;;  %5467 = vmatmul.bf16.vlgmr.msra.gmra.mxu0 %v5103_v10 }
 0xb8a   : > { %4772 = vadd.xlane.f32.xlu0 %v10998_v22 }
 0xb8b   : > { %8103 = vrsqrt.f32 %v4879_v16  ;;  %vm4919_vm12 = vweird.f32 %v4879_v16 }
 0xb8e   : > { %v4761_v37 = vpop.xlane.xlu0 %4760  ;;  %v4836_v30 = vpop.xlane.xlu1 %4835 }
 0xb8f   : > { %v4790_v51 = vmul.f32 %v10795_v48, %v4761_v37  ;;  %v4864_v7 = vmul.f32 %v4836_v30, %v10795_v48 }
 0xb91   : > { %v8104_v63 = vpop.eup %8103  ;;  %v11004_v26 = vsub.f32 %v10844_v61, %v4790_v51  ;;  %v4880_v33 = vadd.f32 1e-05, %v4864_v7 }
 0xb92   : > { %v4914_v54 = vmul.f32 %v8104_v63, %v4879_v16  ;;  %vm4920_vm11 = vweird.f32 %v8104_v63 }
 0xb93   : > { %8105 = vrsqrt.f32 %v4880_v33  ;;  %v4822_v34 = vmul.f32 %v11004_v26, %v11004_v26  ;;  %vm4921_vm13 = vmor %vm4919_vm12, %vm4920_vm11  ;;  %vm4929_vm2 = vweird.f32 %v4880_v33 }
 0xb94   : > { %v4915_v56 = vmul.f32 %v8104_v63, %v4914_v54 }
 0xb95   : > { %4847 = vadd.xlane.f32.xlu1 %v4822_v34 }
 0xb96   : > { %v4916_v25 = vmul.f32 0.5, %v4915_v56  ;;  %v4763_v42 = vpop.xlane.xlu0 %4762 }
 0xb97   : > { %v4791_v47 = vmul.f32 %v10795_v48, %v4763_v42 }
 0xb98   : > { %v4917_v17 = vsub.f32 1.5, %v4916_v25 }
 0xb99   : > { %v8106_v58 = vpop.eup %8105  ;;  %v11010_v3 = vsub.f32 %v10851_v21, %v4791_v47  ;;  %v4838_v9 = vpop.xlane.xlu1 %4837 }
 0xb9a   : > { %v4918_v61 = vmul.f32 %v8104_v63, %v4917_v17  ;;  %v4924_v0 = vmul.f32 %v8106_v58, %v4880_v33  ;;  %v4865_v44 = vmul.f32 %v4838_v9, %v10795_v48  ;;  %vm4930_vm14 = vweird.f32 %v8106_v58 }
 0xb9b   : > { %v4823_v13 = vmul.f32 %v11010_v3, %v11010_v3  ;;  %vm4931_vm3 = vmor %vm4929_vm2, %vm4930_vm14 }
 0xb9c   : > { %v4925_v50 = vmul.f32 %v8106_v58, %v4924_v0  ;;  %v4881_v39 = vadd.f32 1e-05, %v4865_v44  ;;  %v4922_v12 = vsel %vm4921_vm13, %v8104_v63, %v4918_v61 }
 0xb9d   : > { %4849 = vadd.xlane.f32.xlu1 %v4823_v13  ;;  %v5055_v21 = vmul.f32 %v4922_v12, %v10831_v35 }
 0xb9e   : > { %v4926_v14 = vmul.f32 0.5, %v4925_v50  ;;  %8107 = vrsqrt.f32 %v4881_v39  ;;  %vm4939_vm4 = vweird.f32 %v4881_v39 }
 0xb9f   : > { %v5072_v35 = vmul.f32 %v10971_v46, %v5055_v21 }
 0xba0   : > { %v4927_v60 = vsub.f32 1.5, %v4926_v14 }
 0xba1   : > { %v4840_v6 = vpop.xlane.xlu2 %4839  ;;  %v4765_v2 = vpop.xlane.xlu1 %4764  ;;  %v11027_v10 = vadd.f32 %v10982_v38, %v5072_v35 }
 0xba2   : > { %v4928_v19 = vmul.f32 %v8106_v58, %v4927_v60  ;;  %v4866_v20 = vmul.f32 %v4840_v6, %v10795_v48  ;;  %v4792_v29 = vmul.f32 %v10795_v48, %v4765_v2 }
 0xba4   : > { %v8108_v5 = vpop.eup %8107  ;;  %v4932_v59 = vsel %vm4931_vm3, %v8106_v58, %v4928_v19  ;;  %v4882_v49 = vadd.f32 1e-05, %v4866_v20  ;;  %v11019_v11 = vsub.f32 %v10868_v24, %v4792_v29 }
 0xba5   : > { %v5056_v15 = vmul.f32 %v4932_v59, %v10840_v27  ;;  %v4934_v8 = vmul.f32 %v8108_v5, %v4881_v39  ;;  %vm4940_vm15 = vweird.f32 %v8108_v5 }
 0xba6   : > { %8109 = vrsqrt.f32 %v4882_v49  ;;  %v4824_v41 = vmul.f32 %v11019_v11, %v11019_v11  ;;  %vm4941_vm5 = vmor %vm4939_vm4, %vm4940_vm15  ;;  %vm4949_vm0 = vweird.f32 %v4882_v49 }
 0xba7   : > { %v4935_v23 = vmul.f32 %v8108_v5, %v4934_v8  ;;  %v5073_v57 = vmul.f32 %v10971_v46, %v5056_v15 }
 0xba8   : > { %4851 = vadd.xlane.f32.xlu2 %v4824_v41 }
 0xba9   : > { %v4936_v40 = vmul.f32 0.5, %v4935_v23  ;;  %v4767_v1 = vpop.xlane.xlu1 %4766  ;;  %v11030_v24 = vadd.f32 %v10982_v38, %v5073_v57 }
 0xbaa   : > { %v4793_v27 = vmul.f32 %v10795_v48, %v4767_v1 }
 0xbab   : > { %v4937_v32 = vsub.f32 1.5, %v4936_v40  ;;  %v5104_v43 = vpack.c.bf16 %v11030_v24, %v11027_v10 }
 0xbac   : > { %v8110_v16 = vpop.eup %8109  ;;  %v11036_v37 = vsub.f32 %v10872_v18, %v4793_v27 }
 0xbad   : > { %v4938_v30 = vmul.f32 %v8108_v5, %v4937_v32  ;;  %v4944_v51 = vmul.f32 %v8110_v16, %v4882_v49  ;;  %5325 = vmatmul.bf16.gmra.mxu1 %v5104_v43  ;;  %5374 = vmatmul.bf16.gmra.mxu3 %v5104_v43  ;;  %vm4950_vm1 = vweird.f32 %v8110_v16 }
 0xbae   : > { %5423 = vmatmul.bf16.gmra.mxu2 %v5104_v43  ;;  %5472 = vmatmul.bf16.gmra.mxu0 %v5104_v43  ;;  %v4825_v7 = vmul.f32 %v11036_v37, %v11036_v37  ;;  %vm4951_vm6 = vmor %vm4949_vm0, %vm4950_vm1 }
 0xbaf   : > { %v4945_v63 = vmul.f32 %v8110_v16, %v4944_v51  ;;  %v4942_v33 = vsel %vm4941_vm5, %v8108_v5, %v4938_v30 }
 0xbb0   : > { %4853 = vadd.xlane.f32.xlu0 %v4825_v7  ;;  %v5057_v18 = vmul.f32 %v4942_v33, %v10854_v55 }
 0xbb1   : > { %v4946_v54 = vmul.f32 0.5, %v4945_v63 }
 0xbb2   : > { %v5074_v47 = vmul.f32 %v10971_v46, %v5057_v18 }
 0xbb3   : > { %v4947_v34 = vsub.f32 1.5, %v4946_v54 }
 0xbb4   : > { %v11045_v58 = vadd.f32 %v10982_v38, %v5074_v47 }
 0xbb5   : > { %v4948_v56 = vmul.f32 %v8110_v16, %v4947_v34 }
 0xbb7   : > { %v4952_v25 = vsel %vm4951_vm6, %v8110_v16, %v4948_v56 }
 0xbb8   : > { %v5058_v42 = vmul.f32 %v4952_v25, %v10864_v31 }
 0xbba   : > { %v5075_v17 = vmul.f32 %v10971_v46, %v5058_v42 }
 0xbbc   : > { %v11048_v9 = vadd.f32 %v10982_v38, %v5075_v17 }
 0xbbe   : > { %v5105_v61 = vpack.c.bf16 %v11048_v9, %v11045_v58 }
 0xbc0   : > { %5330 = vmatmul.bf16.gmra.mxu1 %v5105_v61  ;;  %5379 = vmatmul.bf16.gmra.mxu3 %v5105_v61 }
 0xbc1   : > { %5428 = vmatmul.bf16.gmra.mxu2 %v5105_v61  ;;  %5477 = vmatmul.bf16.gmra.mxu0 %v5105_v61 }
 0xbe3   : > { %v4842_v55 = vpop.xlane.xlu2 %4841 }
 0xbe4   : > { %v4867_v31 = vmul.f32 %v4842_v55, %v10795_v48 }
 0xbe6   : > { %v4883_v0 = vadd.f32 1e-05, %v4867_v31 }
 0xbe8   : > { %8111 = vrsqrt.f32 %v4883_v0  ;;  %vm4959_vm8 = vweird.f32 %v4883_v0 }
 0xbeb   : > { %v4769_v44 = vpop.xlane.xlu2 %4768  ;;  %v4844_v13 = vpop.xlane.xlu0 %4843 }
 0xbec   : > { %v4794_v50 = vmul.f32 %v10795_v48, %v4769_v44  ;;  %v4868_v39 = vmul.f32 %v4844_v13, %v10795_v48 }
 0xbee   : > { %v8112_v12 = vpop.eup %8111  ;;  %v11056_v14 = vsub.f32 %v10960_v36, %v4794_v50  ;;  %v4884_v60 = vadd.f32 1e-05, %v4868_v39 }
 0xbef   : > { %v4954_v21 = vmul.f32 %v8112_v12, %v4883_v0  ;;  %vm4960_vm7 = vweird.f32 %v8112_v12 }
 0xbf0   : > { %8113 = vrsqrt.f32 %v4884_v60  ;;  %v4826_v6 = vmul.f32 %v11056_v14, %v11056_v14  ;;  %vm4961_vm9 = vmor %vm4959_vm8, %vm4960_vm7  ;;  %vm4969_vm11 = vweird.f32 %v4884_v60 }
 0xbf1   : > { %v4955_v2 = vmul.f32 %v8112_v12, %v4954_v21 }
 0xbf2   : > { %4855 = vadd.xlane.f32.xlu1 %v4826_v6 }
 0xbf3   : > { %v4956_v19 = vmul.f32 0.5, %v4955_v2  ;;  %v4771_v20 = vpop.xlane.xlu2 %4770  ;;  %v4846_v29 = vpop.xlane.xlu0 %4845 }
 0xbf4   : > { %v4795_v5 = vmul.f32 %v10795_v48, %v4771_v20  ;;  %v4869_v59 = vmul.f32 %v4846_v29, %v10795_v48 }
 0xbf5   : > { %v4957_v49 = vsub.f32 1.5, %v4956_v19 }
 0xbf6   : > { %v8114_v15 = vpop.eup %8113  ;;  %v11063_v36 = vsub.f32 %v10977_v62, %v4795_v5  ;;  %v4885_v41 = vadd.f32 1e-05, %v4869_v59 }
 0xbf7   : > { %v4958_v8 = vmul.f32 %v8112_v12, %v4957_v49  ;;  %v4964_v35 = vmul.f32 %v8114_v15, %v4884_v60  ;;  %vm4970_vm10 = vweird.f32 %v8114_v15 }
 0xbf8   : > { %v4827_v23 = vmul.f32 %v11063_v36, %v11063_v36  ;;  %8115 = vrsqrt.f32 %v4885_v41  ;;  %vm4971_vm12 = vmor %vm4969_vm11, %vm4970_vm10  ;;  %vm4979_vm14 = vweird.f32 %v4885_v41 }
 0xbf9   : > { %v4965_v57 = vmul.f32 %v8114_v15, %v4964_v35  ;;  %v4962_v40 = vsel %vm4961_vm9, %v8112_v12, %v4958_v8 }
 0xbfa   : > { %4857 = vadd.xlane.f32.xlu2 %v4827_v23  ;;  %v5059_v62 = vmul.f32 %v4962_v40, %v10948_v4  ;;  %v7692_v23 = vld [vmem:[%s8610_s2 + $0x78] sm:$0xff] }
 0xbfb   : > { %v4966_v1 = vmul.f32 0.5, %v4965_v57  ;;  %v7700_v57 = vld [vmem:[%s8610_s2 + $0xb8] sm:$0xff]  ;;  %5910 = vmatpush.bf16.msra.mxu3 %v7692_v23 }
 0xbfc   : > { %v5076_v54 = vmul.f32 %v10971_v46, %v5059_v62  ;;  %5959 = vmatpush.bf16.msra.mxu2 %v7700_v57  ;;  %v7688_v23 = vld [vmem:[%s8610_s2 + $0x58] sm:$0xff] }
 0xbfd   : > { %v4967_v27 = vsub.f32 1.5, %v4966_v1  ;;  %v4773_v32 = vpop.xlane.xlu0 %4772  ;;  %v7696_v57 = vld [vmem:[%s8610_s2 + $0x98] sm:$0xff] }
 0xbfe   : > { %v4796_v43 = vmul.f32 %v10795_v48, %v4773_v32  ;;  %v8116_v51 = vpop.eup %8115  ;;  %v11078_v18 = vadd.f32 %v10982_v38, %v5076_v54 }
 0xbff   : > { %v4968_v16 = vmul.f32 %v8114_v15, %v4967_v27  ;;  %v4974_v34 = vmul.f32 %v8116_v51, %v4885_v41  ;;  %vm4980_vm13 = vweird.f32 %v8116_v51 }
 0xc00   : > { %v11070_v30 = vsub.f32 %v10998_v22, %v4796_v43  ;;  %vm4981_vm2 = vmor %vm4979_vm14, %vm4980_vm13 }
 0xc01   : > { %v4972_v7 = vsel %vm4971_vm12, %v8114_v15, %v4968_v16  ;;  %v4975_v22 = vmul.f32 %v8116_v51, %v4974_v34  ;;  %v7684_v16 = vld [vmem:[%s8610_s2 + $0x38] sm:$0xff] }
 0xc02   : > { %v5060_v63 = vmul.f32 %v4972_v7, %v10958_v45  ;;  %v4828_v33 = vmul.f32 %v11070_v30, %v11070_v30  ;;  %5861 = vmatpush.bf16.msra.mxu1 %v7684_v16  ;;  %v7708_v7 = vld [vmem:[%s8610_s2 + $0xf8] sm:$0xff] }
 0xc03   : > { %v4976_v17 = vmul.f32 0.5, %v4975_v22  ;;  %6008 = vmatpush.bf16.msrb.mxu0 %v7708_v7  ;;  %v7691_v22 = vld [vmem:[%s8610_s2 + $0x70] sm:$0xff] }
 0xc04   : > { %4859 = vadd.xlane.f32.xlu0 %v4828_v33  ;;  %v5077_v4 = vmul.f32 %v10971_v46, %v5060_v63  ;;  %5911 = vmatpush.bf16.msra.mxu3 %v7691_v22  ;;  %v7687_v7 = vld [vmem:[%s8610_s2 + $0x50] sm:$0xff] }
 0xc05   : > { %v4977_v61 = vsub.f32 1.5, %v4976_v17  ;;  %v7690_v17 = vld [vmem:[%s8610_s2 + $0x68] sm:$0xff] }
 0xc06   : > { %v11081_v56 = vadd.f32 %v10982_v38, %v5077_v4 }
 0xc07   : > { %v4978_v13 = vmul.f32 %v8116_v51, %v4977_v61  ;;  %v7698_v61 = vld [vmem:[%s8610_s2 + $0xa8] sm:$0xff] }
 0xc08   : > { %v4848_v25 = vpop.xlane.xlu1 %4847  ;;  %v5106_v45 = vpack.c.bf16 %v11081_v56, %v11078_v18  ;;  %5912 = vmatpush.bf16.msra.mxu3 %v7690_v17 }
 0xc09   : > { %v4870_v42 = vmul.f32 %v4848_v25, %v10795_v48  ;;  %v4982_v12 = vsel %vm4981_vm2, %v8116_v51, %v4978_v13  ;;  %v7699_v25 = vld [vmem:[%s8610_s2 + $0xb0] sm:$0xff] }
 0xc0a   : > { %5335 = vmatmul.bf16.gmra.mxu1 %v5106_v45  ;;  %5384 = vmatmul.bf16.gmra.mxu3 %v5106_v45  ;;  %v5061_v2 = vmul.f32 %v4982_v12, %v10975_v28 }
 0xc0b   : > { %v4886_v47 = vadd.f32 1e-05, %v4870_v42  ;;  %5433 = vmatmul.bf16.gmra.mxu2 %v5106_v45  ;;  %5482 = vmatmul.bf16.gmra.mxu0 %v5106_v45  ;;  %v7683_v45 = vld [vmem:[%s8610_s2 + $0x30] sm:$0xff] }
 0xc0c   : > { %v5078_v35 = vmul.f32 %v10971_v46, %v5061_v2  ;;  %v7707_v42 = vld [vmem:[%s8610_s2 + $0xf0] sm:$0xff]  ;;  %5960 = vmatpush.bf16.msra.mxu2 %v7699_v25  ;;  %5862 = vmatpush.bf16.msra.mxu1 %v7683_v45  ;;  %v7689_v2 = vld [vmem:[%s8610_s2 + $0x60] sm:$0xff] }
 0xc0d   : > { %8117 = vrsqrt.f32 %v4886_v47  ;;  %vm4989_vm15 = vweird.f32 %v4886_v47  ;;  %6009 = vmatpush.bf16.msrb.mxu0 %v7707_v42  ;;  %5913 = vmatpush.bf16.msra.mxu3 %v7689_v2 }
 0xc0e   : > { %v11095_v1 = vadd.f32 %v10982_v38, %v5078_v35 }
 0xc10   : > { %v4850_v55 = vpop.xlane.xlu1 %4849  ;;  %5961 = vmatpush.bf16.msra.mxu2 %v7698_v61  ;;  %v7703_v61 = vld [vmem:[%s8610_s2 + $0xd0] sm:$0xff] }
 0xc11   : > { %v4871_v31 = vmul.f32 %v4850_v55, %v10795_v48  ;;  %5914 = vmatpush.bf16.msra.mxu3 %v7688_v23  ;;  %v5468_v23 = vpop.f32.mrf.mxu0 }
 0xc13   : > { %v8118_v0 = vpop.eup %8117  ;;  %v4887_v44 = vadd.f32 1e-05, %v4871_v31 }
 0xc14   : > { %v4984_v50 = vmul.f32 %v8118_v0, %v4886_v47  ;;  %vm4990_vm3 = vweird.f32 %v8118_v0 }
 0xc15   : > { %8119 = vrsqrt.f32 %v4887_v44  ;;  %vm4991_vm4 = vmor %vm4989_vm15, %vm4990_vm3  ;;  %vm4999_vm1 = vweird.f32 %v4887_v44  ;;  %5915 = vmatpush.bf16.msra.mxu3 %v7687_v7 }
 0xc16   : > { %v4985_v39 = vmul.f32 %v8118_v0, %v4984_v50 }
 0xc18   : > { %v4986_v60 = vmul.f32 0.5, %v4985_v39 }
 0xc1a   : > { %v4987_v21 = vsub.f32 1.5, %v4986_v60  ;;  %v7706_v60 = vld [vmem:[%s8610_s2 + $0xe8] sm:$0xff] }
 0xc1b   : > { %v8120_v6 = vpop.eup %8119  ;;  %v4852_v19 = vpop.xlane.xlu2 %4851  ;;  %6010 = vmatpush.bf16.msrb.mxu0 %v7706_v60 }
 0xc1c   : > { %v4988_v20 = vmul.f32 %v8118_v0, %v4987_v21  ;;  %v4994_v29 = vmul.f32 %v8120_v6, %v4887_v44  ;;  %v4872_v5 = vmul.f32 %v4852_v19, %v10795_v48  ;;  %vm5000_vm5 = vweird.f32 %v8120_v6  ;;  %v7697_v19 = vld [vmem:[%s8610_s2 + $0xa0] sm:$0xff] }
 0xc1d   : > { %vm5001_vm0 = vmor %vm4999_vm1, %vm5000_vm5  ;;  %5962 = vmatpush.bf16.msra.mxu2 %v7697_v19 }
 0xc1e   : > { %v4992_v59 = vsel %vm4991_vm4, %v8118_v0, %v4988_v20  ;;  %v4995_v49 = vmul.f32 %v8120_v6, %v4994_v29  ;;  %v4888_v15 = vadd.f32 1e-05, %v4872_v5  ;;  %v7681_v20 = vld [vmem:[%s8610_s2 + $0x20] sm:$0xff] }
 0xc1f   : > { %v5062_v8 = vmul.f32 %v4992_v59, %v11004_v26 }
 0xc20   : > { %v4996_v41 = vmul.f32 0.5, %v4995_v49  ;;  %8121 = vrsqrt.f32 %v4888_v15  ;;  %vm5009_vm7 = vweird.f32 %v4888_v15 }
 0xc21   : > { %v5079_v28 = vmul.f32 %v10971_v46, %v5062_v8  ;;  %5963 = vmatpush.bf16.msra.mxu2 %v7696_v57  ;;  %v5419_v57 = vpop.f32.mrf.mxu2 }
 0xc22   : > { %v4997_v40 = vsub.f32 1.5, %v4996_v41 }
 0xc23   : > { %v11098_v27 = vadd.f32 %v10982_v38, %v5079_v28  ;;  %v4854_v50 = vpop.xlane.xlu0 %4853  ;;  %v7705_v28 = vld [vmem:[%s8610_s2 + $0xe0] sm:$0xff] }
 0xc24   : > { %v4998_v62 = vmul.f32 %v8120_v6, %v4997_v40  ;;  %v4873_v39 = vmul.f32 %v4854_v50, %v10795_v48  ;;  %v7680_v40 = vld [vmem:[%s8610_s2 + $0x18] sm:$0xff]  ;;  %6011 = vmatpush.bf16.msrb.mxu0 %v7705_v28 }
 0xc25   : > { %v5107_v26 = vpack.c.bf16 %v11098_v27, %v11095_v1 }
 0xc26   : > { %v8122_v32 = vpop.eup %8121  ;;  %v5002_v63 = vsel %vm5001_vm0, %v8120_v6, %v4998_v62  ;;  %v4889_v12 = vadd.f32 1e-05, %v4873_v39  ;;  %v7704_v62 = vld [vmem:[%s8610_s2 + $0xd8] sm:$0xff]  ;;  %v7677_v39 = vld [vmem:[%s8610_s2] sm:$0xff] }
 0xc27   : > { %v5004_v43 = vmul.f32 %v8122_v32, %v4888_v15  ;;  %5340 = vmatmul.bf16.gmra.mxu1 %v5107_v26  ;;  %5389 = vmatmul.bf16.gmra.mxu3 %v5107_v26  ;;  %vm5010_vm6 = vweird.f32 %v8122_v32  ;;  %v5063_v34 = vmul.f32 %v5002_v63, %v11010_v3  ;;  %v7682_v3 = vld [vmem:[%s8610_s2 + $0x28] sm:$0xff]  ;;  %v7695_v63 = vld [vmem:[%s8610_s2 + $0x90] sm:$0xff] }
 0xc28   : > { %5438 = vmatmul.bf16.gmra.mxu2 %v5107_v26  ;;  %5487 = vmatmul.bf16.gmra.mxu0 %v5107_v26  ;;  %vm5011_vm8 = vmor %vm5009_vm7, %vm5010_vm6  ;;  %8123 = vrsqrt.f32 %v4889_v12  ;;  %vm5019_vm10 = vweird.f32 %v4889_v12 }
 0xc29   : > { %v5005_v51 = vmul.f32 %v8122_v32, %v5004_v43  ;;  %v5080_v31 = vmul.f32 %v10971_v46, %v5063_v34  ;;  %5863 = vmatpush.bf16.msra.mxu1 %v7682_v3  ;;  %6012 = vmatpush.bf16.msrb.mxu0 %v7704_v62 }
 0xc2a   : > { %5964 = vmatpush.bf16.msra.mxu2 %v7695_v63 }
 0xc2b   : > { %v5006_v33 = vmul.f32 0.5, %v5005_v51  ;;  %v11116_v44 = vadd.f32 %v10982_v38, %v5080_v31  ;;  %v7686_v31 = vld [vmem:[%s8610_s2 + $0x48] sm:$0xff] }
 0xc2c   : > { %5916 = vmatpush.bf16.msra.mxu3 %v7686_v31 }
 0xc2d   : > { %v5007_v54 = vsub.f32 1.5, %v5006_v33  ;;  %5864 = vmatpush.bf16.msra.mxu1 %v7681_v20  ;;  %v7679_v33 = vld [vmem:[%s8610_s2 + $0x10] sm:$0xff]  ;;  %6013 = vmatpush.bf16.msrb.mxu0 %v7703_v61 }
 0xc2e   : > { %v8124_v21 = vpop.eup %8123 }
 0xc2f   : > { %v5008_v4 = vmul.f32 %v8122_v32, %v5007_v54  ;;  %v5014_v6 = vmul.f32 %v8124_v21, %v4889_v12  ;;  %vm5020_vm9 = vweird.f32 %v8124_v21 }
 0xc30   : > { %vm5021_vm11 = vmor %vm5019_vm10, %vm5020_vm9 }
 0xc31   : > { %v5012_v47 = vsel %vm5011_vm8, %v8122_v32, %v5008_v4  ;;  %v5015_v29 = vmul.f32 %v8124_v21, %v5014_v6  ;;  %5865 = vmatpush.bf16.msra.mxu1 %v7680_v40  ;;  %v7693_v6 = vld [vmem:[%s8610_s2 + $0x80] sm:$0xff] }
 0xc32   : > { %v5064_v55 = vmul.f32 %v5012_v47, %v11019_v11 }
 0xc33   : > { %v5016_v15 = vmul.f32 0.5, %v5015_v29  ;;  %v7701_v29 = vld [vmem:[%s8610_s2 + $0xc0] sm:$0xff] }
 0xc34   : > { %v5081_v0 = vmul.f32 %v10971_v46, %v5064_v55  ;;  %v7678_v55 = vld [vmem:[%s8610_s2 + $0x8] sm:$0xff] }
 0xc35   : > { %v5017_v8 = vsub.f32 1.5, %v5016_v15  ;;  %5866 = vmatpush.bf16.msra.mxu1 %v7679_v33 }
 0xc36   : > { %v11119_v13 = vadd.f32 %v10982_v38, %v5081_v0  ;;  %v7694_v0 = vld [vmem:[%s8610_s2 + $0x88] sm:$0xff] }
 0xc37   : > { %v5018_v43 = vmul.f32 %v8124_v21, %v5017_v8  ;;  %5965 = vmatpush.bf16.msra.mxu2 %v7694_v0 }
 0xc38   : > { %v5108_v11 = vpack.c.bf16 %v11119_v13, %v11116_v44 }
 0xc39   : > { %v5022_v54 = vsel %vm5021_vm11, %v8124_v21, %v5018_v43  ;;  %5867 = vmatpush.bf16.msra.mxu1 %v7678_v55  ;;  %v7685_v21 = vld [vmem:[%s8610_s2 + $0x40] sm:$0xff] }
 0xc3a   : > { %5345 = vmatmul.bf16.gmra.mxu1 %v5108_v11  ;;  %5394 = vmatmul.bf16.gmra.mxu3 %v5108_v11  ;;  %v5065_v45 = vmul.f32 %v5022_v54, %v11036_v37  ;;  %v7702_v37 = vld [vmem:[%s8610_s2 + $0xc8] sm:$0xff]  ;;  %v5470_v54 = vpop.f32.mrf.mxu0 }
 0xc3b   : > { %5443 = vmatmul.bf16.gmra.mxu2 %v5108_v11  ;;  %5492 = vmatmul.bf16.gmra.mxu0 %v5108_v11 }
 0xc3c   : > { %v5082_v60 = vmul.f32 %v10971_v46, %v5065_v45  ;;  %6014 = vmatpush.bf16.msrb.mxu0 %v7702_v37  ;;  %5917 = vmatpush.bf16.msra.mxu3 %v7685_v21 }
 0xc3d   : > { %5868 = vmatpush.bf16.msra.mxu1 %v7677_v39  ;;  %5966 = vmatpush.bf16.msra.mxu2 %v7693_v6 }
 0xc40   : > { %6015 = vmatpush.bf16.msrb.mxu0 %v7701_v29 }
 0xc65   : > { %v4856_v5 = vpop.xlane.xlu1 %4855 }
 0xc66   : > { %v4874_v59 = vmul.f32 %v4856_v5, %v10795_v48  ;;  %v11157_v5 = vadd.f32 %v10982_v38, %v5082_v60 }
 0xc68   : > { %v4890_v49 = vadd.f32 1e-05, %v4874_v59 }
 0xc6a   : > { %8125 = vrsqrt.f32 %v4890_v49  ;;  %vm5029_vm13 = vweird.f32 %v4890_v49 }
 0xc6d   : > { %v4858_v35 = vpop.xlane.xlu2 %4857 }
 0xc6e   : > { %v4875_v41 = vmul.f32 %v4858_v35, %v10795_v48  ;;  %v5321_v35 = vpop.f32.mrf.mxu1 }
 0xc70   : > { %v8126_v26 = vpop.eup %8125  ;;  %v11134_v32 = vadd.f32 1e-05, %v4875_v41  ;;  %v5370_v41 = vpop.f32.mrf.mxu3 }
 0xc71   : > { %v5024_v16 = vmul.f32 %v8126_v26, %v4890_v49  ;;  %vm5030_vm12 = vweird.f32 %v8126_v26 }
 0xc72   : > { %8127 = vrsqrt.f32 %v11134_v32  ;;  %vm5031_vm14 = vmor %vm5029_vm13, %vm5030_vm12  ;;  %vm5039_vm3 = vweird.f32 %v11134_v32 }
 0xc73   : > { %v5025_v51 = vmul.f32 %v8126_v26, %v5024_v16 }
 0xc75   : > { %v5026_v34 = vmul.f32 0.5, %v5025_v51 }
 0xc76   : > { %v5323_v63 = vpop.f32.mrf.mxu1 }
 0xc77   : > { %v5027_v4 = vsub.f32 1.5, %v5026_v34  ;;  %v4860_v22 = vpop.xlane.xlu0 %4859  ;;  %v5421_v34 = vpop.f32.mrf.mxu2 }
 0xc78   : > { %v8128_v25 = vpop.eup %8127  ;;  %v4876_v42 = vmul.f32 %v4860_v22, %v10795_v48  ;;  %v5372_v33 = vpop.f32.mrf.mxu3 }
 0xc79   : > { %v5028_v47 = vmul.f32 %v8126_v26, %v5027_v4  ;;  %v5034_v17 = vmul.f32 %v8128_v25, %v11134_v32  ;;  %vm5040_vm2 = vweird.f32 %v8128_v25 }
 0xc7a   : > { %v4892_v3 = vadd.f32 1e-05, %v4876_v42  ;;  %vm5041_vm15 = vmor %vm5039_vm3, %vm5040_vm2 }
 0xc7b   : > { %v5032_v11 = vsel %vm5031_vm14, %v8126_v26, %v5028_v47  ;;  %v5035_v50 = vmul.f32 %v8128_v25, %v5034_v17  ;;  %v5473_v47 = vpop.f32.mrf.mxu0 }
 0xc7c   : > { %v5066_v12 = vmul.f32 %v5032_v11, %v11056_v14  ;;  %8129 = vrsqrt.f32 %v4892_v3  ;;  %vm5049_vm5 = vweird.f32 %v4892_v3 }
 0xc7d   : > { %v5036_v2 = vmul.f32 0.5, %v5035_v50 }
 0xc7e   : > { %v5083_v19 = vmul.f32 %v10971_v46, %v5066_v12  ;;  %v5326_v45 = vpop.f32.mrf.mxu1 }
 0xc7f   : > { %v5037_v20 = vsub.f32 1.5, %v5036_v2  ;;  %v5424_v17 = vpop.f32.mrf.mxu2 }
 0xc80   : > { %v11160_v59 = vadd.f32 %v10982_v38, %v5083_v19  ;;  %v5375_v42 = vpop.f32.mrf.mxu3 }
 0xc81   : > { %v5038_v15 = vmul.f32 %v8128_v25, %v5037_v20 }
 0xc82   : > { %v8130_v14 = vpop.eup %8129  ;;  %v5109_v49 = vpack.c.bf16 %v11160_v59, %v11157_v5 }
 0xc83   : > { %v5044_v8 = vmul.f32 %v8130_v14, %v4892_v3  ;;  %v5042_v40 = vsel %vm5041_vm15, %v8128_v25, %v5038_v15  ;;  %vm5050_vm4 = vweird.f32 %v8130_v14 }
 0xc84   : > { %5350 = vmatmul.bf16.gmra.mxu1 %v5109_v49  ;;  %5399 = vmatmul.bf16.gmra.mxu3 %v5109_v49  ;;  %v5067_v43 = vmul.f32 %v5042_v40, %v11063_v36  ;;  %vm5051_vm1 = vmor %vm5049_vm5, %vm5050_vm4 }
 0xc85   : > { %v5045_v28 = vmul.f32 %v8130_v14, %v5044_v8  ;;  %5448 = vmatmul.bf16.gmra.mxu2 %v5109_v49  ;;  %5497 = vmatmul.bf16.gmra.mxu0 %v5109_v49  ;;  %v5475_v49 = vpop.f32.mrf.mxu0 }
 0xc86   : > { %v5084_v32 = vmul.f32 %v10971_v46, %v5067_v43  ;;  %v5328_v19 = vpop.f32.mrf.mxu1 }
 0xc87   : > { %v5046_v26 = vmul.f32 0.5, %v5045_v28  ;;  %v5426_v15 = vpop.f32.mrf.mxu2 }
 0xc88   : > { %v11170_v22 = vadd.f32 %v10982_v38, %v5084_v32  ;;  %v5377_v20 = vpop.f32.mrf.mxu3 }
 0xc89   : > { %v5047_v62 = vsub.f32 1.5, %v5046_v26 }
 0xc8b   : > { %v5048_v16 = vmul.f32 %v8130_v14, %v5047_v62 }
 0xc8d   : > { %v5052_v51 = vsel %vm5051_vm1, %v8130_v14, %v5048_v16  ;;  %v5478_v62 = vpop.f32.mrf.mxu0 }
 0xc8e   : > { %v5068_v7 = vmul.f32 %v5052_v51, %v11070_v30  ;;  %v531_v30 = vld [vmem:[%s8626_s26] sm:$0xf] }
 0xc8f   : > { %v11178_v61 = vperm.slane %v531_v30, 0  ;;  %v11182_v55 = vperm.slane %v531_v30, 3  ;;  %v5429_v43 = vpop.f32.mrf.mxu2 }
 0xc90   : > { %v5085_v4 = vmul.f32 %v10971_v46, %v5068_v7  ;;  %v11180_v46 = vperm.slane %v531_v30, 1 }
 0xc91   : > { %v5324_v31 = vadd.f32 %v5323_v63, %v11178_v61  ;;  %v5471_v0 = vadd.f32 %v5470_v54, %v11182_v55  ;;  %v5322_v50 = vadd.f32 %v5321_v35, %v11178_v61  ;;  %v5469_v39 = vadd.f32 %v5468_v23, %v11182_v55  ;;  %v5331_v23 = vpop.f32.mrf.mxu1 }
 0xc92   : > { %v11173_v36 = vadd.f32 %v10982_v38, %v5085_v4  ;;  %v11184_v38 = vperm.slane %v531_v30, 2  ;;  %v5373_v3 = vadd.f32 %v5372_v33, %v11180_v46  ;;  %v5371_v37 = vadd.f32 %v5370_v41, %v11180_v46 }
 0xc93   : > { %v5512_v60 = vmax.f32 %v5324_v31, 0.0  ;;  %v5515_v6 = vmax.f32 %v5471_v0, 0.0  ;;  %v5508_v29 = vmax.f32 %v5322_v50, 0.0  ;;  %v5511_v8 = vmax.f32 %v5469_v39, 0.0 }
 0xc94   : > { %v5110_v25 = vpack.c.bf16 %v11173_v36, %v11170_v22  ;;  %v5422_v11 = vadd.f32 %v5421_v34, %v11184_v38  ;;  %v5420_v12 = vadd.f32 %v5419_v57, %v11184_v38  ;;  %v5513_v21 = vmax.f32 %v5373_v3, 0.0  ;;  %v5380_v57 = vpop.f32.mrf.mxu3 }
 0xc95   : > { %v5509_v14 = vmax.f32 %v5371_v37, 0.0  ;;  %v5572_v40 = vpack.c.bf16 %v5512_v60, %v5508_v29  ;;  %v5575_v26 = vpack.c.bf16 %v5515_v6, %v5511_v8  ;;  %v5329_v16 = vadd.f32 %v5328_v19, %v11178_v61 }
 0xc96   : > { %5355 = vmatmul.bf16.gmra.mxu1 %v5110_v25  ;;  %5404 = vmatmul.bf16.gmra.mxu3 %v5110_v25  ;;  %v5514_v2 = vmax.f32 %v5422_v11, 0.0  ;;  %v5510_v28 = vmax.f32 %v5420_v12, 0.0  ;;  %v5378_v51 = vadd.f32 %v5377_v20, %v11180_v46  ;;  %v5476_v7 = vadd.f32 %v5475_v49, %v11182_v55  ;;  %v5480_v12 = vpop.f32.mrf.mxu0 }
 0xc97   : > { %5453 = vmatmul.bf16.gmra.mxu2 %v5110_v25  ;;  %5502 = vmatmul.bf16.gmra.mxu0 %v5110_v25  ;;  %v5573_v35 = vpack.c.bf16 %v5513_v21, %v5509_v14  ;;  %v5427_v32 = vadd.f32 %v5426_v15, %v11184_v38  ;;  %v5327_v63 = vadd.f32 %v5326_v45, %v11178_v61  ;;  %v5520_v4 = vmax.f32 %v5329_v16, 0.0  ;;  %v5431_v60 = vpop.f32.mrf.mxu2 }
 0xc98   : > { %v5574_v41 = vpack.c.bf16 %v5514_v2, %v5510_v28  ;;  %v5376_v33 = vadd.f32 %v5375_v42, %v11180_v46  ;;  %v5474_v54 = vadd.f32 %v5473_v47, %v11182_v55  ;;  %v5425_v34 = vadd.f32 %v5424_v17, %v11184_v38 }
 0xc99   : > { %v5521_v25 = vmax.f32 %v5378_v51, 0.0  ;;  %v5523_v30 = vmax.f32 %v5476_v7, 0.0  ;;  %v5522_v31 = vmax.f32 %v5427_v32, 0.0  ;;  %v5516_v3 = vmax.f32 %v5327_v63, 0.0  ;;  %v5333_v37 = vpop.f32.mrf.mxu1 }
 0xc9a   : > { %v5517_v0 = vmax.f32 %v5376_v33, 0.0  ;;  %v5519_v11 = vmax.f32 %v5474_v54, 0.0  ;;  %v5518_v50 = vmax.f32 %v5425_v34, 0.0  ;;  %v5334_v2 = vadd.f32 %v5333_v37, %v11178_v61 }
 0xc9b   : > { %v5576_v21 = vpack.c.bf16 %v5520_v4, %v5516_v3  ;;  %v5481_v14 = vadd.f32 %v5480_v12, %v11182_v55  ;;  %v5432_v49 = vadd.f32 %v5431_v60, %v11184_v38  ;;  %v5332_v15 = vadd.f32 %v5331_v23, %v11178_v61 }
 0xc9c   : > { %v5382_v39 = vpop.f32.mrf.mxu3  ;;  %v5577_v45 = vpack.c.bf16 %v5521_v25, %v5517_v0  ;;  %v5578_v6 = vpack.c.bf16 %v5522_v31, %v5518_v50  ;;  %v5579_v42 = vpack.c.bf16 %v5523_v30, %v5519_v11  ;;  %v5381_v8 = vadd.f32 %v5380_v57, %v11180_v46 }
 0xc9d   : > { %v5383_v19 = vadd.f32 %v5382_v39, %v11180_v46  ;;  %v5479_v28 = vadd.f32 %v5478_v62, %v11182_v55  ;;  %v5530_v16 = vmax.f32 %v5432_v49, 0.0  ;;  %v5524_v51 = vmax.f32 %v5332_v15, 0.0 }
 0xc9e   : > { %v5483_v20 = vpop.f32.mrf.mxu0  ;;  %v5525_v7 = vmax.f32 %v5381_v8, 0.0 }
 0xc9f   : > { %v5434_v29 = vpop.f32.mrf.mxu2  ;;  %v5527_v32 = vmax.f32 %v5479_v28, 0.0  ;;  %v5484_v60 = vadd.f32 %v5483_v20, %v11182_v55 }
 0xca1   : > { %v5336_v47 = vpop.f32.mrf.mxu1  ;;  %v5535_v49 = vmax.f32 %v5484_v60, 0.0 }
 0xca2   : > { %v5337_v50 = vadd.f32 %v5336_v47, %v11178_v61 }
 0xca4   : > { %v5385_v17 = vpop.f32.mrf.mxu3 }
 0xca5   : > { %v5386_v37 = vadd.f32 %v5385_v17, %v11180_v46 }
 0xca6   : > { %5869 = vmatmul.bf16.vlgmr.msra.gmra.mxu1 %v5572_v40  ;;  %5918 = vmatmul.bf16.vlgmr.msra.gmra.mxu3 %v5573_v35  ;;  %v5430_v40 = vadd.f32 %v5429_v43, %v11184_v38  ;;  %v5528_v35 = vmax.f32 %v5334_v2, 0.0  ;;  %v5485_v30 = vpop.f32.mrf.mxu0 }
 0xca7   : > { %5967 = vmatmul.bf16.vlgmr.msra.gmra.mxu2 %v5574_v41  ;;  %6016 = vmatmul.bf16.vlgmr.msrb.gmra.mxu0 %v5575_v26  ;;  %v5529_v26 = vmax.f32 %v5383_v19, 0.0  ;;  %v5531_v41 = vmax.f32 %v5481_v14, 0.0  ;;  %v5436_v57 = vpop.f32.mrf.mxu2  ;;  %v5486_v31 = vadd.f32 %v5485_v30, %v11182_v55  ;;  %v5532_v19 = vmax.f32 %v5337_v50, 0.0 }
 0xca8   : > { %v5526_v63 = vmax.f32 %v5430_v40, 0.0  ;;  %v5580_v33 = vpack.c.bf16 %v5528_v35, %v5524_v51  ;;  %v5437_v3 = vadd.f32 %v5436_v57, %v11184_v38  ;;  %v5533_v14 = vmax.f32 %v5386_v37, 0.0 }
 0xca9   : > { %v5581_v54 = vpack.c.bf16 %v5529_v26, %v5525_v7  ;;  %v5338_v34 = vpop.f32.mrf.mxu1  ;;  %v5583_v23 = vpack.c.bf16 %v5531_v41, %v5527_v32 }
 0xcaa   : > { %v5582_v25 = vpack.c.bf16 %v5530_v16, %v5526_v63  ;;  %v5339_v62 = vadd.f32 %v5338_v34, %v11178_v61  ;;  %v5538_v2 = vmax.f32 %v5437_v3, 0.0 }
 0xcac   : > { %v5387_v4 = vpop.f32.mrf.mxu3 }
 0xcad   : > { %v5388_v43 = vadd.f32 %v5387_v4, %v11180_v46 }
 0xcae   : > { %v5488_v39 = vpop.f32.mrf.mxu0 }
 0xcaf   : > { %v5439_v12 = vpop.f32.mrf.mxu2  ;;  %v5489_v63 = vadd.f32 %v5488_v39, %v11182_v55 }
 0xcb1   : > { %v5341_v0 = vpop.f32.mrf.mxu1  ;;  %v5543_v3 = vmax.f32 %v5489_v63, 0.0 }
 0xcb2   : > { %v5342_v7 = vadd.f32 %v5341_v0, %v11178_v61 }
 0xcb4   : > { %v5390_v11 = vpop.f32.mrf.mxu3 }
 0xcb5   : > { %v5391_v32 = vadd.f32 %v5390_v11, %v11180_v46 }
 0xcb6   : > { %5874 = vmatmul.bf16.gmra.mxu1 %v5576_v21  ;;  %5923 = vmatmul.bf16.gmra.mxu3 %v5577_v45  ;;  %v5435_v21 = vadd.f32 %v5434_v29, %v11184_v38  ;;  %v5536_v45 = vmax.f32 %v5339_v62, 0.0  ;;  %v5490_v20 = vpop.f32.mrf.mxu0 }
 0xcb7   : > { %5972 = vmatmul.bf16.gmra.mxu2 %v5578_v6  ;;  %6021 = vmatmul.bf16.gmra.mxu0 %v5579_v42  ;;  %v5537_v6 = vmax.f32 %v5388_v43, 0.0  ;;  %v5539_v42 = vmax.f32 %v5486_v31, 0.0  ;;  %v5441_v29 = vpop.f32.mrf.mxu2  ;;  %v5491_v16 = vadd.f32 %v5490_v20, %v11182_v55  ;;  %v5540_v43 = vmax.f32 %v5342_v7, 0.0 }
 0xcb8   : > { %v5534_v15 = vmax.f32 %v5435_v21, 0.0  ;;  %v5584_v8 = vpack.c.bf16 %v5536_v45, %v5532_v19  ;;  %v5442_v51 = vadd.f32 %v5441_v29, %v11184_v38  ;;  %v5541_v31 = vmax.f32 %v5391_v32, 0.0 }
 0xcb9   : > { %v5585_v28 = vpack.c.bf16 %v5537_v6, %v5533_v14  ;;  %v5587_v47 = vpack.c.bf16 %v5539_v42, %v5535_v49  ;;  %v5343_v17 = vpop.f32.mrf.mxu1  ;;  %v5547_v57 = vmax.f32 %v5491_v16, 0.0 }
 0xcba   : > { %v5586_v40 = vpack.c.bf16 %v5538_v2, %v5534_v15  ;;  %v5344_v26 = vadd.f32 %v5343_v17, %v11178_v61  ;;  %v5546_v62 = vmax.f32 %v5442_v51, 0.0 }
 0xcbb   : > { %v5591_v60 = vpack.c.bf16 %v5547_v57, %v5543_v3 }
 0xcbc   : > { %v5392_v35 = vpop.f32.mrf.mxu3  ;;  %v5544_v4 = vmax.f32 %v5344_v26, 0.0 }
 0xcbd   : > { %v5393_v41 = vadd.f32 %v5392_v35, %v11180_v46 }
 0xcbe   : > { %v5588_v37 = vpack.c.bf16 %v5544_v4, %v5540_v43 }
 0xcbf   : > { %v5444_v30 = vpop.f32.mrf.mxu2 }
 0xcc4   : > { %v5395_v34 = vpop.f32.mrf.mxu3 }
 0xcc5   : > { %v5396_v49 = vadd.f32 %v5395_v34, %v11180_v46 }
 0xcc6   : > { %5879 = vmatmul.bf16.gmra.mxu1 %v5580_v33  ;;  %5928 = vmatmul.bf16.gmra.mxu3 %v5581_v54  ;;  %v5440_v33 = vadd.f32 %v5439_v12, %v11184_v38  ;;  %v5346_v54 = vpop.f32.mrf.mxu1 }
 0xcc7   : > { %5977 = vmatmul.bf16.gmra.mxu2 %v5582_v25  ;;  %6026 = vmatmul.bf16.gmra.mxu0 %v5583_v23  ;;  %v5545_v25 = vmax.f32 %v5393_v41, 0.0  ;;  %v5493_v23 = vpop.f32.mrf.mxu0  ;;  %v5446_v45 = vpop.f32.mrf.mxu2  ;;  %v5347_v14 = vadd.f32 %v5346_v54, %v11178_v61  ;;  %v5549_v20 = vmax.f32 %v5396_v49, 0.0 }
 0xcc8   : > { %v5542_v50 = vmax.f32 %v5440_v33, 0.0  ;;  %v5447_v19 = vadd.f32 %v5446_v45, %v11184_v38  ;;  %v5494_v15 = vadd.f32 %v5493_v23, %v11182_v55 }
 0xcc9   : > { %v5589_v0 = vpack.c.bf16 %v5545_v25, %v5541_v31  ;;  %v5548_v35 = vmax.f32 %v5347_v14, 0.0 }
 0xcca   : > { %v5590_v11 = vpack.c.bf16 %v5546_v62, %v5542_v50  ;;  %v5554_v17 = vmax.f32 %v5447_v19, 0.0  ;;  %v5551_v29 = vmax.f32 %v5494_v15, 0.0 }
 0xccc   : > { %v5397_v12 = vpop.f32.mrf.mxu3 }
 0xccd   : > { %v5398_v42 = vadd.f32 %v5397_v12, %v11180_v46 }
 0xcce   : > { %v5348_v39 = vpop.f32.mrf.mxu1 }
 0xccf   : > { %v5495_v21 = vpop.f32.mrf.mxu0  ;;  %v5349_v6 = vadd.f32 %v5348_v39, %v11178_v61 }
 0xcd0   : > { %v5496_v2 = vadd.f32 %v5495_v21, %v11182_v55 }
 0xcd6   : > { %5884 = vmatmul.bf16.gmra.mxu1 %v5584_v8  ;;  %5933 = vmatmul.bf16.gmra.mxu3 %v5585_v28  ;;  %v5445_v8 = vadd.f32 %v5444_v30, %v11184_v38  ;;  %v5552_v28 = vmax.f32 %v5349_v6, 0.0 }
 0xcd7   : > { %5982 = vmatmul.bf16.gmra.mxu2 %v5586_v40  ;;  %6031 = vmatmul.bf16.gmra.mxu0 %v5587_v47  ;;  %v5553_v40 = vmax.f32 %v5398_v42, 0.0  ;;  %v5555_v47 = vmax.f32 %v5496_v2, 0.0 }
 0xcd8   : > { %v5550_v26 = vmax.f32 %v5445_v8, 0.0  ;;  %v5592_v41 = vpack.c.bf16 %v5552_v28, %v5548_v35 }
 0xcd9   : > { %v5593_v16 = vpack.c.bf16 %v5553_v40, %v5549_v20  ;;  %v5595_v51 = vpack.c.bf16 %v5555_v47, %v5551_v29 }
 0xcda   : > { %v5594_v7 = vpack.c.bf16 %v5554_v17, %v5550_v26 }
 0xce6   : > { %5889 = vmatmul.bf16.gmra.mxu1 %v5588_v37  ;;  %5938 = vmatmul.bf16.gmra.mxu3 %v5589_v0 }
 0xce7   : > { %5987 = vmatmul.bf16.gmra.mxu2 %v5590_v11  ;;  %6036 = vmatmul.bf16.gmra.mxu0 %v5591_v60 }
 0xcf6   : > { %5894 = vmatmul.bf16.gmra.mxu1 %v5592_v41  ;;  %5943 = vmatmul.bf16.gmra.mxu3 %v5593_v16 }
 0xcf7   : > { %5992 = vmatmul.bf16.gmra.mxu2 %v5594_v7  ;;  %6041 = vmatmul.bf16.gmra.mxu0 %v5595_v51 }
 0xd01   : > { %v5351_v32 = vpop.f32.mrf.mxu1 }
 0xd02   : > { %v5498_v63 = vpop.f32.mrf.mxu0  ;;  %v5352_v54 = vadd.f32 %v5351_v32, %v11178_v61 }
 0xd03   : > { %v5499_v4 = vadd.f32 %v5498_v63, %v11182_v55 }
 0xd04   : > { %v5556_v62 = vmax.f32 %v5352_v54, 0.0 }
 0xd05   : > { %v5559_v31 = vmax.f32 %v5499_v4, 0.0 }
 0xd07   : > { %v5400_v33 = vpop.f32.mrf.mxu3 }
 0xd08   : > { %v5449_v34 = vpop.f32.mrf.mxu2  ;;  %v5401_v50 = vadd.f32 %v5400_v33, %v11180_v46 }
 0xd09   : > { %v5353_v25 = vpop.f32.mrf.mxu1  ;;  %v5450_v0 = vadd.f32 %v5449_v34, %v11184_v38 }
 0xd0a   : > { %v5354_v23 = vadd.f32 %v5353_v25, %v11178_v61  ;;  %v5500_v30 = vpop.f32.mrf.mxu0  ;;  %v5557_v45 = vmax.f32 %v5401_v50, 0.0 }
 0xd0b   : > { %v5501_v57 = vadd.f32 %v5500_v30, %v11182_v55  ;;  %v5558_v42 = vmax.f32 %v5450_v0, 0.0  ;;  %v11251_v30 = vld [vmem:[%s8621_s20] sm:$0x3f] }
 0xd0c   : > { %v5560_v43 = vmax.f32 %v5354_v23, 0.0 }
 0xd0d   : > { %v5563_v3 = vmax.f32 %v5501_v57, 0.0  ;;  %v11254_v57 = vperm.slane %v11251_v30, 3 }
 0xd0e   : > { %v5596_v37 = vpack.c.bf16 %v5560_v43, %v5556_v62 }
 0xd0f   : > { %v5599_v60 = vpack.c.bf16 %v5563_v3, %v5559_v31  ;;  %v5402_v11 = vpop.f32.mrf.mxu3 }
 0xd10   : > { %v5403_v39 = vadd.f32 %v5402_v11, %v11180_v46  ;;  %v5451_v12 = vpop.f32.mrf.mxu2  ;;  %5899 = vmatmul.bf16.gmra.mxu1 %v5596_v37 }
 0xd11   : > { %v5452_v21 = vadd.f32 %v5451_v12, %v11184_v38  ;;  %6046 = vmatmul.bf16.gmra.mxu0 %v5599_v60 }
 0xd12   : > { %v5561_v6 = vmax.f32 %v5403_v39, 0.0 }
 0xd13   : > { %v5562_v2 = vmax.f32 %v5452_v21, 0.0  ;;  %v5356_v19 = vpop.f32.mrf.mxu1 }
 0xd14   : > { %v5597_v14 = vpack.c.bf16 %v5561_v6, %v5557_v45  ;;  %v5503_v49 = vpop.f32.mrf.mxu0  ;;  %v5357_v28 = vadd.f32 %v5356_v19, %v11178_v61 }
 0xd15   : > { %v5598_v15 = vpack.c.bf16 %v5562_v2, %v5558_v42  ;;  %v5504_v47 = vadd.f32 %v5503_v49, %v11182_v55 }
 0xd16   : > { %5948 = vmatmul.bf16.gmra.mxu3 %v5597_v14  ;;  %v5564_v26 = vmax.f32 %v5357_v28, 0.0 }
 0xd17   : > { %5997 = vmatmul.bf16.gmra.mxu2 %v5598_v15  ;;  %v5567_v16 = vmax.f32 %v5504_v47, 0.0 }
 0xd19   : > { %v5405_v8 = vpop.f32.mrf.mxu3 }
 0xd1a   : > { %v5454_v40 = vpop.f32.mrf.mxu2  ;;  %v5406_v7 = vadd.f32 %v5405_v8, %v11180_v46 }
 0xd1b   : > { %v5358_v17 = vpop.f32.mrf.mxu1  ;;  %v5455_v63 = vadd.f32 %v5454_v40, %v11184_v38 }
 0xd1c   : > { %v5359_v35 = vadd.f32 %v5358_v17, %v11178_v61  ;;  %v5505_v20 = vpop.f32.mrf.mxu0  ;;  %v5565_v25 = vmax.f32 %v5406_v7, 0.0 }
 0xd1d   : > { %v5506_v29 = vadd.f32 %v5505_v20, %v11182_v55  ;;  %v5566_v43 = vmax.f32 %v5455_v63, 0.0 }
 0xd1e   : > { %v5568_v41 = vmax.f32 %v5359_v35, 0.0 }
 0xd1f   : > { %v5571_v51 = vmax.f32 %v5506_v29, 0.0 }
 0xd20   : > { %v5600_v32 = vpack.c.bf16 %v5568_v41, %v5564_v26 }
 0xd21   : > { %v5603_v33 = vpack.c.bf16 %v5571_v51, %v5567_v16  ;;  %v5407_v54 = vpop.f32.mrf.mxu3 }
 0xd22   : > { %v5408_v34 = vadd.f32 %v5407_v54, %v11180_v46  ;;  %v5456_v4 = vpop.f32.mrf.mxu2  ;;  %5904 = vmatmul.bf16.gmra.mxu1 %v5600_v32 }
 0xd23   : > { %v5457_v61 = vadd.f32 %v5456_v4, %v11184_v38  ;;  %6051 = vmatmul.bf16.gmra.mxu0 %v5603_v33  ;;  %v5870_v55 = vpop.f32.mrf.mxu1 }
 0xd24   : > { %v5569_v23 = vmax.f32 %v5408_v34, 0.0  ;;  %v6017_v62 = vpop.f32.mrf.mxu0  ;;  %v5871_v46 = vadd.f32 %v5870_v55, %v11254_v57 }
 0xd25   : > { %v5570_v31 = vmax.f32 %v5457_v61, 0.0 }
 0xd26   : > { %v5601_v3 = vpack.c.bf16 %v5569_v23, %v5565_v25 }
 0xd27   : > { %v5602_v50 = vpack.c.bf16 %v5570_v31, %v5566_v43 }
 0xd28   : > { %5953 = vmatmul.bf16.gmra.mxu3 %v5601_v3 }
 0xd29   : > { %6002 = vmatmul.bf16.gmra.mxu2 %v5602_v50  ;;  %v5919_v37 = vpop.f32.mrf.mxu3 }
 0xd2a   : > { %v5920_v38 = vadd.f32 %v5919_v37, %v5871_v46  ;;  %v5968_v0 = vpop.f32.mrf.mxu2 }
 0xd2b   : > { %v5872_v60 = vpop.f32.mrf.mxu1 }
 0xd2c   : > { %v5969_v11 = vadd.f32 %v5968_v0, %v5920_v38  ;;  %v6019_v39 = vpop.f32.mrf.mxu0  ;;  %v5873_v21 = vadd.f32 %v5872_v60, %v11254_v57 }
 0xd2e   : > { %v6018_v12 = vadd.f32 %v6017_v62, %v5969_v11 }
 0xd30   : > { %v11259_v45 = vadd.f32 %v6018_v12, %v10990_v53 }
 0xd31   : > { %v5921_v6 = vpop.f32.mrf.mxu3 }
 0xd32   : > { %v5922_v42 = vadd.f32 %v5921_v6, %v5873_v21  ;;  %v5970_v2 = vpop.f32.mrf.mxu2  ;;  %6073 = vadd.xlane.f32.xlu1 %v11259_v45 }
 0xd33   : > { %v5875_v19 = vpop.f32.mrf.mxu1 }
 0xd34   : > { %v5971_v14 = vadd.f32 %v5970_v2, %v5922_v42  ;;  %v6022_v49 = vpop.f32.mrf.mxu0  ;;  %v5876_v8 = vadd.f32 %v5875_v19, %v11254_v57 }
 0xd36   : > { %v6020_v15 = vadd.f32 %v6019_v39, %v5971_v14 }
 0xd38   : > { %v11264_v28 = vadd.f32 %v6020_v15, %v10993_v52 }
 0xd39   : > { %v5924_v40 = vpop.f32.mrf.mxu3 }
 0xd3a   : > { %v5925_v47 = vadd.f32 %v5924_v40, %v5876_v8  ;;  %v5973_v17 = vpop.f32.mrf.mxu2  ;;  %6075 = vadd.xlane.f32.xlu2 %v11264_v28 }
 0xd3b   : > { %v5877_v53 = vpop.f32.mrf.mxu1 }
 0xd3c   : > { %v5974_v35 = vadd.f32 %v5973_v17, %v5925_v47  ;;  %v6024_v20 = vpop.f32.mrf.mxu0  ;;  %v5878_v26 = vadd.f32 %v5877_v53, %v11254_v57 }
 0xd3e   : > { %v6023_v29 = vadd.f32 %v6022_v49, %v5974_v35 }
 0xd40   : > { %v11269_v41 = vadd.f32 %v6023_v29, %v11027_v10 }
 0xd41   : > { %v5926_v16 = vpop.f32.mrf.mxu3 }
 0xd42   : > { %v5927_v51 = vadd.f32 %v5926_v16, %v5878_v26  ;;  %v5975_v7 = vpop.f32.mrf.mxu2  ;;  %6077 = vadd.xlane.f32.xlu0 %v11269_v41 }
 0xd43   : > { %v5880_v52 = vpop.f32.mrf.mxu1 }
 0xd44   : > { %v5976_v32 = vadd.f32 %v5975_v7, %v5927_v51  ;;  %v6027_v63 = vpop.f32.mrf.mxu0  ;;  %v5881_v54 = vadd.f32 %v5880_v52, %v11254_v57 }
 0xd46   : > { %v6025_v33 = vadd.f32 %v6024_v20, %v5976_v32 }
 0xd48   : > { %v11274_v34 = vadd.f32 %v6025_v33, %v11030_v24 }
 0xd49   : > { %v5929_v4 = vpop.f32.mrf.mxu3 }
 0xd4a   : > { %v5930_v61 = vadd.f32 %v5929_v4, %v5881_v54  ;;  %v5978_v55 = vpop.f32.mrf.mxu2  ;;  %6079 = vadd.xlane.f32.xlu1 %v11274_v34 }
 0xd4b   : > { %v5882_v10 = vpop.f32.mrf.mxu1 }
 0xd4c   : > { %v5979_v25 = vadd.f32 %v5978_v55, %v5930_v61  ;;  %v6029_v23 = vpop.f32.mrf.mxu0  ;;  %v5883_v43 = vadd.f32 %v5882_v10, %v11254_v57 }
 0xd4e   : > { %v6028_v62 = vadd.f32 %v6027_v63, %v5979_v25 }
 0xd50   : > { %v11279_v31 = vadd.f32 %v6028_v62, %v11045_v58 }
 0xd51   : > { %v5931_v3 = vpop.f32.mrf.mxu3 }
 0xd52   : > { %v5932_v50 = vadd.f32 %v5931_v3, %v5883_v43  ;;  %v5980_v46 = vpop.f32.mrf.mxu2  ;;  %6081 = vadd.xlane.f32.xlu2 %v11279_v31 }
 0xd53   : > { %v5885_v24 = vpop.f32.mrf.mxu1 }
 0xd54   : > { %v5981_v37 = vadd.f32 %v5980_v46, %v5932_v50  ;;  %v6032_v38 = vpop.f32.mrf.mxu0  ;;  %v5886_v60 = vadd.f32 %v5885_v24, %v11254_v57 }
 0xd56   : > { %v6030_v0 = vadd.f32 %v6029_v23, %v5981_v37 }
 0xd58   : > { %v11284_v11 = vadd.f32 %v6030_v0, %v11048_v9 }
 0xd59   : > { %v5934_v39 = vpop.f32.mrf.mxu3 }
 0xd5a   : > { %v5935_v12 = vadd.f32 %v5934_v39, %v5886_v60  ;;  %v5983_v21 = vpop.f32.mrf.mxu2  ;;  %6083 = vadd.xlane.f32.xlu0 %v11284_v11 }
 0xd5b   : > { %v5887_v58 = vpop.f32.mrf.mxu1 }
 0xd5c   : > { %v5984_v6 = vadd.f32 %v5983_v21, %v5935_v12  ;;  %v6034_v42 = vpop.f32.mrf.mxu0  ;;  %v5888_v19 = vadd.f32 %v5887_v58, %v11254_v57 }
 0xd5e   : > { %v6033_v2 = vadd.f32 %v6032_v38, %v5984_v6 }
 0xd60   : > { %v11289_v14 = vadd.f32 %v6033_v2, %v11078_v18 }
 0xd61   : > { %v5936_v49 = vpop.f32.mrf.mxu3 }
 0xd62   : > { %v5937_v15 = vadd.f32 %v5936_v49, %v5888_v19  ;;  %v5985_v8 = vpop.f32.mrf.mxu2  ;;  %6085 = vadd.xlane.f32.xlu1 %v11289_v14 }
 0xd63   : > { %v5890_v9 = vpop.f32.mrf.mxu1 }
 0xd64   : > { %v5986_v40 = vadd.f32 %v5985_v8, %v5937_v15  ;;  %v6037_v17 = vpop.f32.mrf.mxu0  ;;  %v5891_v53 = vadd.f32 %v5890_v9, %v11254_v57 }
 0xd66   : > { %v6035_v47 = vadd.f32 %v6034_v42, %v5986_v40 }
 0xd68   : > { %v11294_v35 = vadd.f32 %v6035_v47, %v11081_v56 }
 0xd69   : > { %v5939_v20 = vpop.f32.mrf.mxu3 }
 0xd6a   : > { %v5940_v29 = vadd.f32 %v5939_v20, %v5891_v53  ;;  %v5988_v26 = vpop.f32.mrf.mxu2  ;;  %6087 = vadd.xlane.f32.xlu2 %v11294_v35 }
 0xd6b   : > { %v5892_v18 = vpop.f32.mrf.mxu1 }
 0xd6c   : > { %v5989_v16 = vadd.f32 %v5988_v26, %v5940_v29  ;;  %v5893_v7 = vadd.f32 %v5892_v18, %v11254_v57  ;;  %v6039_v32 = vpop.f32.mrf.mxu0 }
 0xd6e   : > { %v6038_v51 = vadd.f32 %v6037_v17, %v5989_v16 }
 0xd70   : > { %v11299_v52 = vadd.f32 %v6038_v51, %v11095_v1 }
 0xd71   : > { %v5941_v63 = vpop.f32.mrf.mxu3 }
 0xd72   : > { %v5942_v33 = vadd.f32 %v5941_v63, %v5893_v7  ;;  %v5990_v54 = vpop.f32.mrf.mxu2  ;;  %6089 = vadd.xlane.f32.xlu0 %v11299_v52 }
 0xd73   : > { %v5895_v56 = vpop.f32.mrf.mxu1 }
 0xd74   : > { %v5991_v4 = vadd.f32 %v5990_v54, %v5942_v33  ;;  %v5896_v55 = vadd.f32 %v5895_v56, %v11254_v57  ;;  %v6042_v1 = vpop.f32.mrf.mxu0 }
 0xd76   : > { %v6040_v61 = vadd.f32 %v6039_v32, %v5991_v4 }
 0xd78   : > { %v11304_v10 = vadd.f32 %v6040_v61, %v11098_v27 }
 0xd79   : > { %v5944_v25 = vpop.f32.mrf.mxu3 }
 0xd7a   : > { %v5945_v23 = vadd.f32 %v5944_v25, %v5896_v55  ;;  %v5993_v62 = vpop.f32.mrf.mxu2  ;;  %6091 = vadd.xlane.f32.xlu1 %v11304_v10 }
 0xd7b   : > { %v5897_v3 = vpop.f32.mrf.mxu1 }
 0xd7c   : > { %v5994_v43 = vadd.f32 %v5993_v62, %v5945_v23  ;;  %v5898_v46 = vadd.f32 %v5897_v3, %v11254_v57  ;;  %v6044_v60 = vpop.f32.mrf.mxu0 }
 0xd7e   : > { %v6043_v50 = vadd.f32 %v6042_v1, %v5994_v43 }
 0xd80   : > { %v11309_v24 = vadd.f32 %v6043_v50, %v11116_v44 }
 0xd81   : > { %v5946_v37 = vpop.f32.mrf.mxu3 }
 0xd82   : > { %v5947_v38 = vadd.f32 %v5946_v37, %v5898_v46  ;;  %6093 = vadd.xlane.f32.xlu2 %v11309_v24  ;;  %v5995_v27 = vpop.f32.mrf.mxu2 }
 0xd84   : > { %v5996_v0 = vadd.f32 %v5995_v27, %v5947_v38 }
 0xd86   : > { %v6045_v39 = vadd.f32 %v6044_v60, %v5996_v0 }
 0xd88   : > { %v11313_v12 = vadd.f32 %v6045_v39, %v11119_v13 }
 0xd8a   : > { %6095 = vadd.xlane.f32.xlu0 %v11313_v12 }
 0xd8d   : > { %v5900_v21 = vpop.f32.mrf.mxu1 }
 0xd8e   : > { %v5901_v58 = vadd.f32 %v5900_v21, %v11254_v57  ;;  %v6047_v6 = vpop.f32.mrf.mxu0 }
 0xd95   : > { %v5902_v19 = vpop.f32.mrf.mxu1 }
 0xd96   : > { %v5903_v8 = vadd.f32 %v5902_v19, %v11254_v57  ;;  %v6049_v17 = vpop.f32.mrf.mxu0 }
 0xd99   : > { %v5949_v42 = vpop.f32.mrf.mxu3 }
 0xd9a   : > { %v5950_v44 = vadd.f32 %v5949_v42, %v5901_v58  ;;  %v5998_v2 = vpop.f32.mrf.mxu2 }
 0xd9c   : > { %v5999_v49 = vadd.f32 %v5998_v2, %v5950_v44 }
 0xd9e   : > { %v6048_v15 = vadd.f32 %v6047_v6, %v5999_v49 }
 0xd9f   : > { %v5905_v20 = vpop.f32.mrf.mxu1 }
 0xda0   : > { %v11319_v9 = vadd.f32 %v6048_v15, %v11157_v5  ;;  %v5906_v51 = vadd.f32 %v5905_v20, %v11254_v57  ;;  %v6052_v33 = vpop.f32.mrf.mxu0 }
 0xda1   : > { %v5951_v40 = vpop.f32.mrf.mxu3 }
 0xda2   : > { %v5952_v13 = vadd.f32 %v5951_v40, %v5903_v8  ;;  %v6000_v47 = vpop.f32.mrf.mxu2  ;;  %6097 = vadd.xlane.f32.xlu1 %v11319_v9 }
 0xda4   : > { %v6001_v53 = vadd.f32 %v6000_v47, %v5952_v13 }
 0xda5   : > { %v6074_v29 = vpop.xlane.xlu1 %6073 }
 0xda6   : > { %v6050_v26 = vadd.f32 %v6049_v17, %v6001_v53  ;;  %v6105_v18 = vmul.f32 %v6074_v29, %v10795_v48 }
 0xda7   : > { %v5907_v56 = vpop.f32.mrf.mxu1 }
 0xda8   : > { %v11324_v16 = vadd.f32 %v6050_v26, %v11160_v59  ;;  %v11329_v7 = vsub.f32 %v11259_v45, %v6105_v18  ;;  %v5908_v59 = vadd.f32 %v5907_v56, %v11254_v57  ;;  %v6054_v50 = vpop.f32.mrf.mxu0 }
 0xdaa   : > { %6099 = vadd.xlane.f32.xlu2 %v11324_v16  ;;  %v6137_v55 = vmul.f32 %v11329_v7, %v11329_v7 }
 0xdab   : > { %v5954_v5 = vpop.f32.mrf.mxu3 }
 0xdac   : > { %v5955_v32 = vadd.f32 %v5954_v5, %v5906_v51  ;;  %v6003_v63 = vpop.f32.mrf.mxu2 }
 0xdad   : > { %v6076_v4 = vpop.xlane.xlu2 %6075 }
 0xdae   : > { %v6004_v54 = vadd.f32 %v6003_v63, %v5955_v32  ;;  %v6106_v25 = vmul.f32 %v6076_v4, %v10795_v48 }
 0xdb0   : > { %v6053_v61 = vadd.f32 %v6052_v33, %v6004_v54  ;;  %v11340_v43 = vsub.f32 %v11264_v28, %v6106_v25 }
 0xdb2   : > { %v11336_v23 = vadd.f32 %v6053_v61, %v11170_v22  ;;  %6153 = vadd.xlane.f32.xlu2 %v6137_v55  ;;  %v6138_v38 = vmul.f32 %v11340_v43, %v11340_v43 }
 0xdb3   : > { %v5956_v45 = vpop.f32.mrf.mxu3 }
 0xdb4   : > { %v5957_v62 = vadd.f32 %v5956_v45, %v5908_v59  ;;  %6101 = vadd.xlane.f32.xlu0 %v11336_v23  ;;  %v6005_v1 = vpop.f32.mrf.mxu2 }
 0xdb5   : > { %v6078_v46 = vpop.xlane.xlu0 %6077 }
 0xdb6   : > { %v6006_v3 = vadd.f32 %v6005_v1, %v5957_v62  ;;  %v6107_v57 = vmul.f32 %v6078_v46, %v10795_v48 }
 0xdb8   : > { %v6055_v37 = vadd.f32 %v6054_v50, %v6006_v3  ;;  %v11350_v0 = vsub.f32 %v11269_v41, %v6107_v57 }
 0xdba   : > { %v11346_v22 = vadd.f32 %v6055_v37, %v11173_v36  ;;  %v6139_v21 = vmul.f32 %v11350_v0, %v11350_v0 }
 0xdbc   : > { %6155 = vadd.xlane.f32.xlu0 %v6138_v38  ;;  %6103 = vadd.xlane.f32.xlu1 %v11346_v22 }
 0xdbd   : > { %v6080_v27 = vpop.xlane.xlu1 %6079 }
 0xdbe   : > { %v6108_v28 = vmul.f32 %v6080_v27, %v10795_v48 }
 0xdc0   : > { %v11354_v60 = vsub.f32 %v11274_v34, %v6108_v28 }
 0xdc2   : > { %v6140_v39 = vmul.f32 %v11354_v60, %v11354_v60 }
 0xdc4   : > { %6159 = vadd.xlane.f32.xlu2 %v6140_v39  ;;  %6157 = vadd.xlane.f32.xlu1 %v6139_v21 }
 0xdc5   : > { %v6082_v36 = vpop.xlane.xlu2 %6081 }
 0xdc6   : > { %v6109_v58 = vmul.f32 %v6082_v36, %v10795_v48 }
 0xdc8   : > { %v11362_v6 = vsub.f32 %v11279_v31, %v6109_v58 }
 0xdca   : > { %v6141_v41 = vmul.f32 %v11362_v6, %v11362_v6 }
 0xdcc   : > { %6161 = vadd.xlane.f32.xlu0 %v6141_v41 }
 0xdcd   : > { %v6084_v34 = vpop.xlane.xlu0 %6083 }
 0xdce   : > { %v6110_v42 = vmul.f32 %v6084_v34, %v10795_v48 }
 0xdd0   : > { %v11368_v44 = vsub.f32 %v11284_v11, %v6110_v42 }
 0xdd2   : > { %v6142_v2 = vmul.f32 %v11368_v44, %v11368_v44 }
 0xdd4   : > { %6163 = vadd.xlane.f32.xlu1 %v6142_v2 }
 0xdd5   : > { %v6086_v19 = vpop.xlane.xlu1 %6085 }
 0xdd6   : > { %v6111_v49 = vmul.f32 %v6086_v19, %v10795_v48 }
 0xdd8   : > { %v11374_v31 = vsub.f32 %v11289_v14, %v6111_v49 }
 0xdda   : > { %v6143_v15 = vmul.f32 %v11374_v31, %v11374_v31 }
 0xddc   : > { %6165 = vadd.xlane.f32.xlu2 %v6143_v15 }
 0xddd   : > { %v6088_v8 = vpop.xlane.xlu2 %6087 }
 0xdde   : > { %v6112_v40 = vmul.f32 %v6088_v8, %v10795_v48 }
 0xde0   : > { %v11380_v11 = vsub.f32 %v11294_v35, %v6112_v40 }
 0xde2   : > { %v6144_v13 = vmul.f32 %v11380_v11, %v11380_v11 }
 0xde4   : > { %6167 = vadd.xlane.f32.xlu0 %v6144_v13 }
 0xde5   : > { %v6090_v47 = vpop.xlane.xlu0 %6089 }
 0xde6   : > { %v6113_v17 = vmul.f32 %v6090_v47, %v10795_v48  ;;  %v11440_v47 = vperm.slane %v11251_v30, 5 }
 0xde8   : > { %v11386_v14 = vsub.f32 %v11299_v52, %v6113_v17 }
 0xdea   : > { %v6145_v53 = vmul.f32 %v11386_v14, %v11386_v14 }
 0xdec   : > { %6169 = vadd.xlane.f32.xlu1 %v6145_v53 }
 0xded   : > { %v6092_v20 = vpop.xlane.xlu1 %6091 }
 0xdee   : > { %v6114_v29 = vmul.f32 %v6092_v20, %v10795_v48 }
 0xdf0   : > { %v11392_v35 = vsub.f32 %v11304_v10, %v6114_v29 }
 0xdf2   : > { %v6146_v26 = vmul.f32 %v11392_v35, %v11392_v35 }
 0xdf4   : > { %6171 = vadd.xlane.f32.xlu2 %v6146_v26 }
 0xdf5   : > { %v6094_v18 = vpop.xlane.xlu2 %6093 }
 0xdf6   : > { %v6115_v51 = vmul.f32 %v6094_v18, %v10795_v48 }
 0xdf8   : > { %v11398_v52 = vsub.f32 %v11309_v24, %v6115_v51 }
 0xdfa   : > { %v6147_v5 = vmul.f32 %v11398_v52, %v11398_v52 }
 0xdfc   : > { %6173 = vadd.xlane.f32.xlu0 %v6147_v5 }
 0xdfd   : > { %v6096_v32 = vpop.xlane.xlu0 %6095 }
 0xdfe   : > { %v6116_v63 = vmul.f32 %v6096_v32, %v10795_v48 }
 0xe00   : > { %v11404_v10 = vsub.f32 %v11313_v12, %v6116_v63 }
 0xe02   : > { %v6148_v33 = vmul.f32 %v11404_v10, %v11404_v10 }
 0xe04   : > { %6175 = vadd.xlane.f32.xlu1 %v6148_v33 }
 0xe15   : > { %v6098_v54 = vpop.xlane.xlu1 %6097 }
 0xe16   : > { %v6117_v56 = vmul.f32 %v6098_v54, %v10795_v48 }
 0xe18   : > { %v11410_v24 = vsub.f32 %v11319_v9, %v6117_v56 }
 0xe1a   : > { %v6149_v4 = vmul.f32 %v11410_v24, %v11410_v24 }
 0xe1c   : > { %6177 = vadd.xlane.f32.xlu2 %v6149_v4 }
 0xe1d   : > { %v6100_v61 = vpop.xlane.xlu2 %6099 }
 0xe1e   : > { %v6118_v55 = vmul.f32 %v6100_v61, %v10795_v48 }
 0xe20   : > { %v11416_v12 = vsub.f32 %v11324_v16, %v6118_v55 }
 0xe22   : > { %v6150_v59 = vmul.f32 %v11416_v12, %v11416_v12 }
 0xe24   : > { %6179 = vadd.xlane.f32.xlu0 %v6150_v59 }
 0xe25   : > { %v6154_v25 = vpop.xlane.xlu2 %6153 }
 0xe26   : > { %v6185_v45 = vmul.f32 %v6154_v25, %v10795_v48 }
 0xe27   : > { %v6102_v62 = vpop.xlane.xlu0 %6101 }
 0xe28   : > { %v6119_v9 = vmul.f32 %v6102_v62, %v10795_v48  ;;  %v6201_v1 = vadd.f32 1e-05, %v6185_v45 }
 0xe2a   : > { %v11423_v3 = vsub.f32 %v11336_v23, %v6119_v9  ;;  %8131 = vrsqrt.f32 %v6201_v1  ;;  %vm6223_vm6 = vweird.f32 %v6201_v1 }
 0xe2c   : > { %v6151_v50 = vmul.f32 %v11423_v3, %v11423_v3 }
 0xe2e   : > { %6181 = vadd.xlane.f32.xlu1 %v6151_v50 }
 0xe2f   : > { %v6156_v16 = vpop.xlane.xlu0 %6155  ;;  %v6104_v46 = vpop.xlane.xlu1 %6103 }
 0xe30   : > { %v8132_v37 = vpop.eup %8131  ;;  %v6186_v57 = vmul.f32 %v6156_v16, %v10795_v48  ;;  %v6120_v38 = vmul.f32 %v6104_v46, %v10795_v48 }
 0xe31   : > { %v6218_v27 = vmul.f32 %v8132_v37, %v6201_v1  ;;  %vm6224_vm0 = vweird.f32 %v8132_v37 }
 0xe32   : > { %v6202_v28 = vadd.f32 1e-05, %v6186_v57  ;;  %v11430_v39 = vsub.f32 %v11346_v22, %v6120_v38  ;;  %v11437_v22 = vperm.slane %v11251_v30, 4  ;;  %vm6225_vm7 = vmor %vm6223_vm6, %vm6224_vm0 }
 0xe33   : > { %v6219_v21 = vmul.f32 %v8132_v37, %v6218_v27 }
 0xe34   : > { %8133 = vrsqrt.f32 %v6202_v28  ;;  %v6152_v23 = vmul.f32 %v11430_v39, %v11430_v39  ;;  %vm6233_vm9 = vweird.f32 %v6202_v28 }
 0xe35   : > { %v6220_v36 = vmul.f32 0.5, %v6219_v21 }
 0xe36   : > { %6183 = vadd.xlane.f32.xlu2 %v6152_v23 }
 0xe37   : > { %v6221_v58 = vsub.f32 1.5, %v6220_v36  ;;  %v6160_v41 = vpop.xlane.xlu2 %6159  ;;  %v6158_v34 = vpop.xlane.xlu1 %6157 }
 0xe38   : > { %v6188_v42 = vmul.f32 %v6160_v41, %v10795_v48  ;;  %v6187_v2 = vmul.f32 %v6158_v34, %v10795_v48 }
 0xe39   : > { %v6222_v19 = vmul.f32 %v8132_v37, %v6221_v58 }
 0xe3a   : > { %v8134_v49 = vpop.eup %8133  ;;  %v6204_v15 = vadd.f32 1e-05, %v6188_v42  ;;  %v6203_v8 = vadd.f32 1e-05, %v6187_v2 }
 0xe3b   : > { %v6226_v40 = vsel %vm6225_vm7, %v8132_v37, %v6222_v19  ;;  %v6228_v13 = vmul.f32 %v8134_v49, %v6202_v28  ;;  %vm6234_vm8 = vweird.f32 %v8134_v49 }
 0xe3c   : > { %v6377_v17 = vmul.f32 %v6226_v40, %v11329_v7  ;;  %8135 = vrsqrt.f32 %v6204_v15  ;;  %vm6235_vm10 = vmor %vm6233_vm9, %vm6234_vm8  ;;  %vm6253_vm13 = vweird.f32 %v6204_v15  ;;  %vm6243_vm2 = vweird.f32 %v6203_v8 }
 0xe3d   : > { %v6229_v53 = vmul.f32 %v8134_v49, %v6228_v13  ;;  %8137 = vrsqrt.f32 %v6203_v8 }
 0xe3e   : > { %v6394_v20 = vmul.f32 %v11437_v22, %v6377_v17 }
 0xe3f   : > { %v6230_v29 = vmul.f32 0.5, %v6229_v53  ;;  %v6162_v26 = vpop.xlane.xlu0 %6161 }
 0xe40   : > { %v11445_v18 = vadd.f32 %v11440_v47, %v6394_v20  ;;  %v6189_v51 = vmul.f32 %v6162_v26, %v10795_v48 }
 0xe41   : > { %v6231_v5 = vsub.f32 1.5, %v6230_v29 }
 0xe42   : > { %v8136_v32 = vpop.eup %8135  ;;  %6427 = vst [vmem:[#allocation2 + $0x30] sm:$0xff] %v11445_v18  ;;  %v6205_v30 = vadd.f32 1e-05, %v6189_v51 }
 0xe43   : > { %v8138_v63 = vpop.eup %8137  ;;  %v6232_v7 = vmul.f32 %v8134_v49, %v6231_v5  ;;  %v6248_v33 = vmul.f32 %v8136_v32, %v6204_v15  ;;  %vm6254_vm11 = vweird.f32 %v8136_v32 }
 0xe44   : > { %v6238_v54 = vmul.f32 %v8138_v63, %v6203_v8  ;;  %8139 = vrsqrt.f32 %v6205_v30  ;;  %vm6244_vm12 = vweird.f32 %v8138_v63  ;;  %vm6255_vm14 = vmor %vm6253_vm13, %vm6254_vm11  ;;  %vm6263_vm4 = vweird.f32 %v6205_v30 }
 0xe45   : > { %v6236_v56 = vsel %vm6235_vm10, %v8134_v49, %v6232_v7  ;;  %v6249_v4 = vmul.f32 %v8136_v32, %v6248_v33  ;;  %vm6245_vm3 = vmor %vm6243_vm2, %vm6244_vm12 }
 0xe46   : > { %v6378_v61 = vmul.f32 %v6236_v56, %v11340_v43  ;;  %v6239_v55 = vmul.f32 %v8138_v63, %v6238_v54 }
 0xe47   : > { %v6250_v59 = vmul.f32 0.5, %v6249_v4  ;;  %v6164_v25 = vpop.xlane.xlu1 %6163 }
 0xe48   : > { %v6395_v45 = vmul.f32 %v11437_v22, %v6378_v61  ;;  %v6240_v62 = vmul.f32 0.5, %v6239_v55  ;;  %v6190_v9 = vmul.f32 %v6164_v25, %v10795_v48 }
 0xe49   : > { %v6251_v1 = vsub.f32 1.5, %v6250_v59 }
 0xe4a   : > { %v8140_v50 = vpop.eup %8139  ;;  %v11453_v16 = vadd.f32 %v11440_v47, %v6395_v45  ;;  %v6241_v46 = vsub.f32 1.5, %v6240_v62  ;;  %v6206_v37 = vadd.f32 1e-05, %v6190_v9 }
 0xe4b   : > { %v6252_v57 = vmul.f32 %v8136_v32, %v6251_v1  ;;  %v6258_v43 = vmul.f32 %v8140_v50, %v6205_v30  ;;  %vm6264_vm15 = vweird.f32 %v8140_v50 }
 0xe4c   : > { %6428 = vst [vmem:[#allocation2] sm:$0xff] %v11453_v16  ;;  %v6242_v38 = vmul.f32 %v8138_v63, %v6241_v46  ;;  %8141 = vrsqrt.f32 %v6206_v37  ;;  %vm6265_vm5 = vmor %vm6263_vm4, %vm6264_vm15  ;;  %vm6273_vm0 = vweird.f32 %v6206_v37 }
 0xe4d   : > { %v6256_v27 = vsel %vm6255_vm14, %v8136_v32, %v6252_v57  ;;  %v6259_v28 = vmul.f32 %v8140_v50, %v6258_v43 }
 0xe4e   : > { %v6380_v21 = vmul.f32 %v6256_v27, %v11354_v60  ;;  %v6246_v23 = vsel %vm6245_vm3, %v8138_v63, %v6242_v38 }
 0xe4f   : > { %v6379_v36 = vmul.f32 %v6246_v23, %v11350_v0  ;;  %v6260_v58 = vmul.f32 0.5, %v6259_v28  ;;  %v6166_v41 = vpop.xlane.xlu2 %6165 }
 0xe50   : > { %v6397_v34 = vmul.f32 %v11437_v22, %v6380_v21  ;;  %v6191_v42 = vmul.f32 %v6166_v41, %v10795_v48 }
 0xe51   : > { %v6396_v2 = vmul.f32 %v11437_v22, %v6379_v36  ;;  %v6261_v19 = vsub.f32 1.5, %v6260_v58 }
 0xe52   : > { %v8142_v49 = vpop.eup %8141  ;;  %v11462_v15 = vadd.f32 %v11440_v47, %v6397_v34  ;;  %v6207_v8 = vadd.f32 1e-05, %v6191_v42 }
 0xe53   : > { %v11465_v60 = vadd.f32 %v11440_v47, %v6396_v2  ;;  %v6262_v40 = vmul.f32 %v8140_v50, %v6261_v19  ;;  %v6268_v0 = vmul.f32 %v8142_v49, %v6206_v37  ;;  %vm6274_vm1 = vweird.f32 %v8142_v49 }
 0xe54   : > { %6430 = vst [vmem:[#allocation2 + $0x18] sm:$0xff] %v11462_v15  ;;  %8143 = vrsqrt.f32 %v6207_v8  ;;  %vm6275_vm6 = vmor %vm6273_vm0, %vm6274_vm1  ;;  %vm6283_vm8 = vweird.f32 %v6207_v8 }
 0xe55   : > { %6429 = vst [vmem:[#allocation2 + $0x58] sm:$0xff] %v11465_v60  ;;  %v6266_v13 = vsel %vm6265_vm5, %v8140_v50, %v6262_v40  ;;  %v6269_v17 = vmul.f32 %v8142_v49, %v6268_v0 }
 0xe56   : > { %v6381_v53 = vmul.f32 %v6266_v13, %v11362_v6 }
 0xe57   : > { %v6270_v20 = vmul.f32 0.5, %v6269_v17  ;;  %v6168_v29 = vpop.xlane.xlu0 %6167 }
 0xe58   : > { %v6398_v26 = vmul.f32 %v11437_v22, %v6381_v53  ;;  %v6192_v51 = vmul.f32 %v6168_v29, %v10795_v48 }
 0xe59   : > { %v6271_v5 = vsub.f32 1.5, %v6270_v20 }
 0xe5a   : > { %v8144_v32 = vpop.eup %8143  ;;  %v11473_v30 = vadd.f32 %v11440_v47, %v6398_v26  ;;  %v6208_v63 = vadd.f32 1e-05, %v6192_v51 }
 0xe5b   : > { %v6272_v7 = vmul.f32 %v8142_v49, %v6271_v5  ;;  %v6278_v33 = vmul.f32 %v8144_v32, %v6207_v8  ;;  %vm6284_vm7 = vweird.f32 %v8144_v32 }
 0xe5c   : > { %6431 = vst [vmem:[#allocation2 + $0x50] sm:$0xff] %v11473_v30  ;;  %8145 = vrsqrt.f32 %v6208_v63  ;;  %vm6285_vm9 = vmor %vm6283_vm8, %vm6284_vm7  ;;  %vm6293_vm11 = vweird.f32 %v6208_v63 }
 0xe5d   : > { %v6276_v6 = vsel %vm6275_vm6, %v8142_v49, %v6272_v7  ;;  %v6279_v54 = vmul.f32 %v8144_v32, %v6278_v33 }
 0xe5e   : > { %v6382_v56 = vmul.f32 %v6276_v6, %v11368_v44 }
 0xe5f   : > { %v6280_v4 = vmul.f32 0.5, %v6279_v54  ;;  %v6170_v61 = vpop.xlane.xlu1 %6169 }
 0xe60   : > { %v6399_v55 = vmul.f32 %v11437_v22, %v6382_v56  ;;  %v6193_v59 = vmul.f32 %v6170_v61, %v10795_v48 }
 0xe61   : > { %v6281_v25 = vsub.f32 1.5, %v6280_v4 }
 0xe62   : > { %v8146_v45 = vpop.eup %8145  ;;  %v11480_v62 = vadd.f32 %v11440_v47, %v6399_v55  ;;  %v6209_v9 = vadd.f32 1e-05, %v6193_v59 }
 0xe63   : > { %v6282_v1 = vmul.f32 %v8144_v32, %v6281_v25  ;;  %v6288_v50 = vmul.f32 %v8146_v45, %v6208_v63  ;;  %vm6294_vm10 = vweird.f32 %v8146_v45 }
 0xe64   : > { %6432 = vst [vmem:[#allocation2 + $0x68] sm:$0xff] %v11480_v62  ;;  %8147 = vrsqrt.f32 %v6209_v9  ;;  %vm6295_vm12 = vmor %vm6293_vm11, %vm6294_vm10  ;;  %vm6303_vm14 = vweird.f32 %v6209_v9 }
 0xe65   : > { %v6286_v44 = vsel %vm6285_vm9, %v8144_v32, %v6282_v1  ;;  %v6289_v46 = vmul.f32 %v8146_v45, %v6288_v50 }
 0xe66   : > { %v6383_v37 = vmul.f32 %v6286_v44, %v11374_v31 }
 0xe67   : > { %v6290_v57 = vmul.f32 0.5, %v6289_v46  ;;  %v6172_v43 = vpop.xlane.xlu2 %6171 }
 0xe68   : > { %v6400_v38 = vmul.f32 %v11437_v22, %v6383_v37  ;;  %v6194_v27 = vmul.f32 %v6172_v43, %v10795_v48 }
 0xe69   : > { %v6291_v28 = vsub.f32 1.5, %v6290_v57 }
 0xe6a   : > { %v8148_v21 = vpop.eup %8147  ;;  %v11487_v23 = vadd.f32 %v11440_v47, %v6400_v38  ;;  %v6210_v36 = vadd.f32 1e-05, %v6194_v27 }
 0xe6b   : > { %v6292_v58 = vmul.f32 %v8146_v45, %v6291_v28  ;;  %v6298_v41 = vmul.f32 %v8148_v21, %v6209_v9  ;;  %vm6304_vm13 = vweird.f32 %v8148_v21 }
 0xe6c   : > { %6433 = vst [vmem:[#allocation2 + $0x8] sm:$0xff] %v11487_v23  ;;  %8149 = vrsqrt.f32 %v6210_v36  ;;  %vm6305_vm2 = vmor %vm6303_vm14, %vm6304_vm13  ;;  %vm6313_vm15 = vweird.f32 %v6210_v36 }
 0xe6d   : > { %v6296_v31 = vsel %vm6295_vm12, %v8146_v45, %v6292_v58  ;;  %v6299_v34 = vmul.f32 %v8148_v21, %v6298_v41 }
 0xe6e   : > { %v6384_v42 = vmul.f32 %v6296_v31, %v11380_v11 }
 0xe6f   : > { %v6300_v2 = vmul.f32 0.5, %v6299_v34  ;;  %v6174_v19 = vpop.xlane.xlu0 %6173 }
 0xe70   : > { %v6401_v49 = vmul.f32 %v11437_v22, %v6384_v42  ;;  %v6195_v8 = vmul.f32 %v6174_v19, %v10795_v48 }
 0xe71   : > { %v6301_v40 = vsub.f32 1.5, %v6300_v2 }
 0xe72   : > { %v8150_v0 = vpop.eup %8149  ;;  %v11494_v13 = vadd.f32 %v11440_v47, %v6401_v49  ;;  %v6211_v17 = vadd.f32 1e-05, %v6195_v8 }
 0xe73   : > { %v6302_v53 = vmul.f32 %v8148_v21, %v6301_v40  ;;  %v6308_v20 = vmul.f32 %v8150_v0, %v6210_v36  ;;  %vm6314_vm3 = vweird.f32 %v8150_v0 }
 0xe74   : > { %6434 = vst [vmem:[#allocation2 + $0x48] sm:$0xff] %v11494_v13  ;;  %8151 = vrsqrt.f32 %v6211_v17  ;;  %vm6315_vm4 = vmor %vm6313_vm15, %vm6314_vm3  ;;  %vm6323_vm1 = vweird.f32 %v6211_v17 }
 0xe75   : > { %v6306_v11 = vsel %vm6305_vm2, %v8148_v21, %v6302_v53  ;;  %v6309_v29 = vmul.f32 %v8150_v0, %v6308_v20 }
 0xe76   : > { %v6385_v26 = vmul.f32 %v6306_v11, %v11386_v14 }
 0xe77   : > { %v6310_v51 = vmul.f32 0.5, %v6309_v29  ;;  %v6176_v5 = vpop.xlane.xlu1 %6175 }
 0xe78   : > { %v6402_v32 = vmul.f32 %v11437_v22, %v6385_v26  ;;  %v6196_v63 = vmul.f32 %v6176_v5, %v10795_v48 }
 0xe79   : > { %v6311_v7 = vsub.f32 1.5, %v6310_v51 }
 0xe7a   : > { %v8152_v33 = vpop.eup %8151  ;;  %v11501_v6 = vadd.f32 %v11440_v47, %v6402_v32  ;;  %v6212_v54 = vadd.f32 1e-05, %v6196_v63 }
 0xe7b   : > { %v6312_v56 = vmul.f32 %v8150_v0, %v6311_v7  ;;  %v6318_v4 = vmul.f32 %v8152_v33, %v6211_v17  ;;  %vm6324_vm5 = vweird.f32 %v8152_v33 }
 0xe7c   : > { %6435 = vst [vmem:[#allocation2 + $0x40] sm:$0xff] %v11501_v6  ;;  %8153 = vrsqrt.f32 %v6212_v54  ;;  %vm6325_vm0 = vmor %vm6323_vm1, %vm6324_vm5  ;;  %vm6333_vm7 = vweird.f32 %v6212_v54 }
 0xe7d   : > { %v6316_v14 = vsel %vm6315_vm4, %v8150_v0, %v6312_v56  ;;  %v6319_v61 = vmul.f32 %v8152_v33, %v6318_v4 }
 0xe7e   : > { %v6386_v55 = vmul.f32 %v6316_v14, %v11392_v35 }
 0xe7f   : > { %v6320_v59 = vmul.f32 0.5, %v6319_v61 }
 0xe80   : > { %v6403_v25 = vmul.f32 %v11437_v22, %v6386_v55 }
 0xe81   : > { %v6321_v45 = vsub.f32 1.5, %v6320_v59 }
 0xe82   : > { %v8154_v9 = vpop.eup %8153  ;;  %v11507_v1 = vadd.f32 %v11440_v47, %v6403_v25 }
 0xe83   : > { %v6322_v50 = vmul.f32 %v8152_v33, %v6321_v45  ;;  %v6328_v44 = vmul.f32 %v8154_v9, %v6212_v54  ;;  %vm6334_vm6 = vweird.f32 %v8154_v9 }
 0xe84   : > { %6436 = vst [vmem:[#allocation2 + $0x20] sm:$0xff] %v11507_v1  ;;  %vm6335_vm8 = vmor %vm6333_vm7, %vm6334_vm6 }
 0xe85   : > { %v6326_v46 = vsel %vm6325_vm0, %v8152_v33, %v6322_v50  ;;  %v6329_v37 = vmul.f32 %v8154_v9, %v6328_v44 }
 0xe86   : > { %v6387_v57 = vmul.f32 %v6326_v46, %v11398_v52 }
 0xe87   : > { %v6330_v35 = vmul.f32 0.5, %v6329_v37 }
 0xe88   : > { %v6404_v43 = vmul.f32 %v11437_v22, %v6387_v57 }
 0xe89   : > { %v6331_v38 = vsub.f32 1.5, %v6330_v35 }
 0xe8a   : > { %v11513_v27 = vadd.f32 %v11440_v47, %v6404_v43 }
 0xe8b   : > { %v6332_v28 = vmul.f32 %v8154_v9, %v6331_v38 }
 0xe8c   : > { %6437 = vst [vmem:[#allocation2 + $0x10] sm:$0xff] %v11513_v27 }
 0xe8d   : > { %v6336_v21 = vsel %vm6335_vm8, %v8154_v9, %v6332_v28 }
 0xe8e   : > { %v6388_v36 = vmul.f32 %v6336_v21, %v11404_v10 }
 0xe8f   : > { %v6178_v58 = vpop.xlane.xlu2 %6177 }
 0xe90   : > { %v6405_v41 = vmul.f32 %v11437_v22, %v6388_v36  ;;  %v6197_v52 = vmul.f32 %v6178_v58, %v10795_v48 }
 0xe92   : > { %v11520_v31 = vadd.f32 %v11440_v47, %v6405_v41  ;;  %v6213_v34 = vadd.f32 1e-05, %v6197_v52 }
 0xe94   : > { %6438 = vst [vmem:[#allocation2 + $0x38] sm:$0xff] %v11520_v31  ;;  %8155 = vrsqrt.f32 %v6213_v34  ;;  %vm6343_vm10 = vweird.f32 %v6213_v34 }
 0xe97   : > { %v6180_v42 = vpop.xlane.xlu0 %6179 }
 0xe98   : > { %v6198_v2 = vmul.f32 %v6180_v42, %v10795_v48 }
 0xe9a   : > { %v8156_v19 = vpop.eup %8155  ;;  %v6214_v49 = vadd.f32 1e-05, %v6198_v2 }
 0xe9b   : > { %v6338_v8 = vmul.f32 %v8156_v19, %v6213_v34  ;;  %vm6344_vm9 = vweird.f32 %v8156_v19 }
 0xe9c   : > { %8157 = vrsqrt.f32 %v6214_v49  ;;  %vm6345_vm11 = vmor %vm6343_vm10, %vm6344_vm9  ;;  %vm6353_vm13 = vweird.f32 %v6214_v49 }
 0xe9d   : > { %v6339_v10 = vmul.f32 %v8156_v19, %v6338_v8 }
 0xe9f   : > { %v6340_v40 = vmul.f32 0.5, %v6339_v10 }
 0xea1   : > { %v6341_v0 = vsub.f32 1.5, %v6340_v40  ;;  %v6182_v17 = vpop.xlane.xlu1 %6181 }
 0xea2   : > { %v8158_v53 = vpop.eup %8157  ;;  %v6199_v20 = vmul.f32 %v6182_v17, %v10795_v48 }
 0xea3   : > { %v6342_v11 = vmul.f32 %v8156_v19, %v6341_v0  ;;  %v6348_v29 = vmul.f32 %v8158_v53, %v6214_v49  ;;  %vm6354_vm12 = vweird.f32 %v8158_v53 }
 0xea4   : > { %v6215_v26 = vadd.f32 1e-05, %v6199_v20  ;;  %vm6355_vm14 = vmor %vm6353_vm13, %vm6354_vm12 }
 0xea5   : > { %v6346_v51 = vsel %vm6345_vm11, %v8156_v19, %v6342_v11  ;;  %v6349_v5 = vmul.f32 %v8158_v53, %v6348_v29 }
 0xea6   : > { %v6389_v32 = vmul.f32 %v6346_v51, %v11410_v24  ;;  %8159 = vrsqrt.f32 %v6215_v26  ;;  %vm6363_vm3 = vweird.f32 %v6215_v26 }
 0xea7   : > { %v6350_v63 = vmul.f32 0.5, %v6349_v5 }
 0xea8   : > { %v6406_v7 = vmul.f32 %v11437_v22, %v6389_v32 }
 0xea9   : > { %v6351_v33 = vsub.f32 1.5, %v6350_v63  ;;  %v6184_v54 = vpop.xlane.xlu2 %6183 }
 0xeaa   : > { %v11528_v56 = vadd.f32 %v11440_v47, %v6406_v7  ;;  %v6200_v4 = vmul.f32 %v6184_v54, %v10795_v48 }
 0xeab   : > { %v6352_v14 = vmul.f32 %v8158_v53, %v6351_v33 }
 0xeac   : > { %v8160_v61 = vpop.eup %8159  ;;  %6439 = vst [vmem:[#allocation2 + $0x60] sm:$0xff] %v11528_v56  ;;  %v6216_v55 = vadd.f32 1e-05, %v6200_v4 }
 0xead   : > { %v6356_v24 = vsel %vm6355_vm14, %v8158_v53, %v6352_v14  ;;  %v6358_v59 = vmul.f32 %v8160_v61, %v6215_v26  ;;  %vm6364_vm2 = vweird.f32 %v8160_v61 }
 0xeae   : > { %v6390_v25 = vmul.f32 %v6356_v24, %v11416_v12  ;;  %8161 = vrsqrt.f32 %v6216_v55  ;;  %vm6365_vm15 = vmor %vm6363_vm3, %vm6364_vm2  ;;  %vm6373_vm5 = vweird.f32 %v6216_v55 }
 0xeaf   : > { %v6359_v45 = vmul.f32 %v8160_v61, %v6358_v59 }
 0xeb0   : > { %v6407_v9 = vmul.f32 %v11437_v22, %v6390_v25 }
 0xeb1   : > { %v6360_v50 = vmul.f32 0.5, %v6359_v45 }
 0xeb2   : > { %v6424_v44 = vadd.f32 %v11440_v47, %v6407_v9 }
 0xeb3   : > { %v6361_v46 = vsub.f32 1.5, %v6360_v50 }
 0xeb4   : > { %v8162_v37 = vpop.eup %8161  ;;  %6440 = vst [vmem:[#allocation2 + $0x70] sm:$0xff] %v6424_v44 }
 0xeb5   : > { %v6362_v57 = vmul.f32 %v8160_v61, %v6361_v46  ;;  %v6368_v35 = vmul.f32 %v8162_v37, %v6216_v55  ;;  %vm6374_vm4 = vweird.f32 %v8162_v37 }
 0xeb6   : > { %vm6375_vm1 = vmor %vm6373_vm5, %vm6374_vm4 }
 0xeb7   : > { %v6366_v43 = vsel %vm6365_vm15, %v8160_v61, %v6362_v57  ;;  %v6369_v38 = vmul.f32 %v8162_v37, %v6368_v35 }
 0xeb8   : > { %v6391_v28 = vmul.f32 %v6366_v43, %v11423_v3 }
 0xeb9   : > { %v6370_v12 = vmul.f32 0.5, %v6369_v38 }
 0xeba   : > { %v6408_v21 = vmul.f32 %v11437_v22, %v6391_v28 }
 0xebb   : > { %v6371_v36 = vsub.f32 1.5, %v6370_v12 }
 0xebc   : > { %v11538_v58 = vadd.f32 %v11440_v47, %v6408_v21 }
 0xebd   : > { %v6372_v41 = vmul.f32 %v8162_v37, %v6371_v36 }
 0xebe   : > { %6441 = vst [vmem:[#allocation2 + $0x78] sm:$0xff] %v11538_v58 }
 0xebf   : > { %v6376_v52 = vsel %vm6375_vm1, %v8162_v37, %v6372_v41 }
 0xec0   : > { %v6392_v34 = vmul.f32 %v6376_v52, %v11430_v39 }
 0xec2   : > { %v6409_v42 = vmul.f32 %v11437_v22, %v6392_v34  ;;  %6446 = sbr.rel (%p7574_p7) target bundleno = 4235 (0x108b), region = 84 }
 0xec4   : > { %v11544_v3 = vadd.f32 %v11440_v47, %v6409_v42 }
 0xec6   : > { %6442 = vst [vmem:[#allocation2 + $0x28] sm:$0xff] %v11544_v3 }
 0xec7   : > { %6449 = vadd.xlane.f32.xlu2 %v11445_v18  ;;  %6473 = vadd.xlane.f32.xlu1 %v11528_v56 }
 0xec8   : > { %6465 = vadd.xlane.f32.xlu0 %v11501_v6 }
 0xecf   : > { %6451 = vadd.xlane.f32.xlu2 %v11453_v16  ;;  %6475 = vadd.xlane.f32.xlu1 %v6424_v44 }
 0xed0   : > { %6467 = vadd.xlane.f32.xlu0 %v11507_v1 }
 0xed7   : > { %6469 = vadd.xlane.f32.xlu2 %v11513_v27  ;;  %6459 = vadd.xlane.f32.xlu1 %v11480_v62 }
 0xed8   : > { %6457 = vadd.xlane.f32.xlu0 %v11473_v30 }
 0xedf   : > { %6479 = vadd.xlane.f32.xlu2 %v11544_v3  ;;  %6477 = vadd.xlane.f32.xlu1 %v11538_v58 }
 0xee0   : > { %6471 = vadd.xlane.f32.xlu0 %v11520_v31 }
 0xee7   : > { %6461 = vadd.xlane.f32.xlu2 %v11487_v23  ;;  %6455 = vadd.xlane.f32.xlu1 %v11462_v15 }
 0xee8   : > { %6453 = vadd.xlane.f32.xlu0 %v11465_v60 }
 0xef0   : > { %6463 = vadd.xlane.f32.xlu0 %v11494_v13 }
 0xf3a   : > { %v6450_v39 = vpop.xlane.xlu2 %6449  ;;  %v6474_v22 = vpop.xlane.xlu1 %6473 }
 0xf3b   : > { %v6493_v47 = vmul.f32 %v6474_v22, %v10795_v48  ;;  %v6466_v2 = vpop.xlane.xlu0 %6465  ;;  %v6481_v63 = vmul.f32 %v6450_v39, %v10795_v48 }
 0xf3c   : > { %v6489_v19 = vmul.f32 %v6466_v2, %v10795_v48  ;;  %v7716_v2 = vld [vmem:[#allocation9 + $0x38] sm:$0xff] }
 0xf3d   : > { %v11566_v49 = vsub.f32 %v11528_v56, %v6493_v47  ;;  %v11595_v56 = vsub.f32 %v11445_v18, %v6481_v63  ;;  %7734 = vmatpush.bf16.msra.mxu2 %v7716_v2  ;;  %7735 = vmatpush.bf16.msra.mxu3 %v7716_v2 }
 0xf3e   : > { %v11569_v8 = vsub.f32 %v11501_v6, %v6489_v19  ;;  %6883 = vmatpush.bf16.msra.mxu0 %v7716_v2  ;;  %7733 = vmatpush.bf16.msra.mxu1 %v7716_v2  ;;  %v7713_v19 = vld [vmem:[#allocation9 + $0x20] sm:$0xff] }
 0xf3f   : > { %v6525_v10 = vmul.f32 %v11566_v49, %v11566_v49  ;;  %v6513_v59 = vmul.f32 %v11595_v56, %v11595_v56 }
 0xf40   : > { %v6521_v40 = vmul.f32 %v11569_v8, %v11569_v8 }
 0xf41   : > { %6553 = vadd.xlane.f32.xlu0 %v6525_v10  ;;  %v7712_v10 = vld [vmem:[#allocation9 + $0x18] sm:$0xff] }
 0xf42   : > { %6545 = vadd.xlane.f32.xlu1 %v6521_v40  ;;  %v6452_v0 = vpop.xlane.xlu2 %6451  ;;  %v6476_v17 = vpop.xlane.xlu1 %6475  ;;  %v7711_v40 = vld [vmem:[#allocation9 + $0x10] sm:$0xff] }
 0xf43   : > { %v6482_v53 = vmul.f32 %v6452_v0, %v10795_v48  ;;  %v6494_v20 = vmul.f32 %v6476_v17, %v10795_v48  ;;  %v6468_v11 = vpop.xlane.xlu0 %6467 }
 0xf44   : > { %v6490_v29 = vmul.f32 %v6468_v11, %v10795_v48 }
 0xf45   : > { %v11579_v6 = vsub.f32 %v11453_v16, %v6482_v53  ;;  %v11581_v26 = vsub.f32 %v6424_v44, %v6494_v20 }
 0xf46   : > { %v11584_v51 = vsub.f32 %v11507_v1, %v6490_v29  ;;  %v7710_v29 = vld [vmem:[#allocation9 + $0x8] sm:$0xff] }
 0xf47   : > { %v6514_v5 = vmul.f32 %v11579_v6, %v11579_v6  ;;  %v6526_v32 = vmul.f32 %v11581_v26, %v11581_v26 }
 0xf48   : > { %v6522_v7 = vmul.f32 %v11584_v51, %v11584_v51 }
 0xf49   : > { %6531 = vadd.xlane.f32.xlu0 %v6514_v5 }
 0xf4a   : > { %6555 = vadd.xlane.f32.xlu1 %v6526_v32  ;;  %6547 = vadd.xlane.f32.xlu2 %v6522_v7  ;;  %v6470_v16 = vpop.xlane.xlu2 %6469  ;;  %v6460_v33 = vpop.xlane.xlu1 %6459  ;;  %v7709_v32 = vld [vmem:[#allocation9] sm:$0xff] }
 0xf4b   : > { %v6491_v54 = vmul.f32 %v6470_v16, %v10795_v48  ;;  %v6458_v1 = vpop.xlane.xlu0 %6457  ;;  %v6486_v55 = vmul.f32 %v6460_v33, %v10795_v48 }
 0xf4c   : > { %v6485_v4 = vmul.f32 %v6458_v1, %v10795_v48 }
 0xf4d   : > { %v11599_v14 = vsub.f32 %v11513_v27, %v6491_v54  ;;  %v11612_v27 = vsub.f32 %v11480_v62, %v6486_v55 }
 0xf4e   : > { %v11602_v61 = vsub.f32 %v11473_v30, %v6485_v4 }
 0xf4f   : > { %v6523_v24 = vmul.f32 %v11599_v14, %v11599_v14  ;;  %v6518_v37 = vmul.f32 %v11612_v27, %v11612_v27 }
 0xf50   : > { %v6517_v18 = vmul.f32 %v11602_v61, %v11602_v61 }
 0xf51   : > { %6549 = vadd.xlane.f32.xlu0 %v6523_v24 }
 0xf52   : > { %6529 = vadd.xlane.f32.xlu2 %v6513_v59  ;;  %6537 = vadd.xlane.f32.xlu1 %v6517_v18  ;;  %v6480_v25 = vpop.xlane.xlu2 %6479  ;;  %v6478_v30 = vpop.xlane.xlu1 %6477 }
 0xf53   : > { %v6496_v45 = vmul.f32 %v6480_v25, %v10795_v48  ;;  %v6472_v9 = vpop.xlane.xlu0 %6471  ;;  %v6495_v57 = vmul.f32 %v6478_v30, %v10795_v48 }
 0xf54   : > { %v6492_v50 = vmul.f32 %v6472_v9, %v10795_v48 }
 0xf55   : > { %v11617_v44 = vsub.f32 %v11544_v3, %v6496_v45  ;;  %v11630_v38 = vsub.f32 %v11538_v58, %v6495_v57 }
 0xf56   : > { %v11620_v46 = vsub.f32 %v11520_v31, %v6492_v50 }
 0xf57   : > { %v6528_v62 = vmul.f32 %v11617_v44, %v11617_v44  ;;  %v6527_v52 = vmul.f32 %v11630_v38, %v11630_v38 }
 0xf58   : > { %v6524_v35 = vmul.f32 %v11620_v46, %v11620_v46 }
 0xf59   : > { %6559 = vadd.xlane.f32.xlu0 %v6528_v62 }
 0xf5a   : > { %6539 = vadd.xlane.f32.xlu2 %v6518_v37  ;;  %6551 = vadd.xlane.f32.xlu1 %v6524_v35  ;;  %v6462_v43 = vpop.xlane.xlu2 %6461  ;;  %v6456_v12 = vpop.xlane.xlu1 %6455 }
 0xf5b   : > { %v6487_v31 = vmul.f32 %v6462_v43, %v10795_v48  ;;  %v6454_v28 = vpop.xlane.xlu0 %6453  ;;  %v6484_v34 = vmul.f32 %v6456_v12, %v10795_v48 }
 0xf5c   : > { %v6483_v21 = vmul.f32 %v6454_v28, %v10795_v48 }
 0xf5d   : > { %v11635_v36 = vsub.f32 %v11487_v23, %v6487_v31  ;;  %v11648_v23 = vsub.f32 %v11462_v15, %v6484_v34  ;;  %v7715_v15 = vld [vmem:[#allocation9 + $0x30] sm:$0xff] }
 0xf5e   : > { %v11638_v41 = vsub.f32 %v11465_v60, %v6483_v21  ;;  %7737 = vmatpush.bf16.msra.mxu2 %v7715_v15  ;;  %7738 = vmatpush.bf16.msra.mxu3 %v7715_v15 }
 0xf5f   : > { %v6519_v58 = vmul.f32 %v11635_v36, %v11635_v36  ;;  %v6516_v22 = vmul.f32 %v11648_v23, %v11648_v23  ;;  %6884 = vmatpush.bf16.msra.mxu0 %v7715_v15  ;;  %7736 = vmatpush.bf16.msra.mxu1 %v7715_v15 }
 0xf60   : > { %v6515_v42 = vmul.f32 %v11638_v41, %v11638_v41 }
 0xf61   : > { %6541 = vadd.xlane.f32.xlu0 %v6519_v58 }
 0xf62   : > { %6557 = vadd.xlane.f32.xlu2 %v6527_v52  ;;  %6533 = vadd.xlane.f32.xlu1 %v6515_v42 }
 0xf63   : > { %v6464_v3 = vpop.xlane.xlu0 %6463 }
 0xf64   : > { %v6488_v60 = vmul.f32 %v6464_v3, %v10795_v48 }
 0xf66   : > { %v11652_v39 = vsub.f32 %v11494_v13, %v6488_v60  ;;  %v7714_v13 = vld [vmem:[#allocation9 + $0x28] sm:$0xff] }
 0xf67   : > { %7740 = vmatpush.bf16.msra.mxu2 %v7714_v13  ;;  %7741 = vmatpush.bf16.msra.mxu3 %v7714_v13 }
 0xf68   : > { %v6520_v47 = vmul.f32 %v11652_v39, %v11652_v39  ;;  %6885 = vmatpush.bf16.msra.mxu0 %v7714_v13  ;;  %7739 = vmatpush.bf16.msra.mxu1 %v7714_v13 }
 0xf6a   : > { %6535 = vadd.xlane.f32.xlu2 %v6516_v22  ;;  %6543 = vadd.xlane.f32.xlu1 %v6520_v47 }
 0xf6b   : > { %7743 = vmatpush.bf16.msra.mxu2 %v7713_v19  ;;  %7744 = vmatpush.bf16.msra.mxu3 %v7713_v19 }
 0xf6c   : > { %6886 = vmatpush.bf16.msra.mxu0 %v7713_v19  ;;  %7742 = vmatpush.bf16.msra.mxu1 %v7713_v19 }
 0xf6f   : > { %7746 = vmatpush.bf16.msra.mxu2 %v7712_v10  ;;  %7747 = vmatpush.bf16.msra.mxu3 %v7712_v10 }
 0xf70   : > { %6887 = vmatpush.bf16.msra.mxu0 %v7712_v10  ;;  %7745 = vmatpush.bf16.msra.mxu1 %v7712_v10 }
 0xf73   : > { %7749 = vmatpush.bf16.msra.mxu2 %v7711_v40  ;;  %7750 = vmatpush.bf16.msra.mxu3 %v7711_v40 }
 0xf74   : > { %6888 = vmatpush.bf16.msra.mxu0 %v7711_v40  ;;  %7748 = vmatpush.bf16.msra.mxu1 %v7711_v40 }
 0xf77   : > { %7752 = vmatpush.bf16.msra.mxu2 %v7710_v29  ;;  %7753 = vmatpush.bf16.msra.mxu3 %v7710_v29 }
 0xf78   : > { %6889 = vmatpush.bf16.msra.mxu0 %v7710_v29  ;;  %7751 = vmatpush.bf16.msra.mxu1 %v7710_v29 }
 0xf7b   : > { %7755 = vmatpush.bf16.msra.mxu2 %v7709_v32  ;;  %7756 = vmatpush.bf16.msra.mxu3 %v7709_v32 }
 0xf7c   : > { %6890 = vmatpush.bf16.msra.mxu0 %v7709_v32  ;;  %7754 = vmatpush.bf16.msra.mxu1 %v7709_v32 }
 0xfb4   : > { %v6554_v0 = vpop.xlane.xlu0 %6553 }
 0xfb5   : > { %v6546_v17 = vpop.xlane.xlu1 %6545  ;;  %v6573_v53 = vmul.f32 %v6554_v0, %v10795_v48 }
 0xfb6   : > { %v6569_v20 = vmul.f32 %v6546_v17, %v10795_v48 }
 0xfb7   : > { %v11660_v11 = vadd.f32 1e-05, %v6573_v53 }
 0xfb8   : > { %v11662_v5 = vadd.f32 1e-05, %v6569_v20 }
 0xfb9   : > { %8189 = vrsqrt.f32 %v11660_v11  ;;  %vm6719_vm6 = vweird.f32 %v11660_v11 }
 0xfba   : > { %8191 = vrsqrt.f32 %v11662_v5  ;;  %vm6679_vm0 = vweird.f32 %v11662_v5 }
 0xfbc   : > { %v6532_v63 = vpop.xlane.xlu0 %6531 }
 0xfbd   : > { %v6556_v7 = vpop.xlane.xlu1 %6555  ;;  %v6548_v16 = vpop.xlane.xlu2 %6547  ;;  %v6562_v33 = vmul.f32 %v6532_v63, %v10795_v48 }
 0xfbe   : > { %v6574_v54 = vmul.f32 %v6556_v7, %v10795_v48  ;;  %v6570_v1 = vmul.f32 %v6548_v16, %v10795_v48 }
 0xfbf   : > { %v11669_v4 = vpop.eup %8189  ;;  %v11671_v55 = vadd.f32 1e-05, %v6562_v33 }
 0xfc0   : > { %v11673_v24 = vpop.eup %8191  ;;  %v6714_v59 = vmul.f32 %v11669_v4, %v11660_v11  ;;  %v11677_v18 = vadd.f32 1e-05, %v6574_v54  ;;  %v11679_v25 = vadd.f32 1e-05, %v6570_v1  ;;  %vm6720_vm8 = vweird.f32 %v11669_v4 }
 0xfc1   : > { %v6674_v30 = vmul.f32 %v11673_v24, %v11662_v5  ;;  %8193 = vrsqrt.f32 %v11671_v55  ;;  %vm6680_vm7 = vweird.f32 %v11673_v24  ;;  %vm11742_vm10 = vmor %vm6719_vm6, %vm6720_vm8  ;;  %vm6609_vm3 = vweird.f32 %v11671_v55 }
 0xfc2   : > { %8195 = vrsqrt.f32 %v11677_v18  ;;  %v6715_v45 = vmul.f32 %v11669_v4, %v6714_v59  ;;  %vm11754_vm11 = vmor %vm6679_vm0, %vm6680_vm7  ;;  %vm6689_vm12 = vweird.f32 %v11679_v25  ;;  %vm6729_vm13 = vweird.f32 %v11677_v18 }
 0xfc3   : > { %8197 = vrsqrt.f32 %v11679_v25  ;;  %v6675_v9 = vmul.f32 %v11673_v24, %v6674_v30 }
 0xfc4   : > { %v6550_v50 = vpop.xlane.xlu0 %6549  ;;  %v6716_v28 = vmul.f32 0.5, %v6715_v45 }
 0xfc5   : > { %v6530_v37 = vpop.xlane.xlu2 %6529  ;;  %v6538_v57 = vpop.xlane.xlu1 %6537  ;;  %v6571_v62 = vmul.f32 %v6550_v50, %v10795_v48  ;;  %v6676_v21 = vmul.f32 0.5, %v6675_v9 }
 0xfc6   : > { %v6561_v35 = vmul.f32 %v6530_v37, %v10795_v48  ;;  %v6565_v43 = vmul.f32 %v6538_v57, %v10795_v48  ;;  %v6717_v47 = vsub.f32 1.5, %v6716_v28 }
 0xfc7   : > { %v11691_v31 = vpop.eup %8193  ;;  %v11697_v34 = vadd.f32 1e-05, %v6571_v62  ;;  %v6677_v2 = vsub.f32 1.5, %v6676_v21 }
 0xfc8   : > { %v11693_v12 = vpop.eup %8195  ;;  %v11695_v52 = vadd.f32 1e-05, %v6561_v35  ;;  %v6604_v42 = vmul.f32 %v11691_v31, %v11671_v55  ;;  %v11703_v3 = vadd.f32 1e-05, %v6565_v43  ;;  %v6718_v32 = vmul.f32 %v11669_v4, %v6717_v47 }
 0xfc9   : > { %v11699_v58 = vpop.eup %8197  ;;  %v6724_v60 = vmul.f32 %v11693_v12, %v11677_v18  ;;  %v6678_v16 = vmul.f32 %v11673_v24, %v6677_v2  ;;  %vm6730_vm2 = vweird.f32 %v11693_v12  ;;  %vm6610_vm15 = vweird.f32 %v11691_v31 }
 0xfca   : > { %v6684_v22 = vmul.f32 %v11699_v58, %v11679_v25  ;;  %8199 = vrsqrt.f32 %v11695_v52  ;;  %v6605_v19 = vmul.f32 %v11691_v31, %v6604_v42  ;;  %vm6690_vm9 = vweird.f32 %v11699_v58  ;;  %vm11837_vm0 = vmor %vm6729_vm13, %vm6730_vm2 }
 0xfcb   : > { %8201 = vrsqrt.f32 %v11703_v3  ;;  %v6725_v17 = vmul.f32 %v11693_v12, %v6724_v60  ;;  %v6682_v5 = vsel %vm11754_vm11, %v11673_v24, %v6678_v16  ;;  %v6722_v25 = vsel %vm11742_vm10, %v11669_v4, %v6718_v32  ;;  %vm11773_vm14 = vmor %vm6689_vm12, %vm6690_vm9 }
 0xfcc   : > { %v6685_v15 = vmul.f32 %v11699_v58, %v6684_v22  ;;  %8203 = vrsqrt.f32 %v11697_v34  ;;  %v6560_v13 = vpop.xlane.xlu0 %6559  ;;  %v6606_v30 = vmul.f32 0.5, %v6605_v19  ;;  %vm6599_vm1 = vweird.f32 %v11695_v52  ;;  %vm11888_vm2 = vmor %vm6609_vm3, %vm6610_vm15 }
 0xfcd   : > { %v6540_v10 = vpop.xlane.xlu2 %6539  ;;  %v6552_v40 = vpop.xlane.xlu1 %6551  ;;  %v6576_v0 = vmul.f32 %v6560_v13, %v10795_v48  ;;  %v6726_v37 = vmul.f32 0.5, %v6725_v17  ;;  %v6761_v17 = vmul.f32 %v6682_v5, %v11569_v8  ;;  %v11831_v5 = vld [vmem:[%s12085_s7] ss:$0 sm:$0xff]  ;;  %vm6639_vm6 = vweird.f32 %v11703_v3 }
 0xfce   : > { %v6686_v53 = vmul.f32 0.5, %v6685_v15  ;;  %v6566_v20 = vmul.f32 %v6540_v10, %v10795_v48  ;;  %v6572_v29 = vmul.f32 %v6552_v40, %v10795_v48  ;;  %v6607_v60 = vsub.f32 1.5, %v6606_v30 }
 0xfcf   : > { %v11723_v63 = vadd.f32 1e-05, %v6576_v0  ;;  %v6727_v19 = vsub.f32 1.5, %v6726_v37  ;;  %vm6699_vm9 = vweird.f32 %v11697_v34 }
 0xfd0   : > { %v11725_v7 = vpop.eup %8199  ;;  %v6687_v33 = vsub.f32 1.5, %v6686_v53  ;;  %v11728_v54 = vadd.f32 1e-05, %v6566_v20  ;;  %v11730_v1 = vadd.f32 1e-05, %v6572_v29  ;;  %v6765_v20 = vmul.f32 %v6722_v25, %v11566_v49 }
 0xfd1   : > { %v11732_v59 = vpop.eup %8201  ;;  %v6594_v45 = vmul.f32 %v11725_v7, %v11695_v52  ;;  %8205 = vrsqrt.f32 %v11723_v63  ;;  %v11791_v53 = vld [vmem:[%s12084_s6] ss:$0 sm:$0xff]  ;;  %v11803_v30 = vmul.f32 %v11691_v31, %v6607_v60  ;;  %v6728_v37 = vmul.f32 %v11693_v12, %v6727_v19 }
 0xfd2   : > { %v11738_v9 = vpop.eup %8203  ;;  %v6688_v57 = vmul.f32 %v11699_v58, %v6687_v33  ;;  %v6634_v62 = vmul.f32 %v11732_v59, %v11703_v3  ;;  %8207 = vrsqrt.f32 %v11728_v54  ;;  %vm6600_vm4 = vweird.f32 %v11725_v7 }
 0xfd3   : > { %v6595_v11 = vmul.f32 %v11725_v7, %v6594_v45  ;;  %v6694_v43 = vmul.f32 %v11738_v9, %v11697_v34  ;;  %8209 = vrsqrt.f32 %v11730_v1  ;;  %vm6640_vm5 = vweird.f32 %v11732_v59 }
 0xfd4   : > { %v6635_v28 = vmul.f32 %v11732_v59, %v6634_v62  ;;  %v6542_v21 = vpop.xlane.xlu0 %6541  ;;  %v6692_v4 = vsel %vm11773_vm14, %v11699_v58, %v6688_v57  ;;  %vm6649_vm7 = vweird.f32 %v11728_v54  ;;  %v6732_v18 = vsel %vm11837_vm0, %v11693_v12, %v6728_v37  ;;  %vm11902_vm14 = vmor %vm6599_vm1, %vm6600_vm4 }
 0xfd5   : > { %v6596_v22 = vmul.f32 0.5, %v6595_v11  ;;  %v6695_v47 = vmul.f32 %v11738_v9, %v6694_v43  ;;  %v6558_v2 = vpop.xlane.xlu2 %6557  ;;  %v6534_v15 = vpop.xlane.xlu1 %6533  ;;  %v6567_v13 = vmul.f32 %v6542_v21, %v10795_v48  ;;  %v6762_v45 = vmul.f32 %v6692_v4, %v11584_v51  ;;  %vm11915_vm15 = vmor %vm6639_vm6, %vm6640_vm5 }
 0xfd6   : > { %v6575_v24 = vmul.f32 %v6558_v2, %v10795_v48  ;;  %v6636_v40 = vmul.f32 0.5, %v6635_v28  ;;  %v6563_v0 = vmul.f32 %v6534_v15, %v10795_v48  ;;  %v6780_v51 = vmul.f32 %v11791_v53, %v6761_v17 }
 0xfd7   : > { %v11784_v10 = vpop.eup %8205  ;;  %v6597_v32 = vsub.f32 1.5, %v6596_v22  ;;  %v11800_v33 = vadd.f32 1e-05, %v6567_v13  ;;  %v6696_v8 = vmul.f32 0.5, %v6695_v47  ;;  %v6781_v47 = vmul.f32 %v11791_v53, %v6762_v45 }
 0xfd8   : > { %v11794_v29 = vpop.eup %8207  ;;  %v6744_v58 = vmul.f32 %v11784_v10, %v11723_v63  ;;  %v11798_v16 = vadd.f32 1e-05, %v6575_v24  ;;  %v6637_v62 = vsub.f32 1.5, %v6636_v40  ;;  %v11825_v21 = vadd.f32 1e-05, %v6563_v0 }
 0xfd9   : > { %v6644_v49 = vmul.f32 %v11794_v29, %v11728_v54  ;;  %v11810_v50 = vpop.eup %8209  ;;  %v11822_v43 = vmul.f32 %v11725_v7, %v6597_v32  ;;  %v6697_v42 = vsub.f32 1.5, %v6696_v8  ;;  %vm6650_vm8 = vweird.f32 %v11794_v29 }
 0xfda   : > { %v6745_v57 = vmul.f32 %v11784_v10, %v6744_v58  ;;  %8211 = vrsqrt.f32 %v11798_v16  ;;  %v6704_v11 = vmul.f32 %v11810_v50, %v11730_v1  ;;  %vm6700_vm10 = vweird.f32 %v11738_v9  ;;  %vm11930_vm5 = vmor %vm6649_vm7, %vm6650_vm8 }
 0xfdb   : > { %v6645_v35 = vmul.f32 %v11794_v29, %v6644_v49  ;;  %8213 = vrsqrt.f32 %v11800_v33  ;;  %v6800_v4 = vadd.f32 %v11831_v5, %v6781_v47  ;;  %v6766_v40 = vmul.f32 %v6732_v18, %v11581_v26  ;;  %vm11956_vm8 = vmor %vm6699_vm9, %vm6700_vm10 }
 0xfdc   : > { %v6746_v28 = vmul.f32 0.5, %v6745_v57  ;;  %v6705_v22 = vmul.f32 %v11810_v50, %v6704_v11  ;;  %8215 = vrsqrt.f32 %v11825_v21  ;;  %v6799_v17 = vadd.f32 %v11831_v5, %v6780_v51 }
 0xfdd   : > { %v6646_v60 = vmul.f32 0.5, %v6645_v35  ;;  %v6536_v2 = vpop.xlane.xlu2 %6535  ;;  %v6544_v15 = vpop.xlane.xlu1 %6543  ;;  %v6784_v32 = vmul.f32 %v11791_v53, %v6765_v20  ;;  %v6638_v8 = vmul.f32 %v11732_v59, %v6637_v62  ;;  %v11862_v49 = vmul.f32 %v11738_v9, %v6697_v42 }
 0xfde   : > { %v6747_v13 = vsub.f32 1.5, %v6746_v28  ;;  %v6706_v24 = vmul.f32 0.5, %v6705_v22  ;;  %v6564_v58 = vmul.f32 %v6536_v2, %v10795_v48  ;;  %v6568_v12 = vmul.f32 %v6544_v15, %v10795_v48 }
 0xfdf   : > { %v6647_v19 = vsub.f32 1.5, %v6646_v60  ;;  %vm6749_vm11 = vweird.f32 %v11723_v63  ;;  %vm6750_vm12 = vweird.f32 %v11784_v10  ;;  %vm6659_vm13 = vweird.f32 %v11800_v33 }
 0xfe0   : > { %v11854_v0 = vpop.eup %8211  ;;  %v6707_v45 = vsub.f32 1.5, %v6706_v24  ;;  %v6811_v20 = vpack.c.bf16 %v6800_v4, %v6799_v17  ;;  %v6785_v48 = vmul.f32 %v11791_v53, %v6766_v40  ;;  %v11872_v57 = vadd.f32 1e-05, %v6564_v58  ;;  %vm11976_vm9 = vmor %vm6749_vm11, %vm6750_vm12 }
 0xfe1   : > { %v6734_v26 = vmul.f32 %v11854_v0, %v11798_v16  ;;  %v11868_v37 = vpop.eup %8213  ;;  %v6648_v62 = vmul.f32 %v11794_v29, %v6647_v19  ;;  %v11877_v35 = vmul.f32 %v11784_v10, %v6747_v13  ;;  %vm6740_vm0 = vweird.f32 %v11854_v0 }
 0xfe2   : > { %v6654_v51 = vmul.f32 %v11868_v37, %v11800_v33  ;;  %v11882_v28 = vpop.eup %8215  ;;  %6911 = vmatmul.bf16.vlgmr.msra.gmra.mxu2 %v6811_v20  ;;  %v6803_v42 = vadd.f32 %v11831_v5, %v6784_v32  ;;  %v6804_v60 = vadd.f32 %v11831_v5, %v6785_v48  ;;  %8217 = vrsqrt.f32 %v11872_v57 }
 0xfe3   : > { %v6735_v11 = vmul.f32 %v11854_v0, %v6734_v26  ;;  %v11896_v22 = vadd.f32 1e-05, %v6568_v12  ;;  %v6708_v47 = vmul.f32 %v11810_v50, %v6707_v45  ;;  %vm6709_vm3 = vweird.f32 %v11730_v1 }
 0xfe4   : > { %v6614_v15 = vmul.f32 %v11882_v28, %v11825_v21  ;;  %v6655_v13 = vmul.f32 %v11868_v37, %v6654_v51  ;;  %vm6739_vm4 = vweird.f32 %v11798_v16  ;;  %vm6660_vm1 = vweird.f32 %v11868_v37 }
 0xfe5   : > { %v6736_v2 = vmul.f32 0.5, %v6735_v11  ;;  %v6813_v18 = vpack.c.bf16 %v6804_v60, %v6803_v42  ;;  %8219 = vrsqrt.f32 %v11896_v22  ;;  %v6602_v19 = vsel %vm11902_vm14, %v11725_v7, %v11822_v43  ;;  %vm11989_vm10 = vmor %vm6659_vm13, %vm6660_vm1 }
 0xfe6   : > { %v6615_v4 = vmul.f32 %v11882_v28, %v6614_v15  ;;  %v6656_v40 = vmul.f32 0.5, %v6655_v13  ;;  %v6612_v17 = vsel %vm11888_vm2, %v11691_v31, %v11803_v30  ;;  %vm6619_vm6 = vweird.f32 %v11825_v21  ;;  %vm6741_vm13 = vmor %vm6739_vm4, %vm6740_vm0 }
 0xfe7   : > { %v6737_v24 = vsub.f32 1.5, %v6736_v2  ;;  %6921 = vmatmul.bf16.vlgmr.msra.gmra.mxu3 %v6813_v18  ;;  %v6753_v7 = vmul.f32 %v6602_v19, %v11595_v56  ;;  %v6754_v54 = vmul.f32 %v6612_v17, %v11579_v6  ;;  %v6642_v43 = vsel %vm11915_vm15, %v11732_v59, %v6638_v8 }
 0xfe8   : > { %v6652_v32 = vsel %vm11930_vm5, %v11794_v29, %v6648_v62  ;;  %v6616_v58 = vmul.f32 0.5, %v6615_v4  ;;  %vm6620_vm7 = vweird.f32 %v11882_v28  ;;  %v6657_v12 = vsub.f32 1.5, %v6656_v40  ;;  %v11950_v30 = vpop.eup %8217 }
 0xfe9   : > { %v6757_v31 = vmul.f32 %v6642_v43, %v11602_v61  ;;  %v6738_v56 = vmul.f32 %v11854_v0, %v6737_v24  ;;  %v6772_v59 = vmul.f32 %v11791_v53, %v6753_v7  ;;  %v6773_v29 = vmul.f32 %v11791_v53, %v6754_v54  ;;  %vm12021_vm0 = vmor %vm6619_vm6, %vm6620_vm7 }
 0xfea   : > { %v6758_v8 = vmul.f32 %v6652_v32, %v11612_v27  ;;  %v6617_v45 = vsub.f32 1.5, %v6616_v58  ;;  %v6658_v61 = vmul.f32 %v11868_v37, %v6657_v12  ;;  %v6624_v26 = vmul.f32 %v11950_v30, %v11872_v57 }
 0xfeb   : > { %vm6629_vm14 = vweird.f32 %v11872_v57  ;;  %v6702_v34 = vsel %vm11956_vm8, %v11738_v9, %v11862_v49  ;;  %v8220_v20 = vpop.eup %8219  ;;  %v6791_v48 = vadd.f32 %v11831_v5, %v6772_v59  ;;  %v6792_v62 = vadd.f32 %v11831_v5, %v6773_v29 }
 0xfec   : > { %v6776_v11 = vmul.f32 %v11791_v53, %v6757_v31  ;;  %v6777_v51 = vmul.f32 %v11791_v53, %v6758_v8  ;;  %v6618_v25 = vmul.f32 %v11882_v28, %v6617_v45  ;;  %v6625_v9 = vmul.f32 %v11950_v30, %v6624_v26 }
 0xfed   : > { %vm6630_vm11 = vweird.f32 %v11950_v30  ;;  %v6664_v49 = vmul.f32 %v8220_v20, %v11896_v22  ;;  %vm12367_vm12 = vweird.f32 %v11810_v50  ;;  %v6662_v42 = vsel %vm11989_vm10, %v11868_v37, %v6658_v61 }
 0xfee   : > { %vm6711_vm2 = vmor %vm6709_vm3, %vm12367_vm12  ;;  %v6807_v33 = vpack.c.bf16 %v6792_v62, %v6791_v48  ;;  %v6795_v60 = vadd.f32 %v11831_v5, %v6776_v11  ;;  %v6796_v55 = vadd.f32 %v11831_v5, %v6777_v51  ;;  %v6626_v2 = vmul.f32 0.5, %v6625_v9 }
 0xfef   : > { %v6665_v15 = vmul.f32 %v8220_v20, %v6664_v49  ;;  %v6712_v13 = vsel %vm6711_vm2, %v11810_v50, %v6708_v47  ;;  %v6763_v1 = vmul.f32 %v6702_v34, %v11599_v14  ;;  %v6742_v18 = vsel %vm6741_vm13, %v11854_v0, %v6738_v56  ;;  %vm6631_vm15 = vmor %vm6629_vm14, %vm6630_vm11 }
 0xff0   : > { %6891 = vmatmul.bf16.vlgmr.msra.gmra.mxu0 %v6807_v33  ;;  %v6809_v52 = vpack.c.bf16 %v6796_v55, %v6795_v60  ;;  %v6764_v37 = vmul.f32 %v6712_v13, %v11620_v46  ;;  %v6752_v19 = vsel %vm11976_vm9, %v11784_v10, %v11877_v35  ;;  %v6627_v14 = vsub.f32 1.5, %v6626_v2 }
 0xff1   : > { %v6666_v50 = vmul.f32 0.5, %v6665_v15  ;;  %v6782_v47 = vmul.f32 %v11791_v53, %v6763_v1  ;;  %v6767_v46 = vmul.f32 %v6742_v18, %v11630_v38  ;;  %vm6670_vm3 = vweird.f32 %v8220_v20 }
 0xff2   : > { %6901 = vmatmul.bf16.vlgmr.msra.gmra.mxu1 %v6809_v52  ;;  %v6783_v0 = vmul.f32 %v11791_v53, %v6764_v37  ;;  %v6768_v10 = vmul.f32 %v6752_v19, %v11617_v44  ;;  %v6622_v21 = vsel %vm12021_vm0, %v11882_v28, %v6618_v25  ;;  %v6628_v35 = vmul.f32 %v11950_v30, %v6627_v14 }
 0xff3   : > { %v6667_v3 = vsub.f32 1.5, %v6666_v50  ;;  %v6786_v24 = vmul.f32 %v11791_v53, %v6767_v46  ;;  %v6759_v4 = vmul.f32 %v6662_v42, %v11635_v36  ;;  %v6801_v38 = vadd.f32 %v11831_v5, %v6782_v47 }
 0xff4   : > { %v6802_v44 = vadd.f32 %v11831_v5, %v6783_v0  ;;  %v6787_v40 = vmul.f32 %v11791_v53, %v6768_v10  ;;  %v6755_v28 = vmul.f32 %v6622_v21, %v11638_v41  ;;  %v6632_v17 = vsel %vm6631_vm15, %v11950_v30, %v6628_v35 }
 0xff5   : > { %v6668_v7 = vmul.f32 %v8220_v20, %v6667_v3  ;;  %vm6669_vm4 = vweird.f32 %v11896_v22  ;;  %v6805_v36 = vadd.f32 %v11831_v5, %v6786_v24  ;;  %v6756_v43 = vmul.f32 %v6632_v17, %v11648_v23 }
 0xff6   : > { %vm6671_vm1 = vmor %vm6669_vm4, %vm6670_vm3  ;;  %v6812_v54 = vpack.c.bf16 %v6802_v44, %v6801_v38  ;;  %v6806_v57 = vadd.f32 %v11831_v5, %v6787_v40  ;;  %v6774_v32 = vmul.f32 %v11791_v53, %v6755_v28  ;;  %v6778_v22 = vmul.f32 %v11791_v53, %v6759_v4 }
 0xff7   : > { %v6672_v58 = vsel %vm6671_vm1, %v8220_v20, %v6668_v7  ;;  %v6775_v41 = vmul.f32 %v11791_v53, %v6756_v43 }
 0xff8   : > { %6916 = vmatmul.bf16.gmra.mxu2 %v6812_v54  ;;  %v6814_v12 = vpack.c.bf16 %v6806_v57, %v6805_v36  ;;  %v6760_v31 = vmul.f32 %v6672_v58, %v11652_v39  ;;  %v6793_v30 = vadd.f32 %v11831_v5, %v6774_v32  ;;  %v6797_v23 = vadd.f32 %v11831_v5, %v6778_v22  ;;  %v8188_v39 = vld [vmem:[%s12370_s21] ss:$0 sm:$0xff] }
 0xff9   : > { %v6794_v6 = vadd.f32 %v11831_v5, %v6775_v41 }
 0xffa   : > { %6926 = vmatmul.bf16.gmra.mxu3 %v6814_v12  ;;  %v6779_v56 = vmul.f32 %v11791_v53, %v6760_v31 }
 0xffb   : > { %v6808_v59 = vpack.c.bf16 %v6794_v6, %v6793_v30 }
 0xffc   : > { %v6798_v29 = vadd.f32 %v11831_v5, %v6779_v56 }
 0xffe   : > { %v6810_v8 = vpack.c.bf16 %v6798_v29, %v6797_v23 }
0x1000   : > { %6896 = vmatmul.bf16.gmra.mxu0 %v6808_v59 }
0x1002   : > { %6906 = vmatmul.bf16.gmra.mxu1 %v6810_v8 }
0x1065   : > { %v6912_v45 = vpop.f32.mrf.mxu2 }
0x1066   : > { %v6913_v61 = vadd.f32 %v8188_v39, %v6912_v45 }
0x1068   : > { %6940 = vst [vmem:[#allocation11 + $0x40] sm:$0xff] %v6913_v61 }
0x106a   : > { %v6922_v26 = vpop.f32.mrf.mxu3 }
0x106b   : > { %v6923_v34 = vadd.f32 %v8188_v39, %v6922_v26 }
0x106d   : > { %v6892_v20 = vpop.f32.mrf.mxu0  ;;  %6944 = vst [vmem:[#allocation11 + $0x60] sm:$0xff] %v6923_v34  ;;  %v6914_v27 = vpop.f32.mrf.mxu2 }
0x106e   : > { %v6893_v53 = vadd.f32 %v8188_v39, %v6892_v20  ;;  %v6915_v62 = vadd.f32 %v8188_v39, %v6914_v27 }
0x106f   : > { %v6902_v48 = vpop.f32.mrf.mxu1 }
0x1070   : > { %6932 = vst [vmem:[#allocation11] sm:$0xff] %v6893_v53  ;;  %v6903_v5 = vadd.f32 %v8188_v39, %v6902_v48 }
0x1071   : > { %6941 = vst [vmem:[#allocation11 + $0x48] sm:$0xff] %v6915_v62 }
0x1072   : > { %v6924_v11 = vpop.f32.mrf.mxu3  ;;  %6936 = vst [vmem:[#allocation11 + $0x20] sm:$0xff] %v6903_v5 }
0x1073   : > { %v6925_v51 = vadd.f32 %v8188_v39, %v6924_v11 }
0x1075   : > { %v6894_v25 = vpop.f32.mrf.mxu0  ;;  %6945 = vst [vmem:[#allocation11 + $0x68] sm:$0xff] %v6925_v51 }
0x1076   : > { %v6895_v63 = vadd.f32 %v8188_v39, %v6894_v25 }
0x1077   : > { %v6904_v9 = vpop.f32.mrf.mxu1 }
0x1078   : > { %6933 = vst [vmem:[#allocation11 + $0x8] sm:$0xff] %v6895_v63  ;;  %v6905_v49 = vadd.f32 %v8188_v39, %v6904_v9 }
0x107a   : > { %6937 = vst [vmem:[#allocation11 + $0x28] sm:$0xff] %v6905_v49 }
0x107b   : > { %v6917_v42 = vpop.f32.mrf.mxu2 }
0x107c   : > { %v6918_v33 = vadd.f32 %v8188_v39, %v6917_v42 }
0x107d   : > { %v6927_v60 = vpop.f32.mrf.mxu3  ;;  %v6897_v55 = vpop.f32.mrf.mxu0 }
0x107e   : > { %6942 = vst [vmem:[#allocation11 + $0x50] sm:$0xff] %v6918_v33  ;;  %v6928_v2 = vadd.f32 %v8188_v39, %v6927_v60  ;;  %v6898_v15 = vadd.f32 %v8188_v39, %v6897_v55 }
0x107f   : > { %v6907_v13 = vpop.f32.mrf.mxu1 }
0x1080   : > { %6946 = vst [vmem:[#allocation11 + $0x70] sm:$0xff] %v6928_v2  ;;  %v6908_v1 = vadd.f32 %v8188_v39, %v6907_v13 }
0x1081   : > { %6934 = vst [vmem:[#allocation11 + $0x10] sm:$0xff] %v6898_v15 }
0x1082   : > { %6938 = vst [vmem:[#allocation11 + $0x30] sm:$0xff] %v6908_v1 }
0x1083   : > { %v6919_v52 = vpop.f32.mrf.mxu2 }
0x1084   : > { %v6920_v37 = vadd.f32 %v8188_v39, %v6919_v52 }
0x1085   : > { %v6929_v18 = vpop.f32.mrf.mxu3  ;;  %v6899_v19 = vpop.f32.mrf.mxu0 }
0x1086   : > { %6943 = vst [vmem:[#allocation11 + $0x58] sm:$0xff] %v6920_v37  ;;  %v6930_v16 = vadd.f32 %v8188_v39, %v6929_v18  ;;  %v6900_v14 = vadd.f32 %v8188_v39, %v6899_v19 }
0x1087   : > { %v6909_v50 = vpop.f32.mrf.mxu1 }
0x1088   : > { %6947 = vst [vmem:[#allocation11 + $0x78] sm:$0xff] %v6930_v16  ;;  %v6910_v47 = vadd.f32 %v8188_v39, %v6909_v50 }
0x1089   : > { %6935 = vst [vmem:[#allocation11 + $0x18] sm:$0xff] %v6900_v14 }
0x108a   : > { %6939 = vst [vmem:[#allocation11 + $0x38] sm:$0xff] %v6910_v47 }
0x108b PF: > { %p7792_p1 = scmp.eq.s32.totalorder %s8551_s24, 1  ;;  %s8429_s16 = smov [#allocation11]  }
0x108c   : > { %s6953_s22 = sshll.u32 %s8429_s16, 4  ;;  %s12371_s17 = sld [smem:[#allocation63_spill]]  ;;  %s6954_s22 = int_to_ptr.vmem [resolvable:$true] %s6953_s22 }
0x108d   : > { %s8430_s0 = smov 128   ;;  %s8431_s9 = smov 8  }
0x1092   : > { %s6955_s29 = sshll.u32 %s12371_s17, 4  ;;  %s6956_s29 = int_to_ptr.hbm [resolvable:$true] %s6955_s29 }
0x1093   : > { %7770 = dma.vmem_to_hbm [thread:$0]  (%p7792_p1), %s6954_s22, 2048, %s6956_s29, [#allocation5], %s8430_s0, %s8430_s0, %s8431_s9  }
0x1094   : > { %8398 = dma.done.wait (%p7792_p1), [#allocation5], 2048  }
0x1095   : > { %8400 = vsyncadd (%p7792_p1), [#allocation5], 4294965248 }
0x1096 PF: > { %s12372_s16 = sld [smem:[#allocation17_spill]]  ;;  %s12375_s13 = smov %s8407_s14 }
0x1097   : > { %s12373_s11 = sld [smem:[#allocation16_spill]] }
0x1098   : > { %s12374_s15 = sld [smem:[#allocation18_spill]] }
0x109c   : > { %p23_p4 = scmp.ge.s32.totalorder %s12372_s16, 4  }
0x109d   : > { %s12376_s14 = smov %s12373_s11 }
0x109e   :  { %25 = sbr.rel (!%p23_p4) target bundleno = 11 (0xb), region = 131 }
0x10a3   :  { %6972 = vsyncpa [#allocation4], 1 }
0x10a4   :  { %6974 = vsyncpa [#allocation4 + $0x1], 1 }
0x10a5   :  { %6975 = vsyncpa [#allocation7], 1 }
0x10a6   :  { %6977 = vsyncpa [#allocation7 + $0x1], 1 }
0x10a7   :  { %6978 = vsyncpa [#allocation10], 1 }
0x10a8   :  { %6979 = vsyncpa [#allocation5], 1 }
0x10a9   :  { %6981 = vsyncpa [#allocation5 + $0x1], 1 }

</bundles_post_ra>
